<compile_context>
chip_gen: v7x
topology: tpu7x:2x2x1
jax: 0.10.0
libtpu: 0.0.40
codegen_flags: <defaults>
</compile_context>

<pallas_src>
import functools

import jax
import jax.numpy as jnp
from jax.experimental import pallas as pl
from jax.experimental.pallas import tpu as pltpu


# ----------------------------- Pallas kernel ---------------------------------
def _backbone_head_kernel(x_ref, w1_ref, b1_ref, w2_ref, b2_ref, pool_ref,
                          out_ref, *, wp, cin_pad, m_rows):
    """Fused conv3x3 -> ReLU -> conv1x1 -> ReLU -> global-avg-pool -> flatten.

    x_ref    : (R, Cin_pad)       flattened, spatially padded NHWC rows (bf16)
    w1_ref   : (9*Cin_pad, CH)    3x3 conv weight, tap-major rows (bf16)
    b1_ref   : (1, CH)            f32
    w2_ref   : (CH, CF)           1x1 conv weight (bf16, zero-padded rows/cols)
    b2_ref   : (1, CF)            f32
    pool_ref : (NP, M)            masked average-pool matrix: 1/(H*W) on valid rows
    out_ref  : (NP, CF)           lane-dense pooled features (f32)
    """
    ch = w1_ref.shape[1]

    # conv3x3 as 9 statically shifted matmuls accumulated in f32
    # (im2col never materialized).
    acc = jnp.zeros((m_rows, ch), jnp.float32)
    for dy in range(3):
        for dx in range(3):
            off = dy * wp + dx                              # static row shift
            tap = dy * 3 + dx
            xs = x_ref[pl.ds(off, m_rows), :]               # (M, Cin_pad) bf16
            wt = w1_ref[pl.ds(tap * cin_pad, cin_pad), :]   # (Cin_pad, CH) bf16
            acc = acc + jnp.dot(xs, wt, preferred_element_type=jnp.float32)

    h = jnp.maximum(acc + b1_ref[...], 0.0)                 # (M, CH) f32

    # conv1x1 (channel matmul) + ReLU.
    f = jnp.dot(h.astype(jnp.bfloat16), w2_ref[...],
                preferred_element_type=jnp.float32)
    f = jnp.maximum(f + b2_ref[...], 0.0)                   # (M, CF) f32

    # AdaptiveAvgPool2d(1) + Flatten(1): masked mean done on the MXU; 1/(H*W)
    # folded into pool_ref (garbage pseudo-rows and batch padding get weight 0).
    out_ref[...] = jnp.dot(pool_ref[...], f, preferred_element_type=jnp.float32)


# ------------------------------ JAX wrapper -----------------------------------
def multi_head_base_model_forward(x_nchw, params):
    """Forward pass equivalent of MultiHeadBaseModel.forward.

    x_nchw : (N, Cin, H, W) float32  (PyTorch layout)
    returns: (N, Cfeat) float32      (pooled, flattened backbone features)
    """
    w1, b1, w2, b2 = params["w1"], params["b1"], params["w2"], params["b2"]
    cfeat = params["cfeat"]
    cin_pad = params["cin_pad"]
    N, Cin, H, W = x_nchw.shape
    CF = w2.shape[1]                      # lane-padded feature channels (128)
    Hp, Wp = H + 2, W + 2                 # spatial padding=1
    P = Hp * Wp
    M = N * P                             # pseudo-output rows (valid + masked)
    halo = 2 * Wp + 2                     # largest tap offset
    R = pl.cdiv(M + halo, 8) * 8          # sublane-padded input rows
    N_pad = max(8, pl.cdiv(N, 8) * 8)     # sublane-full output rows

    # NCHW -> NHWC (bf16, cast once here), pad channels to cin_pad, pad=1
    # spatially, flatten (n, h, w) -> rows.  This is the raw input (+halo),
    # NOT a 9x im2col blow-up; the kernel rebuilds the taps itself.
    x_nhwc = jnp.transpose(x_nchw, (0, 2, 3, 1)).astype(jnp.bfloat16)
    x_nhwc = jnp.pad(x_nhwc, ((0, 0), (0, 0), (0, 0), (0, cin_pad - Cin)))
    x_pad = jnp.pad(x_nhwc, ((0, 0), (1, 1), (1, 1), (0, 0)))   # (N,Hp,Wp,Cp)
    x_flat = jnp.pad(x_pad.reshape(N * P, cin_pad), ((0, R - N * P), (0, 0)))

    # Masked average-pool matrix: pool[n, o] = 1/(H*W) iff pseudo-row o is a valid
    # output pixel of batch n (so the divisor is the true H*W, never padded).
    o = jnp.arange(M)
    n_of_o = o // P
    rem = o % P
    valid = ((rem // Wp) < H) & ((rem % Wp) < W)
    pool = jnp.where(
        (jnp.arange(N_pad)[:, None] == n_of_o[None, :]) & valid[None, :],
        1.0 / (H * W), 0.0).astype(jnp.float32)                 # (N_pad, M)

    kernel = functools.partial(_backbone_head_kernel,
                               wp=Wp, cin_pad=cin_pad, m_rows=M)

    out = pl.pallas_call(
        kernel,
        out_shape=jax.ShapeDtypeStruct((N_pad, CF), jnp.float32),
        grid_spec=pltpu.PrefetchScalarGridSpec(
            num_scalar_prefetch=0,
            grid=(1,),                    # whole problem fits one lane-dense tile
            in_specs=[
                pl.BlockSpec((R, cin_pad), lambda i: (0, 0)),
                pl.BlockSpec(w1.shape, lambda i: (0, 0)),
                pl.BlockSpec(b1.shape, lambda i: (0, 0)),
                pl.BlockSpec(w2.shape, lambda i: (0, 0)),
                pl.BlockSpec(b2.shape, lambda i: (0, 0)),
                pl.BlockSpec((N_pad, M), lambda i: (0, 0)),
            ],
            out_specs=pl.BlockSpec((N_pad, CF), lambda i: (0, 0)),
        ),
        compiler_params=pltpu.CompilerParams(
            dimension_semantics=("arbitrary",)),
    )(x_flat, w1, b1, w2, b2, pool)

    return out[:N, :cfeat]


def init_params(key, cin=4, chid=32, cfeat=64, cin_pad=8, ch_pad=128, cf_pad=128):
    """Deterministic synthetic parameters.

    Channel dims padded ONCE at init (zero padding keeps the real output columns
    mathematically unchanged); matmul weights stored in bf16.
    """
    k1, k2, k3, k4 = jax.random.split(key, 4)
    w1 = jax.random.normal(k1, (9, cin, chid), jnp.float32) * 0.05
    b1 = jax.random.normal(k2, (chid,), jnp.float32) * 0.01
    w2 = jax.random.normal(k3, (chid, cfeat), jnp.float32) * 0.05
    b2 = jax.random.normal(k4, (cfeat,), jnp.float32) * 0.01

    w1_p = jnp.zeros((9, cin_pad, ch_pad), jnp.float32).at[:, :cin, :chid].set(w1)
    w1_p = w1_p.reshape(9 * cin_pad, ch_pad).astype(jnp.bfloat16)   # tap-major rows
    b1_p = jnp.zeros((1, ch_pad), jnp.float32).at[:, :chid].set(b1)
    w2_p = (jnp.zeros((ch_pad, cf_pad), jnp.float32)
            .at[:chid, :cfeat].set(w2).astype(jnp.bfloat16))
    b2_p = jnp.zeros((1, cf_pad), jnp.float32).at[:, :cfeat].set(b2)
    return {"w1": w1_p, "b1": b1_p, "w2": w2_p, "b2": b2_p,
            "cfeat": cfeat, "cin_pad": cin_pad}


def _reference_forward(x_nchw, params):
    """Pure-JAX f32 reference (im2col formulation) for correctness checking."""
    w1 = params["w1"].astype(jnp.float32)
    b1 = params["b1"].astype(jnp.float32)
    w2 = params["w2"].astype(jnp.float32)
    b2 = params["b2"].astype(jnp.float32)
    cfeat = params["cfeat"]
    cin_pad = params["cin_pad"]
    N, Cin, H, W = x_nchw.shape
    x = jnp.transpose(x_nchw, (0, 2, 3, 1)).astype(jnp.float32)
    x = jnp.pad(x, ((0, 0), (0, 0), (0, 0), (0, cin_pad - Cin)))
    xp = jnp.pad(x, ((0, 0), (1, 1), (1, 1), (0, 0)))
    cols = [xp[:, dy:dy + H, dx:dx + W, :] for dy in range(3) for dx in range(3)]
    patches = jnp.concatenate(cols, axis=-1).reshape(N, H * W, 9 * cin_pad)
    h = jnp.maximum(patches @ w1 + b1, 0.0)
    f = jnp.maximum(h @ w2 + b2, 0.0)
    return f.mean(axis=1)[:, :cfeat]


if __name__ == "__main__":
    key = jax.random.PRNGKey(0)
    kx, kp = jax.random.split(key)

    N, Cin, H, W = 2, 4, 16, 16
    x = jax.random.normal(kx, (N, Cin, H, W), jnp.float32)            # NCHW input
    params = init_params(kp, cin=Cin, chid=32, cfeat=64)

    out = multi_head_base_model_forward(x, params)
    out = jax.block_until_ready(out)

    ref = jax.block_until_ready(_reference_forward(x, params))

    assert out.shape == (N, 64), out.shape
    assert out.dtype == jnp.float32
    max_err = float(jnp.max(jnp.abs(out - ref)))
    assert bool(jnp.allclose(out, ref, rtol=2e-2, atol=5e-3)), (
        "max abs err = %f" % max_err)
    print("KERNEL_OK")
</pallas_src>

<mosaic_0001>
module attributes {stable_mosaic.version = 11 : i64} {
  func.func @_backbone_head_kernel(%arg0: i32, %arg1: memref<688x8xbf16, #tpu.memory_space<vmem>>, %arg2: memref<72x128xbf16, #tpu.memory_space<vmem>>, %arg3: memref<1x128xf32, #tpu.memory_space<vmem>>, %arg4: memref<128x128xbf16, #tpu.memory_space<vmem>>, %arg5: memref<1x128xf32, #tpu.memory_space<vmem>>, %arg6: memref<8x648xf32, #tpu.memory_space<vmem>>, %arg7: memref<8x128xf32, #tpu.memory_space<vmem>>) attributes {dimension_semantics = [#tpu.dimension_semantics<arbitrary>], iteration_bounds = array<i64: 1>, scalar_prefetch = 0 : i64, scratch_operands = 0 : i64, tpu.core_type = #tpu.core_type<tc>, window_params = [{pipeline_mode = #tpu.pipeline_mode<synchronous>, transform_indices = @transform_0, window_bounds = array<i64: 688, 8>}, {pipeline_mode = #tpu.pipeline_mode<synchronous>, transform_indices = @transform_1, window_bounds = array<i64: 72, 128>}, {pipeline_mode = #tpu.pipeline_mode<synchronous>, transform_indices = @transform_2, window_bounds = array<i64: 1, 128>}, {pipeline_mode = #tpu.pipeline_mode<synchronous>, transform_indices = @transform_3, window_bounds = array<i64: 128, 128>}, {pipeline_mode = #tpu.pipeline_mode<synchronous>, transform_indices = @transform_4, window_bounds = array<i64: 1, 128>}, {pipeline_mode = #tpu.pipeline_mode<synchronous>, transform_indices = @transform_5, window_bounds = array<i64: 8, 648>}, {pipeline_mode = #tpu.pipeline_mode<synchronous>, transform_indices = @transform_6, window_bounds = array<i64: 8, 128>}]} {
    %cst = arith.constant 0.000000e+00 : f32
    %0 = vector.broadcast %cst : f32 to vector<648x128xf32>
    %c0 = arith.constant 0 : index
    %c0_0 = arith.constant 0 : index
    %1 = vector.load %arg1[%c0, %c0_0] : memref<688x8xbf16, #tpu.memory_space<vmem>>, vector<648x8xbf16>
    %c0_1 = arith.constant 0 : index
    %c0_2 = arith.constant 0 : index
    %2 = vector.load %arg2[%c0_1, %c0_2] : memref<72x128xbf16, #tpu.memory_space<vmem>>, vector<8x128xbf16>
    %cst_3 = arith.constant dense<0.000000e+00> : vector<648x128xf32>
    %3 = tpu.matmul %1, %2, %cst_3 {dimension_numbers = #tpu.dot_dimension_numbers<[1], [0], [0], [1], [0, 0, 1, 1], [], []>} : vector<648x8xbf16>, vector<8x128xbf16>, vector<648x128xf32> -> vector<648x128xf32>
    %4 = arith.addf %0, %3 : vector<648x128xf32>
    %c1 = arith.constant 1 : index
    %c0_4 = arith.constant 0 : index
    %5 = vector.load %arg1[%c1, %c0_4] : memref<688x8xbf16, #tpu.memory_space<vmem>>, vector<648x8xbf16>
    %c8 = arith.constant 8 : index
    %c0_5 = arith.constant 0 : index
    %6 = vector.load %arg2[%c8, %c0_5] : memref<72x128xbf16, #tpu.memory_space<vmem>>, vector<8x128xbf16>
    %cst_6 = arith.constant dense<0.000000e+00> : vector<648x128xf32>
    %7 = tpu.matmul %5, %6, %cst_6 {dimension_numbers = #tpu.dot_dimension_numbers<[1], [0], [0], [1], [0, 0, 1, 1], [], []>} : vector<648x8xbf16>, vector<8x128xbf16>, vector<648x128xf32> -> vector<648x128xf32>
    %8 = arith.addf %4, %7 : vector<648x128xf32>
    %c2 = arith.constant 2 : index
    %c0_7 = arith.constant 0 : index
    %9 = vector.load %arg1[%c2, %c0_7] : memref<688x8xbf16, #tpu.memory_space<vmem>>, vector<648x8xbf16>
    %c16 = arith.constant 16 : index
    %c0_8 = arith.constant 0 : index
    %10 = vector.load %arg2[%c16, %c0_8] : memref<72x128xbf16, #tpu.memory_space<vmem>>, vector<8x128xbf16>
    %cst_9 = arith.constant dense<0.000000e+00> : vector<648x128xf32>
    %11 = tpu.matmul %9, %10, %cst_9 {dimension_numbers = #tpu.dot_dimension_numbers<[1], [0], [0], [1], [0, 0, 1, 1], [], []>} : vector<648x8xbf16>, vector<8x128xbf16>, vector<648x128xf32> -> vector<648x128xf32>
    %12 = arith.addf %8, %11 : vector<648x128xf32>
    %c18 = arith.constant 18 : index
    %c0_10 = arith.constant 0 : index
    %13 = vector.load %arg1[%c18, %c0_10] : memref<688x8xbf16, #tpu.memory_space<vmem>>, vector<648x8xbf16>
    %c24 = arith.constant 24 : index
    %c0_11 = arith.constant 0 : index
    %14 = vector.load %arg2[%c24, %c0_11] : memref<72x128xbf16, #tpu.memory_space<vmem>>, vector<8x128xbf16>
    %cst_12 = arith.constant dense<0.000000e+00> : vector<648x128xf32>
    %15 = tpu.matmul %13, %14, %cst_12 {dimension_numbers = #tpu.dot_dimension_numbers<[1], [0], [0], [1], [0, 0, 1, 1], [], []>} : vector<648x8xbf16>, vector<8x128xbf16>, vector<648x128xf32> -> vector<648x128xf32>
    %16 = arith.addf %12, %15 : vector<648x128xf32>
    %c19 = arith.constant 19 : index
    %c0_13 = arith.constant 0 : index
    %17 = vector.load %arg1[%c19, %c0_13] : memref<688x8xbf16, #tpu.memory_space<vmem>>, vector<648x8xbf16>
    %c32 = arith.constant 32 : index
    %c0_14 = arith.constant 0 : index
    %18 = vector.load %arg2[%c32, %c0_14] : memref<72x128xbf16, #tpu.memory_space<vmem>>, vector<8x128xbf16>
    %cst_15 = arith.constant dense<0.000000e+00> : vector<648x128xf32>
    %19 = tpu.matmul %17, %18, %cst_15 {dimension_numbers = #tpu.dot_dimension_numbers<[1], [0], [0], [1], [0, 0, 1, 1], [], []>} : vector<648x8xbf16>, vector<8x128xbf16>, vector<648x128xf32> -> vector<648x128xf32>
    %20 = arith.addf %16, %19 : vector<648x128xf32>
    %c20 = arith.constant 20 : index
    %c0_16 = arith.constant 0 : index
    %21 = vector.load %arg1[%c20, %c0_16] : memref<688x8xbf16, #tpu.memory_space<vmem>>, vector<648x8xbf16>
    %c40 = arith.constant 40 : index
    %c0_17 = arith.constant 0 : index
    %22 = vector.load %arg2[%c40, %c0_17] : memref<72x128xbf16, #tpu.memory_space<vmem>>, vector<8x128xbf16>
    %cst_18 = arith.constant dense<0.000000e+00> : vector<648x128xf32>
    %23 = tpu.matmul %21, %22, %cst_18 {dimension_numbers = #tpu.dot_dimension_numbers<[1], [0], [0], [1], [0, 0, 1, 1], [], []>} : vector<648x8xbf16>, vector<8x128xbf16>, vector<648x128xf32> -> vector<648x128xf32>
    %24 = arith.addf %20, %23 : vector<648x128xf32>
    %c36 = arith.constant 36 : index
    %c0_19 = arith.constant 0 : index
    %25 = vector.load %arg1[%c36, %c0_19] : memref<688x8xbf16, #tpu.memory_space<vmem>>, vector<648x8xbf16>
    %c48 = arith.constant 48 : index
    %c0_20 = arith.constant 0 : index
    %26 = vector.load %arg2[%c48, %c0_20] : memref<72x128xbf16, #tpu.memory_space<vmem>>, vector<8x128xbf16>
    %cst_21 = arith.constant dense<0.000000e+00> : vector<648x128xf32>
    %27 = tpu.matmul %25, %26, %cst_21 {dimension_numbers = #tpu.dot_dimension_numbers<[1], [0], [0], [1], [0, 0, 1, 1], [], []>} : vector<648x8xbf16>, vector<8x128xbf16>, vector<648x128xf32> -> vector<648x128xf32>
    %28 = arith.addf %24, %27 : vector<648x128xf32>
    %c37 = arith.constant 37 : index
    %c0_22 = arith.constant 0 : index
    %29 = vector.load %arg1[%c37, %c0_22] : memref<688x8xbf16, #tpu.memory_space<vmem>>, vector<648x8xbf16>
    %c56 = arith.constant 56 : index
    %c0_23 = arith.constant 0 : index
    %30 = vector.load %arg2[%c56, %c0_23] : memref<72x128xbf16, #tpu.memory_space<vmem>>, vector<8x128xbf16>
    %cst_24 = arith.constant dense<0.000000e+00> : vector<648x128xf32>
    %31 = tpu.matmul %29, %30, %cst_24 {dimension_numbers = #tpu.dot_dimension_numbers<[1], [0], [0], [1], [0, 0, 1, 1], [], []>} : vector<648x8xbf16>, vector<8x128xbf16>, vector<648x128xf32> -> vector<648x128xf32>
    %32 = arith.addf %28, %31 : vector<648x128xf32>
    %c38 = arith.constant 38 : index
    %c0_25 = arith.constant 0 : index
    %33 = vector.load %arg1[%c38, %c0_25] : memref<688x8xbf16, #tpu.memory_space<vmem>>, vector<648x8xbf16>
    %c64 = arith.constant 64 : index
    %c0_26 = arith.constant 0 : index
    %34 = vector.load %arg2[%c64, %c0_26] : memref<72x128xbf16, #tpu.memory_space<vmem>>, vector<8x128xbf16>
    %cst_27 = arith.constant dense<0.000000e+00> : vector<648x128xf32>
    %35 = tpu.matmul %33, %34, %cst_27 {dimension_numbers = #tpu.dot_dimension_numbers<[1], [0], [0], [1], [0, 0, 1, 1], [], []>} : vector<648x8xbf16>, vector<8x128xbf16>, vector<648x128xf32> -> vector<648x128xf32>
    %36 = arith.addf %32, %35 : vector<648x128xf32>
    %c0_28 = arith.constant 0 : index
    %c0_29 = arith.constant 0 : index
    %37 = vector.load %arg3[%c0_28, %c0_29] : memref<1x128xf32, #tpu.memory_space<vmem>>, vector<1x128xf32>
    %38 = vector.broadcast %37 : vector<1x128xf32> to vector<648x128xf32>
    %39 = arith.addf %36, %38 : vector<648x128xf32>
    %cst_30 = arith.constant 0.000000e+00 : f32
    %40 = vector.broadcast %cst_30 : f32 to vector<648x128xf32>
    %41 = arith.maximumf %39, %40 : vector<648x128xf32>
    %42 = arith.truncf %41 : vector<648x128xf32> to vector<648x128xbf16>
    %c0_31 = arith.constant 0 : index
    %c0_32 = arith.constant 0 : index
    %43 = vector.load %arg4[%c0_31, %c0_32] : memref<128x128xbf16, #tpu.memory_space<vmem>>, vector<128x128xbf16>
    %cst_33 = arith.constant dense<0.000000e+00> : vector<648x128xf32>
    %44 = tpu.matmul %42, %43, %cst_33 {dimension_numbers = #tpu.dot_dimension_numbers<[1], [0], [0], [1], [0, 0, 1, 1], [], []>} : vector<648x128xbf16>, vector<128x128xbf16>, vector<648x128xf32> -> vector<648x128xf32>
    %c0_34 = arith.constant 0 : index
    %c0_35 = arith.constant 0 : index
    %45 = vector.load %arg5[%c0_34, %c0_35] : memref<1x128xf32, #tpu.memory_space<vmem>>, vector<1x128xf32>
    %46 = vector.broadcast %45 : vector<1x128xf32> to vector<648x128xf32>
    %47 = arith.addf %44, %46 : vector<648x128xf32>
    %cst_36 = arith.constant 0.000000e+00 : f32
    %48 = vector.broadcast %cst_36 : f32 to vector<648x128xf32>
    %49 = arith.maximumf %47, %48 : vector<648x128xf32>
    %c0_37 = arith.constant 0 : index
    %c0_38 = arith.constant 0 : index
    %50 = vector.load %arg6[%c0_37, %c0_38] : memref<8x648xf32, #tpu.memory_space<vmem>>, vector<8x648xf32>
    %cst_39 = arith.constant dense<0.000000e+00> : vector<8x128xf32>
    %51 = tpu.matmul %50, %49, %cst_39 {dimension_numbers = #tpu.dot_dimension_numbers<[1], [0], [0], [1], [0, 0, 1, 1], [], []>} : vector<8x648xf32>, vector<648x128xf32>, vector<8x128xf32> -> vector<8x128xf32>
    %c0_40 = arith.constant 0 : index
    %c0_41 = arith.constant 0 : index
    %52 = vector.load %arg7[%c0_40, %c0_41] : memref<8x128xf32, #tpu.memory_space<vmem>>, vector<8x128xf32>
    tpu.vector_store %arg7[%c0_40, %c0_41], %51 {strides = array<i32>} : memref<8x128xf32, #tpu.memory_space<vmem>>, vector<8x128xf32>,
    return
  }
  func.func @transform_0(%arg0: i32) -> (i32, i32) {
    %c0_i32 = arith.constant 0 : i32
    %c0_i32_0 = arith.constant 0 : i32
    %c0_i32_1 = arith.constant 0 : i32
    return %c0_i32, %c0_i32_0 : i32, i32
  }
  func.func @transform_1(%arg0: i32) -> (i32, i32) {
    %c0_i32 = arith.constant 0 : i32
    %c0_i32_0 = arith.constant 0 : i32
    %c0_i32_1 = arith.constant 0 : i32
    return %c0_i32, %c0_i32_0 : i32, i32
  }
  func.func @transform_2(%arg0: i32) -> (i32, i32) {
    %c0_i32 = arith.constant 0 : i32
    %c0_i32_0 = arith.constant 0 : i32
    %c0_i32_1 = arith.constant 0 : i32
    return %c0_i32, %c0_i32_0 : i32, i32
  }
  func.func @transform_3(%arg0: i32) -> (i32, i32) {
    %c0_i32 = arith.constant 0 : i32
    %c0_i32_0 = arith.constant 0 : i32
    %c0_i32_1 = arith.constant 0 : i32
    return %c0_i32, %c0_i32_0 : i32, i32
  }
  func.func @transform_4(%arg0: i32) -> (i32, i32) {
    %c0_i32 = arith.constant 0 : i32
    %c0_i32_0 = arith.constant 0 : i32
    %c0_i32_1 = arith.constant 0 : i32
    return %c0_i32, %c0_i32_0 : i32, i32
  }
  func.func @transform_5(%arg0: i32) -> (i32, i32) {
    %c0_i32 = arith.constant 0 : i32
    %c0_i32_0 = arith.constant 0 : i32
    %c0_i32_1 = arith.constant 0 : i32
    return %c0_i32, %c0_i32_0 : i32, i32
  }
  func.func @transform_6(%arg0: i32) -> (i32, i32) {
    %c0_i32 = arith.constant 0 : i32
    %c0_i32_0 = arith.constant 0 : i32
    %c0_i32_1 = arith.constant 0 : i32
    return %c0_i32, %c0_i32_0 : i32, i32
  }
}

</mosaic_0001>

<bundles_post_ra>
// kernel: tpu_custom_call.1
= control target key start
LH: loop header
LB: loop body
LE: loop exit
PB: predicated region body
PF: predicated region fallthrough
CT: control target
= control target key end

     0   :  { %vm766_vm0 = vcmask 1043456   ;;  %v16191_v2 = vmov 0.0   ;;  %vm11310_vm1 = vmmov 0   ;;  %vm314_vm2 = vsmask.f32 7424  ;;  %s16184_s0 = inlined_call_operand.vmem [shape: bf16[688,8], index: 0, kind: input, shape index: {}]   ;;  %s16185_s1 = inlined_call_operand.vmem [shape: bf16[72,128], index: 1, kind: input, shape index: {}]   ;;  %s16186_s2 = inlined_call_operand.vmem [shape: f32[1,128], index: 2, kind: input, shape index: {}]   ;;  %s16187_s3 = inlined_call_operand.vmem [shape: bf16[128,128], index: 3, kind: input, shape index: {}]   ;;  %s16188_s4 = inlined_call_operand.vmem [shape: f32[1,128], index: 4, kind: input, shape index: {}]   ;;  %s16189_s5 = inlined_call_operand.vmem [shape: f32[8,648], index: 5, kind: input, shape index: {}]   ;;  %s16190_s6 = inlined_call_operand.hbm [shape: f32[8,128], index: 6, kind: output, shape index: {}]  }
   0x1   :  { %v108_v0 = vld [vmem:[%s16185_s1 + $0x4] sm:$0xf]  ;;  %v11354_v1 = vld [vmem:[%s16184_s0 + $0x8] sm:$0xff]   ;;  %9255 = vmatprep.subr.bf16.mxu0 %v16191_v2  ;;  %11017 = vmatprep.subr.bf16.mxu1 %v16191_v2  ;;  %v25_v4 = vld [vmem:[%s16184_s0] sm:$0xf]  ;;  %vm642_vm3 = vcmask 64512  }
   0x2   :  { %v768_v3 = vsel %vm766_vm0, %v108_v0, 0  ;;  %v26_v5 = vld [vmem:[%s16184_s0 + $0x4] sm:$0xf]  ;;  %9257 = vmatprep.mubr.msk.bf16.mxu0 %vm11310_vm1, %v16191_v2  ;;  %9413 = vmatprep.mubr.msk.bf16.mxu1 %vm11310_vm1, %v16191_v2  ;;  %v323_v7 = vshll.u32 %v11354_v1, 16  ;;  %v11025_v8 = vld [vmem:[%s16184_s0 + $0x138] sm:$0xff]   ;;  %v11386_v16 = vld [vmem:[%s16184_s0 + $0x10] sm:$0xff]  }
   0x3   :  { %9256 = vmatpush3.bf16.msra.mxu0 %v768_v3  ;;  %11018 = vmatpush3.bf16.msra.mxu1 %v768_v3  ;;  %v8249_v6 = vcombine.low %v25_v4, %v26_v5  ;;  %v105_v11 = vld [vmem:[%s16184_s0 + $0x140] sm:$0xf]  ;;  %v107_v12 = vld [vmem:[%s16184_s0 + $0x144] sm:$0x1]  ;;  %v627_v14 = vshll.u32 %v11025_v8, 16  ;;  %v631_v15 = vshrl.u32 %v11025_v8, 16 }
   0x4   :  { %9421 = vmatprep.subr.bf16.mxu1 %v16191_v2  ;;  %9587 = vmatprep.subr.bf16.mxu0 %v16191_v2  ;;  %v11381_v13 = vcombine.low %v105_v11, %v107_v12  ;;  %v325_v18 = vrot.slane %v323_v7, 1  ;;  %v106_v21 = vld [vmem:[%s16185_s1] sm:$0xf]  ;;  %v327_v23 = vshrl.u32 %v11354_v1, 16  ;;  %v331_v24 = vshll.u32 %v11386_v16, 16  ;;  %v11028_v33 = vld [vmem:[%s16184_s0 + $0x18] sm:$0xff]  }
   0x5   :  { %v316_v9 = vshrl.u32 %v8249_v6, 16  ;;  %v318_v10 = vshll.u32 %v8249_v6, 16  ;;  %v11388_v19 = vrot.slane %v627_v14, 1  ;;  %v1215_v28 = vsel %vm766_vm0, %v106_v21, 0  ;;  %v11029_v40 = vld [vmem:[%s16184_s0 + $0x20] sm:$0xff]   ;;  %v11030_v44 = vld [vmem:[%s16184_s0 + $0x28] sm:$0xff]  }
   0x6   :  { %v635_v20 = vshll.u32 %v11381_v13, 16  ;;  %v329_v30 = vor.u32 %v327_v23, %v325_v18  ;;  %v333_v31 = vrot.slane %v331_v24, 1  ;;  %v639_v32 = vshrl.u32 %v11381_v13, 16  ;;  %v11031_v50 = vld [vmem:[%s16184_s0 + $0x30] sm:$0xff]   ;;  %v11032_v57 = vld [vmem:[%s16184_s0 + $0x38] sm:$0xff]   ;;  %v11033_v63 = vld [vmem:[%s16184_s0 + $0x40] sm:$0xff]  }
   0x7   :  { %v320_v17 = vrot.slane %v318_v10, 1  ;;  %v633_v25 = vor.u32 %v631_v15, %v11388_v19  ;;  %v335_v36 = vshrl.u32 %v11386_v16, 16  ;;  %v339_v37 = vshll.u32 %v11028_v33, 16  ;;  %v11035_v12 = vld [vmem:[%s16184_s0 + $0x50] sm:$0xff]  }
   0x8   :  { %v637_v26 = vrot.slane %v635_v20, 1  ;;  %v334_v34 = vsel %vm314_vm2, %v329_v30, %v333_v31  ;;  %v343_v42 = vshrl.u32 %v11028_v33, 16  ;;  %v347_v43 = vshll.u32 %v11029_v40, 16  ;;  %v11036_v20 = vld [vmem:[%s16184_s0 + $0x58] sm:$0xff]  }
   0x9   :  { %v321_v22 = vor.u32 %v320_v17, %v316_v9  ;;  %v337_v38 = vor.u32 %v335_v36, %v333_v31  ;;  %v341_v39 = vrot.slane %v339_v37, 1  ;;  %v355_v47 = vshll.u32 %v11030_v44, 16 }
   0xa   :  { %v638_v29 = vsel %vm314_vm2, %v633_v25, %v637_v26  ;;  %v641_v35 = vor.u32 %v639_v32, %v637_v26  ;;  %v349_v46 = vrot.slane %v347_v43, 1  ;;  %v351_v49 = vshrl.u32 %v11029_v40, 16  ;;  %v11037_v26 = vld [vmem:[%s16184_s0 + $0x60] sm:$0xff]   ;;  %v11038_v32 = vld [vmem:[%s16184_s0 + $0x68] sm:$0xff]  }
   0xb   :  { %v326_v27 = vsel %vm314_vm2, %v321_v22, %v325_v18  ;;  %9414 = vmatmul.mubr.msk.bf16.vlgmr.msra.gmra.mrb[0].mxu1 %vm642_vm3, %v638_v29  ;;  %v342_v41 = vsel %vm314_vm2, %v337_v38, %v341_v39  ;;  %v345_v45 = vor.u32 %v343_v42, %v341_v39  ;;  %v357_v51 = vrot.slane %v355_v47, 1 }
   0xc   :  { %9258 = vmatmul.mubr.msk.bf16.vlgmr.msra.gmra.mrb[0].mxu0 %vm642_vm3, %v326_v27  ;;  %9417 = vmatprep.mubr.msk.bf16.mxu1 %vm11310_vm1, %v16191_v2  ;;  %v353_v52 = vor.u32 %v351_v49, %v349_v46  ;;  %v363_v53 = vshll.u32 %v11031_v50, 16  ;;  %v359_v54 = vshrl.u32 %v11030_v44, 16  ;;  %v371_v59 = vshll.u32 %v11032_v57, 16 }
   0xd   :  { %9261 = vmatprep.mubr.msk.bf16.mxu0 %vm11310_vm1, %v16191_v2  ;;  %9422 = vmatpush3.bf16.msra.mxu1 %v1215_v28  ;;  %v350_v48 = vsel %vm314_vm2, %v345_v45, %v349_v46  ;;  %v367_v60 = vshrl.u32 %v11031_v50, 16  ;;  %v375_v3 = vshrl.u32 %v11032_v57, 16  ;;  %v383_v9 = vshrl.u32 %v11033_v63, 16  ;;  %v11040_v46 = vld [vmem:[%s16184_s0 + $0x78] sm:$0xff]  }
   0xe   :  { %9753 = vmatprep.subr.bf16.mxu1 %v16191_v2  ;;  %v358_v55 = vsel %vm314_vm2, %v353_v52, %v357_v51  ;;  %v365_v56 = vrot.slane %v363_v53, 1  ;;  %v361_v58 = vor.u32 %v359_v54, %v357_v51  ;;  %v373_v62 = vrot.slane %v371_v59, 1 }
   0xf   :  { %v395_v15 = vshll.u32 %v11035_v12, 16  ;;  %v403_v22 = vshll.u32 %v11036_v20, 16  ;;  %v399_v23 = vshrl.u32 %v11035_v12, 16  ;;  %v411_v28 = vshll.u32 %v11037_v26, 16 }
  0x10   :  { %v366_v61 = vsel %vm314_vm2, %v361_v58, %v365_v56  ;;  %v369_v0 = vor.u32 %v367_v60, %v365_v56  ;;  %v377_v7 = vor.u32 %v375_v3, %v373_v62  ;;  %v407_v29 = vshrl.u32 %v11036_v20, 16 }
  0x11   :  { %v397_v18 = vrot.slane %v395_v15, 1  ;;  %v405_v25 = vrot.slane %v403_v22, 1  ;;  %v413_v31 = vrot.slane %v411_v28, 1  ;;  %v419_v36 = vshll.u32 %v11038_v32, 16 }
  0x12   :  { %v374_v4 = vsel %vm314_vm2, %v369_v0, %v373_v62  ;;  %v415_v38 = vshrl.u32 %v11037_v26, 16 }
  0x13   :  { %9418 = vmatmul.mubr.msk.bf16.gmra.mrb[4].mxu1 %vm642_vm3, %v641_v35  ;;  %v401_v27 = vor.u32 %v399_v23, %v397_v18  ;;  %v421_v39 = vrot.slane %v419_v36, 1 }
  0x14   :  { %9262 = vmatmul.mubr.msk.bf16.gmra.mrb[4].mxu0 %vm642_vm3, %v334_v34  ;;  %9423 = vmatprep.mubr.msk.bf16.mxu1 %vm11310_vm1, %v16191_v2  ;;  %v1578_v34 = vld [vmem:[%s16185_s1 + $0x8] sm:$0xf] }
  0x15   :  { %9265 = vmatprep.mubr.msk.bf16.mxu0 %vm11310_vm1, %v16191_v2  ;;  %v406_v30 = vsel %vm314_vm2, %v401_v27, %v405_v25  ;;  %v1788_v35 = vsel %vm766_vm0, %v1578_v34, 0 }
  0x16   :  { %9588 = vmatpush3.bf16.msra.mxu0 %v1788_v35 }
  0x17   :  { %9919 = vmatprep.subr.bf16.mxu0 %v16191_v2 }
  0x1b   :  { %9424 = vmatmul.mubr.msk.bf16.vlgmr.msra.gmra.mrb[8].mxu1 %vm642_vm3, %v8249_v6  ;;  %v11034_v6 = vld [vmem:[%s16184_s0 + $0x48] sm:$0xff]  }
  0x1c   :  { %9266 = vmatmul.mubr.msk.bf16.gmra.mrb[8].mxu0 %vm642_vm3, %v342_v41  ;;  %9427 = vmatprep.mubr.msk.bf16.mxu1 %vm11310_vm1, %v16191_v2  ;;  %v387_v8 = vshll.u32 %v11034_v6, 16  ;;  %v417_v41 = vor.u32 %v415_v38, %v413_v31 }
  0x1d   :  { %9269 = vmatprep.mubr.msk.bf16.mxu0 %vm11310_vm1, %v16191_v2 }
  0x1e   :  { %v389_v11 = vrot.slane %v387_v8, 1  ;;  %v422_v43 = vsel %vm314_vm2, %v417_v41, %v421_v39 }
  0x23   :  { %9428 = vmatmul.mubr.msk.bf16.gmra.mrb[12].mxu1 %vm642_vm3, %v11354_v1  ;;  %v379_v1 = vshll.u32 %v11033_v63, 16 }
  0x24   :  { %9270 = vmatmul.mubr.msk.bf16.gmra.mrb[12].mxu0 %vm642_vm3, %v350_v48  ;;  %9431 = vmatprep.mubr.msk.bf16.mxu1 %vm11310_vm1, %v16191_v2 }
  0x25   :  { %9273 = vmatprep.mubr.msk.bf16.mxu0 %vm11310_vm1, %v16191_v2  ;;  %v381_v5 = vrot.slane %v379_v1, 1 }
  0x27   :  { %v382_v10 = vsel %vm314_vm2, %v377_v7, %v381_v5  ;;  %v385_v14 = vor.u32 %v383_v9, %v381_v5 }
  0x29   :  { %v390_v17 = vsel %vm314_vm2, %v385_v14, %v389_v11 }
  0x2b   :  { %9432 = vmatmul.mubr.msk.bf16.gmra.mrb[16].mxu1 %vm642_vm3, %v11386_v16  ;;  %v391_v16 = vshrl.u32 %v11034_v6, 16 }
  0x2c   :  { %9274 = vmatmul.mubr.msk.bf16.gmra.mrb[16].mxu0 %vm642_vm3, %v358_v55  ;;  %9435 = vmatprep.mubr.msk.bf16.mxu1 %vm11310_vm1, %v16191_v2 }
  0x2d   :  { %9277 = vmatprep.mubr.msk.bf16.mxu0 %vm11310_vm1, %v16191_v2  ;;  %v393_v21 = vor.u32 %v391_v16, %v389_v11 }
  0x2f   :  { %v398_v24 = vsel %vm314_vm2, %v393_v21, %v397_v18 }
  0x33   :  { %9436 = vmatmul.mubr.msk.bf16.gmra.mrb[20].mxu1 %vm642_vm3, %v11028_v33  ;;  %v409_v33 = vor.u32 %v407_v29, %v405_v25 }
  0x34   :  { %9278 = vmatmul.mubr.msk.bf16.gmra.mrb[20].mxu0 %vm642_vm3, %v366_v61  ;;  %9439 = vmatprep.mubr.msk.bf16.mxu1 %vm11310_vm1, %v16191_v2 }
  0x35   :  { %9281 = vmatprep.mubr.msk.bf16.mxu0 %vm11310_vm1, %v16191_v2  ;;  %v414_v37 = vsel %vm314_vm2, %v409_v33, %v413_v31 }
  0x3b   :  { %9440 = vmatmul.mubr.msk.bf16.gmra.mrb[24].mxu1 %vm642_vm3, %v11029_v40  ;;  %v11039_v40 = vld [vmem:[%s16184_s0 + $0x70] sm:$0xff]  }
  0x3c   :  { %9282 = vmatmul.mubr.msk.bf16.gmra.mrb[24].mxu0 %vm642_vm3, %v374_v4  ;;  %9443 = vmatprep.mubr.msk.bf16.mxu1 %vm11310_vm1, %v16191_v2  ;;  %v427_v42 = vshll.u32 %v11039_v40, 16  ;;  %v431_v49 = vshrl.u32 %v11039_v40, 16 }
  0x3d   :  { %9285 = vmatprep.mubr.msk.bf16.mxu0 %vm11310_vm1, %v16191_v2 }
  0x3e   :  { %v429_v45 = vrot.slane %v427_v42, 1 }
  0x43   :  { %9444 = vmatmul.mubr.msk.bf16.gmra.mrb[28].mxu1 %vm642_vm3, %v11030_v44  ;;  %v423_v44 = vshrl.u32 %v11038_v32, 16 }
  0x44   :  { %9286 = vmatmul.mubr.msk.bf16.gmra.mrb[28].mxu0 %vm642_vm3, %v382_v10  ;;  %9447 = vmatprep.mubr.msk.bf16.mxu1 %vm11310_vm1, %v16191_v2 }
  0x45   :  { %9289 = vmatprep.mubr.msk.bf16.mxu0 %vm11310_vm1, %v16191_v2  ;;  %v425_v47 = vor.u32 %v423_v44, %v421_v39 }
  0x47   :  { %v430_v48 = vsel %vm314_vm2, %v425_v47, %v429_v45 }
  0x4b   :  { %9448 = vmatmul.mubr.msk.bf16.gmra.mrb[32].mxu1 %vm642_vm3, %v11031_v50  ;;  %v435_v50 = vshll.u32 %v11040_v46, 16 }
  0x4c   :  { %9290 = vmatmul.mubr.msk.bf16.gmra.mrb[32].mxu0 %vm642_vm3, %v390_v17  ;;  %9451 = vmatprep.mubr.msk.bf16.mxu1 %vm11310_vm1, %v16191_v2 }
  0x4d   :  { %9293 = vmatprep.mubr.msk.bf16.mxu0 %vm11310_vm1, %v16191_v2 }
  0x53   :  { %9452 = vmatmul.mubr.msk.bf16.gmra.mrb[36].mxu1 %vm642_vm3, %v11032_v57 }
  0x54   :  { %9294 = vmatmul.mubr.msk.bf16.gmra.mrb[36].mxu0 %vm642_vm3, %v398_v24  ;;  %9455 = vmatprep.mubr.msk.bf16.mxu1 %vm11310_vm1, %v16191_v2 }
  0x55   :  { %9297 = vmatprep.mubr.msk.bf16.mxu0 %vm11310_vm1, %v16191_v2 }
  0x5b   :  { %9456 = vmatmul.mubr.msk.bf16.gmra.mrb[40].mxu1 %vm642_vm3, %v11033_v63 }
  0x5c   :  { %9298 = vmatmul.mubr.msk.bf16.gmra.mrb[40].mxu0 %vm642_vm3, %v406_v30  ;;  %9459 = vmatprep.mubr.msk.bf16.mxu1 %vm11310_vm1, %v16191_v2 }
  0x5d   :  { %9301 = vmatprep.mubr.msk.bf16.mxu0 %vm11310_vm1, %v16191_v2 }
  0x63   :  { %9460 = vmatmul.mubr.msk.bf16.gmra.mrb[44].mxu1 %vm642_vm3, %v11034_v6 }
  0x64   :  { %9302 = vmatmul.mubr.msk.bf16.gmra.mrb[44].mxu0 %vm642_vm3, %v414_v37  ;;  %9463 = vmatprep.mubr.msk.bf16.mxu1 %vm11310_vm1, %v16191_v2 }
  0x65   :  { %9305 = vmatprep.mubr.msk.bf16.mxu0 %vm11310_vm1, %v16191_v2 }
  0x6b   :  { %9464 = vmatmul.mubr.msk.bf16.gmra.mrb[48].mxu1 %vm642_vm3, %v11035_v12 }
  0x6c   :  { %9306 = vmatmul.mubr.msk.bf16.gmra.mrb[48].mxu0 %vm642_vm3, %v422_v43  ;;  %9467 = vmatprep.mubr.msk.bf16.mxu1 %vm11310_vm1, %v16191_v2 }
  0x6d   :  { %9309 = vmatprep.mubr.msk.bf16.mxu0 %vm11310_vm1, %v16191_v2 }
  0x6e   :  { %11 = vsyncpa [#allocation3], 0  ;;  %v433_v51 = vor.u32 %v431_v49, %v429_v45  ;;  %v437_v52 = vrot.slane %v435_v50, 1  ;;  %v11041_v53 = vld [vmem:[%s16184_s0 + $0x80] sm:$0xff]   ;;  %v439_v55 = vshrl.u32 %v11040_v46, 16  ;;  %v11042_v59 = vld [vmem:[%s16184_s0 + $0x88] sm:$0xff]  }
  0x6f   :  { %v443_v56 = vshll.u32 %v11041_v53, 16  ;;  %v447_v61 = vshrl.u32 %v11041_v53, 16  ;;  %v451_v62 = vshll.u32 %v11042_v59, 16  ;;  %v11043_v1 = vld [vmem:[%s16184_s0 + $0x90] sm:$0xff]   ;;  %v455_v4 = vshrl.u32 %v11042_v59, 16  ;;  %v11044_v8 = vld [vmem:[%s16184_s0 + $0x98] sm:$0xff]  }
  0x70   :  { %v438_v54 = vsel %vm314_vm2, %v433_v51, %v437_v52  ;;  %v441_v57 = vor.u32 %v439_v55, %v437_v52  ;;  %v459_v5 = vshll.u32 %v11043_v1, 16  ;;  %v463_v10 = vshrl.u32 %v11043_v1, 16  ;;  %v11045_v15 = vld [vmem:[%s16184_s0 + $0xa0] sm:$0xff]   ;;  %v11046_v22 = vld [vmem:[%s16184_s0 + $0xa8] sm:$0xff]   ;;  %v11047_v28 = vld [vmem:[%s16184_s0 + $0xb0] sm:$0xff]   ;;  %s11312_s24 = smov [#allocation2]  }
  0x71   :  { %v445_v58 = vrot.slane %v443_v56, 1  ;;  %v453_v0 = vrot.slane %v451_v62, 1  ;;  %v467_v11 = vshll.u32 %v11044_v8, 16  ;;  %v471_v17 = vshrl.u32 %v11044_v8, 16  ;;  %v11048_v34 = vld [vmem:[%s16184_s0 + $0xb8] sm:$0xff]   ;;  %v11647_v52 = vld [vmem:[%s16184_s0 + $0xd0] sm:$0xff]  }
  0x72   :  { %v461_v7 = vrot.slane %v459_v5, 1  ;;  %v475_v18 = vshll.u32 %v11045_v15, 16  ;;  %v479_v24 = vshrl.u32 %v11045_v15, 16  ;;  %v483_v25 = vshll.u32 %v11046_v22, 16  ;;  %s8241_s25 = sshll.u32 %s11312_s24, 4  ;;  %s8242_s25 = int_to_ptr.vmem [resolvable:$true] %s8241_s25 }
  0x73   :  { %9468 = vmatmul.mubr.msk.bf16.gmra.mrb[52].mxu1 %vm642_vm3, %v11036_v20  ;;  %v446_v60 = vsel %vm314_vm2, %v441_v57, %v445_v58  ;;  %v449_v63 = vor.u32 %v447_v61, %v445_v58  ;;  %v457_v6 = vor.u32 %v455_v4, %v453_v0  ;;  %v469_v14 = vrot.slane %v467_v11, 1  ;;  %v11660_v58 = vld [vmem:[%s16184_s0 + $0xd8] sm:$0xff]   ;;  %v2313_v11 = vld [vmem:[%s16185_s1 + $0xc] sm:$0xf]  ;;  %s11285_s26 = scalar_lea.vmem %s8242_s25, 128  ;;  %p11290_p1 = scmp.lt.s32.totalorder %s8242_s25, %s8242_s25 }
  0x74   :  { %9310 = vmatmul.mubr.msk.bf16.gmra.mrb[52].mxu0 %vm642_vm3, %v430_v48  ;;  %9471 = vmatprep.mubr.msk.bf16.mxu1 %vm11310_vm1, %v16191_v2  ;;  %v465_v12 = vor.u32 %v463_v10, %v461_v7  ;;  %v477_v21 = vrot.slane %v475_v18, 1  ;;  %v485_v27 = vrot.slane %v483_v25, 1  ;;  %v487_v30 = vshrl.u32 %v11046_v22, 16  ;;  %v11711_v25 = vld [vmem:[%s16184_s0 + $0xf0] sm:$0xff]   ;;  %p11286_p0 = scmp.ne.s32.totalorder %s8242_s25, %s11285_s26  ;;  %p11291_p2 = scmp.lt.s32.totalorder %s11285_s26, %s11285_s26 }
  0x75   :  { %9313 = vmatprep.mubr.msk.bf16.mxu0 %vm11310_vm1, %v16191_v2  ;;  %v454_v3 = vsel %vm314_vm2, %v449_v63, %v453_v0  ;;  %v462_v9 = vsel %vm314_vm2, %v457_v6, %v461_v7  ;;  %v473_v20 = vor.u32 %v471_v17, %v469_v14  ;;  %v491_v31 = vshll.u32 %v11047_v28, 16  ;;  %v11674_v0 = vld [vmem:[%s16184_s0 + $0xe0] sm:$0xff]   ;;  %v11688_v7 = vld [vmem:[%s16184_s0 + $0xe8] sm:$0xff]  }
  0x76   :  { %v470_v16 = vsel %vm314_vm2, %v465_v12, %v469_v14  ;;  %v495_v36 = vshrl.u32 %v11047_v28, 16  ;;  %v499_v37 = vshll.u32 %v11048_v34, 16  ;;  %v503_v42 = vshrl.u32 %v11048_v34, 16  ;;  %p11292_p3 = por %p11291_p2, %p11290_p1 }
  0x77   :  { %v478_v23 = vsel %vm314_vm2, %v473_v20, %v477_v21  ;;  %v493_v33 = vrot.slane %v491_v31, 1  ;;  %v523_v55 = vshll.u32 %v11647_v52, 16  ;;  %v531_v61 = vshll.u32 %v11660_v58, 16 }
  0x78   :  { %v501_v39 = vrot.slane %v499_v37, 1  ;;  %v539_v4 = vshll.u32 %v11674_v0, 16  ;;  %v547_v17 = vshll.u32 %v11688_v7, 16  ;;  %v2724_v18 = vsel %vm766_vm0, %v2313_v11, 0  ;;  %v11766_v11 = vld [vmem:[%s16184_s0 + $0x108] sm:$0xff]   ;;  %p11293_p4 = pnand %p11292_p3, %p11286_p0 }
  0x79   :  { %v497_v38 = vor.u32 %v495_v36, %v493_v33  ;;  %v525_v57 = vrot.slane %v523_v55, 1  ;;  %v533_v63 = vrot.slane %v531_v61, 1  ;;  %9754 = vmatpush3.bf16.msra.mxu1 %v2724_v18  ;;  %v11747_v55 = vld [vmem:[%s16184_s0 + $0x100] sm:$0xff]   ;;  %vm1582_vm4 = vcmask 1046528  }
  0x7a   :  { %v505_v44 = vor.u32 %v503_v42, %v501_v39  ;;  %v541_v6 = vrot.slane %v539_v4, 1  ;;  %10085 = vmatprep.subr.bf16.mxu1 %v16191_v2  ;;  %vm3172_vm5 = vsmask.f32 6400  ;;  %vm4113_vm6 = vcmask 1045504  }
  0x7b   :  { %9472 = vmatmul.mubr.msk.bf16.gmra.mrb[56].mxu1 %vm642_vm3, %v11037_v26  ;;  %v481_v26 = vor.u32 %v479_v24, %v477_v21  ;;  %v502_v41 = vsel %vm314_vm2, %v497_v38, %v501_v39  ;;  %v549_v24 = vrot.slane %v547_v17, 1  ;;  %v11728_v39 = vld [vmem:[%s16184_s0 + $0xf8] sm:$0xff]   ;;  %vm5703_vm7 = vsmask.f32 5376 }
  0x7c   :  { %9314 = vmatmul.mubr.msk.bf16.gmra.mrb[56].mxu0 %vm642_vm3, %v438_v54  ;;  %9475 = vmatprep.mubr.msk.bf16.mxu1 %vm11310_vm1, %v16191_v2  ;;  %vm6644_vm8 = vcmask 1044480  }
  0x7d   :  { %9317 = vmatprep.mubr.msk.bf16.mxu0 %vm11310_vm1, %v16191_v2  ;;  %v486_v29 = vsel %vm314_vm2, %v481_v26, %v485_v27 }
  0x83   :  { %9476 = vmatmul.mubr.msk.bf16.gmra.mrb[60].mxu1 %vm642_vm3, %v11038_v32  ;;  %v489_v32 = vor.u32 %v487_v30, %v485_v27 }
  0x84   :  { %9318 = vmatmul.mubr.msk.bf16.gmra.mrb[60].mxu0 %vm642_vm3, %v446_v60  ;;  %9479 = vmatprep.mubr.msk.bf16.mxu1 %vm11310_vm1, %v16191_v2  ;;  %v527_v60 = vshrl.u32 %v11647_v52, 16 }
  0x85   :  { %9321 = vmatprep.mubr.msk.bf16.mxu0 %vm11310_vm1, %v16191_v2  ;;  %v494_v35 = vsel %vm314_vm2, %v489_v32, %v493_v33  ;;  %v551_v32 = vshrl.u32 %v11688_v7, 16  ;;  %v555_v33 = vshll.u32 %v11711_v25, 16 }
  0x86   :  { %v529_v62 = vor.u32 %v527_v60, %v525_v57 }
  0x87   :  { %v553_v37 = vor.u32 %v551_v32, %v549_v24  ;;  %v557_v38 = vrot.slane %v555_v33, 1 }
  0x8b   :  { %9480 = vmatmul.mubr.msk.bf16.gmra.mrb[64].mxu1 %vm642_vm3, %v11039_v40  ;;  %v11049_v40 = vld [vmem:[%s16184_s0 + $0xc0] sm:$0xff]  }
  0x8c   :  { %9322 = vmatmul.mubr.msk.bf16.gmra.mrb[64].mxu0 %vm642_vm3, %v454_v3  ;;  %9483 = vmatprep.mubr.msk.bf16.mxu1 %vm11310_vm1, %v16191_v2  ;;  %v507_v43 = vshll.u32 %v11049_v40, 16  ;;  %v511_v48 = vshrl.u32 %v11049_v40, 16  ;;  %v535_v3 = vshrl.u32 %v11660_v58, 16 }
  0x8d   :  { %9325 = vmatprep.mubr.msk.bf16.mxu0 %vm11310_vm1, %v16191_v2 }
  0x8e   :  { %v509_v45 = vrot.slane %v507_v43, 1  ;;  %v537_v5 = vor.u32 %v535_v3, %v533_v63 }
  0x90   :  { %v510_v47 = vsel %vm314_vm2, %v505_v44, %v509_v45  ;;  %v513_v50 = vor.u32 %v511_v48, %v509_v45  ;;  %v542_v14 = vsel %vm314_vm2, %v537_v5, %v541_v6  ;;  %v563_v48 = vshll.u32 %v11728_v39, 16 }
  0x93   :  { %9484 = vmatmul.mubr.msk.bf16.gmra.mrb[68].mxu1 %vm642_vm3, %v11040_v46  ;;  %v11050_v46 = vld [vmem:[%s16184_s0 + $0xc8] sm:$0xff]  }
  0x94   :  { %9326 = vmatmul.mubr.msk.bf16.gmra.mrb[68].mxu0 %vm642_vm3, %v462_v9  ;;  %9487 = vmatprep.mubr.msk.bf16.mxu1 %vm11310_vm1, %v16191_v2  ;;  %v515_v49 = vshll.u32 %v11050_v46, 16  ;;  %v519_v54 = vshrl.u32 %v11050_v46, 16 }
  0x95   :  { %9329 = vmatprep.mubr.msk.bf16.mxu0 %vm11310_vm1, %v16191_v2 }
  0x96   :  { %v517_v51 = vrot.slane %v515_v49, 1 }
  0x98   :  { %v521_v56 = vor.u32 %v519_v54, %v517_v51  ;;  %v565_v54 = vrot.slane %v563_v48, 1  ;;  %v11804_v48 = vld [vmem:[%s16184_s0 + $0x118] sm:$0xff]  }
  0x9b   :  { %9488 = vmatmul.mubr.msk.bf16.gmra.mrb[72].mxu1 %vm642_vm3, %v11041_v53  ;;  %v518_v53 = vsel %vm314_vm2, %v513_v50, %v517_v51 }
  0x9c   :  { %9330 = vmatmul.mubr.msk.bf16.gmra.mrb[72].mxu0 %vm642_vm3, %v470_v16  ;;  %9491 = vmatprep.mubr.msk.bf16.mxu1 %vm11310_vm1, %v16191_v2  ;;  %v543_v16 = vshrl.u32 %v11674_v0, 16 }
  0x9d   :  { %9333 = vmatprep.mubr.msk.bf16.mxu0 %vm11310_vm1, %v16191_v2 }
  0xa3   :  { %9492 = vmatmul.mubr.msk.bf16.gmra.mrb[76].mxu1 %vm642_vm3, %v11042_v59  ;;  %v526_v59 = vsel %vm314_vm2, %v521_v56, %v525_v57 }
  0xa4   :  { %9334 = vmatmul.mubr.msk.bf16.gmra.mrb[76].mxu0 %vm642_vm3, %v478_v23  ;;  %9495 = vmatprep.mubr.msk.bf16.mxu1 %vm11310_vm1, %v16191_v2  ;;  %v545_v23 = vor.u32 %v543_v16, %v541_v6 }
  0xa5   :  { %9337 = vmatprep.mubr.msk.bf16.mxu0 %vm11310_vm1, %v16191_v2 }
  0xa6   :  { %v550_v30 = vsel %vm314_vm2, %v545_v23, %v549_v24 }
  0xab   :  { %9496 = vmatmul.mubr.msk.bf16.gmra.mrb[80].mxu1 %vm642_vm3, %v11043_v1  ;;  %v534_v1 = vsel %vm314_vm2, %v529_v62, %v533_v63  ;;  %v567_v63 = vshrl.u32 %v11728_v39, 16 }
  0xac   :  { %9338 = vmatmul.mubr.msk.bf16.gmra.mrb[80].mxu0 %vm642_vm3, %v486_v29  ;;  %9499 = vmatprep.mubr.msk.bf16.mxu1 %vm11310_vm1, %v16191_v2 }
  0xad   :  { %9341 = vmatprep.mubr.msk.bf16.mxu0 %vm11310_vm1, %v16191_v2 }
  0xb3   :  { %9500 = vmatmul.mubr.msk.bf16.gmra.mrb[84].mxu1 %vm642_vm3, %v11044_v8 }
  0xb4   :  { %9342 = vmatmul.mubr.msk.bf16.gmra.mrb[84].mxu0 %vm642_vm3, %v494_v35  ;;  %9503 = vmatprep.mubr.msk.bf16.mxu1 %vm11310_vm1, %v16191_v2 }
  0xb5   :  { %9345 = vmatprep.mubr.msk.bf16.mxu0 %vm11310_vm1, %v16191_v2 }
  0xbb   :  { %9504 = vmatmul.mubr.msk.bf16.gmra.mrb[88].mxu1 %vm642_vm3, %v11045_v15 }
  0xbc   :  { %9346 = vmatmul.mubr.msk.bf16.gmra.mrb[88].mxu0 %vm642_vm3, %v502_v41  ;;  %9507 = vmatprep.mubr.msk.bf16.mxu1 %vm11310_vm1, %v16191_v2 }
  0xbd   :  { %9349 = vmatprep.mubr.msk.bf16.mxu0 %vm11310_vm1, %v16191_v2 }
  0xc3   :  { %9508 = vmatmul.mubr.msk.bf16.gmra.mrb[92].mxu1 %vm642_vm3, %v11046_v22 }
  0xc4   :  { %9350 = vmatmul.mubr.msk.bf16.gmra.mrb[92].mxu0 %vm642_vm3, %v510_v47  ;;  %9511 = vmatprep.mubr.msk.bf16.mxu1 %vm11310_vm1, %v16191_v2  ;;  %v559_v47 = vshrl.u32 %v11711_v25, 16 }
  0xc5   :  { %9353 = vmatprep.mubr.msk.bf16.mxu0 %vm11310_vm1, %v16191_v2 }
  0xcb   :  { %9512 = vmatmul.mubr.msk.bf16.gmra.mrb[96].mxu1 %vm642_vm3, %v11047_v28 }
  0xcc   :  { %9354 = vmatmul.mubr.msk.bf16.gmra.mrb[96].mxu0 %vm642_vm3, %v518_v53  ;;  %9515 = vmatprep.mubr.msk.bf16.mxu1 %vm11310_vm1, %v16191_v2  ;;  %v561_v53 = vor.u32 %v559_v47, %v557_v38 }
  0xcd   :  { %9357 = vmatprep.mubr.msk.bf16.mxu0 %vm11310_vm1, %v16191_v2 }
  0xce   :  { %v566_v62 = vsel %vm314_vm2, %v561_v53, %v565_v54 }
  0xd3   :  { %9516 = vmatmul.mubr.msk.bf16.gmra.mrb[100].mxu1 %vm642_vm3, %v11048_v34 }
  0xd4   :  { %9358 = vmatmul.mubr.msk.bf16.gmra.mrb[100].mxu0 %vm642_vm3, %v526_v59  ;;  %9519 = vmatprep.mubr.msk.bf16.mxu1 %vm11310_vm1, %v16191_v2 }
  0xd5   :  { %9361 = vmatprep.mubr.msk.bf16.mxu0 %vm11310_vm1, %v16191_v2 }
  0xdb   :  { %9520 = vmatmul.mubr.msk.bf16.gmra.mrb[104].mxu1 %vm642_vm3, %v11049_v40 }
  0xdc   :  { %9362 = vmatmul.mubr.msk.bf16.gmra.mrb[104].mxu0 %vm642_vm3, %v534_v1  ;;  %9523 = vmatprep.mubr.msk.bf16.mxu1 %vm11310_vm1, %v16191_v2  ;;  %v571_v1 = vshll.u32 %v11747_v55, 16 }
  0xdd   :  { %9365 = vmatprep.mubr.msk.bf16.mxu0 %vm11310_vm1, %v16191_v2 }
  0xde   :  { %v11692_v10 = vpop.f32.mrb[0].mxu1 }
  0xdf   :  { %v804_v8 = vpop.f32.mrb[0].mxu0  ;;  %v9415_v15 = vpop.f32.mrb[1].mxu1 }
  0xe0   :  { %v9259_v9 = vpop.f32.mrb[1].mxu0  ;;  %v11701_v21 = vpop.f32.mrb[2].mxu1 }
  0xe1   :  { %v807_v12 = vpop.f32.mrb[2].mxu0  ;;  %v9416_v22 = vpop.f32.mrb[3].mxu1  ;;  %v573_v9 = vrot.slane %v571_v1, 1 }
  0xe2   :  { %v9260_v20 = vpop.f32.mrb[3].mxu0  ;;  %v579_v22 = vshll.u32 %v11766_v11, 16 }
  0xe3   :  { %9524 = vmatmul.mubr.msk.bf16.gmra.mrb[108].mxu1 %vm642_vm3, %v11050_v46  ;;  %v558_v46 = vsel %vm314_vm2, %v553_v37, %v557_v38  ;;  %v575_v20 = vshrl.u32 %v11747_v55, 16  ;;  %v583_v38 = vshrl.u32 %v11766_v11, 16 }
  0xe4   :  { %9366 = vmatmul.mubr.msk.bf16.gmra.mrb[108].mxu0 %vm642_vm3, %v542_v14  ;;  %9527 = vmatprep.mubr.msk.bf16.mxu1 %vm11310_vm1, %v16191_v2 }
  0xe5   :  { %9369 = vmatprep.mubr.msk.bf16.mxu0 %vm11310_vm1, %v16191_v2 }
  0xe6   :  { %v11715_v28 = vpop.f32.mrb[4].mxu1 }
  0xe7   :  { %v812_v26 = vpop.f32.mrb[4].mxu0  ;;  %v9419_v31 = vpop.f32.mrb[5].mxu1 }
  0xe8   :  { %v9263_v27 = vpop.f32.mrb[5].mxu0  ;;  %v1127_v35 = vpop.f32.mrb[6].mxu1  ;;  %v11785_v31 = vld [vmem:[%s16184_s0 + $0x110] sm:$0xff]  }
  0xe9   :  { %v815_v29 = vpop.f32.mrb[6].mxu0  ;;  %v9420_v36 = vpop.f32.mrb[7].mxu1 }
  0xea   :  { %v9264_v34 = vpop.f32.mrb[7].mxu0 }
  0xeb   :  { %9528 = vmatmul.mubr.msk.bf16.gmra.mrb[112].mxu1 %vm642_vm3, %v11647_v52 }
  0xec   :  { %9370 = vmatmul.mubr.msk.bf16.gmra.mrb[112].mxu0 %vm642_vm3, %v550_v30  ;;  %9531 = vmatprep.mubr.msk.bf16.mxu1 %vm11310_vm1, %v16191_v2  ;;  %v581_v30 = vrot.slane %v579_v22, 1 }
  0xed   :  { %9373 = vmatprep.mubr.msk.bf16.mxu0 %vm11310_vm1, %v16191_v2 }
  0xee   :  { %v1251_v41 = vpop.f32.mrb[8].mxu1 }
  0xef   :  { %v820_v40 = vpop.f32.mrb[8].mxu0  ;;  %v11732_v43 = vadd.f32 %v1251_v41, %v804_v8  ;;  %v9425_v44 = vpop.f32.mrb[9].mxu1  ;;  %v569_v8 = vor.u32 %v567_v63, %v565_v54 }
  0xf0   :  { %v9267_v42 = vpop.f32.mrb[9].mxu0  ;;  %v1254_v49 = vpop.f32.mrb[10].mxu1 }
  0xf1   :  { %v823_v45 = vpop.f32.mrb[10].mxu0  ;;  %v11737_v51 = vadd.f32 %v1254_v49, %v807_v12  ;;  %v9426_v52 = vpop.f32.mrb[11].mxu1  ;;  %v574_v18 = vsel %vm314_vm2, %v569_v8, %v573_v9 }
  0xf2   :  { %v9268_v50 = vpop.f32.mrb[11].mxu0 }
  0xf3   :  { %9532 = vmatmul.mubr.msk.bf16.gmra.mrb[116].mxu1 %vm642_vm3, %v11660_v58 }
  0xf4   :  { %9374 = vmatmul.mubr.msk.bf16.gmra.mrb[116].mxu0 %vm642_vm3, %v558_v46  ;;  %9535 = vmatprep.mubr.msk.bf16.mxu1 %vm11310_vm1, %v16191_v2  ;;  %v585_v46 = vor.u32 %v583_v38, %v581_v30 }
  0xf5   :  { %9377 = vmatprep.mubr.msk.bf16.mxu0 %vm11310_vm1, %v16191_v2 }
  0xf6   :  { %v1259_v57 = vpop.f32.mrb[12].mxu1 }
  0xf7   :  { %v828_v56 = vpop.f32.mrb[12].mxu0  ;;  %v11751_v60 = vadd.f32 %v1259_v57, %v812_v26  ;;  %v9429_v61 = vpop.f32.mrb[13].mxu1  ;;  %v591_v57 = vshrl.u32 %v11785_v31, 16 }
  0xf8   :  { %v9271_v59 = vpop.f32.mrb[13].mxu0  ;;  %v1262_v3 = vpop.f32.mrb[14].mxu1 }
  0xf9   :  { %v831_v58 = vpop.f32.mrb[14].mxu0  ;;  %v11756_v5 = vadd.f32 %v1262_v3, %v815_v29  ;;  %v9430_v6 = vpop.f32.mrb[15].mxu1  ;;  %v577_v29 = vor.u32 %v575_v20, %v573_v9  ;;  %v595_v59 = vshll.u32 %v11804_v48, 16 }
  0xfa   :  { %v9272_v4 = vpop.f32.mrb[15].mxu0 }
  0xfb   :  { %9536 = vmatmul.mubr.msk.bf16.gmra.mrb[120].mxu1 %vm642_vm3, %v11674_v0  ;;  %v582_v37 = vsel %vm314_vm2, %v577_v29, %v581_v30  ;;  %v597_v3 = vrot.slane %v595_v59, 1  ;;  %v11823_v4 = vld [vmem:[%s16184_s0 + $0x120] sm:$0xff]   ;;  %v11842_v29 = vld [vmem:[%s16184_s0 + $0x128] sm:$0xff]  }
  0xfc   :  { %9378 = vmatmul.mubr.msk.bf16.gmra.mrb[120].mxu0 %vm642_vm3, %v566_v62  ;;  %9539 = vmatprep.mubr.msk.bf16.mxu1 %vm11310_vm1, %v16191_v2  ;;  %v611_v38 = vshll.u32 %v11842_v29, 16  ;;  %v615_v59 = vshrl.u32 %v11842_v29, 16 }
  0xfd   :  { %9381 = vmatprep.mubr.msk.bf16.mxu0 %vm11310_vm1, %v16191_v2 }
  0xfe   :  { %v1267_v14 = vpop.f32.mrb[16].mxu1 }
  0xff   :  { %v836_v12 = vpop.f32.mrb[16].mxu0  ;;  %v11770_v16 = vadd.f32 %v1267_v14, %v820_v40  ;;  %v9433_v17 = vpop.f32.mrb[17].mxu1  ;;  %v587_v40 = vshll.u32 %v11785_v31, 16 }
 0x100   :  { %v9275_v15 = vpop.f32.mrb[17].mxu0  ;;  %v1270_v23 = vpop.f32.mrb[18].mxu1  ;;  %v599_v17 = vshrl.u32 %v11804_v48, 16 }
 0x101   :  { %v839_v0 = vpop.f32.mrb[18].mxu0  ;;  %v11775_v26 = vadd.f32 %v1270_v23, %v823_v45  ;;  %v9434_v27 = vpop.f32.mrb[19].mxu1  ;;  %v589_v47 = vrot.slane %v587_v40, 1 }
 0x102   :  { %v9276_v24 = vpop.f32.mrb[19].mxu0 }
 0x103   :  { %9540 = vmatmul.mubr.msk.bf16.gmra.mrb[124].mxu1 %vm642_vm3, %v11688_v7  ;;  %v593_v1 = vor.u32 %v591_v57, %v589_v47  ;;  %v601_v24 = vor.u32 %v599_v17, %v597_v3 }
 0x104   :  { %9382 = vmatmul.mubr.msk.bf16.gmra.mrb[124].mxu0 %vm642_vm3, %v574_v18  ;;  %9543 = vmatprep.mubr.msk.bf16.mxu1 %vm11310_vm1, %v16191_v2 }
 0x105   :  { %9385 = vmatprep.mubr.msk.bf16.mxu0 %vm11310_vm1, %v16191_v2  ;;  %v598_v15 = vsel %vm314_vm2, %v593_v1, %v597_v3 }
 0x106   :  { %v1275_v33 = vpop.f32.mrb[20].mxu1 }
 0x107   :  { %v844_v32 = vpop.f32.mrb[20].mxu0  ;;  %v11789_v35 = vadd.f32 %v1275_v33, %v828_v56  ;;  %v9437_v36 = vpop.f32.mrb[21].mxu1  ;;  %v590_v56 = vsel %vm314_vm2, %v585_v46, %v589_v47  ;;  %v613_v47 = vrot.slane %v611_v38, 1 }
 0x108   :  { %v9279_v34 = vpop.f32.mrb[21].mxu0  ;;  %v1278_v41 = vpop.f32.mrb[22].mxu1 }
 0x109   :  { %v847_v7 = vpop.f32.mrb[22].mxu0  ;;  %v11794_v44 = vadd.f32 %v1278_v41, %v831_v58  ;;  %v9438_v45 = vpop.f32.mrb[23].mxu1 }
 0x10a   :  { %v9280_v42 = vpop.f32.mrb[23].mxu0 }
 0x10b   :  { %9544 = vmatmul.mubr.msk.bf16.gmra.mrb[128].mxu1 %vm642_vm3, %v11711_v25 }
 0x10c   :  { %9386 = vmatmul.mubr.msk.bf16.gmra.mrb[128].mxu0 %vm642_vm3, %v582_v37  ;;  %9547 = vmatprep.mubr.msk.bf16.mxu1 %vm11310_vm1, %v16191_v2  ;;  %v607_v37 = vshrl.u32 %v11823_v4, 16 }
 0x10d   :  { %9389 = vmatprep.mubr.msk.bf16.mxu0 %vm11310_vm1, %v16191_v2 }
 0x10e   :  { %v1283_v50 = vpop.f32.mrb[24].mxu1 }
 0x10f   :  { %v852_v49 = vpop.f32.mrb[24].mxu0  ;;  %v11808_v53 = vadd.f32 %v1283_v50, %v836_v12  ;;  %v9441_v54 = vpop.f32.mrb[25].mxu1 }
 0x110   :  { %v9283_v52 = vpop.f32.mrb[25].mxu0  ;;  %v1286_v61 = vpop.f32.mrb[26].mxu1 }
 0x111   :  { %v855_v25 = vpop.f32.mrb[26].mxu0  ;;  %v11813_v62 = vadd.f32 %v1286_v61, %v839_v0  ;;  %v9442_v63 = vpop.f32.mrb[27].mxu1  ;;  %v603_v0 = vshll.u32 %v11823_v4, 16 }
 0x112   :  { %v9284_v58 = vpop.f32.mrb[27].mxu0 }
 0x113   :  { %9548 = vmatmul.mubr.msk.bf16.gmra.mrb[132].mxu1 %vm642_vm3, %v11728_v39  ;;  %v605_v27 = vrot.slane %v603_v0, 1 }
 0x114   :  { %9390 = vmatmul.mubr.msk.bf16.gmra.mrb[132].mxu0 %vm642_vm3, %v590_v56  ;;  %9551 = vmatprep.mubr.msk.bf16.mxu1 %vm11310_vm1, %v16191_v2 }
 0x115   :  { %9393 = vmatprep.mubr.msk.bf16.mxu0 %vm11310_vm1, %v16191_v2  ;;  %v609_v46 = vor.u32 %v607_v37, %v605_v27 }
 0x116   :  { %v1291_v8 = vpop.f32.mrb[28].mxu1 }
 0x117   :  { %v860_v6 = vpop.f32.mrb[28].mxu0  ;;  %v11827_v12 = vadd.f32 %v1291_v8, %v844_v32  ;;  %v9445_v14 = vpop.f32.mrb[29].mxu1  ;;  %v614_v57 = vsel %vm314_vm2, %v609_v46, %v613_v47 }
 0x118   :  { %v9287_v9 = vpop.f32.mrb[29].mxu0  ;;  %v1294_v18 = vpop.f32.mrb[30].mxu1 }
 0x119   :  { %v863_v39 = vpop.f32.mrb[30].mxu0  ;;  %v11832_v22 = vadd.f32 %v1294_v18, %v847_v7  ;;  %v9446_v23 = vpop.f32.mrb[31].mxu1  ;;  %v606_v7 = vsel %vm314_vm2, %v601_v24, %v605_v27 }
 0x11a   :  { %v9288_v20 = vpop.f32.mrb[31].mxu0 }
 0x11b   :  { %9552 = vmatmul.mubr.msk.bf16.gmra.mrb[136].mxu1 %vm642_vm3, %v11747_v55 }
 0x11c   :  { %9394 = vmatmul.mubr.msk.bf16.gmra.mrb[136].mxu0 %vm642_vm3, %v598_v15  ;;  %9555 = vmatprep.mubr.msk.bf16.mxu1 %vm11310_vm1, %v16191_v2 }
 0x11d   :  { %9397 = vmatprep.mubr.msk.bf16.mxu0 %vm11310_vm1, %v16191_v2 }
 0x11e   :  { %v1299_v32 = vpop.f32.mrb[32].mxu1 }
 0x11f   :  { %v868_v30 = vpop.f32.mrb[32].mxu0  ;;  %v11846_v34 = vadd.f32 %v1299_v32, %v852_v49  ;;  %v9449_v36 = vpop.f32.mrb[33].mxu1  ;;  %v11861_v49 = vld [vmem:[%s16184_s0 + $0x130] sm:$0xff]   ;;  %v1577_v32 = vld [vmem:[%s16184_s0] sm:$0xe] }
 0x120   :  { %v9291_v33 = vpop.f32.mrb[33].mxu0  ;;  %v1302_v40 = vpop.f32.mrb[34].mxu1  ;;  %v619_v61 = vshll.u32 %v11861_v49, 16  ;;  %v623_v20 = vshrl.u32 %v11861_v49, 16 }
 0x121   :  { %v871_v55 = vpop.f32.mrb[34].mxu0  ;;  %v11851_v42 = vadd.f32 %v1302_v40, %v855_v25  ;;  %v9450_v45 = vpop.f32.mrb[35].mxu1  ;;  %v11160_v40 = vld [vmem:[%s16184_s0 + $0x4] sm:$0xf] }
 0x122   :  { %v9292_v41 = vpop.f32.mrb[35].mxu0  ;;  %v621_v8 = vrot.slane %v619_v61, 1 }
 0x123   :  { %9556 = vmatmul.mubr.msk.bf16.gmra.mrb[140].mxu1 %vm642_vm3, %v11766_v11  ;;  %v8373_v41 = vcombine.low %v1577_v32, %v11160_v40 }
 0x124   :  { %9398 = vmatmul.mubr.msk.bf16.gmra.mrb[140].mxu0 %vm642_vm3, %v606_v7  ;;  %9559 = vmatprep.mubr.msk.bf16.mxu1 %vm11310_vm1, %v16191_v2 }
 0x125   :  { %9401 = vmatprep.mubr.msk.bf16.mxu0 %vm11310_vm1, %v16191_v2 }
 0x126   :  { %v1307_v52 = vpop.f32.mrb[36].mxu1 }
 0x127   :  { %v876_v50 = vpop.f32.mrb[36].mxu0  ;;  %v11865_v25 = vadd.f32 %v1307_v52, %v860_v6  ;;  %v9453_v56 = vpop.f32.mrb[37].mxu1  ;;  %v617_v6 = vor.u32 %v615_v59, %v613_v47 }
 0x128   :  { %v9295_v54 = vpop.f32.mrb[37].mxu0  ;;  %v1310_v58 = vpop.f32.mrb[38].mxu1 }
 0x129   :  { %v879_v11 = vpop.f32.mrb[38].mxu0  ;;  %v11870_v1 = vadd.f32 %v1310_v58, %v863_v39  ;;  %v9454_v3 = vpop.f32.mrb[39].mxu1  ;;  %v622_v18 = vsel %vm314_vm2, %v617_v6, %v621_v8 }
 0x12a   :  { %v9296_v63 = vpop.f32.mrb[39].mxu0 }
 0x12b   :  { %9560 = vmatmul.mubr.msk.bf16.gmra.mrb[144].mxu1 %vm642_vm3, %v11785_v31 }
 0x12c   :  { %9402 = vmatmul.mubr.msk.bf16.gmra.mrb[144].mxu0 %vm642_vm3, %v614_v57  ;;  %9563 = vmatprep.mubr.msk.bf16.mxu1 %vm11310_vm1, %v16191_v2 }
 0x12d   :  { %9405 = vmatprep.mubr.msk.bf16.mxu0 %vm11310_vm1, %v16191_v2 }
 0x12e   :  { %v1315_v14 = vpop.f32.mrb[40].mxu1 }
 0x12f   :  { %v884_v9 = vpop.f32.mrb[40].mxu0  ;;  %v11879_v17 = vadd.f32 %v1315_v14, %v868_v30  ;;  %v9457_v39 = vpop.f32.mrb[41].mxu1  ;;  %v625_v30 = vor.u32 %v623_v20, %v621_v8 }
 0x130   :  { %v9299_v15 = vpop.f32.mrb[41].mxu0  ;;  %v1318_v31 = vpop.f32.mrb[42].mxu1 }
 0x131   :  { %v887_v0 = vpop.f32.mrb[42].mxu0  ;;  %v11883_v24 = vadd.f32 %v1318_v31, %v871_v55  ;;  %v9458_v27 = vpop.f32.mrb[43].mxu1 }
 0x132   :  { %v9300_v23 = vpop.f32.mrb[43].mxu0 }
 0x133   :  { %9564 = vmatmul.mubr.msk.bf16.gmra.mrb[148].mxu1 %vm642_vm3, %v11804_v48  ;;  %v630_v48 = vsel %vm314_vm2, %v625_v30, %v11388_v19  ;;  %v11161_v19 = vld [vmem:[%s16184_s0 + $0x8] sm:$0xff]  }
 0x134   :  { %9406 = vmatmul.mubr.msk.bf16.gmra.mrb[148].mxu0 %vm642_vm3, %v622_v18  ;;  %9567 = vmatprep.mubr.msk.bf16.mxu1 %vm11310_vm1, %v16191_v2  ;;  %v1584_v54 = vrot.slane %v11161_v19, 1  ;;  %v11164_v19 = vld [vmem:[%s16184_s0 + $0x138] sm:$0xff]  }
 0x135   :  { %9409 = vmatprep.mubr.msk.bf16.mxu0 %vm11310_vm1, %v16191_v2 }
 0x136   :  { %v1323_v36 = vpop.f32.mrb[44].mxu1 }
 0x137   :  { %v892_v33 = vpop.f32.mrb[44].mxu0  ;;  %v11895_v7 = vadd.f32 %v1323_v36, %v876_v50  ;;  %v9461_v37 = vpop.f32.mrb[45].mxu1  ;;  %v1583_v50 = vrot.slane %v8373_v41, 1 }
 0x138   :  { %v9303_v55 = vpop.f32.mrb[45].mxu0  ;;  %v1326_v45 = vpop.f32.mrb[46].mxu1 }
 0x139   :  { %v895_v38 = vpop.f32.mrb[46].mxu0  ;;  %v11902_v47 = vadd.f32 %v1326_v45, %v879_v11  ;;  %v9462_v52 = vpop.f32.mrb[47].mxu1  ;;  %v1585_v58 = vsel %vm1582_vm4, %v1583_v50, %v1584_v54 }
 0x13a   :  { %v9304_v46 = vpop.f32.mrb[47].mxu0 }
 0x13b   :  { %9568 = vmatmul.mubr.msk.bf16.gmra.mrb[152].mxu1 %vm642_vm3, %v11823_v4 }
 0x13c   :  { %9410 = vmatmul.mubr.msk.bf16.gmra.mrb[152].mxu0 %vm642_vm3, %v630_v48  ;;  %9571 = vmatprep.mubr.msk.bf16.mxu1 %vm11310_vm1, %v16191_v2 }
 0x13d   :  { %9589 = vmatprep.mubr.msk.bf16.mxu0 %vm11310_vm1, %v16191_v2 }
 0x13e   :  { %v1331_v11 = vpop.f32.mrb[48].mxu1 }
 0x13f   :  { %v900_v56 = vpop.f32.mrb[48].mxu0  ;;  %v11914_v59 = vadd.f32 %v1331_v11, %v884_v9  ;;  %v9465_v61 = vpop.f32.mrb[49].mxu1  ;;  %v11162_v9 = vld [vmem:[%s16184_s0 + $0x10] sm:$0xff]  }
 0x140   :  { %v9307_v57 = vpop.f32.mrb[49].mxu0  ;;  %v1334_v63 = vpop.f32.mrb[50].mxu1  ;;  %v1586_v14 = vrot.slane %v11162_v9, 1  ;;  %v2232_v61 = vld [vmem:[%s16184_s0 + $0xc] sm:$0xf] }
 0x141   :  { %v903_v4 = vpop.f32.mrb[50].mxu0  ;;  %v11917_v6 = vadd.f32 %v1334_v63, %v887_v0  ;;  %v9466_v8 = vpop.f32.mrb[51].mxu1  ;;  %v2231_v57 = vld [vmem:[%s16184_s0 + $0x8] sm:$0xe]  ;;  %v11166_v9 = vld [vmem:[%s16184_s0 + $0x140] sm:$0xf] }
 0x142   :  { %v9308_v3 = vpop.f32.mrb[51].mxu0 }
 0x143   :  { %9572 = vmatmul.mubr.msk.bf16.gmra.mrb[156].mxu1 %vm642_vm3, %v11842_v29  ;;  %v1587_v29 = vsel %vm1582_vm4, %v1584_v54, %v1586_v14  ;;  %v11165_v54 = vld [vmem:[%s16184_s0 + $0x20] sm:$0xff]  }
 0x144   :  { %9590 = vmatmul.mubr.msk.bf16.vlgmr.msra.gmra.mrb[156].mxu0 %vm642_vm3, %v1585_v58  ;;  %9575 = vmatprep.mubr.msk.bf16.mxu1 %vm11310_vm1, %v16191_v2 }
 0x145   :  { %9593 = vmatprep.mubr.msk.bf16.mxu0 %vm11310_vm1, %v16191_v2 }
 0x146   :  { %v1339_v39 = vpop.f32.mrb[52].mxu1 }
 0x147   :  { %v908_v15 = vpop.f32.mrb[52].mxu0  ;;  %v11929_v18 = vadd.f32 %v1339_v39, %v892_v33  ;;  %v9469_v20 = vpop.f32.mrb[53].mxu1  ;;  %v11163_v33 = vld [vmem:[%s16184_s0 + $0x18] sm:$0xff]  }
 0x148   :  { %v9311_v0 = vpop.f32.mrb[53].mxu0  ;;  %v1342_v23 = vpop.f32.mrb[54].mxu1  ;;  %v1588_v36 = vrot.slane %v11163_v33, 1 }
 0x149   :  { %v911_v31 = vpop.f32.mrb[54].mxu0  ;;  %v11932_v30 = vadd.f32 %v1342_v23, %v895_v38  ;;  %v9470_v32 = vpop.f32.mrb[55].mxu1  ;;  %v11067_v23 = vld [vmem:[%s16184_s0 + $0x10] sm:$0xff]  }
 0x14a   :  { %v9312_v27 = vpop.f32.mrb[55].mxu0  ;;  %v11167_v32 = vld [vmem:[%s16184_s0 + $0x28] sm:$0xff]  }
 0x14b   :  { %9576 = vmatmul.mubr.msk.bf16.gmra.mrb[160].mxu1 %vm642_vm3, %v11861_v49  ;;  %v1589_v49 = vsel %vm1582_vm4, %v1586_v14, %v1588_v36  ;;  %v8331_v14 = vcombine.low %v11166_v9, %v11166_v9  ;;  %v1592_v33 = vrot.slane %v11167_v32, 1 }
 0x14c   :  { %9594 = vmatmul.mubr.msk.bf16.gmra.mrb[160].mxu0 %vm642_vm3, %v1587_v29  ;;  %9579 = vmatprep.mubr.msk.bf16.mxu1 %vm11310_vm1, %v16191_v2  ;;  %v11973_v29 = vcombine.low %v2231_v57, %v2232_v61  ;;  %v11069_v61 = vld [vmem:[%s16184_s0 + $0x18] sm:$0xff]  }
 0x14d   :  { %9597 = vmatprep.mubr.msk.bf16.mxu0 %vm11310_vm1, %v16191_v2 }
 0x14e   :  { %v1347_v37 = vpop.f32.mrb[56].mxu1 }
 0x14f   :  { %v916_v55 = vpop.f32.mrb[56].mxu0  ;;  %v11944_v48 = vadd.f32 %v1347_v37, %v900_v56  ;;  %v9473_v40 = vpop.f32.mrb[57].mxu1  ;;  %v1590_v56 = vrot.slane %v11165_v54, 1 }
 0x150   :  { %v9315_v38 = vpop.f32.mrb[57].mxu0  ;;  %v1350_v45 = vpop.f32.mrb[58].mxu1 }
 0x151   :  { %v919_v41 = vpop.f32.mrb[58].mxu0  ;;  %v11947_v52 = vadd.f32 %v1350_v45, %v903_v4  ;;  %v9474_v50 = vpop.f32.mrb[59].mxu1  ;;  %v1591_v39 = vsel %vm1582_vm4, %v1588_v36, %v1590_v56  ;;  %v2519_v36 = vrot.slane %v11973_v29, 1 }
 0x152   :  { %v9316_v46 = vpop.f32.mrb[59].mxu0  ;;  %v1593_v50 = vsel %vm1582_vm4, %v1590_v56, %v1592_v33 }
 0x153   :  { %9580 = vmatmul.mubr.msk.bf16.gmra.mrb[164].mxu1 %vm642_vm3, %v11164_v19 }
 0x154   :  { %9598 = vmatmul.mubr.msk.bf16.gmra.mrb[164].mxu0 %vm642_vm3, %v1589_v49  ;;  %9583 = vmatprep.mubr.msk.bf16.mxu1 %vm11310_vm1, %v16191_v2 }
 0x155   :  { %9601 = vmatprep.mubr.msk.bf16.mxu0 %vm11310_vm1, %v16191_v2 }
 0x156   :  { %v1355_v4 = vpop.f32.mrb[60].mxu1 }
 0x157   :  { %v924_v11 = vpop.f32.mrb[60].mxu0  ;;  %v11967_v63 = vadd.f32 %v1355_v4, %v908_v15  ;;  %v9477_v3 = vpop.f32.mrb[61].mxu1 }
 0x158   :  { %v9319_v58 = vpop.f32.mrb[61].mxu0  ;;  %v1358_v0 = vpop.f32.mrb[62].mxu1  ;;  %v2522_v3 = vrot.slane %v11069_v61, 1 }
 0x159   :  { %v927_v8 = vpop.f32.mrb[62].mxu0  ;;  %v11978_v27 = vadd.f32 %v1358_v0, %v911_v31  ;;  %v9478_v15 = vpop.f32.mrb[63].mxu1  ;;  %v2520_v31 = vrot.slane %v11067_v23, 1 }
 0x15a   :  { %v9320_v20 = vpop.f32.mrb[63].mxu0 }
 0x15b   :  { %9584 = vmatmul.mubr.msk.bf16.gmra.mrb[168].mxu1 %vm642_vm3, %v8331_v14  ;;  %v2521_v57 = vsel %vm1582_vm4, %v2519_v36, %v2520_v31  ;;  %v2523_v36 = vsel %vm1582_vm4, %v2520_v31, %v2522_v3 }
 0x15c   :  { %9602 = vmatmul.mubr.msk.bf16.gmra.mrb[168].mxu0 %vm642_vm3, %v1591_v39  ;;  %9755 = vmatprep.mubr.msk.bf16.mxu1 %vm11310_vm1, %v16191_v2 }
 0x15d   :  { %9605 = vmatprep.mubr.msk.bf16.mxu0 %vm11310_vm1, %v16191_v2 }
 0x15e   :  { %v1363_v38 = vpop.f32.mrb[64].mxu1 }
 0x15f   :  { %v932_v37 = vpop.f32.mrb[64].mxu0  ;;  %v11990_v49 = vadd.f32 %v1363_v38, %v916_v55  ;;  %v9481_v45 = vpop.f32.mrb[65].mxu1  ;;  %v11168_v55 = vld [vmem:[%s16184_s0 + $0x30] sm:$0xff]   ;;  %v11070_v38 = vld [vmem:[%s16184_s0 + $0x20] sm:$0xff]  }
 0x160   :  { %v9323_v40 = vpop.f32.mrb[65].mxu0  ;;  %v1366_v19 = vpop.f32.mrb[66].mxu1  ;;  %v1594_v56 = vrot.slane %v11168_v55, 1  ;;  %v2524_v31 = vrot.slane %v11070_v38, 1 }
 0x161   :  { %v935_v46 = vpop.f32.mrb[66].mxu0  ;;  %v11997_v4 = vadd.f32 %v1366_v19, %v919_v41  ;;  %v9482_v58 = vpop.f32.mrb[67].mxu1 }
 0x162   :  { %v9324_v54 = vpop.f32.mrb[67].mxu0  ;;  %v1595_v23 = vsel %vm1582_vm4, %v1592_v33, %v1594_v56 }
 0x163   :  { %9756 = vmatmul.mubr.msk.bf16.vlgmr.msra.gmra.mrb[172].mxu1 %vm642_vm3, %v2521_v57 }
 0x164   :  { %9606 = vmatmul.mubr.msk.bf16.gmra.mrb[172].mxu0 %vm642_vm3, %v1593_v50  ;;  %9759 = vmatprep.mubr.msk.bf16.mxu1 %vm11310_vm1, %v16191_v2 }
 0x165   :  { %9609 = vmatprep.mubr.msk.bf16.mxu0 %vm11310_vm1, %v16191_v2 }
 0x166   :  { %v1371_v41 = vpop.f32.mrb[68].mxu1 }
 0x167   :  { %v940_v9 = vpop.f32.mrb[68].mxu0  ;;  %v12008_v39 = vadd.f32 %v1371_v41, %v924_v11  ;;  %v9485_v0 = vpop.f32.mrb[69].mxu1  ;;  %v11169_v11 = vld [vmem:[%s16184_s0 + $0x38] sm:$0xff]  }
 0x168   :  { %v9327_v14 = vpop.f32.mrb[69].mxu0  ;;  %v1374_v15 = vpop.f32.mrb[70].mxu1  ;;  %v1596_v33 = vrot.slane %v11169_v11, 1  ;;  %v11071_v0 = vld [vmem:[%s16184_s0 + $0x28] sm:$0xff]  }
 0x169   :  { %v943_v20 = vpop.f32.mrb[70].mxu0  ;;  %v12015_v40 = vadd.f32 %v1374_v15, %v927_v8  ;;  %v9486_v45 = vpop.f32.mrb[71].mxu1  ;;  %v2525_v14 = vsel %vm1582_vm4, %v2522_v3, %v2524_v31  ;;  %v2526_v3 = vrot.slane %v11071_v0, 1 }
 0x16a   :  { %v9328_v32 = vpop.f32.mrb[71].mxu0  ;;  %v1597_v58 = vsel %vm1582_vm4, %v1594_v56, %v1596_v33 }
 0x16b   :  { %9760 = vmatmul.mubr.msk.bf16.gmra.mrb[176].mxu1 %vm642_vm3, %v2523_v36 }
 0x16c   :  { %9610 = vmatmul.mubr.msk.bf16.gmra.mrb[176].mxu0 %vm642_vm3, %v1595_v23  ;;  %9763 = vmatprep.mubr.msk.bf16.mxu1 %vm11310_vm1, %v16191_v2 }
 0x16d   :  { %9613 = vmatprep.mubr.msk.bf16.mxu0 %vm11310_vm1, %v16191_v2 }
 0x16e   :  { %v1379_v8 = vpop.f32.mrb[72].mxu1 }
 0x16f   :  { %v948_v50 = vpop.f32.mrb[72].mxu0  ;;  %v12026_v54 = vadd.f32 %v1379_v8, %v932_v37  ;;  %v9489_v57 = vpop.f32.mrb[73].mxu1  ;;  %v11170_v37 = vld [vmem:[%s16184_s0 + $0x40] sm:$0xff]  }
 0x170   :  { %v9331_v19 = vpop.f32.mrb[73].mxu0  ;;  %v1382_v55 = vpop.f32.mrb[74].mxu1  ;;  %v1598_v56 = vrot.slane %v11170_v37, 1 }
 0x171   :  { %v951_v61 = vpop.f32.mrb[74].mxu0  ;;  %v12033_v23 = vadd.f32 %v1382_v55, %v935_v46  ;;  %v9490_v15 = vpop.f32.mrb[75].mxu1  ;;  %v11072_v55 = vld [vmem:[%s16184_s0 + $0x30] sm:$0xff]  }
 0x172   :  { %v9332_v41 = vpop.f32.mrb[75].mxu0  ;;  %v1599_v8 = vsel %vm1582_vm4, %v1596_v33, %v1598_v56 }
 0x173   :  { %9764 = vmatmul.mubr.msk.bf16.gmra.mrb[180].mxu1 %vm642_vm3, %v2525_v14 }
 0x174   :  { %9614 = vmatmul.mubr.msk.bf16.gmra.mrb[180].mxu0 %vm642_vm3, %v1597_v58  ;;  %9767 = vmatprep.mubr.msk.bf16.mxu1 %vm11310_vm1, %v16191_v2  ;;  %v2527_v58 = vsel %vm1582_vm4, %v2524_v31, %v2526_v3  ;;  %v2528_v31 = vrot.slane %v11072_v55, 1 }
 0x175   :  { %9617 = vmatprep.mubr.msk.bf16.mxu0 %vm11310_vm1, %v16191_v2 }
 0x176   :  { %v1387_v46 = vpop.f32.mrb[76].mxu1 }
 0x177   :  { %v956_v32 = vpop.f32.mrb[76].mxu0  ;;  %v12044_v38 = vadd.f32 %v1387_v46, %v940_v9  ;;  %v9493_v45 = vpop.f32.mrb[77].mxu1  ;;  %v11171_v9 = vld [vmem:[%s16184_s0 + $0x48] sm:$0xff]  }
 0x178   :  { %v9335_v36 = vpop.f32.mrb[77].mxu0  ;;  %v1390_v19 = vpop.f32.mrb[78].mxu1  ;;  %v1600_v33 = vrot.slane %v11171_v9, 1 }
 0x179   :  { %v959_v11 = vpop.f32.mrb[78].mxu0  ;;  %v12051_v41 = vadd.f32 %v1390_v19, %v943_v20  ;;  %v9494_v14 = vpop.f32.mrb[79].mxu1 }
 0x17a   :  { %v9336_v57 = vpop.f32.mrb[79].mxu0  ;;  %v1601_v45 = vsel %vm1582_vm4, %v1598_v56, %v1600_v33 }
 0x17b   :  { %9768 = vmatmul.mubr.msk.bf16.gmra.mrb[184].mxu1 %vm642_vm3, %v2527_v58  ;;  %v2529_v57 = vsel %vm1582_vm4, %v2526_v3, %v2528_v31  ;;  %v11073_v58 = vld [vmem:[%s16184_s0 + $0x38] sm:$0xff]  }
 0x17c   :  { %9618 = vmatmul.mubr.msk.bf16.gmra.mrb[184].mxu0 %vm642_vm3, %v1599_v8  ;;  %9771 = vmatprep.mubr.msk.bf16.mxu1 %vm11310_vm1, %v16191_v2  ;;  %v2530_v3 = vrot.slane %v11073_v58, 1 }
 0x17d   :  { %9621 = vmatprep.mubr.msk.bf16.mxu0 %vm11310_vm1, %v16191_v2 }
 0x17e   :  { %v1395_v20 = vpop.f32.mrb[80].mxu1 }
 0x17f   :  { %v964_v0 = vpop.f32.mrb[80].mxu0  ;;  %v12062_v37 = vadd.f32 %v1395_v20, %v948_v50  ;;  %v9497_v46 = vpop.f32.mrb[81].mxu1  ;;  %v11172_v50 = vld [vmem:[%s16184_s0 + $0x50] sm:$0xff]  }
 0x180   :  { %v9339_v15 = vpop.f32.mrb[81].mxu0  ;;  %v1398_v8 = vpop.f32.mrb[82].mxu1  ;;  %v1602_v56 = vrot.slane %v11172_v50, 1  ;;  %v11074_v50 = vld [vmem:[%s16184_s0 + $0x40] sm:$0xff]  }
 0x181   :  { %v967_v36 = vpop.f32.mrb[82].mxu0  ;;  %v12069_v14 = vadd.f32 %v1398_v8, %v951_v61  ;;  %v9498_v55 = vpop.f32.mrb[83].mxu1 }
 0x182   :  { %v9340_v19 = vpop.f32.mrb[83].mxu0  ;;  %v1603_v8 = vsel %vm1582_vm4, %v1600_v33, %v1602_v56  ;;  %v2531_v55 = vsel %vm1582_vm4, %v2528_v31, %v2530_v3  ;;  %v2532_v31 = vrot.slane %v11074_v50, 1 }
 0x183   :  { %16194 = vst [vmem:[#allocation5_spill] sm:$0xff] %v12069_v14  ;;  %9772 = vmatmul.mubr.msk.bf16.gmra.mrb[188].mxu1 %vm642_vm3, %v2529_v57 }
 0x184   :  { %9622 = vmatmul.mubr.msk.bf16.gmra.mrb[188].mxu0 %vm642_vm3, %v1601_v45  ;;  %9775 = vmatprep.mubr.msk.bf16.mxu1 %vm11310_vm1, %v16191_v2 }
 0x185   :  { %9625 = vmatprep.mubr.msk.bf16.mxu0 %vm11310_vm1, %v16191_v2 }
 0x186   :  { %v1403_v61 = vpop.f32.mrb[84].mxu1 }
 0x187   :  { %v972_v9 = vpop.f32.mrb[84].mxu0  ;;  %v12080_v15 = vadd.f32 %v1403_v61, %v956_v32  ;;  %v9501_v46 = vpop.f32.mrb[85].mxu1  ;;  %v11173_v32 = vld [vmem:[%s16184_s0 + $0x58] sm:$0xff]  }
 0x188   :  { %v9343_v20 = vpop.f32.mrb[85].mxu0  ;;  %v1406_v19 = vpop.f32.mrb[86].mxu1  ;;  %v1604_v33 = vrot.slane %v11173_v32, 1  ;;  %v11075_v32 = vld [vmem:[%s16184_s0 + $0x48] sm:$0xff]  }
 0x189   :  { %16195 = vst [vmem:[#allocation6_spill] sm:$0xff] %v12080_v15  ;;  %v975_v45 = vpop.f32.mrb[86].mxu0  ;;  %v12087_v14 = vadd.f32 %v1406_v19, %v959_v11  ;;  %v9502_v58 = vpop.f32.mrb[87].mxu1 }
 0x18a   :  { %v9344_v57 = vpop.f32.mrb[87].mxu0 }
 0x18b   :  { %16196 = vst [vmem:[#allocation7_spill] sm:$0xff] %v12087_v14  ;;  %9776 = vmatmul.mubr.msk.bf16.gmra.mrb[192].mxu1 %vm642_vm3, %v2531_v55  ;;  %v1605_v57 = vsel %vm1582_vm4, %v1602_v56, %v1604_v33  ;;  %v2533_v14 = vsel %vm1582_vm4, %v2530_v3, %v2532_v31  ;;  %v3168_v3 = vld [vmem:[%s16185_s1 + $0x10] sm:$0xf] }
 0x18c   :  { %9626 = vmatmul.mubr.msk.bf16.gmra.mrb[192].mxu0 %vm642_vm3, %v1603_v8  ;;  %9779 = vmatprep.mubr.msk.bf16.mxu1 %vm11310_vm1, %v16191_v2 }
 0x18d   :  { %9629 = vmatprep.mubr.msk.bf16.mxu0 %vm11310_vm1, %v16191_v2 }
 0x18e   :  { %v1411_v11 = vpop.f32.mrb[88].mxu1 }
 0x18f   :  { %v980_v61 = vpop.f32.mrb[88].mxu0  ;;  %v12098_v46 = vadd.f32 %v1411_v11, %v964_v0  ;;  %v9505_v8 = vpop.f32.mrb[89].mxu1  ;;  %v11174_v0 = vld [vmem:[%s16184_s0 + $0x60] sm:$0xff]   ;;  %v3665_v11 = vsel %vm766_vm0, %v3168_v3, 0 }
 0x190   :  { %v9347_v20 = vpop.f32.mrb[89].mxu0  ;;  %v1414_v55 = vpop.f32.mrb[90].mxu1  ;;  %v1606_v56 = vrot.slane %v11174_v0, 1  ;;  %9920 = vmatpush3.bf16.msra.mxu0 %v3665_v11 }
 0x191   :  { %16197 = vst [vmem:[#allocation8_spill] sm:$0xff] %v12098_v46  ;;  %v983_v19 = vpop.f32.mrb[90].mxu0  ;;  %v12105_v15 = vadd.f32 %v1414_v55, %v967_v36  ;;  %v9506_v50 = vpop.f32.mrb[91].mxu1  ;;  %v2534_v36 = vrot.slane %v11075_v32, 1  ;;  %10251 = vmatprep.subr.bf16.mxu0 %v16191_v2  ;;  %v11076_v32 = vld [vmem:[%s16184_s0 + $0x50] sm:$0xff]  }
 0x192   :  { %v9348_v58 = vpop.f32.mrb[91].mxu0  ;;  %v1607_v50 = vsel %vm1582_vm4, %v1604_v33, %v1606_v56  ;;  %v2536_v33 = vrot.slane %v11076_v32, 1 }
 0x193   :  { %16198 = vst [vmem:[#allocation9_spill] sm:$0xff] %v12105_v15  ;;  %9780 = vmatmul.mubr.msk.bf16.gmra.mrb[196].mxu1 %vm642_vm3, %v2533_v14  ;;  %v2535_v46 = vsel %vm1582_vm4, %v2532_v31, %v2534_v36 }
 0x194   :  { %9630 = vmatmul.mubr.msk.bf16.gmra.mrb[196].mxu0 %vm642_vm3, %v1605_v57  ;;  %9783 = vmatprep.mubr.msk.bf16.mxu1 %vm11310_vm1, %v16191_v2 }
 0x195   :  { %9633 = vmatprep.mubr.msk.bf16.mxu0 %vm11310_vm1, %v16191_v2 }
 0x196   :  { %v1419_v14 = vpop.f32.mrb[92].mxu1 }
 0x197   :  { %v988_v20 = vpop.f32.mrb[92].mxu0  ;;  %v12121_v57 = vadd.f32 %v1419_v14, %v972_v9  ;;  %v9509_v55 = vpop.f32.mrb[93].mxu1  ;;  %v11175_v9 = vld [vmem:[%s16184_s0 + $0x68] sm:$0xff]  }
 0x198   :  { %v9351_v8 = vpop.f32.mrb[93].mxu0  ;;  %v1422_v0 = vpop.f32.mrb[94].mxu1 }
 0x199   :  { %16199 = vst [vmem:[#allocation10_spill] sm:$0xff] %v12121_v57  ;;  %v991_v58 = vpop.f32.mrb[94].mxu0  ;;  %v12128_v3 = vadd.f32 %v1422_v0, %v975_v45  ;;  %v9510_v11 = vpop.f32.mrb[95].mxu1 }
 0x19a   :  { %v9352_v15 = vpop.f32.mrb[95].mxu0 }
 0x19b   :  { %16200 = vst [vmem:[#allocation11_spill] sm:$0xff] %v12128_v3  ;;  %9784 = vmatmul.mubr.msk.bf16.gmra.mrb[200].mxu1 %vm642_vm3, %v2535_v46  ;;  %v1608_v15 = vrot.slane %v11175_v9, 1  ;;  %v2537_v3 = vsel %vm1582_vm4, %v2534_v36, %v2536_v33  ;;  %v11077_v9 = vld [vmem:[%s16184_s0 + $0x58] sm:$0xff]  }
 0x19c   :  { %9634 = vmatmul.mubr.msk.bf16.gmra.mrb[200].mxu0 %vm642_vm3, %v1607_v50  ;;  %9787 = vmatprep.mubr.msk.bf16.mxu1 %vm11310_vm1, %v16191_v2  ;;  %v2538_v36 = vrot.slane %v11077_v9, 1 }
 0x19d   :  { %9637 = vmatprep.mubr.msk.bf16.mxu0 %vm11310_vm1, %v16191_v2  ;;  %v1609_v46 = vsel %vm1582_vm4, %v1606_v56, %v1608_v15 }
 0x19e   :  { %v1427_v45 = vpop.f32.mrb[96].mxu1 }
 0x19f   :  { %v996_v31 = vpop.f32.mrb[96].mxu0  ;;  %v12139_v8 = vadd.f32 %v1427_v45, %v980_v61  ;;  %v9513_v55 = vpop.f32.mrb[97].mxu1  ;;  %v11176_v61 = vld [vmem:[%s16184_s0 + $0x70] sm:$0xff]  }
 0x1a0   :  { %v9355_v14 = vpop.f32.mrb[97].mxu0  ;;  %v1430_v0 = vpop.f32.mrb[98].mxu1  ;;  %v1610_v56 = vrot.slane %v11176_v61, 1  ;;  %v11078_v61 = vld [vmem:[%s16184_s0 + $0x60] sm:$0xff]  }
 0x1a1   :  { %16201 = vst [vmem:[#allocation12_spill] sm:$0xff] %v12139_v8  ;;  %v999_v50 = vpop.f32.mrb[98].mxu0  ;;  %v12146_v57 = vadd.f32 %v1430_v0, %v983_v19  ;;  %v9514_v32 = vpop.f32.mrb[99].mxu1 }
 0x1a2   :  { %v9356_v11 = vpop.f32.mrb[99].mxu0 }
 0x1a3   :  { %16202 = vst [vmem:[#allocation13_spill] sm:$0xff] %v12146_v57  ;;  %9788 = vmatmul.mubr.msk.bf16.gmra.mrb[204].mxu1 %vm642_vm3, %v2537_v3  ;;  %v1611_v3 = vsel %vm1582_vm4, %v1608_v15, %v1610_v56  ;;  %v2539_v57 = vsel %vm1582_vm4, %v2536_v33, %v2538_v36  ;;  %v2540_v33 = vrot.slane %v11078_v61, 1 }
 0x1a4   :  { %9638 = vmatmul.mubr.msk.bf16.gmra.mrb[204].mxu0 %vm642_vm3, %v1609_v46  ;;  %9791 = vmatprep.mubr.msk.bf16.mxu1 %vm11310_vm1, %v16191_v2 }
 0x1a5   :  { %9641 = vmatprep.mubr.msk.bf16.mxu0 %vm11310_vm1, %v16191_v2 }
 0x1a6   :  { %v1435_v19 = vpop.f32.mrb[100].mxu1 }
 0x1a7   :  { %v1004_v45 = vpop.f32.mrb[100].mxu0  ;;  %v12157_v55 = vadd.f32 %v1435_v19, %v988_v20  ;;  %v9517_v46 = vpop.f32.mrb[101].mxu1  ;;  %v11177_v20 = vld [vmem:[%s16184_s0 + $0x78] sm:$0xff]  }
 0x1a8   :  { %v9359_v14 = vpop.f32.mrb[101].mxu0  ;;  %v1438_v11 = vpop.f32.mrb[102].mxu1  ;;  %v1612_v15 = vrot.slane %v11177_v20, 1  ;;  %v11079_v20 = vld [vmem:[%s16184_s0 + $0x68] sm:$0xff]  }
 0x1a9   :  { %16203 = vst [vmem:[#allocation14_spill] sm:$0xff] %v12157_v55  ;;  %v1007_v0 = vpop.f32.mrb[102].mxu0  ;;  %v12164_v8 = vadd.f32 %v1438_v11, %v991_v58  ;;  %v9518_v9 = vpop.f32.mrb[103].mxu1 }
 0x1aa   :  { %v9360_v32 = vpop.f32.mrb[103].mxu0 }
 0x1ab   :  { %16204 = vst [vmem:[#allocation15_spill] sm:$0xff] %v12164_v8  ;;  %9792 = vmatmul.mubr.msk.bf16.gmra.mrb[208].mxu1 %vm642_vm3, %v2539_v57  ;;  %v1613_v57 = vsel %vm1582_vm4, %v1610_v56, %v1612_v15  ;;  %v2541_v8 = vsel %vm1582_vm4, %v2538_v36, %v2540_v33  ;;  %v2542_v36 = vrot.slane %v11079_v20, 1 }
 0x1ac   :  { %9642 = vmatmul.mubr.msk.bf16.gmra.mrb[208].mxu0 %vm642_vm3, %v1611_v3  ;;  %9795 = vmatprep.mubr.msk.bf16.mxu1 %vm11310_vm1, %v16191_v2 }
 0x1ad   :  { %9645 = vmatprep.mubr.msk.bf16.mxu0 %vm11310_vm1, %v16191_v2 }
 0x1ae   :  { %v1443_v58 = vpop.f32.mrb[104].mxu1 }
 0x1af   :  { %v1012_v19 = vpop.f32.mrb[104].mxu0  ;;  %v12175_v46 = vadd.f32 %v1443_v58, %v996_v31  ;;  %v9521_v3 = vpop.f32.mrb[105].mxu1  ;;  %v11178_v31 = vld [vmem:[%s16184_s0 + $0x80] sm:$0xff]  }
 0x1b0   :  { %v9363_v14 = vpop.f32.mrb[105].mxu0  ;;  %v1446_v32 = vpop.f32.mrb[106].mxu1  ;;  %v1614_v56 = vrot.slane %v11178_v31, 1  ;;  %v11080_v31 = vld [vmem:[%s16184_s0 + $0x70] sm:$0xff]  }
 0x1b1   :  { %16205 = vst [vmem:[#allocation16_spill] sm:$0xff] %v12175_v46  ;;  %v1015_v11 = vpop.f32.mrb[106].mxu0  ;;  %v12182_v55 = vadd.f32 %v1446_v32, %v999_v50  ;;  %v9522_v61 = vpop.f32.mrb[107].mxu1 }
 0x1b2   :  { %v9364_v9 = vpop.f32.mrb[107].mxu0 }
 0x1b3   :  { %16206 = vst [vmem:[#allocation17_spill] sm:$0xff] %v12182_v55  ;;  %9796 = vmatmul.mubr.msk.bf16.gmra.mrb[212].mxu1 %vm642_vm3, %v2541_v8  ;;  %v1615_v8 = vsel %vm1582_vm4, %v1612_v15, %v1614_v56  ;;  %v2543_v55 = vsel %vm1582_vm4, %v2540_v33, %v2542_v36  ;;  %v2544_v33 = vrot.slane %v11080_v31, 1 }
 0x1b4   :  { %9646 = vmatmul.mubr.msk.bf16.gmra.mrb[212].mxu0 %vm642_vm3, %v1613_v57  ;;  %9799 = vmatprep.mubr.msk.bf16.mxu1 %vm11310_vm1, %v16191_v2 }
 0x1b5   :  { %9649 = vmatprep.mubr.msk.bf16.mxu0 %vm11310_vm1, %v16191_v2 }
 0x1b6   :  { %v1451_v50 = vpop.f32.mrb[108].mxu1 }
 0x1b7   :  { %v1020_v58 = vpop.f32.mrb[108].mxu0  ;;  %v12193_v3 = vadd.f32 %v1451_v50, %v1004_v45  ;;  %v9525_v57 = vpop.f32.mrb[109].mxu1  ;;  %v11179_v45 = vld [vmem:[%s16184_s0 + $0x88] sm:$0xff]  }
 0x1b8   :  { %v9367_v14 = vpop.f32.mrb[109].mxu0  ;;  %v1454_v9 = vpop.f32.mrb[110].mxu1  ;;  %v1616_v15 = vrot.slane %v11179_v45, 1  ;;  %v11081_v45 = vld [vmem:[%s16184_s0 + $0x78] sm:$0xff]  }
 0x1b9   :  { %16207 = vst [vmem:[#allocation18_spill] sm:$0xff] %v12193_v3  ;;  %v1023_v32 = vpop.f32.mrb[110].mxu0  ;;  %v12200_v46 = vadd.f32 %v1454_v9, %v1007_v0  ;;  %v9526_v20 = vpop.f32.mrb[111].mxu1 }
 0x1ba   :  { %v9368_v61 = vpop.f32.mrb[111].mxu0 }
 0x1bb   :  { %16208 = vst [vmem:[#allocation19_spill] sm:$0xff] %v12200_v46  ;;  %9800 = vmatmul.mubr.msk.bf16.gmra.mrb[216].mxu1 %vm642_vm3, %v2543_v55  ;;  %v1617_v55 = vsel %vm1582_vm4, %v1614_v56, %v1616_v15  ;;  %v2545_v46 = vsel %vm1582_vm4, %v2542_v36, %v2544_v33  ;;  %v2546_v36 = vrot.slane %v11081_v45, 1 }
 0x1bc   :  { %9650 = vmatmul.mubr.msk.bf16.gmra.mrb[216].mxu0 %vm642_vm3, %v1615_v8  ;;  %9803 = vmatprep.mubr.msk.bf16.mxu1 %vm11310_vm1, %v16191_v2 }
 0x1bd   :  { %9653 = vmatprep.mubr.msk.bf16.mxu0 %vm11310_vm1, %v16191_v2 }
 0x1be   :  { %v1459_v0 = vpop.f32.mrb[112].mxu1 }
 0x1bf   :  { %v1028_v50 = vpop.f32.mrb[112].mxu0  ;;  %v12211_v57 = vadd.f32 %v1459_v0, %v1012_v19  ;;  %v9529_v8 = vpop.f32.mrb[113].mxu1  ;;  %v11180_v19 = vld [vmem:[%s16184_s0 + $0x90] sm:$0xff]  }
 0x1c0   :  { %v9371_v14 = vpop.f32.mrb[113].mxu0  ;;  %v1462_v61 = vpop.f32.mrb[114].mxu1  ;;  %v1618_v56 = vrot.slane %v11180_v19, 1  ;;  %v11082_v19 = vld [vmem:[%s16184_s0 + $0x80] sm:$0xff]  }
 0x1c1   :  { %16209 = vst [vmem:[#allocation20_spill] sm:$0xff] %v12211_v57  ;;  %v1031_v9 = vpop.f32.mrb[114].mxu0  ;;  %v12218_v3 = vadd.f32 %v1462_v61, %v1015_v11  ;;  %v9530_v31 = vpop.f32.mrb[115].mxu1 }
 0x1c2   :  { %v9372_v20 = vpop.f32.mrb[115].mxu0 }
 0x1c3   :  { %16210 = vst [vmem:[#allocation21_spill] sm:$0xff] %v12218_v3  ;;  %9804 = vmatmul.mubr.msk.bf16.gmra.mrb[220].mxu1 %vm642_vm3, %v2545_v46  ;;  %v1619_v46 = vsel %vm1582_vm4, %v1616_v15, %v1618_v56  ;;  %v2547_v3 = vsel %vm1582_vm4, %v2544_v33, %v2546_v36  ;;  %v2548_v33 = vrot.slane %v11082_v19, 1 }
 0x1c4   :  { %9654 = vmatmul.mubr.msk.bf16.gmra.mrb[220].mxu0 %vm642_vm3, %v1617_v55  ;;  %9807 = vmatprep.mubr.msk.bf16.mxu1 %vm11310_vm1, %v16191_v2 }
 0x1c5   :  { %9657 = vmatprep.mubr.msk.bf16.mxu0 %vm11310_vm1, %v16191_v2 }
 0x1c6   :  { %v1467_v11 = vpop.f32.mrb[116].mxu1 }
 0x1c7   :  { %v1036_v0 = vpop.f32.mrb[116].mxu0  ;;  %v12229_v8 = vadd.f32 %v1467_v11, %v1020_v58  ;;  %v9533_v55 = vpop.f32.mrb[117].mxu1  ;;  %v11181_v58 = vld [vmem:[%s16184_s0 + $0x98] sm:$0xff]  }
 0x1c8   :  { %v9375_v14 = vpop.f32.mrb[117].mxu0  ;;  %v1470_v20 = vpop.f32.mrb[118].mxu1  ;;  %v1620_v15 = vrot.slane %v11181_v58, 1  ;;  %v11083_v58 = vld [vmem:[%s16184_s0 + $0x88] sm:$0xff]  }
 0x1c9   :  { %16211 = vst [vmem:[#allocation22_spill] sm:$0xff] %v12229_v8  ;;  %v1039_v61 = vpop.f32.mrb[118].mxu0  ;;  %v12236_v57 = vadd.f32 %v1470_v20, %v1023_v32  ;;  %v9534_v45 = vpop.f32.mrb[119].mxu1 }
 0x1ca   :  { %v9376_v31 = vpop.f32.mrb[119].mxu0 }
 0x1cb   :  { %16212 = vst [vmem:[#allocation23_spill] sm:$0xff] %v12236_v57  ;;  %9808 = vmatmul.mubr.msk.bf16.gmra.mrb[224].mxu1 %vm642_vm3, %v2547_v3  ;;  %v1621_v3 = vsel %vm1582_vm4, %v1618_v56, %v1620_v15  ;;  %v2549_v57 = vsel %vm1582_vm4, %v2546_v36, %v2548_v33  ;;  %v2550_v36 = vrot.slane %v11083_v58, 1 }
 0x1cc   :  { %9658 = vmatmul.mubr.msk.bf16.gmra.mrb[224].mxu0 %vm642_vm3, %v1619_v46  ;;  %9811 = vmatprep.mubr.msk.bf16.mxu1 %vm11310_vm1, %v16191_v2 }
 0x1cd   :  { %9661 = vmatprep.mubr.msk.bf16.mxu0 %vm11310_vm1, %v16191_v2 }
 0x1ce   :  { %v1475_v32 = vpop.f32.mrb[120].mxu1 }
 0x1cf   :  { %v1044_v11 = vpop.f32.mrb[120].mxu0  ;;  %v12247_v55 = vadd.f32 %v1475_v32, %v1028_v50  ;;  %v9537_v46 = vpop.f32.mrb[121].mxu1  ;;  %v11182_v50 = vld [vmem:[%s16184_s0 + $0xa0] sm:$0xff]  }
 0x1d0   :  { %v9379_v14 = vpop.f32.mrb[121].mxu0  ;;  %v1478_v31 = vpop.f32.mrb[122].mxu1  ;;  %v1622_v56 = vrot.slane %v11182_v50, 1  ;;  %v11084_v50 = vld [vmem:[%s16184_s0 + $0x90] sm:$0xff]  }
 0x1d1   :  { %16213 = vst [vmem:[#allocation24_spill] sm:$0xff] %v12247_v55  ;;  %v1047_v20 = vpop.f32.mrb[122].mxu0  ;;  %v12254_v8 = vadd.f32 %v1478_v31, %v1031_v9  ;;  %v9538_v19 = vpop.f32.mrb[123].mxu1 }
 0x1d2   :  { %v9380_v45 = vpop.f32.mrb[123].mxu0 }
 0x1d3   :  { %16214 = vst [vmem:[#allocation25_spill] sm:$0xff] %v12254_v8  ;;  %9812 = vmatmul.mubr.msk.bf16.gmra.mrb[228].mxu1 %vm642_vm3, %v2549_v57  ;;  %v1623_v57 = vsel %vm1582_vm4, %v1620_v15, %v1622_v56  ;;  %v2551_v8 = vsel %vm1582_vm4, %v2548_v33, %v2550_v36  ;;  %v2552_v33 = vrot.slane %v11084_v50, 1 }
 0x1d4   :  { %9662 = vmatmul.mubr.msk.bf16.gmra.mrb[228].mxu0 %vm642_vm3, %v1621_v3  ;;  %9815 = vmatprep.mubr.msk.bf16.mxu1 %vm11310_vm1, %v16191_v2 }
 0x1d5   :  { %9665 = vmatprep.mubr.msk.bf16.mxu0 %vm11310_vm1, %v16191_v2 }
 0x1d6   :  { %v1483_v9 = vpop.f32.mrb[124].mxu1 }
 0x1d7   :  { %v1052_v32 = vpop.f32.mrb[124].mxu0  ;;  %v12265_v46 = vadd.f32 %v1483_v9, %v1036_v0  ;;  %v9541_v3 = vpop.f32.mrb[125].mxu1  ;;  %v11183_v0 = vld [vmem:[%s16184_s0 + $0xa8] sm:$0xff]  }
 0x1d8   :  { %v9383_v14 = vpop.f32.mrb[125].mxu0  ;;  %v1486_v45 = vpop.f32.mrb[126].mxu1  ;;  %v1624_v15 = vrot.slane %v11183_v0, 1  ;;  %v11085_v0 = vld [vmem:[%s16184_s0 + $0x98] sm:$0xff]  }
 0x1d9   :  { %16215 = vst [vmem:[#allocation26_spill] sm:$0xff] %v12265_v46  ;;  %v1055_v31 = vpop.f32.mrb[126].mxu0  ;;  %v12272_v55 = vadd.f32 %v1486_v45, %v1039_v61  ;;  %v9542_v58 = vpop.f32.mrb[127].mxu1 }
 0x1da   :  { %v9384_v19 = vpop.f32.mrb[127].mxu0 }
 0x1db   :  { %16216 = vst [vmem:[#allocation27_spill] sm:$0xff] %v12272_v55  ;;  %9816 = vmatmul.mubr.msk.bf16.gmra.mrb[232].mxu1 %vm642_vm3, %v2551_v8  ;;  %v1625_v8 = vsel %vm1582_vm4, %v1622_v56, %v1624_v15  ;;  %v2553_v55 = vsel %vm1582_vm4, %v2550_v36, %v2552_v33  ;;  %v2554_v36 = vrot.slane %v11085_v0, 1 }
 0x1dc   :  { %9666 = vmatmul.mubr.msk.bf16.gmra.mrb[232].mxu0 %vm642_vm3, %v1623_v57  ;;  %9819 = vmatprep.mubr.msk.bf16.mxu1 %vm11310_vm1, %v16191_v2 }
 0x1dd   :  { %9669 = vmatprep.mubr.msk.bf16.mxu0 %vm11310_vm1, %v16191_v2 }
 0x1de   :  { %v1491_v61 = vpop.f32.mrb[128].mxu1 }
 0x1df   :  { %v1060_v9 = vpop.f32.mrb[128].mxu0  ;;  %v12283_v3 = vadd.f32 %v1491_v61, %v1044_v11  ;;  %v9545_v57 = vpop.f32.mrb[129].mxu1  ;;  %v11184_v11 = vld [vmem:[%s16184_s0 + $0xb0] sm:$0xff]  }
 0x1e0   :  { %v9387_v14 = vpop.f32.mrb[129].mxu0  ;;  %v1494_v19 = vpop.f32.mrb[130].mxu1  ;;  %v1626_v56 = vrot.slane %v11184_v11, 1  ;;  %v11086_v11 = vld [vmem:[%s16184_s0 + $0xa0] sm:$0xff]  }
 0x1e1   :  { %16217 = vst [vmem:[#allocation28_spill] sm:$0xff] %v12283_v3  ;;  %v1063_v45 = vpop.f32.mrb[130].mxu0  ;;  %v12290_v46 = vadd.f32 %v1494_v19, %v1047_v20  ;;  %v9546_v50 = vpop.f32.mrb[131].mxu1 }
 0x1e2   :  { %v9388_v58 = vpop.f32.mrb[131].mxu0 }
 0x1e3   :  { %16218 = vst [vmem:[#allocation29_spill] sm:$0xff] %v12290_v46  ;;  %9820 = vmatmul.mubr.msk.bf16.gmra.mrb[236].mxu1 %vm642_vm3, %v2553_v55  ;;  %v1627_v55 = vsel %vm1582_vm4, %v1624_v15, %v1626_v56  ;;  %v2555_v46 = vsel %vm1582_vm4, %v2552_v33, %v2554_v36  ;;  %v2556_v33 = vrot.slane %v11086_v11, 1 }
 0x1e4   :  { %9670 = vmatmul.mubr.msk.bf16.gmra.mrb[236].mxu0 %vm642_vm3, %v1625_v8  ;;  %9823 = vmatprep.mubr.msk.bf16.mxu1 %vm11310_vm1, %v16191_v2 }
 0x1e5   :  { %9673 = vmatprep.mubr.msk.bf16.mxu0 %vm11310_vm1, %v16191_v2 }
 0x1e6   :  { %v1499_v20 = vpop.f32.mrb[132].mxu1 }
 0x1e7   :  { %v1068_v61 = vpop.f32.mrb[132].mxu0  ;;  %v12301_v57 = vadd.f32 %v1499_v20, %v1052_v32  ;;  %v9549_v8 = vpop.f32.mrb[133].mxu1  ;;  %v11185_v32 = vld [vmem:[%s16184_s0 + $0xb8] sm:$0xff]  }
 0x1e8   :  { %v9391_v14 = vpop.f32.mrb[133].mxu0  ;;  %v1502_v58 = vpop.f32.mrb[134].mxu1  ;;  %v1628_v15 = vrot.slane %v11185_v32, 1  ;;  %v11087_v32 = vld [vmem:[%s16184_s0 + $0xa8] sm:$0xff]  }
 0x1e9   :  { %16219 = vst [vmem:[#allocation30_spill] sm:$0xff] %v12301_v57  ;;  %v1071_v19 = vpop.f32.mrb[134].mxu0  ;;  %v12308_v3 = vadd.f32 %v1502_v58, %v1055_v31  ;;  %v9550_v0 = vpop.f32.mrb[135].mxu1 }
 0x1ea   :  { %v9392_v50 = vpop.f32.mrb[135].mxu0 }
 0x1eb   :  { %16220 = vst [vmem:[#allocation31_spill] sm:$0xff] %v12308_v3  ;;  %9824 = vmatmul.mubr.msk.bf16.gmra.mrb[240].mxu1 %vm642_vm3, %v2555_v46  ;;  %v1629_v46 = vsel %vm1582_vm4, %v1626_v56, %v1628_v15  ;;  %v2557_v3 = vsel %vm1582_vm4, %v2554_v36, %v2556_v33  ;;  %v2558_v36 = vrot.slane %v11087_v32, 1 }
 0x1ec   :  { %9674 = vmatmul.mubr.msk.bf16.gmra.mrb[240].mxu0 %vm642_vm3, %v1627_v55  ;;  %9827 = vmatprep.mubr.msk.bf16.mxu1 %vm11310_vm1, %v16191_v2 }
 0x1ed   :  { %9677 = vmatprep.mubr.msk.bf16.mxu0 %vm11310_vm1, %v16191_v2 }
 0x1ee   :  { %v1507_v31 = vpop.f32.mrb[136].mxu1 }
 0x1ef   :  { %v1076_v20 = vpop.f32.mrb[136].mxu0  ;;  %v12319_v8 = vadd.f32 %v1507_v31, %v1060_v9  ;;  %v9553_v55 = vpop.f32.mrb[137].mxu1  ;;  %v11186_v9 = vld [vmem:[%s16184_s0 + $0xc0] sm:$0xff]  }
 0x1f0   :  { %v9395_v14 = vpop.f32.mrb[137].mxu0  ;;  %v1510_v50 = vpop.f32.mrb[138].mxu1  ;;  %v1630_v56 = vrot.slane %v11186_v9, 1  ;;  %v11088_v9 = vld [vmem:[%s16184_s0 + $0xb0] sm:$0xff]  }
 0x1f1   :  { %16221 = vst [vmem:[#allocation32_spill] sm:$0xff] %v12319_v8  ;;  %v1079_v58 = vpop.f32.mrb[138].mxu0  ;;  %v12326_v57 = vadd.f32 %v1510_v50, %v1063_v45  ;;  %v9554_v11 = vpop.f32.mrb[139].mxu1 }
 0x1f2   :  { %v9396_v0 = vpop.f32.mrb[139].mxu0 }
 0x1f3   :  { %16222 = vst [vmem:[#allocation33_spill] sm:$0xff] %v12326_v57  ;;  %9828 = vmatmul.mubr.msk.bf16.gmra.mrb[244].mxu1 %vm642_vm3, %v2557_v3  ;;  %v1631_v3 = vsel %vm1582_vm4, %v1628_v15, %v1630_v56  ;;  %v2559_v57 = vsel %vm1582_vm4, %v2556_v33, %v2558_v36  ;;  %v2560_v33 = vrot.slane %v11088_v9, 1 }
 0x1f4   :  { %9678 = vmatmul.mubr.msk.bf16.gmra.mrb[244].mxu0 %vm642_vm3, %v1629_v46  ;;  %9831 = vmatprep.mubr.msk.bf16.mxu1 %vm11310_vm1, %v16191_v2 }
 0x1f5   :  { %9681 = vmatprep.mubr.msk.bf16.mxu0 %vm11310_vm1, %v16191_v2 }
 0x1f6   :  { %v1515_v45 = vpop.f32.mrb[140].mxu1 }
 0x1f7   :  { %v1084_v31 = vpop.f32.mrb[140].mxu0  ;;  %v12337_v55 = vadd.f32 %v1515_v45, %v1068_v61  ;;  %v9557_v46 = vpop.f32.mrb[141].mxu1  ;;  %v11187_v61 = vld [vmem:[%s16184_s0 + $0xc8] sm:$0xff]  }
 0x1f8   :  { %v9399_v14 = vpop.f32.mrb[141].mxu0  ;;  %v1518_v0 = vpop.f32.mrb[142].mxu1  ;;  %v1632_v15 = vrot.slane %v11187_v61, 1  ;;  %v2561_v61 = vsel %vm1582_vm4, %v2558_v36, %v2560_v33 }
 0x1f9   :  { %16223 = vst [vmem:[#allocation34_spill] sm:$0xff] %v12337_v55  ;;  %v1087_v50 = vpop.f32.mrb[142].mxu0  ;;  %v12344_v8 = vadd.f32 %v1518_v0, %v1071_v19  ;;  %v9558_v32 = vpop.f32.mrb[143].mxu1 }
 0x1fa   :  { %v9400_v11 = vpop.f32.mrb[143].mxu0 }
 0x1fb   :  { %16224 = vst [vmem:[#allocation35_spill] sm:$0xff] %v12344_v8  ;;  %9832 = vmatmul.mubr.msk.bf16.gmra.mrb[248].mxu1 %vm642_vm3, %v2559_v57  ;;  %v1633_v57 = vsel %vm1582_vm4, %v1630_v56, %v1632_v15  ;;  %v11089_v8 = vld [vmem:[%s16184_s0 + $0xb8] sm:$0xff]  }
 0x1fc   :  { %9682 = vmatmul.mubr.msk.bf16.gmra.mrb[248].mxu0 %vm642_vm3, %v1631_v3  ;;  %9835 = vmatprep.mubr.msk.bf16.mxu1 %vm11310_vm1, %v16191_v2  ;;  %v2562_v56 = vrot.slane %v11089_v8, 1  ;;  %v11090_v8 = vld [vmem:[%s16184_s0 + $0xc0] sm:$0xff]  }
 0x1fd   :  { %9685 = vmatprep.mubr.msk.bf16.mxu0 %vm11310_vm1, %v16191_v2 }
 0x1fe   :  { %v1523_v19 = vpop.f32.mrb[144].mxu1 }
 0x1ff   :  { %v1092_v45 = vpop.f32.mrb[144].mxu0  ;;  %v12355_v46 = vadd.f32 %v1523_v19, %v1076_v20  ;;  %v9561_v3 = vpop.f32.mrb[145].mxu1  ;;  %v11188_v20 = vld [vmem:[%s16184_s0 + $0xd0] sm:$0xff]  }
 0x200   :  { %v9403_v14 = vpop.f32.mrb[145].mxu0  ;;  %v1526_v11 = vpop.f32.mrb[146].mxu1  ;;  %v1634_v19 = vrot.slane %v11188_v20, 1 }
 0x201   :  { %16225 = vst [vmem:[#allocation36_spill] sm:$0xff] %v12355_v46  ;;  %v1095_v0 = vpop.f32.mrb[146].mxu0  ;;  %v12362_v55 = vadd.f32 %v1526_v11, %v1079_v58  ;;  %v9562_v9 = vpop.f32.mrb[147].mxu1 }
 0x202   :  { %v9404_v32 = vpop.f32.mrb[147].mxu0  ;;  %v1635_v3 = vsel %vm1582_vm4, %v1632_v15, %v1634_v19  ;;  %v2563_v9 = vsel %vm1582_vm4, %v2560_v33, %v2562_v56  ;;  %v16229_v15 = vmov 0.0  }
 0x203   :  { %16226 = vst [vmem:[#allocation37_spill] sm:$0xff] %v12362_v55  ;;  %9836 = vmatmul.mubr.msk.bf16.gmra.mrb[252].mxu1 %vm642_vm3, %v2561_v61 }
 0x204   :  { %9686 = vmatmul.mubr.msk.bf16.gmra.mrb[252].mxu0 %vm642_vm3, %v1633_v57  ;;  %9839 = vmatprep.mubr.msk.bf16.mxu1 %vm11310_vm1, %v16191_v2 }
 0x205   :  { %9689 = vmatprep.mubr.msk.bf16.mxu0 %vm11310_vm1, %v16191_v2 }
 0x206   :  { %v1531_v58 = vpop.f32.mrb[148].mxu1 }
 0x207   :  { %v1100_v36 = vpop.f32.mrb[148].mxu0  ;;  %v12374_v57 = vadd.f32 %v1531_v58, %v1084_v31  ;;  %v9565_v11 = vpop.f32.mrb[149].mxu1  ;;  %v11189_v31 = vld [vmem:[%s16184_s0 + $0xd8] sm:$0xff]   ;;  %v2564_v58 = vrot.slane %v11090_v8, 1 }
 0x208   :  { %v9407_v14 = vpop.f32.mrb[149].mxu0  ;;  %v1534_v20 = vpop.f32.mrb[150].mxu1  ;;  %v1636_v33 = vrot.slane %v11189_v31, 1  ;;  %v11091_v31 = vld [vmem:[%s16184_s0 + $0xc8] sm:$0xff]  }
 0x209   :  { %16227 = vst [vmem:[#allocation38_spill] sm:$0xff] %v12374_v57  ;;  %v1103_v32 = vpop.f32.mrb[150].mxu0  ;;  %v12380_v55 = vadd.f32 %v1534_v20, %v1087_v50  ;;  %v9566_v2 = vpop.f32.mrb[151].mxu1  ;;  %v2565_v57 = vsel %vm1582_vm4, %v2562_v56, %v2564_v58 }
 0x20a   :  { %v9408_v61 = vpop.f32.mrb[151].mxu0 }
 0x20b   :  { %16228 = vst [vmem:[#allocation39_spill] sm:$0xff] %v12380_v55  ;;  %9840 = vmatmul.mubr.msk.bf16.gmra.mrb[0].mxu1 %vm642_vm3, %v2563_v9  ;;  %v1637_v9 = vsel %vm1582_vm4, %v1634_v19, %v1636_v33  ;;  %v2566_v19 = vrot.slane %v11091_v31, 1  ;;  %v11092_v31 = vld [vmem:[%s16184_s0 + $0xd0] sm:$0xff]  }
 0x20c   :  { %9690 = vmatmul.mubr.msk.bf16.gmra.mrb[0].mxu0 %vm642_vm3, %v1635_v3  ;;  %9843 = vmatprep.mubr.msk.bf16.mxu1 %vm11310_vm1, %v16229_v15 }
 0x20d   :  { %9693 = vmatprep.mubr.msk.bf16.mxu0 %vm11310_vm1, %v16229_v15 }
 0x20e   :  { %v1539_v50 = vpop.f32.mrb[152].mxu1 }
 0x20f   :  { %v1108_v14 = vpop.f32.mrb[152].mxu0  ;;  %v12391_v2 = vadd.f32 %v1539_v50, %v1092_v45  ;;  %v9569_v3 = vpop.f32.mrb[153].mxu1 }
 0x210   :  { %v9411_v11 = vpop.f32.mrb[153].mxu0  ;;  %v1542_v61 = vpop.f32.mrb[154].mxu1 }
 0x211   :  { %16230 = vst [vmem:[#allocation40_spill] sm:$0xff] %v12391_v2  ;;  %v1111_v20 = vpop.f32.mrb[154].mxu0  ;;  %v12398_v46 = vadd.f32 %v1542_v61, %v1095_v0  ;;  %v9570_v8 = vpop.f32.mrb[155].mxu1  ;;  %v2567_v2 = vsel %vm1582_vm4, %v2564_v58, %v2566_v19 }
 0x212   :  { %v9412_v55 = vpop.f32.mrb[155].mxu0 }
 0x213   :  { %16231 = vst [vmem:[#allocation41_spill] sm:$0xff] %v12398_v46  ;;  %9844 = vmatmul.mubr.msk.bf16.gmra.mrb[4].mxu1 %vm642_vm3, %v2565_v57  ;;  %v11190_v55 = vld [vmem:[%s16184_s0 + $0xe0] sm:$0xff]  }
 0x214   :  { %9694 = vmatmul.mubr.msk.bf16.gmra.mrb[4].mxu0 %vm642_vm3, %v1637_v9  ;;  %v1638_v45 = vrot.slane %v11190_v55, 1  ;;  %9847 = vmatprep.mubr.msk.bf16.mxu1 %vm11310_vm1, %v16229_v15 }
 0x215   :  { %9697 = vmatprep.mubr.msk.bf16.mxu0 %vm11310_vm1, %v16229_v15 }
 0x216   :  { %v1547_v0 = vpop.f32.mrb[156].mxu1  ;;  %v1639_v61 = vsel %vm1582_vm4, %v1636_v33, %v1638_v45  ;;  %v2568_v33 = vrot.slane %v11092_v31, 1  ;;  %v11093_v31 = vld [vmem:[%s16184_s0 + $0xd8] sm:$0xff]  }
 0x217   :  { %v1824_v56 = vpop.f32.mrb[156].mxu0  ;;  %v12412_v3 = vadd.f32 %v1547_v0, %v1100_v36  ;;  %v9573_v57 = vpop.f32.mrb[157].mxu1 }
 0x218   :  { %v12410_v50 = vadd.f32 %v1824_v56, %v11732_v43  ;;  %v9591_v11 = vpop.f32.mrb[157].mxu0  ;;  %v1550_v8 = vpop.f32.mrb[158].mxu1 }
 0x219   :  { %v1827_v9 = vpop.f32.mrb[158].mxu0  ;;  %v12422_v43 = vadd.f32 %v1550_v8, %v1103_v32  ;;  %v9574_v56 = vpop.f32.mrb[159].mxu1 }
 0x21a   :  { %v12416_v46 = vadd.f32 %v1827_v9, %v11737_v51  ;;  %v9592_v55 = vpop.f32.mrb[159].mxu0  ;;  %v11191_v51 = vld [vmem:[%s16184_s0 + $0xe8] sm:$0xff]  }
 0x21b   :  { %9848 = vmatmul.mubr.msk.bf16.gmra.mrb[8].mxu1 %vm642_vm3, %v2567_v2  ;;  %v1640_v36 = vrot.slane %v11191_v51, 1  ;;  %v2569_v51 = vsel %vm1582_vm4, %v2566_v19, %v2568_v33 }
 0x21c   :  { %9698 = vmatmul.mubr.msk.bf16.gmra.mrb[8].mxu0 %vm642_vm3, %v1639_v61  ;;  %9851 = vmatprep.mubr.msk.bf16.mxu1 %vm11310_vm1, %v16229_v15 }
 0x21d   :  { %9701 = vmatprep.mubr.msk.bf16.mxu0 %vm11310_vm1, %v16229_v15  ;;  %v1641_v61 = vsel %vm1582_vm4, %v1638_v45, %v1640_v36  ;;  %v2570_v45 = vrot.slane %v11093_v31, 1 }
 0x21e   :  { %v1555_v32 = vpop.f32.mrb[160].mxu1 }
 0x21f   :  { %v1832_v58 = vpop.f32.mrb[160].mxu0  ;;  %v12436_v57 = vadd.f32 %v1555_v32, %v1108_v14  ;;  %v9577_v2 = vpop.f32.mrb[161].mxu1 }
 0x220   :  { %v12434_v0 = vadd.f32 %v1832_v58, %v11751_v60  ;;  %v9595_v11 = vpop.f32.mrb[161].mxu0  ;;  %v1558_v8 = vpop.f32.mrb[162].mxu1  ;;  %v4109_v2 = vld [vmem:[%s16185_s1 + $0x14] sm:$0xf] }
 0x221   :  { %v1835_v9 = vpop.f32.mrb[162].mxu0  ;;  %v12446_v60 = vadd.f32 %v1558_v8, %v1111_v20  ;;  %v9578_v58 = vpop.f32.mrb[163].mxu1 }
 0x222   :  { %v12440_v55 = vadd.f32 %v1835_v9, %v11756_v5  ;;  %v9596_v56 = vpop.f32.mrb[163].mxu0  ;;  %v11192_v5 = vld [vmem:[%s16184_s0 + $0xf0] sm:$0xff]  }
 0x223   :  { %9852 = vmatmul.mubr.msk.bf16.gmra.mrb[12].mxu1 %vm642_vm3, %v2569_v51  ;;  %v1642_v14 = vrot.slane %v11192_v5, 1  ;;  %v4319_v51 = vsel %vm766_vm0, %v4109_v2, 0  ;;  %v2571_v5 = vsel %vm1582_vm4, %v2568_v33, %v2570_v45 }
 0x224   :  { %9702 = vmatmul.mubr.msk.bf16.gmra.mrb[12].mxu0 %vm642_vm3, %v1641_v61  ;;  %9855 = vmatprep.mubr.msk.bf16.mxu1 %vm11310_vm1, %v16229_v15 }
 0x225   :  { %9705 = vmatprep.mubr.msk.bf16.mxu0 %vm11310_vm1, %v16229_v15  ;;  %v1643_v56 = vsel %vm1582_vm4, %v1640_v36, %v1642_v14  ;;  %10086 = vmatpush3.bf16.msra.mxu1 %v4319_v51 }
 0x226   :  { %v1563_v20 = vpop.f32.mrb[164].mxu1  ;;  %10417 = vmatprep.subr.bf16.mxu1 %v16229_v15 }
 0x227   :  { %v1840_v19 = vpop.f32.mrb[164].mxu0  ;;  %v12464_v9 = vadd.f32 %v1563_v20, %v11692_v10  ;;  %v9581_v61 = vpop.f32.mrb[165].mxu1 }
 0x228   :  { %v12458_v32 = vadd.f32 %v1840_v19, %v11770_v16  ;;  %v9599_v11 = vpop.f32.mrb[165].mxu0  ;;  %v1566_v31 = vpop.f32.mrb[166].mxu1  ;;  %v11094_v19 = vld [vmem:[%s16184_s0 + $0xe0] sm:$0xff]  }
 0x229   :  { %v1843_v8 = vpop.f32.mrb[166].mxu0  ;;  %v12476_v10 = vadd.f32 %v1566_v31, %v11701_v21  ;;  %v9582_v20 = vpop.f32.mrb[167].mxu1  ;;  %v2572_v21 = vrot.slane %v11094_v19, 1 }
 0x22a   :  { %v12469_v58 = vadd.f32 %v1843_v8, %v11775_v26  ;;  %v9600_v16 = vpop.f32.mrb[167].mxu0  ;;  %v11193_v26 = vld [vmem:[%s16184_s0 + $0xf8] sm:$0xff]  }
 0x22b   :  { %9856 = vmatmul.mubr.msk.bf16.gmra.mrb[16].mxu1 %vm642_vm3, %v2571_v5  ;;  %v1644_v36 = vrot.slane %v11193_v26, 1  ;;  %v2573_v20 = vsel %vm1582_vm4, %v2570_v45, %v2572_v21 }
 0x22c   :  { %9706 = vmatmul.mubr.msk.bf16.gmra.mrb[16].mxu0 %vm642_vm3, %v1643_v56  ;;  %9859 = vmatprep.mubr.msk.bf16.mxu1 %vm11310_vm1, %v16229_v15 }
 0x22d   :  { %9709 = vmatprep.mubr.msk.bf16.mxu0 %vm11310_vm1, %v16229_v15  ;;  %v1645_v31 = vsel %vm1582_vm4, %v1642_v14, %v1644_v36 }
 0x22e   :  { %v1571_v11 = vpop.f32.mrb[168].mxu1 }
 0x22f   :  { %v1848_v33 = vpop.f32.mrb[168].mxu0  ;;  %v12492_v8 = vadd.f32 %v1571_v11, %v11715_v28  ;;  %v9585_v51 = vpop.f32.mrb[169].mxu1  ;;  %v11194_v28 = vld [vmem:[%s16184_s0 + $0x100] sm:$0xff]  }
 0x230   :  { %v12489_v2 = vadd.f32 %v1848_v33, %v11789_v35  ;;  %v9603_v61 = vpop.f32.mrb[169].mxu0  ;;  %v1574_v19 = vpop.f32.mrb[170].mxu1  ;;  %v11095_v35 = vld [vmem:[%s16184_s0 + $0xe8] sm:$0xff]  }
 0x231   :  { %v1851_v56 = vpop.f32.mrb[170].mxu0  ;;  %v9586_v26 = vpop.f32.mrb[171].mxu1  ;;  %v2574_v14 = vrot.slane %v11095_v35, 1 }
 0x232   :  { %v12496_v16 = vadd.f32 %v1851_v56, %v11794_v44  ;;  %v9604_v5 = vpop.f32.mrb[171].mxu0  ;;  %v1646_v44 = vrot.slane %v11194_v28, 1 }
 0x233   :  { %9860 = vmatmul.mubr.msk.bf16.gmra.mrb[20].mxu1 %vm642_vm3, %v2573_v20  ;;  %v2575_v35 = vsel %vm1582_vm4, %v2572_v21, %v2574_v14 }
 0x234   :  { %9710 = vmatmul.mubr.msk.bf16.gmra.mrb[20].mxu0 %vm642_vm3, %v1645_v31  ;;  %9863 = vmatprep.mubr.msk.bf16.mxu1 %vm11310_vm1, %v16229_v15  ;;  %v1647_v5 = vsel %vm1582_vm4, %v1644_v36, %v1646_v44 }
 0x235   :  { %9713 = vmatprep.mubr.msk.bf16.mxu0 %vm11310_vm1, %v16229_v15 }
 0x236   :  { %v2760_v11 = vpop.f32.mrb[172].mxu1 }
 0x237   :  { %v1856_v45 = vpop.f32.mrb[172].mxu0  ;;  %v12515_v56 = vadd.f32 %v2760_v11, %v12410_v50  ;;  %v9757_v51 = vpop.f32.mrb[173].mxu1 }
 0x238   :  { %v12512_v33 = vadd.f32 %v1856_v45, %v11808_v53  ;;  %v9607_v61 = vpop.f32.mrb[173].mxu0  ;;  %v2763_v19 = vpop.f32.mrb[174].mxu1  ;;  %v11096_v53 = vld [vmem:[%s16184_s0 + $0xf0] sm:$0xff]  }
 0x239   :  { %v1859_v31 = vpop.f32.mrb[174].mxu0  ;;  %v12526_v28 = vadd.f32 %v2763_v19, %v12416_v46  ;;  %v9758_v50 = vpop.f32.mrb[175].mxu1  ;;  %v2576_v21 = vrot.slane %v11096_v53, 1 }
 0x23a   :  { %v12519_v20 = vadd.f32 %v1859_v31, %v11813_v62  ;;  %v9608_v26 = vpop.f32.mrb[175].mxu0  ;;  %v11195_v62 = vld [vmem:[%s16184_s0 + $0x108] sm:$0xff]  }
 0x23b   :  { %9864 = vmatmul.mubr.msk.bf16.gmra.mrb[24].mxu1 %vm642_vm3, %v2575_v35  ;;  %v1648_v36 = vrot.slane %v11195_v62, 1  ;;  %v2577_v53 = vsel %vm1582_vm4, %v2574_v14, %v2576_v21 }
 0x23c   :  { %9714 = vmatmul.mubr.msk.bf16.gmra.mrb[24].mxu0 %vm642_vm3, %v1647_v5  ;;  %9867 = vmatprep.mubr.msk.bf16.mxu1 %vm11310_vm1, %v16229_v15 }
 0x23d   :  { %9717 = vmatprep.mubr.msk.bf16.mxu0 %vm11310_vm1, %v16229_v15  ;;  %v1649_v19 = vsel %vm1582_vm4, %v1646_v44, %v1648_v36 }
 0x23e   :  { %v2768_v11 = vpop.f32.mrb[176].mxu1 }
 0x23f   :  { %v1864_v45 = vpop.f32.mrb[176].mxu0  ;;  %v12541_v51 = vadd.f32 %v2768_v11, %v12434_v0  ;;  %v9761_v31 = vpop.f32.mrb[177].mxu1 }
 0x240   :  { %v12538_v46 = vadd.f32 %v1864_v45, %v11827_v12  ;;  %v9611_v61 = vpop.f32.mrb[177].mxu0  ;;  %v2771_v35 = vpop.f32.mrb[178].mxu1  ;;  %v11097_v12 = vld [vmem:[%s16184_s0 + $0xf8] sm:$0xff]  }
 0x241   :  { %v1867_v5 = vpop.f32.mrb[178].mxu0  ;;  %v12552_v62 = vadd.f32 %v2771_v35, %v12440_v55  ;;  %v9762_v0 = vpop.f32.mrb[179].mxu1  ;;  %v2578_v14 = vrot.slane %v11097_v12, 1 }
 0x242   :  { %v12545_v26 = vadd.f32 %v1867_v5, %v11832_v22  ;;  %v9612_v50 = vpop.f32.mrb[179].mxu0  ;;  %v11196_v22 = vld [vmem:[%s16184_s0 + $0x110] sm:$0xff]  }
 0x243   :  { %9868 = vmatmul.mubr.msk.bf16.gmra.mrb[28].mxu1 %vm642_vm3, %v2577_v53  ;;  %v1650_v44 = vrot.slane %v11196_v22, 1  ;;  %v2579_v12 = vsel %vm1582_vm4, %v2576_v21, %v2578_v14 }
 0x244   :  { %9718 = vmatmul.mubr.msk.bf16.gmra.mrb[28].mxu0 %vm642_vm3, %v1649_v19  ;;  %9871 = vmatprep.mubr.msk.bf16.mxu1 %vm11310_vm1, %v16229_v15 }
 0x245   :  { %9721 = vmatprep.mubr.msk.bf16.mxu0 %vm11310_vm1, %v16229_v15  ;;  %v1651_v35 = vsel %vm1582_vm4, %v1648_v36, %v1650_v44 }
 0x246   :  { %v2776_v11 = vpop.f32.mrb[180].mxu1 }
 0x247   :  { %v1872_v45 = vpop.f32.mrb[180].mxu0  ;;  %v12567_v31 = vadd.f32 %v2776_v11, %v12458_v32  ;;  %v9765_v5 = vpop.f32.mrb[181].mxu1 }
 0x248   :  { %v12564_v55 = vadd.f32 %v1872_v45, %v11846_v34  ;;  %v9615_v61 = vpop.f32.mrb[181].mxu0  ;;  %v2779_v53 = vpop.f32.mrb[182].mxu1  ;;  %v11098_v34 = vld [vmem:[%s16184_s0 + $0x100] sm:$0xff]  }
 0x249   :  { %v1875_v19 = vpop.f32.mrb[182].mxu0  ;;  %v12578_v22 = vadd.f32 %v2779_v53, %v12469_v58  ;;  %v9766_v32 = vpop.f32.mrb[183].mxu1  ;;  %v2580_v21 = vrot.slane %v11098_v34, 1 }
 0x24a   :  { %v12571_v50 = vadd.f32 %v1875_v19, %v11851_v42  ;;  %v9616_v0 = vpop.f32.mrb[183].mxu0  ;;  %v11197_v42 = vld [vmem:[%s16184_s0 + $0x118] sm:$0xff]  }
 0x24b   :  { %9872 = vmatmul.mubr.msk.bf16.gmra.mrb[32].mxu1 %vm642_vm3, %v2579_v12  ;;  %v1652_v36 = vrot.slane %v11197_v42, 1  ;;  %v2581_v34 = vsel %vm1582_vm4, %v2578_v14, %v2580_v21 }
 0x24c   :  { %9722 = vmatmul.mubr.msk.bf16.gmra.mrb[32].mxu0 %vm642_vm3, %v1651_v35  ;;  %9875 = vmatprep.mubr.msk.bf16.mxu1 %vm11310_vm1, %v16229_v15 }
 0x24d   :  { %9725 = vmatprep.mubr.msk.bf16.mxu0 %vm11310_vm1, %v16229_v15  ;;  %v1653_v53 = vsel %vm1582_vm4, %v1650_v44, %v1652_v36 }
 0x24e   :  { %v2784_v11 = vpop.f32.mrb[184].mxu1 }
 0x24f   :  { %v1880_v45 = vpop.f32.mrb[184].mxu0  ;;  %v12593_v5 = vadd.f32 %v2784_v11, %v12489_v2  ;;  %v9769_v19 = vpop.f32.mrb[185].mxu1 }
 0x250   :  { %v12590_v58 = vadd.f32 %v1880_v45, %v11865_v25  ;;  %v9619_v61 = vpop.f32.mrb[185].mxu0  ;;  %v2787_v12 = vpop.f32.mrb[186].mxu1  ;;  %v11099_v25 = vld [vmem:[%s16184_s0 + $0x108] sm:$0xff]  }
 0x251   :  { %v1883_v35 = vpop.f32.mrb[186].mxu0  ;;  %v12604_v42 = vadd.f32 %v2787_v12, %v12496_v16  ;;  %v9770_v2 = vpop.f32.mrb[187].mxu1  ;;  %v2582_v14 = vrot.slane %v11099_v25, 1 }
 0x252   :  { %v12597_v0 = vadd.f32 %v1883_v35, %v11870_v1  ;;  %v9620_v32 = vpop.f32.mrb[187].mxu0  ;;  %v11198_v1 = vld [vmem:[%s16184_s0 + $0x120] sm:$0xff]  }
 0x253   :  { %9876 = vmatmul.mubr.msk.bf16.gmra.mrb[36].mxu1 %vm642_vm3, %v2581_v34  ;;  %v1654_v44 = vrot.slane %v11198_v1, 1  ;;  %v2583_v25 = vsel %vm1582_vm4, %v2580_v21, %v2582_v14 }
 0x254   :  { %9726 = vmatmul.mubr.msk.bf16.gmra.mrb[36].mxu0 %vm642_vm3, %v1653_v53  ;;  %9879 = vmatprep.mubr.msk.bf16.mxu1 %vm11310_vm1, %v16229_v15 }
 0x255   :  { %9729 = vmatprep.mubr.msk.bf16.mxu0 %vm11310_vm1, %v16229_v15  ;;  %v1655_v12 = vsel %vm1582_vm4, %v1652_v36, %v1654_v44 }
 0x256   :  { %v2792_v11 = vpop.f32.mrb[188].mxu1 }
 0x257   :  { %v1888_v45 = vpop.f32.mrb[188].mxu0  ;;  %v12619_v19 = vadd.f32 %v2792_v11, %v12512_v33  ;;  %v9773_v35 = vpop.f32.mrb[189].mxu1 }
 0x258   :  { %v12616_v16 = vadd.f32 %v1888_v45, %v11879_v17  ;;  %v9623_v61 = vpop.f32.mrb[189].mxu0  ;;  %v2795_v34 = vpop.f32.mrb[190].mxu1  ;;  %v11100_v17 = vld [vmem:[%s16184_s0 + $0x110] sm:$0xff]  }
 0x259   :  { %v1891_v53 = vpop.f32.mrb[190].mxu0  ;;  %v12630_v1 = vadd.f32 %v2795_v34, %v12519_v20  ;;  %v9774_v33 = vpop.f32.mrb[191].mxu1  ;;  %v2584_v21 = vrot.slane %v11100_v17, 1 }
 0x25a   :  { %v12623_v32 = vadd.f32 %v1891_v53, %v11883_v24  ;;  %v9624_v2 = vpop.f32.mrb[191].mxu0  ;;  %v11199_v24 = vld [vmem:[%s16184_s0 + $0x128] sm:$0xff]  }
 0x25b   :  { %9880 = vmatmul.mubr.msk.bf16.gmra.mrb[40].mxu1 %vm642_vm3, %v2583_v25  ;;  %v1656_v36 = vrot.slane %v11199_v24, 1  ;;  %v2585_v17 = vsel %vm1582_vm4, %v2582_v14, %v2584_v21 }
 0x25c   :  { %9730 = vmatmul.mubr.msk.bf16.gmra.mrb[40].mxu0 %vm642_vm3, %v1655_v12  ;;  %9883 = vmatprep.mubr.msk.bf16.mxu1 %vm11310_vm1, %v16229_v15 }
 0x25d   :  { %9733 = vmatprep.mubr.msk.bf16.mxu0 %vm11310_vm1, %v16229_v15  ;;  %v1657_v34 = vsel %vm1582_vm4, %v1654_v44, %v1656_v36 }
 0x25e   :  { %v2800_v11 = vpop.f32.mrb[192].mxu1 }
 0x25f   :  { %v1896_v45 = vpop.f32.mrb[192].mxu0  ;;  %v12645_v35 = vadd.f32 %v2800_v11, %v12538_v46  ;;  %v9777_v53 = vpop.f32.mrb[193].mxu1 }
 0x260   :  { %v12642_v20 = vadd.f32 %v1896_v45, %v11895_v7  ;;  %v9627_v61 = vpop.f32.mrb[193].mxu0  ;;  %v2803_v25 = vpop.f32.mrb[194].mxu1  ;;  %v11101_v7 = vld [vmem:[%s16184_s0 + $0x118] sm:$0xff]  }
 0x261   :  { %v1899_v12 = vpop.f32.mrb[194].mxu0  ;;  %v12656_v24 = vadd.f32 %v2803_v25, %v12545_v26  ;;  %v9778_v46 = vpop.f32.mrb[195].mxu1  ;;  %v2586_v14 = vrot.slane %v11101_v7, 1 }
 0x262   :  { %v12649_v2 = vadd.f32 %v1899_v12, %v11902_v47  ;;  %v9628_v33 = vpop.f32.mrb[195].mxu0  ;;  %v11200_v47 = vld [vmem:[%s16184_s0 + $0x130] sm:$0xff]  }
 0x263   :  { %9884 = vmatmul.mubr.msk.bf16.gmra.mrb[44].mxu1 %vm642_vm3, %v2585_v17  ;;  %v1658_v44 = vrot.slane %v11200_v47, 1  ;;  %v2587_v7 = vsel %vm1582_vm4, %v2584_v21, %v2586_v14 }
 0x264   :  { %9734 = vmatmul.mubr.msk.bf16.gmra.mrb[44].mxu0 %vm642_vm3, %v1657_v34  ;;  %9887 = vmatprep.mubr.msk.bf16.mxu1 %vm11310_vm1, %v16229_v15 }
 0x265   :  { %9737 = vmatprep.mubr.msk.bf16.mxu0 %vm11310_vm1, %v16229_v15  ;;  %v1659_v25 = vsel %vm1582_vm4, %v1656_v36, %v1658_v44 }
 0x266   :  { %v2808_v11 = vpop.f32.mrb[196].mxu1 }
 0x267   :  { %v1904_v45 = vpop.f32.mrb[196].mxu0  ;;  %v12671_v53 = vadd.f32 %v2808_v11, %v12564_v55  ;;  %v9781_v12 = vpop.f32.mrb[197].mxu1 }
 0x268   :  { %v12668_v26 = vadd.f32 %v1904_v45, %v11914_v59  ;;  %v9631_v61 = vpop.f32.mrb[197].mxu0  ;;  %v2811_v17 = vpop.f32.mrb[198].mxu1  ;;  %v11102_v59 = vld [vmem:[%s16184_s0 + $0x120] sm:$0xff]  }
 0x269   :  { %v1907_v34 = vpop.f32.mrb[198].mxu0  ;;  %v12682_v47 = vadd.f32 %v2811_v17, %v12571_v50  ;;  %v9782_v55 = vpop.f32.mrb[199].mxu1  ;;  %v2588_v21 = vrot.slane %v11102_v59, 1 }
 0x26a   :  { %v12675_v33 = vadd.f32 %v1907_v34, %v11917_v6  ;;  %v9632_v46 = vpop.f32.mrb[199].mxu0  ;;  %v11201_v6 = vld [vmem:[%s16184_s0 + $0x138] sm:$0xff]  }
 0x26b   :  { %9888 = vmatmul.mubr.msk.bf16.gmra.mrb[48].mxu1 %vm642_vm3, %v2587_v7  ;;  %v1660_v36 = vrot.slane %v11201_v6, 1  ;;  %v2589_v59 = vsel %vm1582_vm4, %v2586_v14, %v2588_v21 }
 0x26c   :  { %9738 = vmatmul.mubr.msk.bf16.gmra.mrb[48].mxu0 %vm642_vm3, %v1659_v25  ;;  %9891 = vmatprep.mubr.msk.bf16.mxu1 %vm11310_vm1, %v16229_v15 }
 0x26d   :  { %9741 = vmatprep.mubr.msk.bf16.mxu0 %vm11310_vm1, %v16229_v15  ;;  %v1661_v17 = vsel %vm1582_vm4, %v1658_v44, %v1660_v36 }
 0x26e   :  { %v2816_v11 = vpop.f32.mrb[200].mxu1 }
 0x26f   :  { %v1912_v45 = vpop.f32.mrb[200].mxu0  ;;  %v12697_v12 = vadd.f32 %v2816_v11, %v12590_v58  ;;  %v9785_v34 = vpop.f32.mrb[201].mxu1 }
 0x270   :  { %v12694_v50 = vadd.f32 %v1912_v45, %v11929_v18  ;;  %v9635_v61 = vpop.f32.mrb[201].mxu0  ;;  %v2819_v7 = vpop.f32.mrb[202].mxu1  ;;  %v11103_v18 = vld [vmem:[%s16184_s0 + $0x128] sm:$0xff]   ;;  %v1662_v45 = vrot.slane %v11381_v13, 1 }
 0x271   :  { %v1915_v25 = vpop.f32.mrb[202].mxu0  ;;  %v12708_v6 = vadd.f32 %v2819_v7, %v12597_v0  ;;  %v9786_v58 = vpop.f32.mrb[203].mxu1 }
 0x272   :  { %v12701_v46 = vadd.f32 %v1915_v25, %v11932_v30  ;;  %v9636_v55 = vpop.f32.mrb[203].mxu0  ;;  %v2590_v30 = vrot.slane %v11103_v18, 1  ;;  %v1663_v25 = vsel %vm1582_vm4, %v1660_v36, %v1662_v45  ;;  %v3174_v58 = vshrl.u32 %v11973_v29, 16 }
 0x273   :  { %16232 = vst [vmem:[#allocation42_spill] sm:$0xff] %v12708_v6  ;;  %9892 = vmatmul.mubr.msk.bf16.gmra.mrb[52].mxu1 %vm642_vm3, %v2589_v59  ;;  %v3177_v36 = vshll.u32 %v11973_v29, 16 }
 0x274   :  { %9742 = vmatmul.mubr.msk.bf16.gmra.mrb[52].mxu0 %vm642_vm3, %v1661_v17  ;;  %9895 = vmatprep.mubr.msk.bf16.mxu1 %vm11310_vm1, %v16229_v15  ;;  %v2591_v59 = vsel %vm1582_vm4, %v2588_v21, %v2590_v30  ;;  %v3176_v29 = vrot.slane %v3174_v58, 1 }
 0x275   :  { %9745 = vmatprep.mubr.msk.bf16.mxu0 %vm11310_vm1, %v16229_v15 }
 0x276   :  { %v2824_v0 = vpop.f32.mrb[204].mxu1 }
 0x277   :  { %v1920_v44 = vpop.f32.mrb[204].mxu0  ;;  %v12721_v61 = vadd.f32 %v2824_v0, %v12616_v16  ;;  %v9789_v34 = vpop.f32.mrb[205].mxu1 }
 0x278   :  { %v12718_v14 = vadd.f32 %v1920_v44, %v11944_v48  ;;  %v9639_v11 = vpop.f32.mrb[205].mxu0  ;;  %v2827_v7 = vpop.f32.mrb[206].mxu1  ;;  %v11104_v48 = vld [vmem:[%s16184_s0 + $0x130] sm:$0xff]  }
 0x279   :  { %16233 = vst [vmem:[#allocation43_spill] sm:$0xff] %v12721_v61  ;;  %v1923_v13 = vpop.f32.mrb[206].mxu0  ;;  %v12732_v18 = vadd.f32 %v2827_v7, %v12623_v32  ;;  %v9790_v16 = vpop.f32.mrb[207].mxu1  ;;  %v2592_v32 = vrot.slane %v11104_v48, 1 }
 0x27a   :  { %v12725_v17 = vadd.f32 %v1923_v13, %v11947_v52  ;;  %v9640_v55 = vpop.f32.mrb[207].mxu0  ;;  %v12740_v52 = vld [vmem:[%s16184_s0 + $0x10] sm:$0xff]  }
 0x27b   :  { %16234 = vst [vmem:[#allocation44_spill] sm:$0xff] %v12732_v18  ;;  %v3182_v21 = vshrl.u32 %v12740_v52, 16  ;;  %v3185_v44 = vshll.u32 %v12740_v52, 16  ;;  %9896 = vmatmul.mubr.msk.bf16.gmra.mrb[56].mxu1 %vm642_vm3, %v2591_v59  ;;  %v2593_v58 = vsel %vm1582_vm4, %v2590_v30, %v2592_v32  ;;  %v12772_v30 = vld [vmem:[%s16184_s0 + $0x18] sm:$0xff]  }
 0x27c   :  { %9746 = vmatmul.mubr.msk.bf16.gmra.mrb[56].mxu0 %vm642_vm3, %v1663_v25  ;;  %9899 = vmatprep.mubr.msk.bf16.mxu1 %vm11310_vm1, %v16229_v15  ;;  %v3179_v25 = vrot.slane %v3177_v36, 2 }
 0x27d   :  { %9749 = vmatprep.mubr.msk.bf16.mxu0 %vm11310_vm1, %v16229_v15  ;;  %v3184_v7 = vrot.slane %v3182_v21, 1  ;;  %v3187_v55 = vrot.slane %v3185_v44, 2 }
 0x27e   :  { %v2832_v34 = vpop.f32.mrb[208].mxu1 }
 0x27f   :  { %v1928_v0 = vpop.f32.mrb[208].mxu0  ;;  %v12753_v16 = vadd.f32 %v2832_v34, %v12642_v20  ;;  %v9793_v59 = vpop.f32.mrb[209].mxu1  ;;  %v3180_v20 = vor.u32 %v3179_v25, %v3176_v29 }
 0x280   :  { %v12750_v11 = vadd.f32 %v1928_v0, %v11967_v63  ;;  %v9643_v13 = vpop.f32.mrb[209].mxu0  ;;  %v2835_v6 = vpop.f32.mrb[210].mxu1  ;;  %v11105_v63 = vld [vmem:[%s16184_s0 + $0x138] sm:$0xff]  }
 0x281   :  { %v1931_v18 = vpop.f32.mrb[210].mxu0  ;;  %v12763_v36 = vadd.f32 %v2835_v6, %v12649_v2  ;;  %v9794_v21 = vpop.f32.mrb[211].mxu1  ;;  %v3194_v2 = vshll.u32 %v12772_v30, 16  ;;  %v2594_v6 = vrot.slane %v11105_v63, 1 }
 0x282   :  { %v12756_v61 = vadd.f32 %v1931_v18, %v11978_v27  ;;  %v9644_v48 = vpop.f32.mrb[211].mxu0  ;;  %v3188_v27 = vor.u32 %v3187_v55, %v3184_v7  ;;  %v3191_v18 = vshrl.u32 %v12772_v30, 16 }
 0x283   :  { %16235 = vst [vmem:[#allocation45_spill] sm:$0xff] %v12763_v36  ;;  %9900 = vmatmul.mubr.msk.bf16.gmra.mrb[60].mxu1 %vm642_vm3, %v2593_v58  ;;  %v3196_v59 = vrot.slane %v3194_v2, 2  ;;  %v2595_v21 = vsel %vm1582_vm4, %v2592_v32, %v2594_v6  ;;  %v12802_v32 = vld [vmem:[%s16184_s0 + $0x20] sm:$0xff]  }
 0x284   :  { %9750 = vmatmul.mubr.msk.bf16.gmra.mrb[60].mxu0 %vm642_vm3, %v1662_v45  ;;  %9903 = vmatprep.mubr.msk.bf16.mxu1 %vm11310_vm1, %v16229_v15  ;;  %v3189_v7 = vsel %vm3172_vm5, %v3180_v20, %v3188_v27  ;;  %v3193_v55 = vrot.slane %v3191_v18, 1  ;;  %v3200_v20 = vshrl.u32 %v12802_v32, 16  ;;  %v3203_v18 = vshll.u32 %v12802_v32, 16 }
 0x285   :  { %9921 = vmatprep.mubr.msk.bf16.mxu0 %vm11310_vm1, %v16229_v15 }
 0x286   :  { %v2840_v0 = vpop.f32.mrb[212].mxu1 }
 0x287   :  { %v1936_v45 = vpop.f32.mrb[212].mxu0  ;;  %v12782_v34 = vadd.f32 %v2840_v0, %v12668_v26  ;;  %v9797_v13 = vpop.f32.mrb[213].mxu1  ;;  %v2311_v0 = vld [vmem:[%s16184_s0 + $0x148] sm:$0xf] }
 0x288   :  { %v12779_v44 = vadd.f32 %v1936_v45, %v11990_v49  ;;  %v9647_v29 = vpop.f32.mrb[213].mxu0  ;;  %v2843_v58 = vpop.f32.mrb[214].mxu1  ;;  %v11106_v49 = vld [vmem:[%s16184_s0 + $0x140] sm:$0xff]  }
 0x289   :  { %16236 = vst [vmem:[#allocation46_spill] sm:$0xff] %v12782_v34  ;;  %v1939_v25 = vpop.f32.mrb[214].mxu0  ;;  %v12793_v26 = vadd.f32 %v2843_v58, %v12675_v33  ;;  %v9798_v45 = vpop.f32.mrb[215].mxu1  ;;  %v2596_v33 = vrot.slane %v11106_v49, 1  ;;  %v2312_v29 = vld [vmem:[%s16184_s0 + $0x14c] sm:$0x1] }
 0x28a   :  { %v12786_v48 = vadd.f32 %v1939_v25, %v11997_v4  ;;  %v9648_v63 = vpop.f32.mrb[215].mxu0  ;;  %v3197_v4 = vor.u32 %v3196_v59, %v3193_v55  ;;  %v3205_v49 = vrot.slane %v3203_v18, 2 }
 0x28b   :  { %16237 = vst [vmem:[#allocation47_spill] sm:$0xff] %v12793_v26  ;;  %9904 = vmatmul.mubr.msk.bf16.gmra.mrb[64].mxu1 %vm642_vm3, %v2595_v21  ;;  %v3202_v21 = vrot.slane %v3200_v20, 1  ;;  %v2597_v36 = vsel %vm1582_vm4, %v2594_v6, %v2596_v33 }
 0x28c   :  { %9922 = vmatmul.mubr.msk.bf16.vlgmr.msra.gmra.mrb[64].mxu0 %vm642_vm3, %v3189_v7  ;;  %9907 = vmatprep.mubr.msk.bf16.mxu1 %vm11310_vm1, %v16229_v15  ;;  %v3198_v63 = vsel %vm3172_vm5, %v3188_v27, %v3197_v4 }
 0x28d   :  { %9925 = vmatprep.mubr.msk.bf16.mxu0 %vm11310_vm1, %v16229_v15 }
 0x28e   :  { %v2848_v25 = vpop.f32.mrb[216].mxu1 }
 0x28f   :  { %v1944_v2 = vpop.f32.mrb[216].mxu0  ;;  %v12818_v55 = vadd.f32 %v2848_v25, %v12694_v50  ;;  %v9801_v59 = vpop.f32.mrb[217].mxu1  ;;  %v3206_v50 = vor.u32 %v3205_v49, %v3202_v21 }
 0x290   :  { %v12815_v13 = vadd.f32 %v1944_v2, %v12008_v39  ;;  %v9651_v7 = vpop.f32.mrb[217].mxu0  ;;  %v2851_v26 = vpop.f32.mrb[218].mxu1  ;;  %v8455_v39 = vcombine.low %v2311_v0, %v2312_v29 }
 0x291   :  { %v1947_v58 = vpop.f32.mrb[218].mxu0  ;;  %v12826_v2 = vadd.f32 %v2851_v26, %v12701_v46  ;;  %v9802_v7 = vpop.f32.mrb[219].mxu1  ;;  %v3207_v25 = vsel %vm3172_vm5, %v3197_v4, %v3206_v50 }
 0x292   :  { %v12822_v45 = vadd.f32 %v1947_v58, %v12015_v40  ;;  %v9652_v34 = vpop.f32.mrb[219].mxu0  ;;  %v12835_v40 = vld [vmem:[%s16184_s0 + $0x28] sm:$0xff]   ;;  %v2598_v46 = vrot.slane %v8455_v39, 1 }
 0x293   :  { %9908 = vmatmul.mubr.msk.bf16.gmra.mrb[68].mxu1 %vm642_vm3, %v2597_v36  ;;  %v3209_v27 = vshrl.u32 %v12835_v40, 16  ;;  %v3212_v6 = vshll.u32 %v12835_v40, 16 }
 0x294   :  { %9926 = vmatmul.mubr.msk.bf16.gmra.mrb[68].mxu0 %vm642_vm3, %v3198_v63  ;;  %9911 = vmatprep.mubr.msk.bf16.mxu1 %vm11310_vm1, %v16229_v15  ;;  %v2599_v39 = vsel %vm1582_vm4, %v2596_v33, %v2598_v46 }
 0x295   :  { %9929 = vmatprep.mubr.msk.bf16.mxu0 %vm11310_vm1, %v16229_v15  ;;  %v3211_v59 = vrot.slane %v3209_v27, 1  ;;  %v3214_v58 = vrot.slane %v3212_v6, 2 }
 0x296   :  { %v2856_v26 = vpop.f32.mrb[220].mxu1 }
 0x297   :  { %v1952_v34 = vpop.f32.mrb[220].mxu0  ;;  %v12845_v18 = vadd.f32 %v2856_v26, %v12718_v14  ;;  %v9805_v0 = vpop.f32.mrb[221].mxu1  ;;  %v3215_v14 = vor.u32 %v3214_v58, %v3211_v59 }
 0x298   :  { %v12842_v36 = vadd.f32 %v1952_v34, %v12026_v54  ;;  %v9655_v20 = vpop.f32.mrb[221].mxu0  ;;  %v2859_v21 = vpop.f32.mrb[222].mxu1 }
 0x299   :  { %v1955_v29 = vpop.f32.mrb[222].mxu0  ;;  %v12853_v54 = vadd.f32 %v2859_v21, %v12725_v17  ;;  %v9806_v7 = vpop.f32.mrb[223].mxu1  ;;  %v4108_v17 = vld [vmem:[%s16184_s0 + $0x8] sm:$0xc]  ;;  %v11207_v21 = vld [vmem:[%s16184_s0 + $0xc] sm:$0xf] }
 0x29a   :  { %v12849_v63 = vadd.f32 %v1955_v29, %v12033_v23  ;;  %v9656_v49 = vpop.f32.mrb[223].mxu0  ;;  %v12862_v23 = vld [vmem:[%s16184_s0 + $0x30] sm:$0xff]  }
 0x29b   :  { %9912 = vmatmul.mubr.msk.bf16.gmra.mrb[72].mxu1 %vm642_vm3, %v2599_v39  ;;  %v3218_v4 = vshrl.u32 %v12862_v23, 16  ;;  %v3221_v33 = vshll.u32 %v12862_v23, 16  ;;  %v8539_v49 = vcombine.low %v4108_v17, %v11207_v21  ;;  %v4115_v17 = vrot.slane %v12740_v52, 2 }
 0x29c   :  { %9930 = vmatmul.mubr.msk.bf16.gmra.mrb[72].mxu0 %vm642_vm3, %v3207_v25  ;;  %9915 = vmatprep.mubr.msk.bf16.mxu1 %vm11310_vm1, %v16229_v15  ;;  %v3216_v25 = vsel %vm3172_vm5, %v3206_v50, %v3215_v14 }
 0x29d   :  { %9933 = vmatprep.mubr.msk.bf16.mxu0 %vm11310_vm1, %v16229_v15  ;;  %v3220_v59 = vrot.slane %v3218_v4, 1  ;;  %v3223_v58 = vrot.slane %v3221_v33, 2  ;;  %v12894_v4 = vld [vmem:[%s16184_s0 + $0x38] sm:$0xff]  }
 0x29e   :  { %v2864_v34 = vpop.f32.mrb[224].mxu1  ;;  %v3230_v33 = vshll.u32 %v12894_v4, 16 }
 0x29f   :  { %v1960_v27 = vpop.f32.mrb[224].mxu0  ;;  %v12875_v20 = vadd.f32 %v2864_v34, %v12750_v11  ;;  %v9809_v0 = vpop.f32.mrb[225].mxu1  ;;  %v3224_v50 = vor.u32 %v3223_v58, %v3220_v59 }
 0x2a0   :  { %v12872_v6 = vadd.f32 %v1960_v27, %v12044_v38  ;;  %v9659_v26 = vpop.f32.mrb[225].mxu0  ;;  %v2867_v38 = vpop.f32.mrb[226].mxu1 }
 0x2a1   :  { %v1963_v29 = vpop.f32.mrb[226].mxu0  ;;  %v12885_v27 = vadd.f32 %v2867_v38, %v12756_v61  ;;  %v9810_v11 = vpop.f32.mrb[227].mxu1  ;;  %v4114_v61 = vrot.slane %v8539_v49, 2  ;;  %v3225_v58 = vsel %vm3172_vm5, %v3215_v14, %v3224_v50  ;;  %v3232_v49 = vrot.slane %v3230_v33, 2  ;;  %v16240_v38 = vld [vmem:[#allocation5_spill] sm:$0xff]  ;;  %v12922_v14 = vld [vmem:[%s16184_s0 + $0x40] sm:$0xff]  }
 0x2a2   :  { %v12882_v39 = vadd.f32 %v1963_v29, %v12051_v41  ;;  %v9660_v7 = vpop.f32.mrb[227].mxu0  ;;  %v3227_v41 = vshrl.u32 %v12894_v4, 16  ;;  %v3239_v33 = vshll.u32 %v12922_v14, 16 }
 0x2a3   :  { %16238 = vst [vmem:[#allocation48_spill] sm:$0xff] %v12885_v27  ;;  %9916 = vmatmul.mubr.msk.bf16.gmra.mrb[76].mxu1 %vm642_vm3, %v2598_v46  ;;  %v4116_v27 = vsel %vm4113_vm6, %v4114_v61, %v4115_v17 }
 0x2a4   :  { %9934 = vmatmul.mubr.msk.bf16.gmra.mrb[76].mxu0 %vm642_vm3, %v3216_v25  ;;  %10087 = vmatprep.mubr.msk.bf16.mxu1 %vm11310_vm1, %v16229_v15  ;;  %v3229_v21 = vrot.slane %v3227_v41, 1  ;;  %v3236_v41 = vshrl.u32 %v12922_v14, 16 }
 0x2a5   :  { %9937 = vmatprep.mubr.msk.bf16.mxu0 %vm11310_vm1, %v16229_v15 }
 0x2a6   :  { %v2872_v26 = vpop.f32.mrb[228].mxu1 }
 0x2a7   :  { %v1968_v46 = vpop.f32.mrb[228].mxu0  ;;  %v12905_v29 = vadd.f32 %v2872_v26, %v12779_v44  ;;  %v9813_v25 = vpop.f32.mrb[229].mxu1  ;;  %v3233_v44 = vor.u32 %v3232_v49, %v3229_v21 }
 0x2a8   :  { %v12902_v34 = vadd.f32 %v1968_v46, %v12062_v37  ;;  %v9663_v0 = vpop.f32.mrb[229].mxu0  ;;  %v2875_v52 = vpop.f32.mrb[230].mxu1 }
 0x2a9   :  { %16239 = vst [vmem:[#allocation49_spill] sm:$0xff] %v12905_v29  ;;  %v1971_v59 = vpop.f32.mrb[230].mxu0  ;;  %v12913_v37 = vadd.f32 %v2875_v52, %v12786_v48  ;;  %v9814_v46 = vpop.f32.mrb[231].mxu1  ;;  %v4117_v48 = vrot.slane %v12772_v30, 2  ;;  %v3234_v49 = vsel %vm3172_vm5, %v3224_v50, %v3233_v44  ;;  %v3241_v52 = vrot.slane %v3239_v33, 2  ;;  %v12950_v50 = vld [vmem:[%s16184_s0 + $0x48] sm:$0xff]  }
 0x2aa   :  { %v12909_v7 = vadd.f32 %v1971_v59, %v16240_v38  ;;  %v9664_v11 = vpop.f32.mrb[231].mxu0  ;;  %v3238_v38 = vrot.slane %v3236_v41, 1  ;;  %v3245_v41 = vshrl.u32 %v12950_v50, 16 }
 0x2ab   :  { %16241 = vst [vmem:[#allocation5_spill] sm:$0xff] %v12913_v37  ;;  %10088 = vmatmul.mubr.msk.bf16.vlgmr.msra.gmra.mrb[80].mxu1 %vm642_vm3, %v4116_v27  ;;  %v16242_v27 = vld [vmem:[#allocation6_spill] sm:$0xff]  ;;  %v16244_v11 = vld [vmem:[#allocation7_spill] sm:$0xff]  ;;  %v4118_v29 = vsel %vm4113_vm6, %v4115_v17, %v4117_v48  ;;  %v3248_v17 = vshll.u32 %v12950_v50, 16 }
 0x2ac   :  { %9938 = vmatmul.mubr.msk.bf16.gmra.mrb[80].mxu0 %vm642_vm3, %v3225_v58  ;;  %10091 = vmatprep.mubr.msk.bf16.mxu1 %vm11310_vm1, %v16229_v15 }
 0x2ad   :  { %9941 = vmatprep.mubr.msk.bf16.mxu0 %vm11310_vm1, %v16229_v15 }
 0x2ae   :  { %v2880_v0 = vpop.f32.mrb[232].mxu1 }
 0x2af   :  { %v1976_v61 = vpop.f32.mrb[232].mxu0  ;;  %v12933_v59 = vadd.f32 %v2880_v0, %v12815_v13  ;;  %v9817_v58 = vpop.f32.mrb[233].mxu1  ;;  %v3242_v13 = vor.u32 %v3241_v52, %v3238_v38  ;;  %v3247_v52 = vrot.slane %v3245_v41, 1 }
 0x2b0   :  { %v12930_v26 = vadd.f32 %v1976_v61, %v16242_v27  ;;  %v9667_v25 = vpop.f32.mrb[233].mxu0  ;;  %v2883_v37 = vpop.f32.mrb[234].mxu1 }
 0x2b1   :  { %16243 = vst [vmem:[#allocation6_spill] sm:$0xff] %v12933_v59  ;;  %v1979_v21 = vpop.f32.mrb[234].mxu0  ;;  %v12941_v61 = vadd.f32 %v2883_v37, %v12822_v45  ;;  %v9818_v27 = vpop.f32.mrb[235].mxu1  ;;  %v4119_v45 = vrot.slane %v12802_v32, 2  ;;  %v3243_v38 = vsel %vm3172_vm5, %v3233_v44, %v3242_v13  ;;  %v12978_v44 = vld [vmem:[%s16184_s0 + $0x50] sm:$0xff]  }
 0x2b2   :  { %v12937_v46 = vadd.f32 %v1979_v21, %v16244_v11  ;;  %v9668_v30 = vpop.f32.mrb[235].mxu0  ;;  %v3250_v11 = vrot.slane %v3248_v17, 2  ;;  %v3254_v41 = vshrl.u32 %v12978_v44, 16 }
 0x2b3   :  { %16245 = vst [vmem:[#allocation7_spill] sm:$0xff] %v12941_v61  ;;  %10092 = vmatmul.mubr.msk.bf16.gmra.mrb[84].mxu1 %vm642_vm3, %v4118_v29  ;;  %v16246_v29 = vld [vmem:[#allocation8_spill] sm:$0xff]  ;;  %v16248_v30 = vld [vmem:[#allocation9_spill] sm:$0xff]  ;;  %v4120_v59 = vsel %vm4113_vm6, %v4117_v48, %v4119_v45  ;;  %v3257_v48 = vshll.u32 %v12978_v44, 16 }
 0x2b4   :  { %9942 = vmatmul.mubr.msk.bf16.gmra.mrb[84].mxu0 %vm642_vm3, %v3234_v49  ;;  %10095 = vmatprep.mubr.msk.bf16.mxu1 %vm11310_vm1, %v16229_v15 }
 0x2b5   :  { %9945 = vmatprep.mubr.msk.bf16.mxu0 %vm11310_vm1, %v16229_v15 }
 0x2b6   :  { %v2888_v0 = vpop.f32.mrb[236].mxu1 }
 0x2b7   :  { %v1984_v37 = vpop.f32.mrb[236].mxu0  ;;  %v12961_v58 = vadd.f32 %v2888_v0, %v12842_v36  ;;  %v9821_v21 = vpop.f32.mrb[237].mxu1  ;;  %v3251_v36 = vor.u32 %v3250_v11, %v3247_v52  ;;  %v3256_v11 = vrot.slane %v3254_v41, 1 }
 0x2b8   :  { %v12958_v33 = vadd.f32 %v1984_v37, %v16246_v29  ;;  %v9671_v25 = vpop.f32.mrb[237].mxu0  ;;  %v2891_v61 = vpop.f32.mrb[238].mxu1 }
 0x2b9   :  { %16247 = vst [vmem:[#allocation8_spill] sm:$0xff] %v12961_v58  ;;  %v1987_v49 = vpop.f32.mrb[238].mxu0  ;;  %v12969_v37 = vadd.f32 %v2891_v61, %v12849_v63  ;;  %v9822_v29 = vpop.f32.mrb[239].mxu1  ;;  %v4121_v63 = vrot.slane %v12835_v40, 2  ;;  %v3252_v52 = vsel %vm3172_vm5, %v3242_v13, %v3251_v36  ;;  %v13006_v13 = vld [vmem:[%s16184_s0 + $0x58] sm:$0xff]  }
 0x2ba   :  { %v12965_v27 = vadd.f32 %v1987_v49, %v16248_v30  ;;  %v9672_v32 = vpop.f32.mrb[239].mxu0  ;;  %v3259_v30 = vrot.slane %v3257_v48, 2  ;;  %v3263_v41 = vshrl.u32 %v13006_v13, 16 }
 0x2bb   :  { %16249 = vst [vmem:[#allocation9_spill] sm:$0xff] %v12969_v37  ;;  %10096 = vmatmul.mubr.msk.bf16.gmra.mrb[88].mxu1 %vm642_vm3, %v4120_v59  ;;  %v16250_v59 = vld [vmem:[#allocation10_spill] sm:$0xff]  ;;  %v16252_v32 = vld [vmem:[#allocation11_spill] sm:$0xff]  ;;  %v4122_v58 = vsel %vm4113_vm6, %v4119_v45, %v4121_v63  ;;  %v3266_v45 = vshll.u32 %v13006_v13, 16 }
 0x2bc   :  { %9946 = vmatmul.mubr.msk.bf16.gmra.mrb[88].mxu0 %vm642_vm3, %v3243_v38  ;;  %10099 = vmatprep.mubr.msk.bf16.mxu1 %vm11310_vm1, %v16229_v15 }
 0x2bd   :  { %9949 = vmatprep.mubr.msk.bf16.mxu0 %vm11310_vm1, %v16229_v15 }
 0x2be   :  { %v2896_v0 = vpop.f32.mrb[240].mxu1 }
 0x2bf   :  { %v1992_v61 = vpop.f32.mrb[240].mxu0  ;;  %v12989_v21 = vadd.f32 %v2896_v0, %v12872_v6  ;;  %v9825_v49 = vpop.f32.mrb[241].mxu1  ;;  %v3260_v6 = vor.u32 %v3259_v30, %v3256_v11  ;;  %v3265_v30 = vrot.slane %v3263_v41, 1 }
 0x2c0   :  { %v12986_v17 = vadd.f32 %v1992_v61, %v16250_v59  ;;  %v9675_v25 = vpop.f32.mrb[241].mxu0  ;;  %v2899_v37 = vpop.f32.mrb[242].mxu1 }
 0x2c1   :  { %16251 = vst [vmem:[#allocation10_spill] sm:$0xff] %v12989_v21  ;;  %v1995_v38 = vpop.f32.mrb[242].mxu0  ;;  %v12997_v61 = vadd.f32 %v2899_v37, %v12882_v39  ;;  %v9826_v59 = vpop.f32.mrb[243].mxu1  ;;  %v4123_v39 = vrot.slane %v12862_v23, 2  ;;  %v3261_v11 = vsel %vm3172_vm5, %v3251_v36, %v3260_v6  ;;  %v13034_v36 = vld [vmem:[%s16184_s0 + $0x60] sm:$0xff]  }
 0x2c2   :  { %v12993_v29 = vadd.f32 %v1995_v38, %v16252_v32  ;;  %v9676_v40 = vpop.f32.mrb[243].mxu0  ;;  %v3268_v32 = vrot.slane %v3266_v45, 2  ;;  %v3272_v41 = vshrl.u32 %v13034_v36, 16 }
 0x2c3   :  { %16253 = vst [vmem:[#allocation11_spill] sm:$0xff] %v12997_v61  ;;  %10100 = vmatmul.mubr.msk.bf16.gmra.mrb[92].mxu1 %vm642_vm3, %v4122_v58  ;;  %v16254_v58 = vld [vmem:[#allocation12_spill] sm:$0xff]  ;;  %v16256_v40 = vld [vmem:[#allocation13_spill] sm:$0xff]  ;;  %v4124_v21 = vsel %vm4113_vm6, %v4121_v63, %v4123_v39  ;;  %v3275_v63 = vshll.u32 %v13034_v36, 16 }
 0x2c4   :  { %9950 = vmatmul.mubr.msk.bf16.gmra.mrb[92].mxu0 %vm642_vm3, %v3252_v52  ;;  %10103 = vmatprep.mubr.msk.bf16.mxu1 %vm11310_vm1, %v16229_v15 }
 0x2c5   :  { %9953 = vmatprep.mubr.msk.bf16.mxu0 %vm11310_vm1, %v16229_v15 }
 0x2c6   :  { %v2904_v0 = vpop.f32.mrb[244].mxu1 }
 0x2c7   :  { %v2000_v37 = vpop.f32.mrb[244].mxu0  ;;  %v13017_v49 = vadd.f32 %v2904_v0, %v12902_v34  ;;  %v9829_v38 = vpop.f32.mrb[245].mxu1  ;;  %v3269_v34 = vor.u32 %v3268_v32, %v3265_v30  ;;  %v3274_v32 = vrot.slane %v3272_v41, 1 }
 0x2c8   :  { %v13014_v48 = vadd.f32 %v2000_v37, %v16254_v58  ;;  %v9679_v25 = vpop.f32.mrb[245].mxu0  ;;  %v2907_v61 = vpop.f32.mrb[246].mxu1 }
 0x2c9   :  { %16255 = vst [vmem:[#allocation12_spill] sm:$0xff] %v13017_v49  ;;  %v2003_v52 = vpop.f32.mrb[246].mxu0  ;;  %v13025_v37 = vadd.f32 %v2907_v61, %v12909_v7  ;;  %v9830_v58 = vpop.f32.mrb[247].mxu1  ;;  %v4125_v7 = vrot.slane %v12894_v4, 2  ;;  %v3270_v30 = vsel %vm3172_vm5, %v3260_v6, %v3269_v34  ;;  %v13062_v6 = vld [vmem:[%s16184_s0 + $0x68] sm:$0xff]  }
 0x2ca   :  { %v13021_v59 = vadd.f32 %v2003_v52, %v16256_v40  ;;  %v9680_v23 = vpop.f32.mrb[247].mxu0  ;;  %v3277_v40 = vrot.slane %v3275_v63, 2  ;;  %v3281_v41 = vshrl.u32 %v13062_v6, 16 }
 0x2cb   :  { %16257 = vst [vmem:[#allocation13_spill] sm:$0xff] %v13025_v37  ;;  %10104 = vmatmul.mubr.msk.bf16.gmra.mrb[96].mxu1 %vm642_vm3, %v4124_v21  ;;  %v16258_v21 = vld [vmem:[#allocation14_spill] sm:$0xff]  ;;  %v16260_v23 = vld [vmem:[#allocation15_spill] sm:$0xff]  ;;  %v4126_v49 = vsel %vm4113_vm6, %v4123_v39, %v4125_v7  ;;  %v3284_v39 = vshll.u32 %v13062_v6, 16 }
 0x2cc   :  { %9954 = vmatmul.mubr.msk.bf16.gmra.mrb[96].mxu0 %vm642_vm3, %v3261_v11  ;;  %10107 = vmatprep.mubr.msk.bf16.mxu1 %vm11310_vm1, %v16229_v15 }
 0x2cd   :  { %9957 = vmatprep.mubr.msk.bf16.mxu0 %vm11310_vm1, %v16229_v15 }
 0x2ce   :  { %v2912_v0 = vpop.f32.mrb[248].mxu1 }
 0x2cf   :  { %v2008_v61 = vpop.f32.mrb[248].mxu0  ;;  %v13045_v38 = vadd.f32 %v2912_v0, %v12930_v26  ;;  %v9833_v52 = vpop.f32.mrb[249].mxu1  ;;  %v3278_v26 = vor.u32 %v3277_v40, %v3274_v32  ;;  %v3283_v40 = vrot.slane %v3281_v41, 1 }
 0x2d0   :  { %v13042_v45 = vadd.f32 %v2008_v61, %v16258_v21  ;;  %v9683_v25 = vpop.f32.mrb[249].mxu0  ;;  %v2915_v37 = vpop.f32.mrb[250].mxu1 }
 0x2d1   :  { %16259 = vst [vmem:[#allocation14_spill] sm:$0xff] %v13045_v38  ;;  %v2011_v11 = vpop.f32.mrb[250].mxu0  ;;  %v13053_v61 = vadd.f32 %v2915_v37, %v12937_v46  ;;  %v9834_v21 = vpop.f32.mrb[251].mxu1  ;;  %v4127_v46 = vrot.slane %v12922_v14, 2  ;;  %v3279_v32 = vsel %vm3172_vm5, %v3269_v34, %v3278_v26  ;;  %v13090_v34 = vld [vmem:[%s16184_s0 + $0x70] sm:$0xff]  }
 0x2d2   :  { %v13049_v58 = vadd.f32 %v2011_v11, %v16260_v23  ;;  %v9684_v4 = vpop.f32.mrb[251].mxu0  ;;  %v3286_v23 = vrot.slane %v3284_v39, 2  ;;  %v3290_v41 = vshrl.u32 %v13090_v34, 16 }
 0x2d3   :  { %16261 = vst [vmem:[#allocation15_spill] sm:$0xff] %v13053_v61  ;;  %10108 = vmatmul.mubr.msk.bf16.gmra.mrb[100].mxu1 %vm642_vm3, %v4126_v49  ;;  %v16262_v49 = vld [vmem:[#allocation16_spill] sm:$0xff]  ;;  %v16264_v4 = vld [vmem:[#allocation17_spill] sm:$0xff]  ;;  %v4128_v38 = vsel %vm4113_vm6, %v4125_v7, %v4127_v46  ;;  %v3293_v7 = vshll.u32 %v13090_v34, 16 }
 0x2d4   :  { %9958 = vmatmul.mubr.msk.bf16.gmra.mrb[100].mxu0 %vm642_vm3, %v3270_v30  ;;  %10111 = vmatprep.mubr.msk.bf16.mxu1 %vm11310_vm1, %v16229_v15 }
 0x2d5   :  { %9961 = vmatprep.mubr.msk.bf16.mxu0 %vm11310_vm1, %v16229_v15 }
 0x2d6   :  { %v2920_v0 = vpop.f32.mrb[252].mxu1 }
 0x2d7   :  { %v2016_v37 = vpop.f32.mrb[252].mxu0  ;;  %v13073_v52 = vadd.f32 %v2920_v0, %v12958_v33  ;;  %v9837_v11 = vpop.f32.mrb[253].mxu1  ;;  %v3287_v33 = vor.u32 %v3286_v23, %v3283_v40  ;;  %v16266_v0 = vld [vmem:[#allocation18_spill] sm:$0xff] }
 0x2d8   :  { %v13070_v63 = vadd.f32 %v2016_v37, %v16262_v49  ;;  %v9687_v25 = vpop.f32.mrb[253].mxu0  ;;  %v2923_v61 = vpop.f32.mrb[254].mxu1 }
 0x2d9   :  { %16263 = vst [vmem:[#allocation16_spill] sm:$0xff] %v13073_v52  ;;  %v2019_v30 = vpop.f32.mrb[254].mxu0  ;;  %v13081_v37 = vadd.f32 %v2923_v61, %v12965_v27  ;;  %v9838_v49 = vpop.f32.mrb[255].mxu1  ;;  %v4844_v27 = vld [vmem:[%s16185_s1 + $0x18] sm:$0xf] }
 0x2da   :  { %v13077_v21 = vadd.f32 %v2019_v30, %v16264_v4  ;;  %v9688_v14 = vpop.f32.mrb[255].mxu0  ;;  %v5255_v61 = vsel %vm766_vm0, %v4844_v27, 0  ;;  %v3288_v4 = vsel %vm3172_vm5, %v3278_v26, %v3287_v33  ;;  %v16268_v49 = vld [vmem:[#allocation19_spill] sm:$0xff] }
 0x2db   :  { %16265 = vst [vmem:[#allocation17_spill] sm:$0xff] %v13081_v37  ;;  %10112 = vmatmul.mubr.msk.bf16.gmra.mrb[104].mxu1 %vm642_vm3, %v4128_v38  ;;  %v4129_v38 = vrot.slane %v12950_v50, 2  ;;  %10252 = vmatpush3.bf16.msra.mxu0 %v5255_v61  ;;  %v3292_v14 = vrot.slane %v3290_v41, 1  ;;  %v3295_v50 = vrot.slane %v3293_v7, 2  ;;  %v13123_v26 = vld [vmem:[%s16184_s0 + $0x78] sm:$0xff]   ;;  %v16270_v7 = vld [vmem:[#allocation20_spill] sm:$0xff] }
 0x2dc   :  { %9962 = vmatmul.mubr.msk.bf16.gmra.mrb[104].mxu0 %vm642_vm3, %v3279_v32  ;;  %10115 = vmatprep.mubr.msk.bf16.mxu1 %vm11310_vm1, %v16229_v15 }
 0x2dd   :  { %9965 = vmatprep.mubr.msk.bf16.mxu0 %vm11310_vm1, %v16229_v15  ;;  %10583 = vmatprep.subr.bf16.mxu0 %v16229_v15 }
 0x2de   :  { %v2928_v11 = vpop.f32.mrb[0].mxu1 }
 0x2df   :  { %v2024_v39 = vpop.f32.mrb[0].mxu0  ;;  %v13106_v32 = vadd.f32 %v2928_v11, %v12986_v17  ;;  %v9841_v40 = vpop.f32.mrb[1].mxu1  ;;  %v3296_v17 = vor.u32 %v3295_v50, %v3292_v14 }
 0x2e0   :  { %v13102_v25 = vadd.f32 %v2024_v39, %v16266_v0  ;;  %v9691_v30 = vpop.f32.mrb[1].mxu0  ;;  %v2931_v61 = vpop.f32.mrb[2].mxu1  ;;  %v4130_v39 = vsel %vm4113_vm6, %v4127_v46, %v4129_v38  ;;  %v3302_v46 = vshll.u32 %v13123_v26, 16 }
 0x2e1   :  { %16267 = vst [vmem:[#allocation18_spill] sm:$0xff] %v13106_v32  ;;  %v2027_v23 = vpop.f32.mrb[2].mxu0  ;;  %v13114_v0 = vadd.f32 %v2931_v61, %v12993_v29  ;;  %v9842_v30 = vpop.f32.mrb[3].mxu1  ;;  %v4131_v29 = vrot.slane %v12978_v44, 2 }
 0x2e2   :  { %v13110_v27 = vadd.f32 %v2027_v23, %v16268_v49  ;;  %v9692_v37 = vpop.f32.mrb[3].mxu0  ;;  %v3297_v49 = vsel %vm3172_vm5, %v3287_v33, %v3296_v17  ;;  %v16272_v30 = vld [vmem:[#allocation21_spill] sm:$0xff]  ;;  %v13151_v33 = vld [vmem:[%s16184_s0 + $0x80] sm:$0xff]  }
 0x2e3   :  { %16269 = vst [vmem:[#allocation19_spill] sm:$0xff] %v13114_v0  ;;  %10116 = vmatmul.mubr.msk.bf16.gmra.mrb[108].mxu1 %vm642_vm3, %v4130_v39  ;;  %v3299_v37 = vshrl.u32 %v13123_v26, 16  ;;  %v3304_v39 = vrot.slane %v3302_v46, 2  ;;  %v4132_v52 = vsel %vm4113_vm6, %v4129_v38, %v4131_v29  ;;  %v3311_v38 = vshll.u32 %v13151_v33, 16 }
 0x2e4   :  { %9966 = vmatmul.mubr.msk.bf16.gmra.mrb[108].mxu0 %vm642_vm3, %v3288_v4  ;;  %10119 = vmatprep.mubr.msk.bf16.mxu1 %vm11310_vm1, %v16229_v15 }
 0x2e5   :  { %9969 = vmatprep.mubr.msk.bf16.mxu0 %vm11310_vm1, %v16229_v15  ;;  %v3301_v61 = vrot.slane %v3299_v37, 1  ;;  %v3308_v37 = vshrl.u32 %v13151_v33, 16 }
 0x2e6   :  { %v2936_v40 = vpop.f32.mrb[4].mxu1 }
 0x2e7   :  { %v2032_v41 = vpop.f32.mrb[4].mxu0  ;;  %v13134_v4 = vadd.f32 %v2936_v40, %v13014_v48  ;;  %v9845_v14 = vpop.f32.mrb[5].mxu1  ;;  %v3305_v48 = vor.u32 %v3304_v39, %v3301_v61  ;;  %v3310_v39 = vrot.slane %v3308_v37, 1 }
 0x2e8   :  { %v13131_v11 = vadd.f32 %v2032_v41, %v16270_v7  ;;  %v9695_v23 = vpop.f32.mrb[5].mxu0  ;;  %v2939_v32 = vpop.f32.mrb[6].mxu1 }
 0x2e9   :  { %16271 = vst [vmem:[#allocation20_spill] sm:$0xff] %v13134_v4  ;;  %v2035_v50 = vpop.f32.mrb[6].mxu0  ;;  %v13142_v41 = vadd.f32 %v2939_v32, %v13021_v59  ;;  %v9846_v7 = vpop.f32.mrb[7].mxu1  ;;  %v4133_v59 = vrot.slane %v13006_v13, 2  ;;  %v3306_v61 = vsel %vm3172_vm5, %v3296_v17, %v3305_v48  ;;  %v13179_v17 = vld [vmem:[%s16184_s0 + $0x88] sm:$0xff]  }
 0x2ea   :  { %v13138_v0 = vadd.f32 %v2035_v50, %v16272_v30  ;;  %v9696_v44 = vpop.f32.mrb[7].mxu0  ;;  %v3313_v30 = vrot.slane %v3311_v38, 2  ;;  %v3317_v37 = vshrl.u32 %v13179_v17, 16 }
 0x2eb   :  { %16273 = vst [vmem:[#allocation21_spill] sm:$0xff] %v13142_v41  ;;  %10120 = vmatmul.mubr.msk.bf16.gmra.mrb[112].mxu1 %vm642_vm3, %v4132_v52  ;;  %v16274_v52 = vld [vmem:[#allocation22_spill] sm:$0xff]  ;;  %v16276_v44 = vld [vmem:[#allocation23_spill] sm:$0xff]  ;;  %v4134_v4 = vsel %vm4113_vm6, %v4131_v29, %v4133_v59  ;;  %v3320_v29 = vshll.u32 %v13179_v17, 16 }
 0x2ec   :  { %9970 = vmatmul.mubr.msk.bf16.gmra.mrb[112].mxu0 %vm642_vm3, %v3297_v49  ;;  %10123 = vmatprep.mubr.msk.bf16.mxu1 %vm11310_vm1, %v16229_v15 }
 0x2ed   :  { %9973 = vmatprep.mubr.msk.bf16.mxu0 %vm11310_vm1, %v16229_v15 }
 0x2ee   :  { %v2944_v40 = vpop.f32.mrb[8].mxu1 }
 0x2ef   :  { %v2040_v32 = vpop.f32.mrb[8].mxu0  ;;  %v13162_v14 = vadd.f32 %v2944_v40, %v13042_v45  ;;  %v9849_v50 = vpop.f32.mrb[9].mxu1  ;;  %v3314_v45 = vor.u32 %v3313_v30, %v3310_v39  ;;  %v3319_v30 = vrot.slane %v3317_v37, 1 }
 0x2f0   :  { %v13159_v46 = vadd.f32 %v2040_v32, %v16274_v52  ;;  %v9699_v23 = vpop.f32.mrb[9].mxu0  ;;  %v2947_v41 = vpop.f32.mrb[10].mxu1 }
 0x2f1   :  { %16275 = vst [vmem:[#allocation22_spill] sm:$0xff] %v13162_v14  ;;  %v2043_v49 = vpop.f32.mrb[10].mxu0  ;;  %v13170_v32 = vadd.f32 %v2947_v41, %v13049_v58  ;;  %v9850_v52 = vpop.f32.mrb[11].mxu1  ;;  %v4135_v58 = vrot.slane %v13034_v36, 2  ;;  %v3315_v39 = vsel %vm3172_vm5, %v3305_v48, %v3314_v45  ;;  %v13207_v48 = vld [vmem:[%s16184_s0 + $0x90] sm:$0xff]  }
 0x2f2   :  { %v13166_v7 = vadd.f32 %v2043_v49, %v16276_v44  ;;  %v9700_v13 = vpop.f32.mrb[11].mxu0  ;;  %v3322_v44 = vrot.slane %v3320_v29, 2  ;;  %v3326_v37 = vshrl.u32 %v13207_v48, 16 }
 0x2f3   :  { %16277 = vst [vmem:[#allocation23_spill] sm:$0xff] %v13170_v32  ;;  %10124 = vmatmul.mubr.msk.bf16.gmra.mrb[116].mxu1 %vm642_vm3, %v4134_v4  ;;  %v16278_v4 = vld [vmem:[#allocation24_spill] sm:$0xff]  ;;  %v16280_v13 = vld [vmem:[#allocation25_spill] sm:$0xff]  ;;  %v4136_v14 = vsel %vm4113_vm6, %v4133_v59, %v4135_v58  ;;  %v3329_v59 = vshll.u32 %v13207_v48, 16 }
 0x2f4   :  { %9974 = vmatmul.mubr.msk.bf16.gmra.mrb[116].mxu0 %vm642_vm3, %v3306_v61  ;;  %10127 = vmatprep.mubr.msk.bf16.mxu1 %vm11310_vm1, %v16229_v15 }
 0x2f5   :  { %9977 = vmatprep.mubr.msk.bf16.mxu0 %vm11310_vm1, %v16229_v15 }
 0x2f6   :  { %v2952_v40 = vpop.f32.mrb[12].mxu1 }
 0x2f7   :  { %v2048_v41 = vpop.f32.mrb[12].mxu0  ;;  %v13190_v50 = vadd.f32 %v2952_v40, %v13070_v63  ;;  %v9853_v49 = vpop.f32.mrb[13].mxu1  ;;  %v3323_v63 = vor.u32 %v3322_v44, %v3319_v30  ;;  %v3328_v44 = vrot.slane %v3326_v37, 1 }
 0x2f8   :  { %v13187_v38 = vadd.f32 %v2048_v41, %v16278_v4  ;;  %v9703_v23 = vpop.f32.mrb[13].mxu0  ;;  %v2955_v32 = vpop.f32.mrb[14].mxu1 }
 0x2f9   :  { %16279 = vst [vmem:[#allocation24_spill] sm:$0xff] %v13190_v50  ;;  %v2051_v61 = vpop.f32.mrb[14].mxu0  ;;  %v13198_v41 = vadd.f32 %v2955_v32, %v13077_v21  ;;  %v9854_v4 = vpop.f32.mrb[15].mxu1  ;;  %v4137_v21 = vrot.slane %v13062_v6, 2  ;;  %v3324_v30 = vsel %vm3172_vm5, %v3314_v45, %v3323_v63  ;;  %v13235_v45 = vld [vmem:[%s16184_s0 + $0x98] sm:$0xff]  }
 0x2fa   :  { %v13194_v52 = vadd.f32 %v2051_v61, %v16280_v13  ;;  %v9704_v36 = vpop.f32.mrb[15].mxu0  ;;  %v3331_v13 = vrot.slane %v3329_v59, 2  ;;  %v3335_v37 = vshrl.u32 %v13235_v45, 16 }
 0x2fb   :  { %16281 = vst [vmem:[#allocation25_spill] sm:$0xff] %v13198_v41  ;;  %10128 = vmatmul.mubr.msk.bf16.gmra.mrb[120].mxu1 %vm642_vm3, %v4136_v14  ;;  %v16282_v14 = vld [vmem:[#allocation26_spill] sm:$0xff]  ;;  %v16284_v36 = vld [vmem:[#allocation27_spill] sm:$0xff]  ;;  %v4138_v50 = vsel %vm4113_vm6, %v4135_v58, %v4137_v21  ;;  %v3338_v58 = vshll.u32 %v13235_v45, 16 }
 0x2fc   :  { %9978 = vmatmul.mubr.msk.bf16.gmra.mrb[120].mxu0 %vm642_vm3, %v3315_v39  ;;  %10131 = vmatprep.mubr.msk.bf16.mxu1 %vm11310_vm1, %v16229_v15 }
 0x2fd   :  { %9981 = vmatprep.mubr.msk.bf16.mxu0 %vm11310_vm1, %v16229_v15 }
 0x2fe   :  { %v2960_v40 = vpop.f32.mrb[16].mxu1 }
 0x2ff   :  { %v2056_v32 = vpop.f32.mrb[16].mxu0  ;;  %v13218_v49 = vadd.f32 %v2960_v40, %v13102_v25  ;;  %v9857_v61 = vpop.f32.mrb[17].mxu1  ;;  %v3332_v25 = vor.u32 %v3331_v13, %v3328_v44  ;;  %v3337_v13 = vrot.slane %v3335_v37, 1 }
 0x300   :  { %v13215_v29 = vadd.f32 %v2056_v32, %v16282_v14  ;;  %v9707_v23 = vpop.f32.mrb[17].mxu0  ;;  %v2963_v41 = vpop.f32.mrb[18].mxu1 }
 0x301   :  { %16283 = vst [vmem:[#allocation26_spill] sm:$0xff] %v13218_v49  ;;  %v2059_v39 = vpop.f32.mrb[18].mxu0  ;;  %v13226_v32 = vadd.f32 %v2963_v41, %v13110_v27  ;;  %v9858_v14 = vpop.f32.mrb[19].mxu1  ;;  %v4139_v27 = vrot.slane %v13090_v34, 2  ;;  %v3333_v44 = vsel %vm3172_vm5, %v3323_v63, %v3332_v25  ;;  %v13263_v63 = vld [vmem:[%s16184_s0 + $0xa0] sm:$0xff]  }
 0x302   :  { %v13222_v4 = vadd.f32 %v2059_v39, %v16284_v36  ;;  %v9708_v6 = vpop.f32.mrb[19].mxu0  ;;  %v3340_v36 = vrot.slane %v3338_v58, 2  ;;  %v3344_v37 = vshrl.u32 %v13263_v63, 16 }
 0x303   :  { %16285 = vst [vmem:[#allocation27_spill] sm:$0xff] %v13226_v32  ;;  %10132 = vmatmul.mubr.msk.bf16.gmra.mrb[124].mxu1 %vm642_vm3, %v4138_v50  ;;  %v16286_v50 = vld [vmem:[#allocation28_spill] sm:$0xff]  ;;  %v16288_v6 = vld [vmem:[#allocation29_spill] sm:$0xff]  ;;  %v4140_v49 = vsel %vm4113_vm6, %v4137_v21, %v4139_v27  ;;  %v3347_v21 = vshll.u32 %v13263_v63, 16 }
 0x304   :  { %9982 = vmatmul.mubr.msk.bf16.gmra.mrb[124].mxu0 %vm642_vm3, %v3324_v30  ;;  %10135 = vmatprep.mubr.msk.bf16.mxu1 %vm11310_vm1, %v16229_v15 }
 0x305   :  { %9985 = vmatprep.mubr.msk.bf16.mxu0 %vm11310_vm1, %v16229_v15 }
 0x306   :  { %v2968_v40 = vpop.f32.mrb[20].mxu1 }
 0x307   :  { %v2064_v41 = vpop.f32.mrb[20].mxu0  ;;  %v13246_v61 = vadd.f32 %v2968_v40, %v13131_v11  ;;  %v9861_v39 = vpop.f32.mrb[21].mxu1  ;;  %v3341_v11 = vor.u32 %v3340_v36, %v3337_v13  ;;  %v3346_v36 = vrot.slane %v3344_v37, 1 }
 0x308   :  { %v13243_v59 = vadd.f32 %v2064_v41, %v16286_v50  ;;  %v9711_v23 = vpop.f32.mrb[21].mxu0  ;;  %v2971_v32 = vpop.f32.mrb[22].mxu1 }
 0x309   :  { %16287 = vst [vmem:[#allocation28_spill] sm:$0xff] %v13246_v61  ;;  %v2067_v30 = vpop.f32.mrb[22].mxu0  ;;  %v13254_v41 = vadd.f32 %v2971_v32, %v13138_v0  ;;  %v9862_v50 = vpop.f32.mrb[23].mxu1  ;;  %v4141_v0 = vrot.slane %v13123_v26, 2  ;;  %v3342_v13 = vsel %vm3172_vm5, %v3332_v25, %v3341_v11  ;;  %v13291_v25 = vld [vmem:[%s16184_s0 + $0xa8] sm:$0xff]  }
 0x30a   :  { %v13250_v14 = vadd.f32 %v2067_v30, %v16288_v6  ;;  %v9712_v34 = vpop.f32.mrb[23].mxu0  ;;  %v3349_v6 = vrot.slane %v3347_v21, 2  ;;  %v3353_v37 = vshrl.u32 %v13291_v25, 16 }
 0x30b   :  { %16289 = vst [vmem:[#allocation29_spill] sm:$0xff] %v13254_v41  ;;  %10136 = vmatmul.mubr.msk.bf16.gmra.mrb[128].mxu1 %vm642_vm3, %v4140_v49  ;;  %v16290_v49 = vld [vmem:[#allocation30_spill] sm:$0xff]  ;;  %v16292_v34 = vld [vmem:[#allocation31_spill] sm:$0xff]  ;;  %v4142_v61 = vsel %vm4113_vm6, %v4139_v27, %v4141_v0  ;;  %v3356_v27 = vshll.u32 %v13291_v25, 16 }
 0x30c   :  { %9986 = vmatmul.mubr.msk.bf16.gmra.mrb[128].mxu0 %vm642_vm3, %v3333_v44  ;;  %10139 = vmatprep.mubr.msk.bf16.mxu1 %vm11310_vm1, %v16229_v15 }
 0x30d   :  { %9989 = vmatprep.mubr.msk.bf16.mxu0 %vm11310_vm1, %v16229_v15 }
 0x30e   :  { %v2976_v40 = vpop.f32.mrb[24].mxu1 }
 0x30f   :  { %v2072_v32 = vpop.f32.mrb[24].mxu0  ;;  %v13274_v39 = vadd.f32 %v2976_v40, %v13159_v46  ;;  %v9865_v30 = vpop.f32.mrb[25].mxu1  ;;  %v3350_v46 = vor.u32 %v3349_v6, %v3346_v36  ;;  %v3355_v6 = vrot.slane %v3353_v37, 1 }
 0x310   :  { %v13271_v58 = vadd.f32 %v2072_v32, %v16290_v49  ;;  %v9715_v23 = vpop.f32.mrb[25].mxu0  ;;  %v2979_v41 = vpop.f32.mrb[26].mxu1 }
 0x311   :  { %16291 = vst [vmem:[#allocation30_spill] sm:$0xff] %v13274_v39  ;;  %v2075_v44 = vpop.f32.mrb[26].mxu0  ;;  %v13282_v32 = vadd.f32 %v2979_v41, %v13166_v7  ;;  %v9866_v49 = vpop.f32.mrb[27].mxu1  ;;  %v4143_v7 = vrot.slane %v13151_v33, 2  ;;  %v3351_v36 = vsel %vm3172_vm5, %v3341_v11, %v3350_v46  ;;  %v13319_v11 = vld [vmem:[%s16184_s0 + $0xb0] sm:$0xff]  }
 0x312   :  { %v13278_v50 = vadd.f32 %v2075_v44, %v16292_v34  ;;  %v9716_v26 = vpop.f32.mrb[27].mxu0  ;;  %v3358_v34 = vrot.slane %v3356_v27, 2  ;;  %v3362_v37 = vshrl.u32 %v13319_v11, 16 }
 0x313   :  { %16293 = vst [vmem:[#allocation31_spill] sm:$0xff] %v13282_v32  ;;  %10140 = vmatmul.mubr.msk.bf16.gmra.mrb[132].mxu1 %vm642_vm3, %v4142_v61  ;;  %v16294_v61 = vld [vmem:[#allocation32_spill] sm:$0xff]  ;;  %v16296_v26 = vld [vmem:[#allocation33_spill] sm:$0xff]  ;;  %v4144_v39 = vsel %vm4113_vm6, %v4141_v0, %v4143_v7  ;;  %v3365_v0 = vshll.u32 %v13319_v11, 16 }
 0x314   :  { %9990 = vmatmul.mubr.msk.bf16.gmra.mrb[132].mxu0 %vm642_vm3, %v3342_v13  ;;  %10143 = vmatprep.mubr.msk.bf16.mxu1 %vm11310_vm1, %v16229_v15 }
 0x315   :  { %9993 = vmatprep.mubr.msk.bf16.mxu0 %vm11310_vm1, %v16229_v15 }
 0x316   :  { %v2984_v40 = vpop.f32.mrb[28].mxu1 }
 0x317   :  { %v2080_v41 = vpop.f32.mrb[28].mxu0  ;;  %v13302_v30 = vadd.f32 %v2984_v40, %v13187_v38  ;;  %v9869_v44 = vpop.f32.mrb[29].mxu1  ;;  %v3359_v38 = vor.u32 %v3358_v34, %v3355_v6  ;;  %v3364_v34 = vrot.slane %v3362_v37, 1 }
 0x318   :  { %v13299_v21 = vadd.f32 %v2080_v41, %v16294_v61  ;;  %v9719_v23 = vpop.f32.mrb[29].mxu0  ;;  %v2987_v32 = vpop.f32.mrb[30].mxu1 }
 0x319   :  { %16295 = vst [vmem:[#allocation32_spill] sm:$0xff] %v13302_v30  ;;  %v2083_v13 = vpop.f32.mrb[30].mxu0  ;;  %v13310_v41 = vadd.f32 %v2987_v32, %v13194_v52  ;;  %v9870_v61 = vpop.f32.mrb[31].mxu1  ;;  %v4145_v52 = vrot.slane %v13179_v17, 2  ;;  %v3360_v6 = vsel %vm3172_vm5, %v3350_v46, %v3359_v38  ;;  %v13347_v46 = vld [vmem:[%s16184_s0 + $0xb8] sm:$0xff]  }
 0x31a   :  { %v13306_v49 = vadd.f32 %v2083_v13, %v16296_v26  ;;  %v9720_v33 = vpop.f32.mrb[31].mxu0  ;;  %v3367_v26 = vrot.slane %v3365_v0, 2  ;;  %v3371_v37 = vshrl.u32 %v13347_v46, 16 }
 0x31b   :  { %16297 = vst [vmem:[#allocation33_spill] sm:$0xff] %v13310_v41  ;;  %10144 = vmatmul.mubr.msk.bf16.gmra.mrb[136].mxu1 %vm642_vm3, %v4144_v39  ;;  %v16298_v39 = vld [vmem:[#allocation34_spill] sm:$0xff]  ;;  %v16300_v33 = vld [vmem:[#allocation35_spill] sm:$0xff]  ;;  %v4146_v30 = vsel %vm4113_vm6, %v4143_v7, %v4145_v52  ;;  %v3374_v7 = vshll.u32 %v13347_v46, 16 }
 0x31c   :  { %9994 = vmatmul.mubr.msk.bf16.gmra.mrb[136].mxu0 %vm642_vm3, %v3351_v36  ;;  %10147 = vmatprep.mubr.msk.bf16.mxu1 %vm11310_vm1, %v16229_v15 }
 0x31d   :  { %9997 = vmatprep.mubr.msk.bf16.mxu0 %vm11310_vm1, %v16229_v15 }
 0x31e   :  { %v2992_v40 = vpop.f32.mrb[32].mxu1 }
 0x31f   :  { %v2088_v32 = vpop.f32.mrb[32].mxu0  ;;  %v13330_v44 = vadd.f32 %v2992_v40, %v13215_v29  ;;  %v9873_v13 = vpop.f32.mrb[33].mxu1  ;;  %v3368_v29 = vor.u32 %v3367_v26, %v3364_v34  ;;  %v3373_v26 = vrot.slane %v3371_v37, 1 }
 0x320   :  { %v13327_v27 = vadd.f32 %v2088_v32, %v16298_v39  ;;  %v9723_v23 = vpop.f32.mrb[33].mxu0  ;;  %v2995_v41 = vpop.f32.mrb[34].mxu1 }
 0x321   :  { %16299 = vst [vmem:[#allocation34_spill] sm:$0xff] %v13330_v44  ;;  %v2091_v36 = vpop.f32.mrb[34].mxu0  ;;  %v13338_v32 = vadd.f32 %v2995_v41, %v13222_v4  ;;  %v9874_v39 = vpop.f32.mrb[35].mxu1  ;;  %v4147_v4 = vrot.slane %v13207_v48, 2  ;;  %v3369_v34 = vsel %vm3172_vm5, %v3359_v38, %v3368_v29  ;;  %v13375_v38 = vld [vmem:[%s16184_s0 + $0xc0] sm:$0xff]  }
 0x322   :  { %v13334_v61 = vadd.f32 %v2091_v36, %v16300_v33  ;;  %v9724_v17 = vpop.f32.mrb[35].mxu0  ;;  %v3376_v33 = vrot.slane %v3374_v7, 2  ;;  %v3380_v37 = vshrl.u32 %v13375_v38, 16 }
 0x323   :  { %16301 = vst [vmem:[#allocation35_spill] sm:$0xff] %v13338_v32  ;;  %10148 = vmatmul.mubr.msk.bf16.gmra.mrb[140].mxu1 %vm642_vm3, %v4146_v30  ;;  %v16302_v30 = vld [vmem:[#allocation36_spill] sm:$0xff]  ;;  %v16304_v17 = vld [vmem:[#allocation37_spill] sm:$0xff]  ;;  %v4148_v44 = vsel %vm4113_vm6, %v4145_v52, %v4147_v4  ;;  %v3383_v52 = vshll.u32 %v13375_v38, 16 }
 0x324   :  { %9998 = vmatmul.mubr.msk.bf16.gmra.mrb[140].mxu0 %vm642_vm3, %v3360_v6  ;;  %10151 = vmatprep.mubr.msk.bf16.mxu1 %vm11310_vm1, %v16229_v15 }
 0x325   :  { %10001 = vmatprep.mubr.msk.bf16.mxu0 %vm11310_vm1, %v16229_v15 }
 0x326   :  { %v3000_v40 = vpop.f32.mrb[36].mxu1 }
 0x327   :  { %v2096_v41 = vpop.f32.mrb[36].mxu0  ;;  %v13358_v13 = vadd.f32 %v3000_v40, %v13243_v59  ;;  %v9877_v36 = vpop.f32.mrb[37].mxu1  ;;  %v3377_v59 = vor.u32 %v3376_v33, %v3373_v26  ;;  %v3382_v33 = vrot.slane %v3380_v37, 1 }
 0x328   :  { %v13355_v0 = vadd.f32 %v2096_v41, %v16302_v30  ;;  %v9727_v23 = vpop.f32.mrb[37].mxu0  ;;  %v3003_v32 = vpop.f32.mrb[38].mxu1 }
 0x329   :  { %16303 = vst [vmem:[#allocation36_spill] sm:$0xff] %v13358_v13  ;;  %v2099_v6 = vpop.f32.mrb[38].mxu0  ;;  %v13366_v41 = vadd.f32 %v3003_v32, %v13250_v14  ;;  %v9878_v30 = vpop.f32.mrb[39].mxu1  ;;  %v4149_v14 = vrot.slane %v13235_v45, 2  ;;  %v3378_v26 = vsel %vm3172_vm5, %v3368_v29, %v3377_v59  ;;  %v13403_v29 = vld [vmem:[%s16184_s0 + $0xc8] sm:$0xff]  }
 0x32a   :  { %v13362_v39 = vadd.f32 %v2099_v6, %v16304_v17  ;;  %v9728_v48 = vpop.f32.mrb[39].mxu0  ;;  %v3385_v17 = vrot.slane %v3383_v52, 2  ;;  %v3389_v37 = vshrl.u32 %v13403_v29, 16 }
 0x32b   :  { %16305 = vst [vmem:[#allocation37_spill] sm:$0xff] %v13366_v41  ;;  %10152 = vmatmul.mubr.msk.bf16.gmra.mrb[144].mxu1 %vm642_vm3, %v4148_v44  ;;  %v16306_v44 = vld [vmem:[#allocation38_spill] sm:$0xff]  ;;  %v16308_v48 = vld [vmem:[#allocation39_spill] sm:$0xff]  ;;  %v4150_v13 = vsel %vm4113_vm6, %v4147_v4, %v4149_v14  ;;  %v3392_v4 = vshll.u32 %v13403_v29, 16 }
 0x32c   :  { %10002 = vmatmul.mubr.msk.bf16.gmra.mrb[144].mxu0 %vm642_vm3, %v3369_v34  ;;  %10155 = vmatprep.mubr.msk.bf16.mxu1 %vm11310_vm1, %v16229_v15 }
 0x32d   :  { %10005 = vmatprep.mubr.msk.bf16.mxu0 %vm11310_vm1, %v16229_v15 }
 0x32e   :  { %v3008_v40 = vpop.f32.mrb[40].mxu1 }
 0x32f   :  { %v2104_v32 = vpop.f32.mrb[40].mxu0  ;;  %v13386_v36 = vadd.f32 %v3008_v40, %v13271_v58  ;;  %v9881_v6 = vpop.f32.mrb[41].mxu1  ;;  %v3386_v58 = vor.u32 %v3385_v17, %v3382_v33  ;;  %v3391_v17 = vrot.slane %v3389_v37, 1 }
 0x330   :  { %v13383_v7 = vadd.f32 %v2104_v32, %v16306_v44  ;;  %v9731_v23 = vpop.f32.mrb[41].mxu0  ;;  %v3011_v41 = vpop.f32.mrb[42].mxu1 }
 0x331   :  { %16307 = vst [vmem:[#allocation38_spill] sm:$0xff] %v13386_v36  ;;  %v2107_v34 = vpop.f32.mrb[42].mxu0  ;;  %v13394_v32 = vadd.f32 %v3011_v41, %v13278_v50  ;;  %v9882_v44 = vpop.f32.mrb[43].mxu1  ;;  %v4151_v50 = vrot.slane %v13263_v63, 2  ;;  %v3387_v33 = vsel %vm3172_vm5, %v3377_v59, %v3386_v58  ;;  %v13431_v59 = vld [vmem:[%s16184_s0 + $0xd0] sm:$0xff]  }
 0x332   :  { %v13390_v30 = vadd.f32 %v2107_v34, %v16308_v48  ;;  %v9732_v45 = vpop.f32.mrb[43].mxu0  ;;  %v3394_v48 = vrot.slane %v3392_v4, 2  ;;  %v3398_v37 = vshrl.u32 %v13431_v59, 16 }
 0x333   :  { %16309 = vst [vmem:[#allocation39_spill] sm:$0xff] %v13394_v32  ;;  %10156 = vmatmul.mubr.msk.bf16.gmra.mrb[148].mxu1 %vm642_vm3, %v4150_v13  ;;  %v16310_v13 = vld [vmem:[#allocation40_spill] sm:$0xff]  ;;  %v16311_v45 = vld [vmem:[#allocation41_spill] sm:$0xff]  ;;  %v4152_v36 = vsel %vm4113_vm6, %v4149_v14, %v4151_v50  ;;  %v3401_v14 = vshll.u32 %v13431_v59, 16 }
 0x334   :  { %10006 = vmatmul.mubr.msk.bf16.gmra.mrb[148].mxu0 %vm642_vm3, %v3378_v26  ;;  %10159 = vmatprep.mubr.msk.bf16.mxu1 %vm11310_vm1, %v16229_v15 }
 0x335   :  { %10009 = vmatprep.mubr.msk.bf16.mxu0 %vm11310_vm1, %v16229_v15 }
 0x336   :  { %v3016_v40 = vpop.f32.mrb[44].mxu1 }
 0x337   :  { %v2112_v41 = vpop.f32.mrb[44].mxu0  ;;  %v13414_v6 = vadd.f32 %v3016_v40, %v13299_v21  ;;  %v9885_v34 = vpop.f32.mrb[45].mxu1  ;;  %v3395_v21 = vor.u32 %v3394_v48, %v3391_v17  ;;  %v3400_v17 = vrot.slane %v3398_v37, 1  ;;  %v3403_v48 = vrot.slane %v3401_v14, 2 }
 0x338   :  { %v13411_v52 = vadd.f32 %v2112_v41, %v16310_v13  ;;  %v9735_v23 = vpop.f32.mrb[45].mxu0  ;;  %v3019_v32 = vpop.f32.mrb[46].mxu1 }
 0x339   :  { %v2115_v26 = vpop.f32.mrb[46].mxu0  ;;  %v13422_v41 = vadd.f32 %v3019_v32, %v13306_v49  ;;  %v9886_v13 = vpop.f32.mrb[47].mxu1  ;;  %v4153_v49 = vrot.slane %v13291_v25, 2 }
 0x33a   :  { %v13418_v44 = vadd.f32 %v2115_v26, %v16311_v45  ;;  %v9736_v63 = vpop.f32.mrb[47].mxu0 }
 0x33b   :  { %10160 = vmatmul.mubr.msk.bf16.gmra.mrb[152].mxu1 %vm642_vm3, %v4152_v36  ;;  %v4154_v13 = vsel %vm4113_vm6, %v4151_v50, %v4153_v49 }
 0x33c   :  { %10010 = vmatmul.mubr.msk.bf16.gmra.mrb[152].mxu0 %vm642_vm3, %v3387_v33  ;;  %10163 = vmatprep.mubr.msk.bf16.mxu1 %vm11310_vm1, %v16229_v15  ;;  %v3396_v33 = vsel %vm3172_vm5, %v3386_v58, %v3395_v21 }
 0x33d   :  { %10013 = vmatprep.mubr.msk.bf16.mxu0 %vm11310_vm1, %v16229_v15 }
 0x33e   :  { %v3024_v4 = vpop.f32.mrb[48].mxu1 }
 0x33f   :  { %v2120_v32 = vpop.f32.mrb[48].mxu0  ;;  %v13442_v23 = vadd.f32 %v3024_v4, %v13327_v27  ;;  %v9889_v34 = vpop.f32.mrb[49].mxu1  ;;  %v3404_v27 = vor.u32 %v3403_v48, %v3400_v17 }
 0x340   :  { %v13439_v36 = vadd.f32 %v2120_v32, %v12412_v3  ;;  %v9739_v40 = vpop.f32.mrb[49].mxu0  ;;  %v3027_v63 = vpop.f32.mrb[50].mxu1 }
 0x341   :  { %v2123_v26 = vpop.f32.mrb[50].mxu0  ;;  %v13450_v3 = vadd.f32 %v3027_v63, %v13334_v61  ;;  %v9890_v32 = vpop.f32.mrb[51].mxu1  ;;  %v4155_v61 = vrot.slane %v13319_v11, 2  ;;  %v3405_v17 = vsel %vm3172_vm5, %v3395_v21, %v3404_v27 }
 0x342   :  { %v13446_v45 = vadd.f32 %v2123_v26, %v12422_v43  ;;  %v9740_v25 = vpop.f32.mrb[51].mxu0  ;;  %v13459_v43 = vld [vmem:[%s16184_s0 + $0xd8] sm:$0xff]  }
 0x343   :  { %10164 = vmatmul.mubr.msk.bf16.gmra.mrb[156].mxu1 %vm642_vm3, %v4154_v13  ;;  %v3407_v58 = vshrl.u32 %v13459_v43, 16  ;;  %v3410_v50 = vshll.u32 %v13459_v43, 16  ;;  %v4156_v32 = vsel %vm4113_vm6, %v4153_v49, %v4155_v61 }
 0x344   :  { %10014 = vmatmul.mubr.msk.bf16.gmra.mrb[156].mxu0 %vm642_vm3, %v3396_v33  ;;  %10167 = vmatprep.mubr.msk.bf16.mxu1 %vm11310_vm1, %v16229_v15 }
 0x345   :  { %10017 = vmatprep.mubr.msk.bf16.mxu0 %vm11310_vm1, %v16229_v15  ;;  %v3409_v48 = vrot.slane %v3407_v58, 1  ;;  %v3412_v63 = vrot.slane %v3410_v50, 2 }
 0x346   :  { %v3032_v4 = vpop.f32.mrb[52].mxu1 }
 0x347   :  { %v2128_v37 = vpop.f32.mrb[52].mxu0  ;;  %v13470_v34 = vadd.f32 %v3032_v4, %v13355_v0  ;;  %v9893_v26 = vpop.f32.mrb[53].mxu1  ;;  %v3413_v0 = vor.u32 %v3412_v63, %v3409_v48 }
 0x348   :  { %v13467_v14 = vadd.f32 %v2128_v37, %v12436_v57  ;;  %v9743_v40 = vpop.f32.mrb[53].mxu0  ;;  %v3035_v13 = vpop.f32.mrb[54].mxu1 }
 0x349   :  { %v2131_v33 = vpop.f32.mrb[54].mxu0  ;;  %v13478_v57 = vadd.f32 %v3035_v13, %v13362_v39  ;;  %v9894_v37 = vpop.f32.mrb[55].mxu1  ;;  %v4157_v39 = vrot.slane %v13347_v46, 2  ;;  %v3414_v48 = vsel %vm3172_vm5, %v3404_v27, %v3413_v0 }
 0x34a   :  { %v13474_v25 = vadd.f32 %v2131_v33, %v12446_v60  ;;  %v9744_v11 = vpop.f32.mrb[55].mxu0  ;;  %v13487_v60 = vld [vmem:[%s16184_s0 + $0xe0] sm:$0xff]  }
 0x34b   :  { %10168 = vmatmul.mubr.msk.bf16.gmra.mrb[160].mxu1 %vm642_vm3, %v4156_v32  ;;  %v3416_v21 = vshrl.u32 %v13487_v60, 16  ;;  %v3419_v49 = vshll.u32 %v13487_v60, 16  ;;  %v4158_v37 = vsel %vm4113_vm6, %v4155_v61, %v4157_v39 }
 0x34c   :  { %10018 = vmatmul.mubr.msk.bf16.gmra.mrb[160].mxu0 %vm642_vm3, %v3405_v17  ;;  %10171 = vmatprep.mubr.msk.bf16.mxu1 %vm11310_vm1, %v16229_v15 }
 0x34d   :  { %10021 = vmatprep.mubr.msk.bf16.mxu0 %vm11310_vm1, %v16229_v15  ;;  %v3418_v63 = vrot.slane %v3416_v21, 1  ;;  %v3421_v13 = vrot.slane %v3419_v49, 2 }
 0x34e   :  { %v3040_v4 = vpop.f32.mrb[56].mxu1 }
 0x34f   :  { %v2136_v58 = vpop.f32.mrb[56].mxu0  ;;  %v13498_v26 = vadd.f32 %v3040_v4, %v13383_v7  ;;  %v9897_v33 = vpop.f32.mrb[57].mxu1  ;;  %v3422_v7 = vor.u32 %v3421_v13, %v3418_v63 }
 0x350   :  { %v13495_v50 = vadd.f32 %v2136_v58, %v12464_v9  ;;  %v9747_v40 = vpop.f32.mrb[57].mxu0  ;;  %v3043_v32 = vpop.f32.mrb[58].mxu1 }
 0x351   :  { %v2139_v17 = vpop.f32.mrb[58].mxu0  ;;  %v13506_v9 = vadd.f32 %v3043_v32, %v13390_v30  ;;  %v9898_v58 = vpop.f32.mrb[59].mxu1  ;;  %v4159_v30 = vrot.slane %v13375_v38, 2  ;;  %v3423_v63 = vsel %vm3172_vm5, %v3413_v0, %v3422_v7  ;;  %v13540_v0 = vld [vmem:[%s16184_s0 + $0xf0] sm:$0xff]  }
 0x352   :  { %v13502_v11 = vadd.f32 %v2139_v17, %v12476_v10  ;;  %v9748_v46 = vpop.f32.mrb[59].mxu0  ;;  %v13515_v10 = vld [vmem:[%s16184_s0 + $0xe8] sm:$0xff]  }
 0x353   :  { %10172 = vmatmul.mubr.msk.bf16.gmra.mrb[164].mxu1 %vm642_vm3, %v4158_v37  ;;  %v3425_v27 = vshrl.u32 %v13515_v10, 16  ;;  %v3428_v61 = vshll.u32 %v13515_v10, 16  ;;  %v4160_v58 = vsel %vm4113_vm6, %v4157_v39, %v4159_v30  ;;  %v3437_v39 = vshll.u32 %v13540_v0, 16 }
 0x354   :  { %10022 = vmatmul.mubr.msk.bf16.gmra.mrb[164].mxu0 %vm642_vm3, %v3414_v48  ;;  %10175 = vmatprep.mubr.msk.bf16.mxu1 %vm11310_vm1, %v16229_v15 }
 0x355   :  { %10025 = vmatprep.mubr.msk.bf16.mxu0 %vm11310_vm1, %v16229_v15  ;;  %v3427_v13 = vrot.slane %v3425_v27, 1  ;;  %v3430_v32 = vrot.slane %v3428_v61, 2  ;;  %v3434_v27 = vshrl.u32 %v13540_v0, 16 }
 0x356   :  { %v3048_v4 = vpop.f32.mrb[60].mxu1 }
 0x357   :  { %v2144_v21 = vpop.f32.mrb[60].mxu0  ;;  %v13526_v33 = vadd.f32 %v3048_v4, %v13411_v52  ;;  %v9901_v17 = vpop.f32.mrb[61].mxu1  ;;  %v3431_v52 = vor.u32 %v3430_v32, %v3427_v13  ;;  %v3436_v32 = vrot.slane %v3434_v27, 1 }
 0x358   :  { %v13523_v49 = vadd.f32 %v2144_v21, %v12492_v8  ;;  %v9751_v40 = vpop.f32.mrb[61].mxu0  ;;  %v3051_v46 = vpop.f32.mrb[62].mxu1 }
 0x359   :  { %v2147_v48 = vpop.f32.mrb[62].mxu0  ;;  %v13531_v38 = vadd.f32 %v3051_v46, %v13418_v44  ;;  %v9902_v8 = vpop.f32.mrb[63].mxu1  ;;  %v4161_v44 = vrot.slane %v13403_v29, 2  ;;  %v3432_v13 = vsel %vm3172_vm5, %v3422_v7, %v3431_v52  ;;  %v3439_v46 = vrot.slane %v3437_v39, 2 }
 0x35a   :  { %v9752_v37 = vpop.f32.mrb[63].mxu0 }
 0x35b   :  { %10176 = vmatmul.mubr.msk.bf16.gmra.mrb[168].mxu1 %vm642_vm3, %v4160_v58  ;;  %v4162_v8 = vsel %vm4113_vm6, %v4159_v30, %v4161_v44 }
 0x35c   :  { %10026 = vmatmul.mubr.msk.bf16.gmra.mrb[168].mxu0 %vm642_vm3, %v3423_v63  ;;  %10179 = vmatprep.mubr.msk.bf16.mxu1 %vm11310_vm1, %v16229_v15 }
 0x35d   :  { %10029 = vmatprep.mubr.msk.bf16.mxu0 %vm11310_vm1, %v16229_v15 }
 0x35e   :  { %v3056_v21 = vpop.f32.mrb[64].mxu1 }
 0x35f   :  { %v3701_v61 = vpop.f32.mrb[64].mxu0  ;;  %v13551_v17 = vadd.f32 %v3056_v21, %v13439_v36  ;;  %v9905_v48 = vpop.f32.mrb[65].mxu1  ;;  %v13565_v36 = vld [vmem:[%s16184_s0 + $0xf8] sm:$0xff]  }
 0x360   :  { %v13548_v4 = vadd.f32 %v3701_v61, %v12515_v56  ;;  %v9923_v40 = vpop.f32.mrb[65].mxu0  ;;  %v3059_v37 = vpop.f32.mrb[66].mxu1  ;;  %v3443_v7 = vshrl.u32 %v13565_v36, 16  ;;  %v3446_v27 = vshll.u32 %v13565_v36, 16 }
 0x361   :  { %v3704_v63 = vpop.f32.mrb[66].mxu0  ;;  %v13559_v56 = vadd.f32 %v3059_v37, %v13446_v45  ;;  %v9906_v61 = vpop.f32.mrb[67].mxu1  ;;  %v4163_v45 = vrot.slane %v13431_v59, 2 }
 0x362   :  { %v13555_v58 = vadd.f32 %v3704_v63, %v12526_v28  ;;  %v9924_v29 = vpop.f32.mrb[67].mxu0  ;;  %v3440_v28 = vor.u32 %v3439_v46, %v3436_v32  ;;  %v3445_v48 = vrot.slane %v3443_v7, 1  ;;  %v3448_v63 = vrot.slane %v3446_v27, 2 }
 0x363   :  { %10180 = vmatmul.mubr.msk.bf16.gmra.mrb[172].mxu1 %vm642_vm3, %v4162_v8  ;;  %v4164_v61 = vsel %vm4113_vm6, %v4161_v44, %v4163_v45 }
 0x364   :  { %10030 = vmatmul.mubr.msk.bf16.gmra.mrb[172].mxu0 %vm642_vm3, %v3432_v13  ;;  %10183 = vmatprep.mubr.msk.bf16.mxu1 %vm11310_vm1, %v16229_v15  ;;  %v3441_v32 = vsel %vm3172_vm5, %v3431_v52, %v3440_v28  ;;  %v3449_v7 = vor.u32 %v3448_v63, %v3445_v48  ;;  %v5699_v63 = vld [vmem:[%s16185_s1 + $0x1c] sm:$0xf] }
 0x365   :  { %10033 = vmatprep.mubr.msk.bf16.mxu0 %vm11310_vm1, %v16229_v15 }
 0x366   :  { %v3064_v39 = vpop.f32.mrb[68].mxu1  ;;  %v3450_v48 = vsel %vm3172_vm5, %v3440_v28, %v3449_v7 }
 0x367   :  { %v3709_v30 = vpop.f32.mrb[68].mxu0  ;;  %v13579_v13 = vadd.f32 %v3064_v39, %v13467_v14  ;;  %v9909_v37 = vpop.f32.mrb[69].mxu1 }
 0x368   :  { %v13576_v21 = vadd.f32 %v3709_v30, %v12541_v51  ;;  %v9927_v40 = vpop.f32.mrb[69].mxu0  ;;  %v3067_v46 = vpop.f32.mrb[70].mxu1 }
 0x369   :  { %v3712_v29 = vpop.f32.mrb[70].mxu0  ;;  %v13587_v51 = vadd.f32 %v3067_v46, %v13474_v25  ;;  %v9910_v30 = vpop.f32.mrb[71].mxu1  ;;  %v4165_v25 = vrot.slane %v13459_v43, 2  ;;  %v6196_v43 = vsel %vm766_vm0, %v5699_v63, 0 }
 0x36a   :  { %v13583_v8 = vadd.f32 %v3712_v29, %v12552_v62  ;;  %v9928_v59 = vpop.f32.mrb[71].mxu0  ;;  %v13596_v62 = vld [vmem:[%s16184_s0 + $0x100] sm:$0xff]   ;;  %10418 = vmatpush3.bf16.msra.mxu1 %v6196_v43 }
 0x36b   :  { %10184 = vmatmul.mubr.msk.bf16.gmra.mrb[176].mxu1 %vm642_vm3, %v4164_v61  ;;  %v3452_v14 = vshrl.u32 %v13596_v62, 16  ;;  %v3455_v52 = vshll.u32 %v13596_v62, 16  ;;  %v4166_v28 = vsel %vm4113_vm6, %v4163_v45, %v4165_v25  ;;  %10749 = vmatprep.subr.bf16.mxu1 %v16229_v15 }
 0x36c   :  { %10034 = vmatmul.mubr.msk.bf16.gmra.mrb[176].mxu0 %vm642_vm3, %v3441_v32  ;;  %10187 = vmatprep.mubr.msk.bf16.mxu1 %vm11310_vm1, %v16229_v15 }
 0x36d   :  { %10037 = vmatprep.mubr.msk.bf16.mxu0 %vm11310_vm1, %v16229_v15  ;;  %v3454_v46 = vrot.slane %v3452_v14, 1  ;;  %v3457_v59 = vrot.slane %v3455_v52, 2  ;;  %v4167_v14 = vrot.slane %v13487_v60, 2 }
 0x36e   :  { %v3072_v27 = vpop.f32.mrb[72].mxu1 }
 0x36f   :  { %v3717_v44 = vpop.f32.mrb[72].mxu0  ;;  %v13611_v37 = vadd.f32 %v3072_v27, %v13495_v50  ;;  %v9913_v29 = vpop.f32.mrb[73].mxu1  ;;  %v3458_v50 = vor.u32 %v3457_v59, %v3454_v46  ;;  %v4168_v60 = vsel %vm4113_vm6, %v4165_v25, %v4167_v14  ;;  %v4169_v25 = vrot.slane %v13515_v10, 2 }
 0x370   :  { %v13604_v39 = vadd.f32 %v3717_v44, %v12567_v31  ;;  %v9931_v40 = vpop.f32.mrb[73].mxu0  ;;  %v3075_v61 = vpop.f32.mrb[74].mxu1 }
 0x371   :  { %v3720_v32 = vpop.f32.mrb[74].mxu0  ;;  %v13619_v44 = vadd.f32 %v3075_v61, %v13502_v11  ;;  %v9914_v40 = vpop.f32.mrb[75].mxu1  ;;  %v3459_v59 = vsel %vm3172_vm5, %v3449_v7, %v3458_v50 }
 0x372   :  { %v13615_v31 = vadd.f32 %v3720_v32, %v12578_v22  ;;  %v9932_v30 = vpop.f32.mrb[75].mxu0  ;;  %v13629_v22 = vld [vmem:[%s16184_s0 + $0x108] sm:$0xff]  }
 0x373   :  { %16312 = vst [vmem:[#allocation40_spill] sm:$0xff] %v13619_v44  ;;  %10188 = vmatmul.mubr.msk.bf16.gmra.mrb[180].mxu1 %vm642_vm3, %v4166_v28  ;;  %v3461_v45 = vshrl.u32 %v13629_v22, 16  ;;  %v3464_v11 = vshll.u32 %v13629_v22, 16 }
 0x374   :  { %10038 = vmatmul.mubr.msk.bf16.gmra.mrb[180].mxu0 %vm642_vm3, %v3450_v48  ;;  %10191 = vmatprep.mubr.msk.bf16.mxu1 %vm11310_vm1, %v16229_v15 }
 0x375   :  { %10041 = vmatprep.mubr.msk.bf16.mxu0 %vm11310_vm1, %v16229_v15  ;;  %v3463_v43 = vrot.slane %v3461_v45, 1  ;;  %v3466_v61 = vrot.slane %v3464_v11, 2 }
 0x376   :  { %v3080_v27 = vpop.f32.mrb[76].mxu1 }
 0x377   :  { %v3725_v52 = vpop.f32.mrb[76].mxu0  ;;  %v13640_v29 = vadd.f32 %v3080_v27, %v13523_v49  ;;  %v9917_v46 = vpop.f32.mrb[77].mxu1  ;;  %v13654_v49 = vld [vmem:[%s16184_s0 + $0x110] sm:$0xff]  }
 0x378   :  { %v13637_v48 = vadd.f32 %v3725_v52, %v12593_v5  ;;  %v9935_v63 = vpop.f32.mrb[77].mxu0  ;;  %v3083_v40 = vpop.f32.mrb[78].mxu1  ;;  %v3467_v5 = vor.u32 %v3466_v61, %v3463_v43  ;;  %v3473_v7 = vshll.u32 %v13654_v49, 16 }
 0x379   :  { %v3728_v32 = vpop.f32.mrb[78].mxu0  ;;  %v9918_v44 = vpop.f32.mrb[79].mxu1 }
 0x37a   :  { %v13644_v30 = vadd.f32 %v3728_v32, %v12604_v42  ;;  %v9936_v28 = vpop.f32.mrb[79].mxu0  ;;  %v3470_v42 = vshrl.u32 %v13654_v49, 16  ;;  %v3468_v46 = vsel %vm3172_vm5, %v3458_v50, %v3467_v5  ;;  %v3475_v43 = vrot.slane %v3473_v7, 2 }
 0x37b   :  { %10192 = vmatmul.mubr.msk.bf16.gmra.mrb[184].mxu1 %vm642_vm3, %v4168_v60  ;;  %v4170_v60 = vsel %vm4113_vm6, %v4167_v14, %v4169_v25 }
 0x37c   :  { %10042 = vmatmul.mubr.msk.bf16.gmra.mrb[184].mxu0 %vm642_vm3, %v3459_v59  ;;  %10195 = vmatprep.mubr.msk.bf16.mxu1 %vm11310_vm1, %v16229_v15  ;;  %v3472_v59 = vrot.slane %v3470_v42, 1 }
 0x37d   :  { %10045 = vmatprep.mubr.msk.bf16.mxu0 %vm11310_vm1, %v16229_v15 }
 0x37e   :  { %v4355_v11 = vpop.f32.mrb[80].mxu1 }
 0x37f   :  { %v3733_v44 = vpop.f32.mrb[80].mxu0  ;;  %v13665_v27 = vadd.f32 %v4355_v11, %v13548_v4  ;;  %v10089_v63 = vpop.f32.mrb[81].mxu1  ;;  %v3476_v4 = vor.u32 %v3475_v43, %v3472_v59 }
 0x380   :  { %v13662_v45 = vadd.f32 %v3733_v44, %v12619_v19  ;;  %v9939_v52 = vpop.f32.mrb[81].mxu0  ;;  %v4358_v28 = vpop.f32.mrb[82].mxu1 }
 0x381   :  { %v3736_v32 = vpop.f32.mrb[82].mxu0  ;;  %v13673_v19 = vadd.f32 %v4358_v28, %v13555_v58  ;;  %v10090_v40 = vpop.f32.mrb[83].mxu1  ;;  %v4171_v58 = vrot.slane %v13540_v0, 2 }
 0x382   :  { %v13669_v61 = vadd.f32 %v3736_v32, %v12630_v1  ;;  %v9940_v10 = vpop.f32.mrb[83].mxu0  ;;  %v13682_v1 = vld [vmem:[%s16184_s0 + $0x118] sm:$0xff]  }
 0x383   :  { %10196 = vmatmul.mubr.msk.bf16.gmra.mrb[188].mxu1 %vm642_vm3, %v4170_v60  ;;  %v3479_v50 = vshrl.u32 %v13682_v1, 16  ;;  %v3482_v14 = vshll.u32 %v13682_v1, 16  ;;  %v4172_v60 = vsel %vm4113_vm6, %v4169_v25, %v4171_v58 }
 0x384   :  { %10046 = vmatmul.mubr.msk.bf16.gmra.mrb[188].mxu0 %vm642_vm3, %v3468_v46  ;;  %10199 = vmatprep.mubr.msk.bf16.mxu1 %vm11310_vm1, %v16229_v15  ;;  %v3477_v46 = vsel %vm3172_vm5, %v3467_v5, %v3476_v4 }
 0x385   :  { %10049 = vmatprep.mubr.msk.bf16.mxu0 %vm11310_vm1, %v16229_v15  ;;  %v3481_v59 = vrot.slane %v3479_v50, 1  ;;  %v3484_v43 = vrot.slane %v3482_v14, 2 }
 0x386   :  { %v4363_v44 = vpop.f32.mrb[84].mxu1 }
 0x387   :  { %v3741_v42 = vpop.f32.mrb[84].mxu0  ;;  %v13693_v52 = vadd.f32 %v4363_v44, %v13576_v21  ;;  %v10093_v63 = vpop.f32.mrb[85].mxu1  ;;  %v3485_v21 = vor.u32 %v3484_v43, %v3481_v59 }
 0x388   :  { %v13690_v7 = vadd.f32 %v3741_v42, %v12645_v35  ;;  %v9943_v11 = vpop.f32.mrb[85].mxu0  ;;  %v4366_v10 = vpop.f32.mrb[86].mxu1 }
 0x389   :  { %v3744_v32 = vpop.f32.mrb[86].mxu0  ;;  %v13701_v35 = vadd.f32 %v4366_v10, %v13583_v8  ;;  %v10094_v40 = vpop.f32.mrb[87].mxu1  ;;  %v4173_v8 = vrot.slane %v13565_v36, 2 }
 0x38a   :  { %v13697_v28 = vadd.f32 %v3744_v32, %v12656_v24  ;;  %v9944_v0 = vpop.f32.mrb[87].mxu0  ;;  %v13710_v24 = vld [vmem:[%s16184_s0 + $0x120] sm:$0xff]  }
 0x38b   :  { %10200 = vmatmul.mubr.msk.bf16.gmra.mrb[192].mxu1 %vm642_vm3, %v4172_v60  ;;  %v3488_v5 = vshrl.u32 %v13710_v24, 16  ;;  %v3491_v25 = vshll.u32 %v13710_v24, 16  ;;  %v4174_v60 = vsel %vm4113_vm6, %v4171_v58, %v4173_v8 }
 0x38c   :  { %10050 = vmatmul.mubr.msk.bf16.gmra.mrb[192].mxu0 %vm642_vm3, %v3477_v46  ;;  %10203 = vmatprep.mubr.msk.bf16.mxu1 %vm11310_vm1, %v16229_v15  ;;  %v3486_v46 = vsel %vm3172_vm5, %v3476_v4, %v3485_v21 }
 0x38d   :  { %10053 = vmatprep.mubr.msk.bf16.mxu0 %vm11310_vm1, %v16229_v15  ;;  %v3490_v59 = vrot.slane %v3488_v5, 1  ;;  %v3493_v43 = vrot.slane %v3491_v25, 2 }
 0x38e   :  { %v4371_v42 = vpop.f32.mrb[88].mxu1 }
 0x38f   :  { %v3749_v50 = vpop.f32.mrb[88].mxu0  ;;  %v13721_v11 = vadd.f32 %v4371_v42, %v13604_v39  ;;  %v10097_v63 = vpop.f32.mrb[89].mxu1  ;;  %v3494_v39 = vor.u32 %v3493_v43, %v3490_v59 }
 0x390   :  { %v13718_v14 = vadd.f32 %v3749_v50, %v12671_v53  ;;  %v9947_v44 = vpop.f32.mrb[89].mxu0  ;;  %v4374_v0 = vpop.f32.mrb[90].mxu1 }
 0x391   :  { %v3752_v32 = vpop.f32.mrb[90].mxu0  ;;  %v13729_v53 = vadd.f32 %v4374_v0, %v13615_v31  ;;  %v10098_v40 = vpop.f32.mrb[91].mxu1  ;;  %v4175_v31 = vrot.slane %v13596_v62, 2  ;;  %v16314_v0 = vld [vmem:[#allocation42_spill] sm:$0xff] }
 0x392   :  { %v13725_v10 = vadd.f32 %v3752_v32, %v12682_v47  ;;  %v9948_v36 = vpop.f32.mrb[91].mxu0  ;;  %v13738_v47 = vld [vmem:[%s16184_s0 + $0x128] sm:$0xff]  }
 0x393   :  { %10204 = vmatmul.mubr.msk.bf16.gmra.mrb[196].mxu1 %vm642_vm3, %v4174_v60  ;;  %v3497_v4 = vshrl.u32 %v13738_v47, 16  ;;  %v3500_v58 = vshll.u32 %v13738_v47, 16  ;;  %v4176_v40 = vsel %vm4113_vm6, %v4173_v8, %v4175_v31 }
 0x394   :  { %10054 = vmatmul.mubr.msk.bf16.gmra.mrb[196].mxu0 %vm642_vm3, %v3486_v46  ;;  %10207 = vmatprep.mubr.msk.bf16.mxu1 %vm11310_vm1, %v16229_v15  ;;  %v3495_v46 = vsel %vm3172_vm5, %v3485_v21, %v3494_v39  ;;  %v13766_v21 = vld [vmem:[%s16184_s0 + $0x130] sm:$0xff]  }
 0x395   :  { %10057 = vmatprep.mubr.msk.bf16.mxu0 %vm11310_vm1, %v16229_v15  ;;  %v3499_v59 = vrot.slane %v3497_v4, 1  ;;  %v3502_v43 = vrot.slane %v3500_v58, 2  ;;  %v3506_v4 = vshrl.u32 %v13766_v21, 16  ;;  %v3509_v8 = vshll.u32 %v13766_v21, 16 }
 0x396   :  { %v4379_v50 = vpop.f32.mrb[92].mxu1 }
 0x397   :  { %v3757_v5 = vpop.f32.mrb[92].mxu0  ;;  %v13749_v44 = vadd.f32 %v4379_v50, %v13637_v48  ;;  %v10101_v63 = vpop.f32.mrb[93].mxu1  ;;  %v3503_v48 = vor.u32 %v3502_v43, %v3499_v59  ;;  %v16316_v50 = vld [vmem:[#allocation43_spill] sm:$0xff] }
 0x398   :  { %v13746_v25 = vadd.f32 %v3757_v5, %v12697_v12  ;;  %v9951_v42 = vpop.f32.mrb[93].mxu0  ;;  %v4382_v60 = vpop.f32.mrb[94].mxu1 }
 0x399   :  { %16313 = vst [vmem:[#allocation41_spill] sm:$0xff] %v13749_v44  ;;  %v3760_v32 = vpop.f32.mrb[94].mxu0  ;;  %v13757_v12 = vadd.f32 %v4382_v60, %v13644_v30  ;;  %v10102_v5 = vpop.f32.mrb[95].mxu1  ;;  %v4177_v30 = vrot.slane %v13629_v22, 2  ;;  %v3508_v60 = vrot.slane %v3506_v4, 1 }
 0x39a   :  { %v13753_v36 = vadd.f32 %v3760_v32, %v16314_v0  ;;  %v9952_v62 = vpop.f32.mrb[95].mxu0  ;;  %v3504_v0 = vsel %vm3172_vm5, %v3494_v39, %v3503_v48  ;;  %v13794_v39 = vld [vmem:[%s16184_s0 + $0x138] sm:$0xff]  }
 0x39b   :  { %16315 = vst [vmem:[#allocation42_spill] sm:$0xff] %v13757_v12  ;;  %10208 = vmatmul.mubr.msk.bf16.gmra.mrb[200].mxu1 %vm642_vm3, %v4176_v40  ;;  %v3511_v62 = vrot.slane %v3509_v8, 2  ;;  %v16318_v40 = vld [vmem:[#allocation44_spill] sm:$0xff]  ;;  %v4178_v44 = vsel %vm4113_vm6, %v4175_v31, %v4177_v30  ;;  %v3515_v4 = vshrl.u32 %v13794_v39, 16  ;;  %v3518_v31 = vshll.u32 %v13794_v39, 16 }
 0x39c   :  { %10058 = vmatmul.mubr.msk.bf16.gmra.mrb[200].mxu0 %vm642_vm3, %v3495_v46  ;;  %10211 = vmatprep.mubr.msk.bf16.mxu1 %vm11310_vm1, %v16229_v15 }
 0x39d   :  { %10061 = vmatprep.mubr.msk.bf16.mxu0 %vm11310_vm1, %v16229_v15 }
 0x39e   :  { %v4387_v63 = vpop.f32.mrb[96].mxu1 }
 0x39f   :  { %v3765_v58 = vpop.f32.mrb[96].mxu0  ;;  %v13777_v46 = vadd.f32 %v4387_v63, %v13662_v45  ;;  %v10105_v59 = vpop.f32.mrb[97].mxu1  ;;  %v3512_v45 = vor.u32 %v3511_v62, %v3508_v60  ;;  %v3517_v60 = vrot.slane %v3515_v4, 1  ;;  %v3520_v62 = vrot.slane %v3518_v31, 2 }
 0x3a0   :  { %v13774_v42 = vadd.f32 %v3765_v58, %v16316_v50  ;;  %v9955_v32 = vpop.f32.mrb[97].mxu0  ;;  %v4390_v12 = vpop.f32.mrb[98].mxu1  ;;  %v4181_v31 = vrot.slane %v13682_v1, 2 }
 0x3a1   :  { %16317 = vst [vmem:[#allocation43_spill] sm:$0xff] %v13777_v46  ;;  %v3768_v43 = vpop.f32.mrb[98].mxu0  ;;  %v13785_v58 = vadd.f32 %v4390_v12, %v13669_v61  ;;  %v10106_v50 = vpop.f32.mrb[99].mxu1  ;;  %v4179_v61 = vrot.slane %v13654_v49, 2 }
 0x3a2   :  { %v13781_v5 = vadd.f32 %v3768_v43, %v16318_v40  ;;  %v9956_v22 = vpop.f32.mrb[99].mxu0  ;;  %v16321_v40 = vld [vmem:[#allocation45_spill] sm:$0xff] }
 0x3a3   :  { %16319 = vst [vmem:[#allocation44_spill] sm:$0xff] %v13785_v58  ;;  %10212 = vmatmul.mubr.msk.bf16.gmra.mrb[204].mxu1 %vm642_vm3, %v4178_v44  ;;  %v4180_v58 = vsel %vm4113_vm6, %v4177_v30, %v4179_v61  ;;  %v13825_v30 = vld [vmem:[%s16184_s0 + $0x140] sm:$0xff]  }
 0x3a4   :  { %10062 = vmatmul.mubr.msk.bf16.gmra.mrb[204].mxu0 %vm642_vm3, %v3504_v0  ;;  %10215 = vmatprep.mubr.msk.bf16.mxu1 %vm11310_vm1, %v16229_v15  ;;  %v3513_v0 = vsel %vm3172_vm5, %v3503_v48, %v3512_v45  ;;  %v3521_v48 = vor.u32 %v3520_v62, %v3517_v60  ;;  %v3527_v4 = vshll.u32 %v13825_v30, 16 }
 0x3a5   :  { %10065 = vmatprep.mubr.msk.bf16.mxu0 %vm11310_vm1, %v16229_v15 }
 0x3a6   :  { %v4395_v8 = vpop.f32.mrb[100].mxu1 }
 0x3a7   :  { %v3773_v12 = vpop.f32.mrb[100].mxu0  ;;  %v13805_v32 = vadd.f32 %v4395_v8, %v13690_v7  ;;  %v10109_v59 = vpop.f32.mrb[101].mxu1  ;;  %v3167_v7 = vld [vmem:[%s16184_s0 + $0x14c] sm:$0x3] }
 0x3a8   :  { %v13802_v44 = vadd.f32 %v3773_v12, %v12753_v16  ;;  %v9959_v63 = vpop.f32.mrb[101].mxu0  ;;  %v4398_v50 = vpop.f32.mrb[102].mxu1  ;;  %v16323_v59 = vld [vmem:[#allocation46_spill] sm:$0xff] }
 0x3a9   :  { %16320 = vst [vmem:[#allocation50_spill] sm:$0xff] %v13805_v32  ;;  %v3776_v43 = vpop.f32.mrb[102].mxu0  ;;  %v13813_v16 = vadd.f32 %v4398_v50, %v13697_v28  ;;  %v10110_v12 = vpop.f32.mrb[103].mxu1  ;;  %v3524_v28 = vshrl.u32 %v13825_v30, 16 }
 0x3aa   :  { %v13809_v22 = vadd.f32 %v3776_v43, %v16321_v40  ;;  %v9960_v49 = vpop.f32.mrb[103].mxu0  ;;  %v3529_v12 = vrot.slane %v3527_v4, 2 }
 0x3ab   :  { %16322 = vst [vmem:[#allocation45_spill] sm:$0xff] %v13813_v16  ;;  %10216 = vmatmul.mubr.msk.bf16.gmra.mrb[208].mxu1 %vm642_vm3, %v4180_v58  ;;  %v11242_v58 = vld [vmem:[%s16184_s0 + $0x148] sm:$0xf]  ;;  %v3522_v49 = vsel %vm3172_vm5, %v3512_v45, %v3521_v48  ;;  %v3526_v1 = vrot.slane %v3524_v28, 1  ;;  %v16324_v16 = vld [vmem:[#allocation47_spill] sm:$0xff] }
 0x3ac   :  { %10066 = vmatmul.mubr.msk.bf16.gmra.mrb[208].mxu0 %vm642_vm3, %v3513_v0  ;;  %10219 = vmatprep.mubr.msk.bf16.mxu1 %vm11310_vm1, %v16229_v15  ;;  %v13835_v63 = vcombine.low %v11242_v58, %v3167_v7  ;;  %v4182_v58 = vsel %vm4113_vm6, %v4179_v61, %v4181_v31  ;;  %v4183_v61 = vrot.slane %v13710_v24, 2 }
 0x3ad   :  { %10069 = vmatprep.mubr.msk.bf16.mxu0 %vm11310_vm1, %v16229_v15 }
 0x3ae   :  { %v4403_v0 = vpop.f32.mrb[104].mxu1  ;;  %v3533_v45 = vshrl.u32 %v13835_v63, 16 }
 0x3af   :  { %v3781_v8 = vpop.f32.mrb[104].mxu0  ;;  %v13841_v62 = vadd.f32 %v4403_v0, %v13718_v14  ;;  %v10113_v40 = vpop.f32.mrb[105].mxu1  ;;  %v3530_v14 = vor.u32 %v3529_v12, %v3526_v1 }
 0x3b0   :  { %v13838_v43 = vadd.f32 %v3781_v8, %v16323_v59  ;;  %v9963_v60 = vpop.f32.mrb[105].mxu0  ;;  %v4406_v46 = vpop.f32.mrb[106].mxu1 }
 0x3b1   :  { %v3784_v50 = vpop.f32.mrb[106].mxu0  ;;  %v13849_v8 = vadd.f32 %v4406_v46, %v13725_v10  ;;  %v10114_v59 = vpop.f32.mrb[107].mxu1 }
 0x3b2   :  { %v13845_v32 = vadd.f32 %v3784_v50, %v16324_v16  ;;  %v9964_v7 = vpop.f32.mrb[107].mxu0  ;;  %v3536_v16 = vshll.u32 %v13835_v63, 16  ;;  %v3531_v50 = vsel %vm3172_vm5, %v3521_v48, %v3530_v14 }
 0x3b3   :  { %10220 = vmatmul.mubr.msk.bf16.gmra.mrb[212].mxu1 %vm642_vm3, %v4182_v58  ;;  %v4184_v58 = vsel %vm4113_vm6, %v4181_v31, %v4183_v61 }
 0x3b4   :  { %10070 = vmatmul.mubr.msk.bf16.gmra.mrb[212].mxu0 %vm642_vm3, %v3522_v49  ;;  %10223 = vmatprep.mubr.msk.bf16.mxu1 %vm11310_vm1, %v16229_v15  ;;  %v3535_v49 = vrot.slane %v3533_v45, 1  ;;  %v3538_v1 = vrot.slane %v3536_v16, 2 }
 0x3b5   :  { %10073 = vmatprep.mubr.msk.bf16.mxu0 %vm11310_vm1, %v16229_v15 }
 0x3b6   :  { %v4411_v28 = vpop.f32.mrb[108].mxu1 }
 0x3b7   :  { %v3789_v10 = vpop.f32.mrb[108].mxu0  ;;  %v13864_v0 = vadd.f32 %v4411_v28, %v13746_v25  ;;  %v10117_v60 = vpop.f32.mrb[109].mxu1  ;;  %v3539_v25 = vor.u32 %v3538_v1, %v3535_v49 }
 0x3b8   :  { %v13861_v46 = vadd.f32 %v3789_v10, %v12818_v55  ;;  %v9967_v4 = vpop.f32.mrb[109].mxu0  ;;  %v4414_v7 = vpop.f32.mrb[110].mxu1 }
 0x3b9   :  { %v3792_v40 = vpop.f32.mrb[110].mxu0  ;;  %v13872_v55 = vadd.f32 %v4414_v7, %v13753_v36  ;;  %v10118_v59 = vpop.f32.mrb[111].mxu1  ;;  %v3540_v4 = vsel %vm3172_vm5, %v3530_v14, %v3539_v25 }
 0x3ba   :  { %v13868_v12 = vadd.f32 %v3792_v40, %v12826_v2  ;;  %v9968_v24 = vpop.f32.mrb[111].mxu0  ;;  %v4185_v2 = vrot.slane %v13738_v47, 2 }
 0x3bb   :  { %10224 = vmatmul.mubr.msk.bf16.gmra.mrb[216].mxu1 %vm642_vm3, %v4184_v58 }
 0x3bc   :  { %10074 = vmatmul.mubr.msk.bf16.gmra.mrb[216].mxu0 %vm642_vm3, %v3531_v50  ;;  %10227 = vmatprep.mubr.msk.bf16.mxu1 %vm11310_vm1, %v16229_v15  ;;  %v4186_v47 = vsel %vm4113_vm6, %v4183_v61, %v4185_v2 }
 0x3bd   :  { %10077 = vmatprep.mubr.msk.bf16.mxu0 %vm11310_vm1, %v16229_v15 }
 0x3be   :  { %v4419_v36 = vpop.f32.mrb[112].mxu1 }
 0x3bf   :  { %v3797_v48 = vpop.f32.mrb[112].mxu0  ;;  %v13885_v16 = vadd.f32 %v4419_v36, %v13774_v42  ;;  %v10121_v10 = vpop.f32.mrb[113].mxu1  ;;  %v4762_v42 = vld [vmem:[%s16184_s0 + $0x10] sm:$0xc]  ;;  %v16325_v36 = vld [vmem:[#allocation48_spill] sm:$0xff] }
 0x3c0   :  { %v13882_v31 = vadd.f32 %v3797_v48, %v12845_v18  ;;  %v9971_v45 = vpop.f32.mrb[113].mxu0  ;;  %v4422_v40 = vpop.f32.mrb[114].mxu1  ;;  %v13919_v48 = vld [vmem:[%s16184_s0 + $0x18] sm:$0xff]  }
 0x3c1   :  { %v3800_v28 = vpop.f32.mrb[114].mxu0  ;;  %v13893_v49 = vadd.f32 %v4422_v40, %v13781_v5  ;;  %v10122_v18 = vpop.f32.mrb[115].mxu1  ;;  %v4763_v5 = vld [vmem:[%s16184_s0 + $0x14] sm:$0xf] }
 0x3c2   :  { %v13889_v60 = vadd.f32 %v3800_v28, %v12853_v54  ;;  %v9972_v50 = vpop.f32.mrb[115].mxu0  ;;  %v4187_v54 = vrot.slane %v13766_v21, 2  ;;  %v13914_v21 = vcombine.low %v4762_v42, %v4763_v5 }
 0x3c3   :  { %10228 = vmatmul.mubr.msk.bf16.gmra.mrb[220].mxu1 %vm642_vm3, %v4186_v47  ;;  %v5051_v50 = vrot.slane %v13919_v48, 2 }
 0x3c4   :  { %10078 = vmatmul.mubr.msk.bf16.gmra.mrb[220].mxu0 %vm642_vm3, %v3540_v4  ;;  %10231 = vmatprep.mubr.msk.bf16.mxu1 %vm11310_vm1, %v16229_v15  ;;  %v4188_v28 = vsel %vm4113_vm6, %v4185_v2, %v4187_v54  ;;  %v5050_v40 = vrot.slane %v13914_v21, 2  ;;  %v4189_v2 = vrot.slane %v13794_v39, 2 }
 0x3c5   :  { %10081 = vmatprep.mubr.msk.bf16.mxu0 %vm11310_vm1, %v16229_v15 }
 0x3c6   :  { %v4427_v1 = vpop.f32.mrb[116].mxu1 }
 0x3c7   :  { %v3805_v14 = vpop.f32.mrb[116].mxu0  ;;  %v13912_v24 = vadd.f32 %v4427_v1, %v13802_v44  ;;  %v10125_v58 = vpop.f32.mrb[117].mxu1 }
 0x3c8   :  { %v13909_v61 = vadd.f32 %v3805_v14, %v12875_v20  ;;  %v9975_v7 = vpop.f32.mrb[117].mxu0  ;;  %v4430_v10 = vpop.f32.mrb[118].mxu1  ;;  %v13947_v58 = vld [vmem:[%s16184_s0 + $0x20] sm:$0xff]  }
 0x3c9   :  { %v3808_v59 = vpop.f32.mrb[118].mxu0  ;;  %v13926_v4 = vadd.f32 %v4430_v10, %v13809_v22  ;;  %v10126_v44 = vpop.f32.mrb[119].mxu1  ;;  %v16326_v22 = vld [vmem:[#allocation49_spill] sm:$0xff]  ;;  %v5052_v7 = vsel %vm4113_vm6, %v5050_v40, %v5051_v50  ;;  %v4191_v40 = vrot.slane %v13825_v30, 2 }
 0x3ca   :  { %v13922_v45 = vadd.f32 %v3808_v59, %v16325_v36  ;;  %v9976_v20 = vpop.f32.mrb[119].mxu0  ;;  %v16328_v59 = vld [vmem:[#allocation5_spill] sm:$0xff]  ;;  %v5053_v44 = vrot.slane %v13947_v58, 2 }
 0x3cb   :  { %10232 = vmatmul.mubr.msk.bf16.gmra.mrb[224].mxu1 %vm642_vm3, %v4188_v28  ;;  %v4190_v20 = vsel %vm4113_vm6, %v4187_v54, %v4189_v2  ;;  %v16330_v54 = vld [vmem:[#allocation6_spill] sm:$0xff] }
 0x3cc   :  { %10082 = vmatmul.mubr.msk.bf16.gmra.mrb[224].mxu0 %vm642_vm3, %v3539_v25  ;;  %10235 = vmatprep.mubr.msk.bf16.mxu1 %vm11310_vm1, %v16229_v15 }
 0x3cd   :  { %10253 = vmatprep.mubr.msk.bf16.mxu0 %vm11310_vm1, %v16229_v15 }
 0x3ce   :  { %v4435_v42 = vpop.f32.mrb[120].mxu1 }
 0x3cf   :  { %v3813_v47 = vpop.f32.mrb[120].mxu0  ;;  %v13941_v5 = vadd.f32 %v4435_v42, %v13838_v43  ;;  %v10129_v14 = vpop.f32.mrb[121].mxu1 }
 0x3d0   :  { %v13938_v18 = vadd.f32 %v3813_v47, %v16326_v22  ;;  %v9979_v25 = vpop.f32.mrb[121].mxu0  ;;  %v4438_v36 = vpop.f32.mrb[122].mxu1 }
 0x3d1   :  { %16327 = vst [vmem:[#allocation46_spill] sm:$0xff] %v13941_v5  ;;  %v3816_v1 = vpop.f32.mrb[122].mxu0  ;;  %v13954_v28 = vadd.f32 %v4438_v36, %v13845_v32  ;;  %v10130_v43 = vpop.f32.mrb[123].mxu1  ;;  %v16332_v36 = vld [vmem:[#allocation7_spill] sm:$0xff] }
 0x3d2   :  { %v13950_v39 = vadd.f32 %v3816_v1, %v16328_v59  ;;  %v9980_v10 = vpop.f32.mrb[123].mxu0  ;;  %v13974_v59 = vld [vmem:[%s16184_s0 + $0x28] sm:$0xff]   ;;  %v4192_v43 = vsel %vm4113_vm6, %v4189_v2, %v4191_v40  ;;  %v16334_v2 = vld [vmem:[#allocation8_spill] sm:$0xff] }
 0x3d3   :  { %16329 = vst [vmem:[#allocation47_spill] sm:$0xff] %v13954_v28  ;;  %10236 = vmatmul.mubr.msk.bf16.gmra.mrb[228].mxu1 %vm642_vm3, %v4190_v20 }
 0x3d4   :  { %10254 = vmatmul.mubr.msk.bf16.vlgmr.msra.gmra.mrb[228].mxu0 %vm642_vm3, %v5052_v7  ;;  %10239 = vmatprep.mubr.msk.bf16.mxu1 %vm11310_vm1, %v16229_v15  ;;  %v5054_v7 = vsel %vm4113_vm6, %v5051_v50, %v5053_v44  ;;  %v5055_v50 = vrot.slane %v13974_v59, 2 }
 0x3d5   :  { %10257 = vmatprep.mubr.msk.bf16.mxu0 %vm11310_vm1, %v16229_v15 }
 0x3d6   :  { %v4443_v32 = vpop.f32.mrb[124].mxu1 }
 0x3d7   :  { %v3821_v47 = vpop.f32.mrb[124].mxu0  ;;  %v13968_v25 = vadd.f32 %v4443_v32, %v13861_v46  ;;  %v10133_v14 = vpop.f32.mrb[125].mxu1 }
 0x3d8   :  { %v13965_v22 = vadd.f32 %v3821_v47, %v16330_v54  ;;  %v9983_v42 = vpop.f32.mrb[125].mxu0  ;;  %v4446_v10 = vpop.f32.mrb[126].mxu1  ;;  %v4193_v54 = vrot.slane %v13835_v63, 2 }
 0x3d9   :  { %16331 = vst [vmem:[#allocation48_spill] sm:$0xff] %v13968_v25  ;;  %v3824_v1 = vpop.f32.mrb[126].mxu0  ;;  %v13981_v47 = vadd.f32 %v4446_v10, %v13868_v12  ;;  %v10134_v46 = vpop.f32.mrb[127].mxu1  ;;  %v5056_v10 = vsel %vm4113_vm6, %v5053_v44, %v5055_v50 }
 0x3da   :  { %v13977_v30 = vadd.f32 %v3824_v1, %v16332_v36  ;;  %v9984_v20 = vpop.f32.mrb[127].mxu0 }
 0x3db   :  { %16333 = vst [vmem:[#allocation49_spill] sm:$0xff] %v13981_v47  ;;  %10240 = vmatmul.mubr.msk.bf16.gmra.mrb[232].mxu1 %vm642_vm3, %v4192_v43  ;;  %v14001_v20 = vld [vmem:[%s16184_s0 + $0x30] sm:$0xff]   ;;  %v16336_v43 = vld [vmem:[#allocation9_spill] sm:$0xff] }
 0x3dc   :  { %10258 = vmatmul.mubr.msk.bf16.gmra.mrb[232].mxu0 %vm642_vm3, %v5054_v7  ;;  %10243 = vmatprep.mubr.msk.bf16.mxu1 %vm11310_vm1, %v16229_v15  ;;  %v5057_v44 = vrot.slane %v14001_v20, 2 }
 0x3dd   :  { %10261 = vmatprep.mubr.msk.bf16.mxu0 %vm11310_vm1, %v16229_v15 }
 0x3de   :  { %v4451_v12 = vpop.f32.mrb[128].mxu1 }
 0x3df   :  { %v3829_v32 = vpop.f32.mrb[128].mxu0  ;;  %v13995_v1 = vadd.f32 %v4451_v12, %v13882_v31  ;;  %v10137_v7 = vpop.f32.mrb[129].mxu1  ;;  %v5705_v12 = vshrl.u32 %v13914_v21, 16 }
 0x3e0   :  { %v13992_v42 = vadd.f32 %v3829_v32, %v16334_v2  ;;  %v9987_v14 = vpop.f32.mrb[129].mxu0  ;;  %v4454_v46 = vpop.f32.mrb[130].mxu1  ;;  %v4194_v2 = vsel %vm4113_vm6, %v4191_v40, %v4193_v54  ;;  %v5708_v40 = vshll.u32 %v13914_v21, 16  ;;  %v5716_v7 = vshll.u32 %v13919_v48, 16  ;;  %v14031_v21 = vld [vmem:[%s16184_s0 + $0x38] sm:$0xff]  }
 0x3e1   :  { %16335 = vst [vmem:[#allocation5_spill] sm:$0xff] %v13995_v1  ;;  %v3832_v36 = vpop.f32.mrb[130].mxu0  ;;  %v14008_v14 = vadd.f32 %v4454_v46, %v13889_v60  ;;  %v10138_v31 = vpop.f32.mrb[131].mxu1  ;;  %v5713_v60 = vshrl.u32 %v13919_v48, 16  ;;  %v5058_v1 = vsel %vm4113_vm6, %v5055_v50, %v5057_v44  ;;  %v5707_v47 = vrot.slane %v5705_v12, 2  ;;  %v16339_v48 = vld [vmem:[#allocation11_spill] sm:$0xff] }
 0x3e2   :  { %v14004_v63 = vadd.f32 %v3832_v36, %v16336_v43  ;;  %v9988_v32 = vpop.f32.mrb[131].mxu0  ;;  %v5710_v28 = vrot.slane %v5708_v40, 3  ;;  %v5718_v5 = vrot.slane %v5716_v7, 3  ;;  %v5059_v50 = vrot.slane %v14031_v21, 2  ;;  %v16340_v7 = vld [vmem:[#allocation12_spill] sm:$0xff] }
 0x3e3   :  { %16337 = vst [vmem:[#allocation6_spill] sm:$0xff] %v14008_v14  ;;  %10244 = vmatmul.mubr.msk.bf16.gmra.mrb[236].mxu1 %vm642_vm3, %v4194_v2  ;;  %v5722_v40 = vshrl.u32 %v13947_v58, 16 }
 0x3e4   :  { %10262 = vmatmul.mubr.msk.bf16.gmra.mrb[236].mxu0 %vm642_vm3, %v5056_v10  ;;  %10247 = vmatprep.mubr.msk.bf16.mxu1 %vm11310_vm1, %v16229_v15  ;;  %v16338_v10 = vld [vmem:[#allocation10_spill] sm:$0xff] }
 0x3e5   :  { %10265 = vmatprep.mubr.msk.bf16.mxu0 %vm11310_vm1, %v16229_v15 }
 0x3e6   :  { %v4459_v46 = vpop.f32.mrb[132].mxu1 }
 0x3e7   :  { %v3837_v36 = vpop.f32.mrb[132].mxu0  ;;  %v14025_v2 = vadd.f32 %v4459_v46, %v13909_v61  ;;  %v10141_v31 = vpop.f32.mrb[133].mxu1 }
 0x3e8   :  { %v14022_v43 = vadd.f32 %v3837_v36, %v16338_v10  ;;  %v9991_v32 = vpop.f32.mrb[133].mxu0  ;;  %v4462_v36 = vpop.f32.mrb[134].mxu1 }
 0x3e9   :  { %v3840_v14 = vpop.f32.mrb[134].mxu0  ;;  %v5715_v32 = vrot.slane %v5713_v60, 2  ;;  %v14037_v61 = vadd.f32 %v4462_v36, %v13922_v45  ;;  %v10142_v46 = vpop.f32.mrb[135].mxu1  ;;  %v5725_v45 = vshll.u32 %v13947_v58, 16  ;;  %v16342_v58 = vld [vmem:[#allocation13_spill] sm:$0xff] }
 0x3ea   :  { %v14034_v25 = vadd.f32 %v3840_v14, %v16339_v48  ;;  %v9992_v10 = vpop.f32.mrb[135].mxu0  ;;  %v5711_v14 = vor.u32 %v5710_v28, %v5707_v47  ;;  %v5060_v46 = vsel %vm4113_vm6, %v5057_v44, %v5059_v50 }
 0x3eb   :  { %10248 = vmatmul.mubr.msk.bf16.gmra.mrb[240].mxu1 %vm642_vm3, %v4193_v54  ;;  %v5719_v12 = vor.u32 %v5718_v5, %v5715_v32  ;;  %v14058_v5 = vld [vmem:[%s16184_s0 + $0x40] sm:$0xff]  }
 0x3ec   :  { %10266 = vmatmul.mubr.msk.bf16.gmra.mrb[240].mxu0 %vm642_vm3, %v5058_v1  ;;  %10419 = vmatprep.mubr.msk.bf16.mxu1 %vm11310_vm1, %v16229_v15  ;;  %v5061_v44 = vrot.slane %v14058_v5, 2 }
 0x3ed   :  { %10269 = vmatprep.mubr.msk.bf16.mxu0 %vm11310_vm1, %v16229_v15 }
 0x3ee   :  { %v4467_v54 = vpop.f32.mrb[136].mxu1 }
 0x3ef   :  { %v3845_v60 = vpop.f32.mrb[136].mxu0  ;;  %v14052_v48 = vadd.f32 %v4467_v54, %v13938_v18  ;;  %v10145_v36 = vpop.f32.mrb[137].mxu1 }
 0x3f0   :  { %v14049_v1 = vadd.f32 %v3845_v60, %v16340_v7  ;;  %v9995_v31 = vpop.f32.mrb[137].mxu0  ;;  %v4470_v47 = vpop.f32.mrb[138].mxu1  ;;  %v5720_v60 = vsel %vm5703_vm7, %v5711_v14, %v5719_v12  ;;  %v5724_v7 = vrot.slane %v5722_v40, 2  ;;  %v5731_v14 = vshrl.u32 %v13974_v59, 16 }
 0x3f1   :  { %16341 = vst [vmem:[#allocation7_spill] sm:$0xff] %v14052_v48  ;;  %v3848_v10 = vpop.f32.mrb[138].mxu0  ;;  %v5727_v31 = vrot.slane %v5725_v45, 3  ;;  %v14065_v18 = vadd.f32 %v4470_v47, %v13950_v39  ;;  %v10146_v54 = vpop.f32.mrb[139].mxu1  ;;  %v5734_v40 = vshll.u32 %v13974_v59, 16  ;;  %v16344_v45 = vld [vmem:[#allocation14_spill] sm:$0xff] }
 0x3f2   :  { %v14061_v28 = vadd.f32 %v3848_v10, %v16342_v58  ;;  %v9996_v32 = vpop.f32.mrb[139].mxu0  ;;  %v5062_v54 = vsel %vm4113_vm6, %v5059_v50, %v5061_v44 }
 0x3f3   :  { %16343 = vst [vmem:[#allocation8_spill] sm:$0xff] %v14065_v18  ;;  %10420 = vmatmul.mubr.msk.bf16.vlgmr.msra.gmra.mrb[244].mxu1 %vm642_vm3, %v5720_v60  ;;  %v5728_v36 = vor.u32 %v5727_v31, %v5724_v7  ;;  %v14086_v7 = vld [vmem:[%s16184_s0 + $0x48] sm:$0xff]   ;;  %v16346_v31 = vld [vmem:[#allocation15_spill] sm:$0xff]  ;;  %v5736_v48 = vrot.slane %v5734_v40, 3 }
 0x3f4   :  { %10270 = vmatmul.mubr.msk.bf16.gmra.mrb[244].mxu0 %vm642_vm3, %v5060_v46  ;;  %10423 = vmatprep.mubr.msk.bf16.mxu1 %vm11310_vm1, %v16229_v15  ;;  %v5063_v50 = vrot.slane %v14086_v7, 2 }
 0x3f5   :  { %10273 = vmatprep.mubr.msk.bf16.mxu0 %vm11310_vm1, %v16229_v15 }
 0x3f6   :  { %v4475_v46 = vpop.f32.mrb[140].mxu1 }
 0x3f7   :  { %v3853_v39 = vpop.f32.mrb[140].mxu0  ;;  %v14080_v47 = vadd.f32 %v4475_v46, %v13965_v22  ;;  %v10149_v32 = vpop.f32.mrb[141].mxu1 }
 0x3f8   :  { %v14077_v10 = vadd.f32 %v3853_v39, %v16344_v45  ;;  %v9999_v58 = vpop.f32.mrb[141].mxu0  ;;  %v4478_v18 = vpop.f32.mrb[142].mxu1  ;;  %v5729_v45 = vsel %vm5703_vm7, %v5719_v12, %v5728_v36  ;;  %v5740_v12 = vshrl.u32 %v14001_v20, 16 }
 0x3f9   :  { %16345 = vst [vmem:[#allocation9_spill] sm:$0xff] %v14080_v47  ;;  %v3856_v60 = vpop.f32.mrb[142].mxu0  ;;  %v5733_v58 = vrot.slane %v5731_v14, 2  ;;  %v14093_v22 = vadd.f32 %v4478_v18, %v13977_v30  ;;  %v10150_v46 = vpop.f32.mrb[143].mxu1  ;;  %v5743_v14 = vshll.u32 %v14001_v20, 16  ;;  %v16348_v18 = vld [vmem:[#allocation16_spill] sm:$0xff] }
 0x3fa   :  { %v14089_v59 = vadd.f32 %v3856_v60, %v16346_v31  ;;  %v10000_v39 = vpop.f32.mrb[143].mxu0  ;;  %v5064_v46 = vsel %vm4113_vm6, %v5061_v44, %v5063_v50 }
 0x3fb   :  { %16347 = vst [vmem:[#allocation10_spill] sm:$0xff] %v14093_v22  ;;  %10424 = vmatmul.mubr.msk.bf16.gmra.mrb[248].mxu1 %vm642_vm3, %v5729_v45  ;;  %v5737_v32 = vor.u32 %v5736_v48, %v5733_v58  ;;  %v14114_v48 = vld [vmem:[%s16184_s0 + $0x50] sm:$0xff]   ;;  %v16350_v58 = vld [vmem:[#allocation17_spill] sm:$0xff]  ;;  %v5745_v47 = vrot.slane %v5743_v14, 3 }
 0x3fc   :  { %10274 = vmatmul.mubr.msk.bf16.gmra.mrb[248].mxu0 %vm642_vm3, %v5062_v54  ;;  %10427 = vmatprep.mubr.msk.bf16.mxu1 %vm11310_vm1, %v16229_v15  ;;  %v5065_v44 = vrot.slane %v14114_v48, 2 }
 0x3fd   :  { %10277 = vmatprep.mubr.msk.bf16.mxu0 %vm11310_vm1, %v16229_v15 }
 0x3fe   :  { %v4483_v60 = vpop.f32.mrb[144].mxu1 }
 0x3ff   :  { %v3861_v30 = vpop.f32.mrb[144].mxu0  ;;  %v14108_v31 = vadd.f32 %v4483_v60, %v13992_v42  ;;  %v10153_v39 = vpop.f32.mrb[145].mxu1 }
 0x400   :  { %v14105_v40 = vadd.f32 %v3861_v30, %v16348_v18  ;;  %v10003_v54 = vpop.f32.mrb[145].mxu0  ;;  %v4486_v22 = vpop.f32.mrb[146].mxu1  ;;  %v5738_v18 = vsel %vm5703_vm7, %v5728_v36, %v5737_v32  ;;  %v5749_v36 = vshrl.u32 %v14031_v21, 16 }
 0x401   :  { %16349 = vst [vmem:[#allocation11_spill] sm:$0xff] %v14108_v31  ;;  %v3864_v45 = vpop.f32.mrb[146].mxu0  ;;  %v5742_v54 = vrot.slane %v5740_v12, 2  ;;  %v14121_v42 = vadd.f32 %v4486_v22, %v14004_v63  ;;  %v10154_v60 = vpop.f32.mrb[147].mxu1  ;;  %v5752_v12 = vshll.u32 %v14031_v21, 16  ;;  %v16352_v22 = vld [vmem:[#allocation18_spill] sm:$0xff] }
 0x402   :  { %v14117_v20 = vadd.f32 %v3864_v45, %v16350_v58  ;;  %v10004_v30 = vpop.f32.mrb[147].mxu0  ;;  %v5066_v60 = vsel %vm4113_vm6, %v5063_v50, %v5065_v44 }
 0x403   :  { %16351 = vst [vmem:[#allocation12_spill] sm:$0xff] %v14121_v42  ;;  %10428 = vmatmul.mubr.msk.bf16.gmra.mrb[252].mxu1 %vm642_vm3, %v5738_v18  ;;  %v5746_v39 = vor.u32 %v5745_v47, %v5742_v54  ;;  %v14142_v47 = vld [vmem:[%s16184_s0 + $0x58] sm:$0xff]   ;;  %v5754_v31 = vrot.slane %v5752_v12, 3 }
 0x404   :  { %10278 = vmatmul.mubr.msk.bf16.gmra.mrb[252].mxu0 %vm642_vm3, %v5064_v46  ;;  %10431 = vmatprep.mubr.msk.bf16.mxu1 %vm11310_vm1, %v16229_v15  ;;  %v16354_v54 = vld [vmem:[#allocation19_spill] sm:$0xff]  ;;  %v5067_v50 = vrot.slane %v14142_v47, 2 }
 0x405   :  { %10281 = vmatprep.mubr.msk.bf16.mxu0 %vm11310_vm1, %v16229_v15 }
 0x406   :  { %v4491_v45 = vpop.f32.mrb[148].mxu1 }
 0x407   :  { %v3869_v63 = vpop.f32.mrb[148].mxu0  ;;  %v14136_v58 = vadd.f32 %v4491_v45, %v14022_v43  ;;  %v10157_v30 = vpop.f32.mrb[149].mxu1 }
 0x408   :  { %v14133_v14 = vadd.f32 %v3869_v63, %v16352_v22  ;;  %v10007_v46 = vpop.f32.mrb[149].mxu0  ;;  %v4494_v42 = vpop.f32.mrb[150].mxu1  ;;  %v5747_v22 = vsel %vm5703_vm7, %v5737_v32, %v5746_v39  ;;  %v5758_v32 = vshrl.u32 %v14058_v5, 16 }
 0x409   :  { %16353 = vst [vmem:[#allocation13_spill] sm:$0xff] %v14136_v58  ;;  %v3872_v18 = vpop.f32.mrb[150].mxu0  ;;  %v5751_v46 = vrot.slane %v5749_v36, 2  ;;  %v14149_v43 = vadd.f32 %v4494_v42, %v14034_v25  ;;  %v10158_v45 = vpop.f32.mrb[151].mxu1  ;;  %v5761_v36 = vshll.u32 %v14058_v5, 16  ;;  %v16356_v42 = vld [vmem:[#allocation20_spill] sm:$0xff] }
 0x40a   :  { %v14145_v21 = vadd.f32 %v3872_v18, %v16354_v54  ;;  %v10008_v63 = vpop.f32.mrb[151].mxu0  ;;  %v5068_v45 = vsel %vm4113_vm6, %v5065_v44, %v5067_v50 }
 0x40b   :  { %16355 = vst [vmem:[#allocation14_spill] sm:$0xff] %v14149_v43  ;;  %10432 = vmatmul.mubr.msk.bf16.gmra.mrb[0].mxu1 %vm642_vm3, %v5747_v22  ;;  %v5755_v30 = vor.u32 %v5754_v31, %v5751_v46  ;;  %v14170_v31 = vld [vmem:[%s16184_s0 + $0x60] sm:$0xff]   ;;  %v16358_v46 = vld [vmem:[#allocation21_spill] sm:$0xff]  ;;  %v5763_v58 = vrot.slane %v5761_v36, 3 }
 0x40c   :  { %10282 = vmatmul.mubr.msk.bf16.gmra.mrb[0].mxu0 %vm642_vm3, %v5066_v60  ;;  %10435 = vmatprep.mubr.msk.bf16.mxu1 %vm11310_vm1, %v16229_v15  ;;  %v5069_v44 = vrot.slane %v14170_v31, 2 }
 0x40d   :  { %10285 = vmatprep.mubr.msk.bf16.mxu0 %vm11310_vm1, %v16229_v15 }
 0x40e   :  { %v4499_v18 = vpop.f32.mrb[152].mxu1 }
 0x40f   :  { %v3877_v25 = vpop.f32.mrb[152].mxu0  ;;  %v14164_v54 = vadd.f32 %v4499_v18, %v14049_v1  ;;  %v10161_v63 = vpop.f32.mrb[153].mxu1 }
 0x410   :  { %v14161_v12 = vadd.f32 %v3877_v25, %v16356_v42  ;;  %v10011_v60 = vpop.f32.mrb[153].mxu0  ;;  %v4502_v43 = vpop.f32.mrb[154].mxu1  ;;  %v5756_v42 = vsel %vm5703_vm7, %v5746_v39, %v5755_v30  ;;  %v5767_v39 = vshrl.u32 %v14086_v7, 16 }
 0x411   :  { %16357 = vst [vmem:[#allocation15_spill] sm:$0xff] %v14164_v54  ;;  %v3880_v22 = vpop.f32.mrb[154].mxu0  ;;  %v5760_v60 = vrot.slane %v5758_v32, 2  ;;  %v14177_v1 = vadd.f32 %v4502_v43, %v14061_v28  ;;  %v10162_v18 = vpop.f32.mrb[155].mxu1  ;;  %v5770_v32 = vshll.u32 %v14086_v7, 16  ;;  %v16360_v43 = vld [vmem:[#allocation22_spill] sm:$0xff] }
 0x412   :  { %v14173_v5 = vadd.f32 %v3880_v22, %v16358_v46  ;;  %v10012_v25 = vpop.f32.mrb[155].mxu0  ;;  %v14195_v18 = vld [vmem:[%s16184_s0 + $0x68] sm:$0xff]  }
 0x413   :  { %16359 = vst [vmem:[#allocation16_spill] sm:$0xff] %v14177_v1  ;;  %10436 = vmatmul.mubr.msk.bf16.gmra.mrb[4].mxu1 %vm642_vm3, %v5756_v42  ;;  %v5764_v63 = vor.u32 %v5763_v58, %v5760_v60  ;;  %v5070_v42 = vsel %vm4113_vm6, %v5067_v50, %v5069_v44  ;;  %v16362_v60 = vld [vmem:[#allocation23_spill] sm:$0xff] }
 0x414   :  { %10286 = vmatmul.mubr.msk.bf16.gmra.mrb[4].mxu0 %vm642_vm3, %v5068_v45  ;;  %10439 = vmatprep.mubr.msk.bf16.mxu1 %vm11310_vm1, %v16229_v15 }
 0x415   :  { %10289 = vmatprep.mubr.msk.bf16.mxu0 %vm11310_vm1, %v16229_v15 }
 0x416   :  { %v4507_v22 = vpop.f32.mrb[156].mxu1 }
 0x417   :  { %v3885_v28 = vpop.f32.mrb[156].mxu0  ;;  %v10165_v46 = vpop.f32.mrb[157].mxu1  ;;  %v14198_v58 = vadd.f32 %v4507_v22, %v14077_v10  ;;  %v5071_v10 = vrot.slane %v14195_v18, 2 }
 0x418   :  { %v14189_v36 = vadd.f32 %v3885_v28, %v16360_v43  ;;  %v10015_v45 = vpop.f32.mrb[157].mxu0  ;;  %v4510_v1 = vpop.f32.mrb[158].mxu1  ;;  %v5765_v43 = vsel %vm5703_vm7, %v5755_v30, %v5764_v63  ;;  %v5772_v46 = vrot.slane %v5770_v32, 3  ;;  %v5776_v30 = vshrl.u32 %v14114_v48, 16 }
 0x419   :  { %v3888_v25 = vpop.f32.mrb[158].mxu0  ;;  %16361 = vst [vmem:[#allocation17_spill] sm:$0xff] %v14198_v58  ;;  %v5769_v45 = vrot.slane %v5767_v39, 2  ;;  %v10166_v54 = vpop.f32.mrb[159].mxu1  ;;  %v14205_v50 = vadd.f32 %v4510_v1, %v14089_v59  ;;  %v16364_v59 = vld [vmem:[#allocation24_spill] sm:$0xff] }
 0x41a   :  { %v14201_v7 = vadd.f32 %v3888_v25, %v16362_v60  ;;  %v10016_v28 = vpop.f32.mrb[159].mxu0  ;;  %v5779_v54 = vshll.u32 %v14114_v48, 16 }
 0x41b   :  { %16363 = vst [vmem:[#allocation18_spill] sm:$0xff] %v14205_v50  ;;  %10440 = vmatmul.mubr.msk.bf16.gmra.mrb[8].mxu1 %vm642_vm3, %v5765_v43  ;;  %v5773_v22 = vor.u32 %v5772_v46, %v5769_v45  ;;  %v5072_v28 = vsel %vm4113_vm6, %v5069_v44, %v5071_v10  ;;  %v14223_v43 = vld [vmem:[%s16184_s0 + $0x70] sm:$0xff]   ;;  %v16366_v46 = vld [vmem:[#allocation25_spill] sm:$0xff] }
 0x41c   :  { %10290 = vmatmul.mubr.msk.bf16.gmra.mrb[8].mxu0 %vm642_vm3, %v5070_v42  ;;  %10443 = vmatprep.mubr.msk.bf16.mxu1 %vm11310_vm1, %v16229_v15 }
 0x41d   :  { %10293 = vmatprep.mubr.msk.bf16.mxu0 %vm11310_vm1, %v16229_v15 }
 0x41e   :  { %v4515_v32 = vpop.f32.mrb[160].mxu1 }
 0x41f   :  { %v3893_v39 = vpop.f32.mrb[160].mxu0  ;;  %v10169_v42 = vpop.f32.mrb[161].mxu1  ;;  %v14226_v45 = vadd.f32 %v4515_v32, %v14105_v40  ;;  %v5073_v40 = vrot.slane %v14223_v43, 2  ;;  %v6640_v32 = vld [vmem:[%s16185_s1 + $0x20] sm:$0xf] }
 0x420   :  { %v14217_v1 = vadd.f32 %v3893_v39, %v16364_v59  ;;  %v10019_v25 = vpop.f32.mrb[161].mxu0  ;;  %v4518_v50 = vpop.f32.mrb[162].mxu1  ;;  %v5774_v59 = vsel %vm5703_vm7, %v5764_v63, %v5773_v22  ;;  %v5781_v42 = vrot.slane %v5779_v54, 3  ;;  %v16368_v54 = vld [vmem:[#allocation26_spill] sm:$0xff] }
 0x421   :  { %v3896_v60 = vpop.f32.mrb[162].mxu0  ;;  %16365 = vst [vmem:[#allocation19_spill] sm:$0xff] %v14226_v45  ;;  %v5778_v25 = vrot.slane %v5776_v30, 2  ;;  %v10170_v58 = vpop.f32.mrb[163].mxu1  ;;  %v14233_v44 = vadd.f32 %v4518_v50, %v14117_v20  ;;  %v5785_v20 = vshrl.u32 %v14142_v47, 16  ;;  %v6850_v50 = vsel %vm766_vm0, %v6640_v32, 0 }
 0x422   :  { %v14229_v48 = vadd.f32 %v3896_v60, %v16366_v46  ;;  %v10020_v39 = vpop.f32.mrb[163].mxu0  ;;  %v5788_v58 = vshll.u32 %v14142_v47, 16  ;;  %10584 = vmatpush3.bf16.msra.mxu0 %v6850_v50 }
 0x423   :  { %16367 = vst [vmem:[#allocation20_spill] sm:$0xff] %v14233_v44  ;;  %10444 = vmatmul.mubr.msk.bf16.gmra.mrb[12].mxu1 %vm642_vm3, %v5774_v59  ;;  %v5782_v63 = vor.u32 %v5781_v42, %v5778_v25  ;;  %v5074_v44 = vsel %vm4113_vm6, %v5071_v10, %v5073_v40  ;;  %v14255_v25 = vld [vmem:[%s16184_s0 + $0x78] sm:$0xff]  }
 0x424   :  { %10294 = vmatmul.mubr.msk.bf16.gmra.mrb[12].mxu0 %vm642_vm3, %v5072_v28  ;;  %10447 = vmatprep.mubr.msk.bf16.mxu1 %vm11310_vm1, %v16229_v15  ;;  %v16370_v42 = vld [vmem:[#allocation27_spill] sm:$0xff] }
 0x425   :  { %10297 = vmatprep.mubr.msk.bf16.mxu0 %vm11310_vm1, %v16229_v15 }
 0x426   :  { %v4523_v28 = vpop.f32.mrb[164].mxu1 }
 0x427   :  { %v3901_v30 = vpop.f32.mrb[164].mxu0  ;;  %v10173_v39 = vpop.f32.mrb[165].mxu1  ;;  %v14258_v47 = vadd.f32 %v4523_v28, %v14133_v14  ;;  %v5075_v14 = vrot.slane %v14255_v25, 2 }
 0x428   :  { %v14249_v60 = vadd.f32 %v3901_v30, %v16368_v54  ;;  %v10023_v46 = vpop.f32.mrb[165].mxu0  ;;  %v4526_v50 = vpop.f32.mrb[166].mxu1  ;;  %v5783_v54 = vsel %vm5703_vm7, %v5773_v22, %v5782_v63  ;;  %v5790_v39 = vrot.slane %v5788_v58, 3  ;;  %v5794_v22 = vshrl.u32 %v14170_v31, 16 }
 0x429   :  { %v3904_v59 = vpop.f32.mrb[166].mxu0  ;;  %16369 = vst [vmem:[#allocation21_spill] sm:$0xff] %v14258_v47  ;;  %v5787_v46 = vrot.slane %v5785_v20, 2  ;;  %v10174_v45 = vpop.f32.mrb[167].mxu1  ;;  %v14265_v10 = vadd.f32 %v4526_v50, %v14145_v21  ;;  %v16372_v21 = vld [vmem:[#allocation28_spill] sm:$0xff] }
 0x42a   :  { %v14261_v32 = vadd.f32 %v3904_v59, %v16370_v42  ;;  %v10024_v30 = vpop.f32.mrb[167].mxu0  ;;  %v5797_v45 = vshll.u32 %v14170_v31, 16 }
 0x42b   :  { %16371 = vst [vmem:[#allocation22_spill] sm:$0xff] %v14265_v10  ;;  %10448 = vmatmul.mubr.msk.bf16.gmra.mrb[16].mxu1 %vm642_vm3, %v5783_v54  ;;  %v5791_v28 = vor.u32 %v5790_v39, %v5787_v46  ;;  %v5076_v30 = vsel %vm4113_vm6, %v5073_v40, %v5075_v14  ;;  %v14283_v54 = vld [vmem:[%s16184_s0 + $0x80] sm:$0xff]   ;;  %v16374_v39 = vld [vmem:[#allocation29_spill] sm:$0xff] }
 0x42c   :  { %10298 = vmatmul.mubr.msk.bf16.gmra.mrb[16].mxu0 %vm642_vm3, %v5074_v44  ;;  %10451 = vmatprep.mubr.msk.bf16.mxu1 %vm11310_vm1, %v16229_v15 }
 0x42d   :  { %10301 = vmatprep.mubr.msk.bf16.mxu0 %vm11310_vm1, %v16229_v15 }
 0x42e   :  { %v4531_v44 = vpop.f32.mrb[168].mxu1 }
 0x42f   :  { %v3909_v20 = vpop.f32.mrb[168].mxu0  ;;  %v10177_v42 = vpop.f32.mrb[169].mxu1  ;;  %v14286_v46 = vadd.f32 %v4531_v44, %v14161_v12  ;;  %v5077_v12 = vrot.slane %v14283_v54, 2 }
 0x430   :  { %v14277_v58 = vadd.f32 %v3909_v20, %v16372_v21  ;;  %v10027_v59 = vpop.f32.mrb[169].mxu0  ;;  %v4534_v10 = vpop.f32.mrb[170].mxu1  ;;  %v5792_v21 = vsel %vm5703_vm7, %v5782_v63, %v5791_v28  ;;  %v5799_v42 = vrot.slane %v5797_v45, 3  ;;  %v5803_v63 = vshrl.u32 %v14195_v18, 16 }
 0x431   :  { %v3912_v50 = vpop.f32.mrb[170].mxu0  ;;  %16373 = vst [vmem:[#allocation23_spill] sm:$0xff] %v14286_v46  ;;  %v5796_v59 = vrot.slane %v5794_v22, 2  ;;  %v10178_v47 = vpop.f32.mrb[171].mxu1  ;;  %v14293_v40 = vadd.f32 %v4534_v10, %v14173_v5  ;;  %v16376_v5 = vld [vmem:[#allocation30_spill] sm:$0xff] }
 0x432   :  { %v14289_v31 = vadd.f32 %v3912_v50, %v16374_v39  ;;  %v10028_v20 = vpop.f32.mrb[171].mxu0  ;;  %v5806_v47 = vshll.u32 %v14195_v18, 16 }
 0x433   :  { %16375 = vst [vmem:[#allocation24_spill] sm:$0xff] %v14293_v40  ;;  %10452 = vmatmul.mubr.msk.bf16.gmra.mrb[20].mxu1 %vm642_vm3, %v5792_v21  ;;  %v5800_v44 = vor.u32 %v5799_v42, %v5796_v59  ;;  %v5078_v20 = vsel %vm4113_vm6, %v5075_v14, %v5077_v12  ;;  %v14311_v21 = vld [vmem:[%s16184_s0 + $0x88] sm:$0xff]   ;;  %v16378_v42 = vld [vmem:[#allocation31_spill] sm:$0xff] }
 0x434   :  { %10302 = vmatmul.mubr.msk.bf16.gmra.mrb[20].mxu0 %vm642_vm3, %v5076_v30  ;;  %10455 = vmatprep.mubr.msk.bf16.mxu1 %vm11310_vm1, %v16229_v15 }
 0x435   :  { %10305 = vmatprep.mubr.msk.bf16.mxu0 %vm11310_vm1, %v16229_v15 }
 0x436   :  { %v4539_v45 = vpop.f32.mrb[172].mxu1 }
 0x437   :  { %v3917_v22 = vpop.f32.mrb[172].mxu0  ;;  %v10181_v30 = vpop.f32.mrb[173].mxu1  ;;  %v14314_v59 = vadd.f32 %v4539_v45, %v14189_v36  ;;  %v5079_v36 = vrot.slane %v14311_v21, 2 }
 0x438   :  { %v14305_v10 = vadd.f32 %v3917_v22, %v16376_v5  ;;  %v10031_v50 = vpop.f32.mrb[173].mxu0  ;;  %v4542_v40 = vpop.f32.mrb[174].mxu1  ;;  %v5801_v5 = vsel %vm5703_vm7, %v5791_v28, %v5800_v44  ;;  %v5808_v30 = vrot.slane %v5806_v47, 3  ;;  %v5812_v28 = vshrl.u32 %v14223_v43, 16 }
 0x439   :  { %v3920_v39 = vpop.f32.mrb[174].mxu0  ;;  %16377 = vst [vmem:[#allocation25_spill] sm:$0xff] %v14314_v59  ;;  %v5805_v50 = vrot.slane %v5803_v63, 2  ;;  %v10182_v46 = vpop.f32.mrb[175].mxu1  ;;  %v14321_v14 = vadd.f32 %v4542_v40, %v14201_v7  ;;  %v16380_v7 = vld [vmem:[#allocation32_spill] sm:$0xff] }
 0x43a   :  { %v14317_v18 = vadd.f32 %v3920_v39, %v16378_v42  ;;  %v10032_v22 = vpop.f32.mrb[175].mxu0  ;;  %v5815_v46 = vshll.u32 %v14223_v43, 16 }
 0x43b   :  { %16379 = vst [vmem:[#allocation26_spill] sm:$0xff] %v14321_v14  ;;  %10456 = vmatmul.mubr.msk.bf16.gmra.mrb[24].mxu1 %vm642_vm3, %v5801_v5  ;;  %v5809_v45 = vor.u32 %v5808_v30, %v5805_v50  ;;  %v5080_v22 = vsel %vm4113_vm6, %v5077_v12, %v5079_v36  ;;  %v14339_v5 = vld [vmem:[%s16184_s0 + $0x90] sm:$0xff]   ;;  %v16382_v30 = vld [vmem:[#allocation33_spill] sm:$0xff] }
 0x43c   :  { %10306 = vmatmul.mubr.msk.bf16.gmra.mrb[24].mxu0 %vm642_vm3, %v5078_v20  ;;  %10459 = vmatprep.mubr.msk.bf16.mxu1 %vm11310_vm1, %v16229_v15 }
 0x43d   :  { %10309 = vmatprep.mubr.msk.bf16.mxu0 %vm11310_vm1, %v16229_v15 }
 0x43e   :  { %v4547_v47 = vpop.f32.mrb[176].mxu1 }
 0x43f   :  { %v3925_v63 = vpop.f32.mrb[176].mxu0  ;;  %v10185_v20 = vpop.f32.mrb[177].mxu1  ;;  %v14342_v50 = vadd.f32 %v4547_v47, %v14217_v1  ;;  %v5081_v1 = vrot.slane %v14339_v5, 2 }
 0x440   :  { %v14333_v40 = vadd.f32 %v3925_v63, %v16380_v7  ;;  %v10035_v39 = vpop.f32.mrb[177].mxu0  ;;  %v4550_v14 = vpop.f32.mrb[178].mxu1  ;;  %v5810_v7 = vsel %vm5703_vm7, %v5800_v44, %v5809_v45  ;;  %v5817_v20 = vrot.slane %v5815_v46, 3  ;;  %v5821_v44 = vshrl.u32 %v14255_v25, 16 }
 0x441   :  { %v3928_v42 = vpop.f32.mrb[178].mxu0  ;;  %16381 = vst [vmem:[#allocation27_spill] sm:$0xff] %v14342_v50  ;;  %v5814_v39 = vrot.slane %v5812_v28, 2  ;;  %v10186_v59 = vpop.f32.mrb[179].mxu1  ;;  %v14349_v12 = vadd.f32 %v4550_v14, %v14229_v48  ;;  %v16384_v48 = vld [vmem:[#allocation34_spill] sm:$0xff] }
 0x442   :  { %v14345_v43 = vadd.f32 %v3928_v42, %v16382_v30  ;;  %v10036_v63 = vpop.f32.mrb[179].mxu0  ;;  %v5824_v59 = vshll.u32 %v14255_v25, 16 }
 0x443   :  { %16383 = vst [vmem:[#allocation28_spill] sm:$0xff] %v14349_v12  ;;  %10460 = vmatmul.mubr.msk.bf16.gmra.mrb[28].mxu1 %vm642_vm3, %v5810_v7  ;;  %v5818_v47 = vor.u32 %v5817_v20, %v5814_v39  ;;  %v5082_v63 = vsel %vm4113_vm6, %v5079_v36, %v5081_v1  ;;  %v14367_v7 = vld [vmem:[%s16184_s0 + $0x98] sm:$0xff]  }
 0x444   :  { %10310 = vmatmul.mubr.msk.bf16.gmra.mrb[28].mxu0 %vm642_vm3, %v5080_v22  ;;  %10463 = vmatprep.mubr.msk.bf16.mxu1 %vm11310_vm1, %v16229_v15  ;;  %v16386_v20 = vld [vmem:[#allocation35_spill] sm:$0xff] }
 0x445   :  { %10313 = vmatprep.mubr.msk.bf16.mxu0 %vm11310_vm1, %v16229_v15 }
 0x446   :  { %v4555_v46 = vpop.f32.mrb[180].mxu1 }
 0x447   :  { %v3933_v28 = vpop.f32.mrb[180].mxu0  ;;  %v10189_v22 = vpop.f32.mrb[181].mxu1  ;;  %v14370_v39 = vadd.f32 %v4555_v46, %v14249_v60  ;;  %v5083_v60 = vrot.slane %v14367_v7, 2 }
 0x448   :  { %v14361_v14 = vadd.f32 %v3933_v28, %v16384_v48  ;;  %v10039_v42 = vpop.f32.mrb[181].mxu0  ;;  %v4558_v12 = vpop.f32.mrb[182].mxu1  ;;  %v5819_v48 = vsel %vm5703_vm7, %v5809_v45, %v5818_v47  ;;  %v5826_v22 = vrot.slane %v5824_v59, 3  ;;  %v5830_v45 = vshrl.u32 %v14283_v54, 16 }
 0x449   :  { %v3936_v30 = vpop.f32.mrb[182].mxu0  ;;  %16385 = vst [vmem:[#allocation29_spill] sm:$0xff] %v14370_v39  ;;  %v5823_v42 = vrot.slane %v5821_v44, 2  ;;  %v10190_v50 = vpop.f32.mrb[183].mxu1  ;;  %v14377_v36 = vadd.f32 %v4558_v12, %v14261_v32  ;;  %v16388_v32 = vld [vmem:[#allocation36_spill] sm:$0xff] }
 0x44a   :  { %v14373_v25 = vadd.f32 %v3936_v30, %v16386_v20  ;;  %v10040_v28 = vpop.f32.mrb[183].mxu0  ;;  %v5833_v50 = vshll.u32 %v14283_v54, 16 }
 0x44b   :  { %16387 = vst [vmem:[#allocation30_spill] sm:$0xff] %v14377_v36  ;;  %10464 = vmatmul.mubr.msk.bf16.gmra.mrb[32].mxu1 %vm642_vm3, %v5819_v48  ;;  %v5827_v46 = vor.u32 %v5826_v22, %v5823_v42  ;;  %v5084_v28 = vsel %vm4113_vm6, %v5081_v1, %v5083_v60  ;;  %v14395_v48 = vld [vmem:[%s16184_s0 + $0xa0] sm:$0xff]   ;;  %v16390_v22 = vld [vmem:[#allocation37_spill] sm:$0xff] }
 0x44c   :  { %10314 = vmatmul.mubr.msk.bf16.gmra.mrb[32].mxu0 %vm642_vm3, %v5082_v63  ;;  %10467 = vmatprep.mubr.msk.bf16.mxu1 %vm11310_vm1, %v16229_v15 }
 0x44d   :  { %10317 = vmatprep.mubr.msk.bf16.mxu0 %vm11310_vm1, %v16229_v15 }
 0x44e   :  { %v4563_v59 = vpop.f32.mrb[184].mxu1 }
 0x44f   :  { %v3941_v44 = vpop.f32.mrb[184].mxu0  ;;  %v10193_v63 = vpop.f32.mrb[185].mxu1  ;;  %v14398_v42 = vadd.f32 %v4563_v59, %v14277_v58  ;;  %v5085_v58 = vrot.slane %v14395_v48, 2 }
 0x450   :  { %v14389_v12 = vadd.f32 %v3941_v44, %v16388_v32  ;;  %v10043_v30 = vpop.f32.mrb[185].mxu0  ;;  %v4566_v36 = vpop.f32.mrb[186].mxu1  ;;  %v5828_v32 = vsel %vm5703_vm7, %v5818_v47, %v5827_v46  ;;  %v5835_v63 = vrot.slane %v5833_v50, 3  ;;  %v5839_v47 = vshrl.u32 %v14311_v21, 16 }
 0x451   :  { %v3944_v20 = vpop.f32.mrb[186].mxu0  ;;  %16389 = vst [vmem:[#allocation31_spill] sm:$0xff] %v14398_v42  ;;  %v5832_v30 = vrot.slane %v5830_v45, 2  ;;  %v10194_v39 = vpop.f32.mrb[187].mxu1  ;;  %v14405_v1 = vadd.f32 %v4566_v36, %v14289_v31  ;;  %v16392_v31 = vld [vmem:[#allocation38_spill] sm:$0xff] }
 0x452   :  { %v14401_v54 = vadd.f32 %v3944_v20, %v16390_v22  ;;  %v10044_v44 = vpop.f32.mrb[187].mxu0  ;;  %v5842_v39 = vshll.u32 %v14311_v21, 16 }
 0x453   :  { %16391 = vst [vmem:[#allocation32_spill] sm:$0xff] %v14405_v1  ;;  %10468 = vmatmul.mubr.msk.bf16.gmra.mrb[36].mxu1 %vm642_vm3, %v5828_v32  ;;  %v5836_v59 = vor.u32 %v5835_v63, %v5832_v30  ;;  %v5086_v44 = vsel %vm4113_vm6, %v5083_v60, %v5085_v58  ;;  %v14423_v32 = vld [vmem:[%s16184_s0 + $0xa8] sm:$0xff]   ;;  %v16393_v63 = vld [vmem:[#allocation39_spill] sm:$0xff] }
 0x454   :  { %10318 = vmatmul.mubr.msk.bf16.gmra.mrb[36].mxu0 %vm642_vm3, %v5084_v28  ;;  %10471 = vmatprep.mubr.msk.bf16.mxu1 %vm11310_vm1, %v16229_v15 }
 0x455   :  { %10321 = vmatprep.mubr.msk.bf16.mxu0 %vm11310_vm1, %v16229_v15 }
 0x456   :  { %v4571_v50 = vpop.f32.mrb[188].mxu1 }
 0x457   :  { %v3949_v45 = vpop.f32.mrb[188].mxu0  ;;  %v10197_v28 = vpop.f32.mrb[189].mxu1  ;;  %v14426_v30 = vadd.f32 %v4571_v50, %v14305_v10  ;;  %v5087_v10 = vrot.slane %v14423_v32, 2 }
 0x458   :  { %v14417_v36 = vadd.f32 %v3949_v45, %v16392_v31  ;;  %v10047_v20 = vpop.f32.mrb[189].mxu0  ;;  %v4574_v1 = vpop.f32.mrb[190].mxu1  ;;  %v5837_v31 = vsel %vm5703_vm7, %v5827_v46, %v5836_v59  ;;  %v5844_v28 = vrot.slane %v5842_v39, 3  ;;  %v5848_v46 = vshrl.u32 %v14339_v5, 16 }
 0x459   :  { %v3952_v22 = vpop.f32.mrb[190].mxu0  ;;  %v5841_v20 = vrot.slane %v5839_v47, 2  ;;  %v10198_v42 = vpop.f32.mrb[191].mxu1  ;;  %v14433_v60 = vadd.f32 %v4574_v1, %v14317_v18 }
 0x45a   :  { %v14429_v21 = vadd.f32 %v3952_v22, %v16393_v63  ;;  %v10048_v45 = vpop.f32.mrb[191].mxu0  ;;  %v5851_v42 = vshll.u32 %v14339_v5, 16  ;;  %v5088_v63 = vsel %vm4113_vm6, %v5085_v58, %v5087_v10 }
 0x45b   :  { %10472 = vmatmul.mubr.msk.bf16.gmra.mrb[40].mxu1 %vm642_vm3, %v5837_v31  ;;  %v5845_v50 = vor.u32 %v5844_v28, %v5841_v20  ;;  %v14451_v45 = vld [vmem:[%s16184_s0 + $0xb0] sm:$0xff]  }
 0x45c   :  { %10322 = vmatmul.mubr.msk.bf16.gmra.mrb[40].mxu0 %vm642_vm3, %v5086_v44  ;;  %10475 = vmatprep.mubr.msk.bf16.mxu1 %vm11310_vm1, %v16229_v15 }
 0x45d   :  { %10325 = vmatprep.mubr.msk.bf16.mxu0 %vm11310_vm1, %v16229_v15  ;;  %v5846_v28 = vsel %vm5703_vm7, %v5836_v59, %v5845_v50  ;;  %v5857_v59 = vshrl.u32 %v14367_v7, 16 }
 0x45e   :  { %v4579_v1 = vpop.f32.mrb[192].mxu1 }
 0x45f   :  { %v3957_v47 = vpop.f32.mrb[192].mxu0  ;;  %v10201_v22 = vpop.f32.mrb[193].mxu1  ;;  %v14454_v31 = vadd.f32 %v4579_v1, %v14333_v40 }
 0x460   :  { %v14445_v18 = vadd.f32 %v3957_v47, %v13414_v6  ;;  %v10051_v39 = vpop.f32.mrb[193].mxu0  ;;  %v4582_v20 = vpop.f32.mrb[194].mxu1  ;;  %v5850_v47 = vrot.slane %v5848_v46, 2  ;;  %v5860_v46 = vshll.u32 %v14367_v7, 16 }
 0x461   :  { %v3960_v44 = vpop.f32.mrb[194].mxu0  ;;  %v5853_v39 = vrot.slane %v5851_v42, 3  ;;  %v10202_v22 = vpop.f32.mrb[195].mxu1  ;;  %v14461_v58 = vadd.f32 %v4582_v20, %v14345_v43 }
 0x462   :  { %v14457_v5 = vadd.f32 %v3960_v44, %v13422_v41  ;;  %v10052_v6 = vpop.f32.mrb[195].mxu0  ;;  %v5089_v41 = vrot.slane %v14451_v45, 2 }
 0x463   :  { %10476 = vmatmul.mubr.msk.bf16.gmra.mrb[44].mxu1 %vm642_vm3, %v5846_v28  ;;  %v5854_v40 = vor.u32 %v5853_v39, %v5850_v47  ;;  %v14479_v28 = vld [vmem:[%s16184_s0 + $0xb8] sm:$0xff]  }
 0x464   :  { %10326 = vmatmul.mubr.msk.bf16.gmra.mrb[44].mxu0 %vm642_vm3, %v5088_v63  ;;  %10479 = vmatprep.mubr.msk.bf16.mxu1 %vm11310_vm1, %v16229_v15  ;;  %v5090_v6 = vsel %vm4113_vm6, %v5087_v10, %v5089_v41 }
 0x465   :  { %10329 = vmatprep.mubr.msk.bf16.mxu0 %vm11310_vm1, %v16229_v15  ;;  %v5855_v22 = vsel %vm5703_vm7, %v5845_v50, %v5854_v40  ;;  %v5866_v50 = vshrl.u32 %v14395_v48, 16 }
 0x466   :  { %v4587_v1 = vpop.f32.mrb[196].mxu1 }
 0x467   :  { %v3965_v42 = vpop.f32.mrb[196].mxu0  ;;  %v10205_v63 = vpop.f32.mrb[197].mxu1  ;;  %v14482_v47 = vadd.f32 %v4587_v1, %v14361_v14 }
 0x468   :  { %v14473_v43 = vadd.f32 %v3965_v42, %v13442_v23  ;;  %v10055_v44 = vpop.f32.mrb[197].mxu0  ;;  %v4590_v39 = vpop.f32.mrb[198].mxu1  ;;  %v5859_v42 = vrot.slane %v5857_v59, 2  ;;  %v5869_v59 = vshll.u32 %v14395_v48, 16 }
 0x469   :  { %v3968_v20 = vpop.f32.mrb[198].mxu0  ;;  %v5862_v44 = vrot.slane %v5860_v46, 3  ;;  %v10206_v63 = vpop.f32.mrb[199].mxu1  ;;  %v14489_v10 = vadd.f32 %v4590_v39, %v14373_v25 }
 0x46a   :  { %v14485_v7 = vadd.f32 %v3968_v20, %v13450_v3  ;;  %v10056_v23 = vpop.f32.mrb[199].mxu0  ;;  %v5091_v3 = vrot.slane %v14479_v28, 2 }
 0x46b   :  { %10480 = vmatmul.mubr.msk.bf16.gmra.mrb[48].mxu1 %vm642_vm3, %v5855_v22  ;;  %v5863_v14 = vor.u32 %v5862_v44, %v5859_v42  ;;  %v14507_v22 = vld [vmem:[%s16184_s0 + $0xc0] sm:$0xff]  }
 0x46c   :  { %10330 = vmatmul.mubr.msk.bf16.gmra.mrb[48].mxu0 %vm642_vm3, %v5090_v6  ;;  %10483 = vmatprep.mubr.msk.bf16.mxu1 %vm11310_vm1, %v16229_v15  ;;  %v5092_v23 = vsel %vm4113_vm6, %v5089_v41, %v5091_v3 }
 0x46d   :  { %10333 = vmatprep.mubr.msk.bf16.mxu0 %vm11310_vm1, %v16229_v15  ;;  %v5864_v63 = vsel %vm5703_vm7, %v5854_v40, %v5863_v14  ;;  %v5875_v40 = vshrl.u32 %v14423_v32, 16 }
 0x46e   :  { %v4595_v1 = vpop.f32.mrb[200].mxu1 }
 0x46f   :  { %v3973_v46 = vpop.f32.mrb[200].mxu0  ;;  %v10209_v6 = vpop.f32.mrb[201].mxu1  ;;  %v14510_v42 = vadd.f32 %v4595_v1, %v14389_v12 }
 0x470   :  { %v14501_v25 = vadd.f32 %v3973_v46, %v13470_v34  ;;  %v10059_v20 = vpop.f32.mrb[201].mxu0  ;;  %v4598_v44 = vpop.f32.mrb[202].mxu1  ;;  %v5868_v46 = vrot.slane %v5866_v50, 2  ;;  %v5878_v50 = vshll.u32 %v14423_v32, 16 }
 0x471   :  { %v3976_v39 = vpop.f32.mrb[202].mxu0  ;;  %v5871_v20 = vrot.slane %v5869_v59, 3  ;;  %v10210_v6 = vpop.f32.mrb[203].mxu1  ;;  %v14517_v41 = vadd.f32 %v4598_v44, %v14401_v54 }
 0x472   :  { %v14513_v48 = vadd.f32 %v3976_v39, %v13478_v57  ;;  %v10060_v34 = vpop.f32.mrb[203].mxu0  ;;  %v5093_v57 = vrot.slane %v14507_v22, 2 }
 0x473   :  { %10484 = vmatmul.mubr.msk.bf16.gmra.mrb[52].mxu1 %vm642_vm3, %v5864_v63  ;;  %v5872_v12 = vor.u32 %v5871_v20, %v5868_v46  ;;  %v14535_v63 = vld [vmem:[%s16184_s0 + $0xc8] sm:$0xff]  }
 0x474   :  { %10334 = vmatmul.mubr.msk.bf16.gmra.mrb[52].mxu0 %vm642_vm3, %v5092_v23  ;;  %10487 = vmatprep.mubr.msk.bf16.mxu1 %vm11310_vm1, %v16229_v15  ;;  %v5094_v34 = vsel %vm4113_vm6, %v5091_v3, %v5093_v57 }
 0x475   :  { %10337 = vmatprep.mubr.msk.bf16.mxu0 %vm11310_vm1, %v16229_v15  ;;  %v5873_v6 = vsel %vm5703_vm7, %v5863_v14, %v5872_v12  ;;  %v5884_v14 = vshrl.u32 %v14451_v45, 16 }
 0x476   :  { %v4603_v1 = vpop.f32.mrb[204].mxu1 }
 0x477   :  { %v3981_v59 = vpop.f32.mrb[204].mxu0  ;;  %v10213_v23 = vpop.f32.mrb[205].mxu1  ;;  %v14538_v46 = vadd.f32 %v4603_v1, %v14417_v36 }
 0x478   :  { %v14529_v54 = vadd.f32 %v3981_v59, %v13498_v26  ;;  %v10063_v39 = vpop.f32.mrb[205].mxu0  ;;  %v4606_v20 = vpop.f32.mrb[206].mxu1  ;;  %v5877_v59 = vrot.slane %v5875_v40, 2  ;;  %v5887_v40 = vshll.u32 %v14451_v45, 16 }
 0x479   :  { %v3984_v44 = vpop.f32.mrb[206].mxu0  ;;  %v5880_v39 = vrot.slane %v5878_v50, 3  ;;  %v10214_v23 = vpop.f32.mrb[207].mxu1  ;;  %v14545_v3 = vadd.f32 %v4606_v20, %v14429_v21 }
 0x47a   :  { %v14541_v32 = vadd.f32 %v3984_v44, %v13506_v9  ;;  %v10064_v26 = vpop.f32.mrb[207].mxu0  ;;  %v5095_v9 = vrot.slane %v14535_v63, 2 }
 0x47b   :  { %10488 = vmatmul.mubr.msk.bf16.gmra.mrb[56].mxu1 %vm642_vm3, %v5873_v6  ;;  %v5881_v36 = vor.u32 %v5880_v39, %v5877_v59  ;;  %v14563_v6 = vld [vmem:[%s16184_s0 + $0xd0] sm:$0xff]  }
 0x47c   :  { %10338 = vmatmul.mubr.msk.bf16.gmra.mrb[56].mxu0 %vm642_vm3, %v5094_v34  ;;  %10491 = vmatprep.mubr.msk.bf16.mxu1 %vm11310_vm1, %v16229_v15  ;;  %v5096_v26 = vsel %vm4113_vm6, %v5093_v57, %v5095_v9 }
 0x47d   :  { %10341 = vmatprep.mubr.msk.bf16.mxu0 %vm11310_vm1, %v16229_v15  ;;  %v5882_v23 = vsel %vm5703_vm7, %v5872_v12, %v5881_v36  ;;  %v5893_v12 = vshrl.u32 %v14479_v28, 16 }
 0x47e   :  { %v4611_v1 = vpop.f32.mrb[208].mxu1 }
 0x47f   :  { %v3989_v50 = vpop.f32.mrb[208].mxu0  ;;  %v10217_v34 = vpop.f32.mrb[209].mxu1  ;;  %v14566_v59 = vadd.f32 %v4611_v1, %v14445_v18 }
 0x480   :  { %v14557_v21 = vadd.f32 %v3989_v50, %v13526_v33  ;;  %v10067_v44 = vpop.f32.mrb[209].mxu0  ;;  %v4614_v39 = vpop.f32.mrb[210].mxu1  ;;  %v5886_v50 = vrot.slane %v5884_v14, 2  ;;  %v5896_v14 = vshll.u32 %v14479_v28, 16 }
 0x481   :  { %v3992_v20 = vpop.f32.mrb[210].mxu0  ;;  %v5889_v44 = vrot.slane %v5887_v40, 3  ;;  %v10218_v34 = vpop.f32.mrb[211].mxu1  ;;  %v14573_v57 = vadd.f32 %v4614_v39, %v14457_v5 }
 0x482   :  { %v14569_v45 = vadd.f32 %v3992_v20, %v13531_v38  ;;  %v10068_v33 = vpop.f32.mrb[211].mxu0  ;;  %v5097_v38 = vrot.slane %v14563_v6, 2 }
 0x483   :  { %10492 = vmatmul.mubr.msk.bf16.gmra.mrb[60].mxu1 %vm642_vm3, %v5882_v23  ;;  %v5890_v18 = vor.u32 %v5889_v44, %v5886_v50  ;;  %v14591_v23 = vld [vmem:[%s16184_s0 + $0xd8] sm:$0xff]  }
 0x484   :  { %10342 = vmatmul.mubr.msk.bf16.gmra.mrb[60].mxu0 %vm642_vm3, %v5096_v26  ;;  %10495 = vmatprep.mubr.msk.bf16.mxu1 %vm11310_vm1, %v16229_v15  ;;  %v5098_v33 = vsel %vm4113_vm6, %v5095_v9, %v5097_v38 }
 0x485   :  { %10345 = vmatprep.mubr.msk.bf16.mxu0 %vm11310_vm1, %v16229_v15  ;;  %v5891_v34 = vsel %vm5703_vm7, %v5881_v36, %v5890_v18  ;;  %v5902_v36 = vshrl.u32 %v14507_v22, 16 }
 0x486   :  { %v4619_v1 = vpop.f32.mrb[212].mxu1 }
 0x487   :  { %v3997_v40 = vpop.f32.mrb[212].mxu0  ;;  %v10221_v26 = vpop.f32.mrb[213].mxu1  ;;  %v14594_v50 = vadd.f32 %v4619_v1, %v14473_v43 }
 0x488   :  { %v14585_v5 = vadd.f32 %v3997_v40, %v13551_v17  ;;  %v10071_v20 = vpop.f32.mrb[213].mxu0  ;;  %v4622_v44 = vpop.f32.mrb[214].mxu1  ;;  %v5895_v40 = vrot.slane %v5893_v12, 2  ;;  %v5905_v12 = vshll.u32 %v14507_v22, 16 }
 0x489   :  { %v4000_v39 = vpop.f32.mrb[214].mxu0  ;;  %v5898_v20 = vrot.slane %v5896_v14, 3  ;;  %v10222_v26 = vpop.f32.mrb[215].mxu1  ;;  %v14601_v9 = vadd.f32 %v4622_v44, %v14485_v7 }
 0x48a   :  { %v14597_v28 = vadd.f32 %v4000_v39, %v13559_v56  ;;  %v10072_v17 = vpop.f32.mrb[215].mxu0  ;;  %v5099_v56 = vrot.slane %v14591_v23, 2 }
 0x48b   :  { %10496 = vmatmul.mubr.msk.bf16.gmra.mrb[64].mxu1 %vm642_vm3, %v5891_v34  ;;  %v5899_v43 = vor.u32 %v5898_v20, %v5895_v40  ;;  %v14619_v34 = vld [vmem:[%s16184_s0 + $0xe0] sm:$0xff]  }
 0x48c   :  { %10346 = vmatmul.mubr.msk.bf16.gmra.mrb[64].mxu0 %vm642_vm3, %v5098_v33  ;;  %10499 = vmatprep.mubr.msk.bf16.mxu1 %vm11310_vm1, %v16229_v15  ;;  %v5100_v17 = vsel %vm4113_vm6, %v5097_v38, %v5099_v56 }
 0x48d   :  { %10349 = vmatprep.mubr.msk.bf16.mxu0 %vm11310_vm1, %v16229_v15  ;;  %v5900_v26 = vsel %vm5703_vm7, %v5890_v18, %v5899_v43  ;;  %v5911_v18 = vshrl.u32 %v14535_v63, 16 }
 0x48e   :  { %v4627_v1 = vpop.f32.mrb[216].mxu1 }
 0x48f   :  { %v4005_v14 = vpop.f32.mrb[216].mxu0  ;;  %v10225_v33 = vpop.f32.mrb[217].mxu1  ;;  %v14622_v40 = vadd.f32 %v4627_v1, %v14501_v25 }
 0x490   :  { %v14613_v7 = vadd.f32 %v4005_v14, %v13579_v13  ;;  %v10075_v39 = vpop.f32.mrb[217].mxu0  ;;  %v4630_v20 = vpop.f32.mrb[218].mxu1  ;;  %v5904_v14 = vrot.slane %v5902_v36, 2  ;;  %v5914_v36 = vshll.u32 %v14535_v63, 16 }
 0x491   :  { %v4008_v44 = vpop.f32.mrb[218].mxu0  ;;  %v5907_v39 = vrot.slane %v5905_v12, 3  ;;  %v10226_v33 = vpop.f32.mrb[219].mxu1  ;;  %v14629_v38 = vadd.f32 %v4630_v20, %v14513_v48 }
 0x492   :  { %v14625_v22 = vadd.f32 %v4008_v44, %v13587_v51  ;;  %v10076_v13 = vpop.f32.mrb[219].mxu0  ;;  %v5101_v51 = vrot.slane %v14619_v34, 2 }
 0x493   :  { %16394 = vst [vmem:[#allocation33_spill] sm:$0xff] %v14629_v38  ;;  %10500 = vmatmul.mubr.msk.bf16.gmra.mrb[68].mxu1 %vm642_vm3, %v5900_v26  ;;  %v5908_v25 = vor.u32 %v5907_v39, %v5904_v14  ;;  %v14647_v26 = vld [vmem:[%s16184_s0 + $0xe8] sm:$0xff]   ;;  %v16395_v39 = vld [vmem:[#allocation40_spill] sm:$0xff] }
 0x494   :  { %10350 = vmatmul.mubr.msk.bf16.gmra.mrb[68].mxu0 %vm642_vm3, %v5100_v17  ;;  %10503 = vmatprep.mubr.msk.bf16.mxu1 %vm11310_vm1, %v16229_v15  ;;  %v5102_v13 = vsel %vm4113_vm6, %v5099_v56, %v5101_v51 }
 0x495   :  { %10353 = vmatprep.mubr.msk.bf16.mxu0 %vm11310_vm1, %v16229_v15 }
 0x496   :  { %v4635_v1 = vpop.f32.mrb[220].mxu1 }
 0x497   :  { %v4013_v12 = vpop.f32.mrb[220].mxu0  ;;  %v10229_v17 = vpop.f32.mrb[221].mxu1  ;;  %v14650_v14 = vadd.f32 %v4635_v1, %v14529_v54  ;;  %v5103_v54 = vrot.slane %v14647_v26, 2 }
 0x498   :  { %v14641_v48 = vadd.f32 %v4013_v12, %v13611_v37  ;;  %v10079_v44 = vpop.f32.mrb[221].mxu0  ;;  %v4638_v33 = vpop.f32.mrb[222].mxu1  ;;  %v5909_v12 = vsel %vm5703_vm7, %v5899_v43, %v5908_v25  ;;  %v5916_v17 = vrot.slane %v5914_v36, 3  ;;  %v5920_v43 = vshrl.u32 %v14563_v6, 16 }
 0x499   :  { %v4016_v20 = vpop.f32.mrb[222].mxu0  ;;  %v5913_v44 = vrot.slane %v5911_v18, 2  ;;  %v10230_v38 = vpop.f32.mrb[223].mxu1  ;;  %v14657_v56 = vadd.f32 %v4638_v33, %v14541_v32  ;;  %v5104_v33 = vsel %vm4113_vm6, %v5101_v51, %v5103_v54 }
 0x49a   :  { %v14653_v63 = vadd.f32 %v4016_v20, %v16395_v39  ;;  %v10080_v37 = vpop.f32.mrb[223].mxu0  ;;  %v5923_v38 = vshll.u32 %v14563_v6, 16 }
 0x49b   :  { %16396 = vst [vmem:[#allocation34_spill] sm:$0xff] %v14657_v56  ;;  %10504 = vmatmul.mubr.msk.bf16.gmra.mrb[72].mxu1 %vm642_vm3, %v5909_v12  ;;  %v5917_v1 = vor.u32 %v5916_v17, %v5913_v44  ;;  %v14675_v37 = vld [vmem:[%s16184_s0 + $0xf0] sm:$0xff]  }
 0x49c   :  { %10354 = vmatmul.mubr.msk.bf16.gmra.mrb[72].mxu0 %vm642_vm3, %v5102_v13  ;;  %10507 = vmatprep.mubr.msk.bf16.mxu1 %vm11310_vm1, %v16229_v15 }
 0x49d   :  { %10357 = vmatprep.mubr.msk.bf16.mxu0 %vm11310_vm1, %v16229_v15  ;;  %v5918_v17 = vsel %vm5703_vm7, %v5908_v25, %v5917_v1  ;;  %v5929_v25 = vshrl.u32 %v14591_v23, 16 }
 0x49e   :  { %v4643_v36 = vpop.f32.mrb[224].mxu1 }
 0x49f   :  { %v4021_v18 = vpop.f32.mrb[224].mxu0  ;;  %v10233_v13 = vpop.f32.mrb[225].mxu1  ;;  %v14678_v12 = vadd.f32 %v4643_v36, %v14557_v21  ;;  %v5105_v21 = vrot.slane %v14675_v37, 2 }
 0x4a0   :  { %v14669_v32 = vadd.f32 %v4021_v18, %v13640_v29  ;;  %v10083_v20 = vpop.f32.mrb[225].mxu0  ;;  %v4646_v44 = vpop.f32.mrb[226].mxu1  ;;  %v5922_v29 = vrot.slane %v5920_v43, 2  ;;  %v5925_v18 = vrot.slane %v5923_v38, 3 }
 0x4a1   :  { %v4024_v39 = vpop.f32.mrb[226].mxu0  ;;  %v10234_v56 = vpop.f32.mrb[227].mxu1  ;;  %v14682_v20 = vadd.f32 %v4646_v44, %v14569_v45  ;;  %v14700_v44 = vld [vmem:[%s16184_s0 + $0xf8] sm:$0xff]  }
 0x4a2   :  { %v10084_v6 = vpop.f32.mrb[227].mxu0  ;;  %v5926_v51 = vor.u32 %v5925_v18, %v5922_v29  ;;  %v5932_v56 = vshll.u32 %v14591_v23, 16  ;;  %v5931_v18 = vrot.slane %v5929_v25, 2  ;;  %v5941_v25 = vshll.u32 %v14619_v34, 16 }
 0x4a3   :  { %10508 = vmatmul.mubr.msk.bf16.gmra.mrb[76].mxu1 %vm642_vm3, %v5918_v17 }
 0x4a4   :  { %10358 = vmatmul.mubr.msk.bf16.gmra.mrb[76].mxu0 %vm642_vm3, %v5104_v33  ;;  %10511 = vmatprep.mubr.msk.bf16.mxu1 %vm11310_vm1, %v16229_v15  ;;  %v5106_v33 = vsel %vm4113_vm6, %v5103_v54, %v5105_v21 }
 0x4a5   :  { %10361 = vmatprep.mubr.msk.bf16.mxu0 %vm11310_vm1, %v16229_v15 }
 0x4a6   :  { %v4651_v45 = vpop.f32.mrb[228].mxu1 }
 0x4a7   :  { %v5291_v43 = vpop.f32.mrb[228].mxu0  ;;  %v10237_v13 = vpop.f32.mrb[229].mxu1  ;;  %v14703_v6 = vadd.f32 %v4651_v45, %v14585_v5  ;;  %v5107_v5 = vrot.slane %v14700_v44, 2 }
 0x4a8   :  { %v14694_v38 = vadd.f32 %v5291_v43, %v13665_v27  ;;  %v10255_v36 = vpop.f32.mrb[229].mxu0  ;;  %v4654_v17 = vpop.f32.mrb[230].mxu1  ;;  %v5927_v27 = vsel %vm5703_vm7, %v5917_v1, %v5926_v51  ;;  %v5934_v43 = vrot.slane %v5932_v56, 3  ;;  %v5938_v1 = vshrl.u32 %v14619_v34, 16 }
 0x4a9   :  { %v5294_v39 = vpop.f32.mrb[230].mxu0  ;;  %v10238_v36 = vpop.f32.mrb[231].mxu1  ;;  %v14710_v54 = vadd.f32 %v4654_v17, %v14597_v28  ;;  %v5108_v17 = vsel %vm4113_vm6, %v5105_v21, %v5107_v5 }
 0x4aa   :  { %v14706_v23 = vadd.f32 %v5294_v39, %v13673_v19  ;;  %v10256_v29 = vpop.f32.mrb[231].mxu0  ;;  %v5935_v19 = vor.u32 %v5934_v43, %v5931_v18  ;;  %v5940_v36 = vrot.slane %v5938_v1, 2  ;;  %v5950_v1 = vshll.u32 %v14647_v26, 16 }
 0x4ab   :  { %10512 = vmatmul.mubr.msk.bf16.gmra.mrb[80].mxu1 %vm642_vm3, %v5927_v27  ;;  %v14728_v29 = vld [vmem:[%s16184_s0 + $0x100] sm:$0xff]  }
 0x4ac   :  { %10362 = vmatmul.mubr.msk.bf16.gmra.mrb[80].mxu0 %vm642_vm3, %v5106_v33  ;;  %10515 = vmatprep.mubr.msk.bf16.mxu1 %vm11310_vm1, %v16229_v15 }
 0x4ad   :  { %10365 = vmatprep.mubr.msk.bf16.mxu0 %vm11310_vm1, %v16229_v15 }
 0x4ae   :  { %v4659_v28 = vpop.f32.mrb[232].mxu1 }
 0x4af   :  { %v5299_v56 = vpop.f32.mrb[232].mxu0  ;;  %v10241_v39 = vpop.f32.mrb[233].mxu1  ;;  %v14731_v27 = vadd.f32 %v4659_v28, %v14613_v7  ;;  %v5109_v7 = vrot.slane %v14728_v29, 2 }
 0x4b0   :  { %v14722_v45 = vadd.f32 %v5299_v56, %v13693_v52  ;;  %v10259_v13 = vpop.f32.mrb[233].mxu0  ;;  %v4662_v18 = vpop.f32.mrb[234].mxu1  ;;  %v5936_v52 = vsel %vm5703_vm7, %v5926_v51, %v5935_v19  ;;  %v5943_v56 = vrot.slane %v5941_v25, 3  ;;  %v5947_v51 = vshrl.u32 %v14647_v26, 16 }
 0x4b1   :  { %v5302_v33 = vpop.f32.mrb[234].mxu0  ;;  %v10242_v13 = vpop.f32.mrb[235].mxu1  ;;  %v14738_v21 = vadd.f32 %v4662_v18, %v14625_v22  ;;  %v5110_v18 = vsel %vm4113_vm6, %v5107_v5, %v5109_v7 }
 0x4b2   :  { %v14734_v34 = vadd.f32 %v5302_v33, %v13701_v35  ;;  %v10260_v43 = vpop.f32.mrb[235].mxu0  ;;  %v5944_v35 = vor.u32 %v5943_v56, %v5940_v36  ;;  %v5949_v13 = vrot.slane %v5947_v51, 2  ;;  %v5959_v51 = vshll.u32 %v14675_v37, 16 }
 0x4b3   :  { %10516 = vmatmul.mubr.msk.bf16.gmra.mrb[84].mxu1 %vm642_vm3, %v5936_v52  ;;  %v14756_v43 = vld [vmem:[%s16184_s0 + $0x108] sm:$0xff]  }
 0x4b4   :  { %10366 = vmatmul.mubr.msk.bf16.gmra.mrb[84].mxu0 %vm642_vm3, %v5108_v17  ;;  %10519 = vmatprep.mubr.msk.bf16.mxu1 %vm11310_vm1, %v16229_v15 }
 0x4b5   :  { %10369 = vmatprep.mubr.msk.bf16.mxu0 %vm11310_vm1, %v16229_v15 }
 0x4b6   :  { %v4667_v22 = vpop.f32.mrb[236].mxu1 }
 0x4b7   :  { %v5307_v25 = vpop.f32.mrb[236].mxu0  ;;  %v10245_v33 = vpop.f32.mrb[237].mxu1  ;;  %v14759_v52 = vadd.f32 %v4667_v22, %v14641_v48  ;;  %v5111_v48 = vrot.slane %v14756_v43, 2  ;;  %v16399_v22 = vld [vmem:[#allocation41_spill] sm:$0xff] }
 0x4b8   :  { %v14750_v28 = vadd.f32 %v5307_v25, %v13721_v11  ;;  %v10263_v39 = vpop.f32.mrb[237].mxu0  ;;  %v4670_v36 = vpop.f32.mrb[238].mxu1  ;;  %v5945_v11 = vsel %vm5703_vm7, %v5935_v19, %v5944_v35  ;;  %v5952_v25 = vrot.slane %v5950_v1, 3  ;;  %v5956_v19 = vshrl.u32 %v14675_v37, 16 }
 0x4b9   :  { %v5310_v17 = vpop.f32.mrb[238].mxu0  ;;  %16397 = vst [vmem:[#allocation35_spill] sm:$0xff] %v14759_v52  ;;  %v10246_v39 = vpop.f32.mrb[239].mxu1  ;;  %v14766_v5 = vadd.f32 %v4670_v36, %v14653_v63 }
 0x4ba   :  { %v14762_v26 = vadd.f32 %v5310_v17, %v13729_v53  ;;  %v10264_v56 = vpop.f32.mrb[239].mxu0  ;;  %v5953_v53 = vor.u32 %v5952_v25, %v5949_v13  ;;  %v16401_v25 = vld [vmem:[#allocation42_spill] sm:$0xff] }
 0x4bb   :  { %16398 = vst [vmem:[#allocation36_spill] sm:$0xff] %v14766_v5  ;;  %10520 = vmatmul.mubr.msk.bf16.gmra.mrb[88].mxu1 %vm642_vm3, %v5945_v11  ;;  %v5112_v56 = vsel %vm4113_vm6, %v5109_v7, %v5111_v48  ;;  %v14784_v11 = vld [vmem:[%s16184_s0 + $0x110] sm:$0xff]   ;;  %v5961_v5 = vrot.slane %v5959_v51, 3  ;;  %v16402_v51 = vld [vmem:[#allocation43_spill] sm:$0xff] }
 0x4bc   :  { %10370 = vmatmul.mubr.msk.bf16.gmra.mrb[88].mxu0 %vm642_vm3, %v5110_v18  ;;  %10523 = vmatprep.mubr.msk.bf16.mxu1 %vm11310_vm1, %v16229_v15 }
 0x4bd   :  { %10373 = vmatprep.mubr.msk.bf16.mxu0 %vm11310_vm1, %v16229_v15 }
 0x4be   :  { %v4675_v63 = vpop.f32.mrb[240].mxu1 }
 0x4bf   :  { %v5315_v1 = vpop.f32.mrb[240].mxu0  ;;  %v10249_v36 = vpop.f32.mrb[241].mxu1  ;;  %v14787_v13 = vadd.f32 %v4675_v63, %v14669_v32  ;;  %v5113_v32 = vrot.slane %v14784_v11, 2  ;;  %v5965_v63 = vshrl.u32 %v14700_v44, 16 }
 0x4c0   :  { %v14778_v33 = vadd.f32 %v5315_v1, %v16399_v22  ;;  %v10267_v17 = vpop.f32.mrb[241].mxu0  ;;  %v5954_v1 = vsel %vm5703_vm7, %v5944_v35, %v5953_v53  ;;  %v4678_v22 = vpop.f32.mrb[242].mxu1  ;;  %v5968_v35 = vshll.u32 %v14700_v44, 16 }
 0x4c1   :  { %v5318_v18 = vpop.f32.mrb[242].mxu0  ;;  %16400 = vst [vmem:[#allocation37_spill] sm:$0xff] %v14787_v13  ;;  %v5958_v17 = vrot.slane %v5956_v19, 2  ;;  %v10250_v36 = vpop.f32.mrb[243].mxu1  ;;  %v5114_v22 = vsel %vm4113_vm6, %v5111_v48, %v5113_v32 }
 0x4c2   :  { %v14790_v37 = vadd.f32 %v5318_v18, %v16401_v25  ;;  %v10268_v39 = vpop.f32.mrb[243].mxu0  ;;  %v14809_v36 = vld [vmem:[%s16184_s0 + $0x118] sm:$0xff]  }
 0x4c3   :  { %10524 = vmatmul.mubr.msk.bf16.gmra.mrb[92].mxu1 %vm642_vm3, %v5954_v1  ;;  %v5962_v7 = vor.u32 %v5961_v5, %v5958_v17  ;;  %v16404_v17 = vld [vmem:[#allocation44_spill] sm:$0xff] }
 0x4c4   :  { %10374 = vmatmul.mubr.msk.bf16.gmra.mrb[92].mxu0 %vm642_vm3, %v5112_v56  ;;  %10527 = vmatprep.mubr.msk.bf16.mxu1 %vm11310_vm1, %v16229_v15 }
 0x4c5   :  { %10377 = vmatprep.mubr.msk.bf16.mxu0 %vm11310_vm1, %v16229_v15 }
 0x4c6   :  { %v6232_v56 = vpop.f32.mrb[244].mxu1 }
 0x4c7   :  { %v5323_v19 = vpop.f32.mrb[244].mxu0  ;;  %v10421_v39 = vpop.f32.mrb[245].mxu1  ;;  %v14812_v5 = vadd.f32 %v6232_v56, %v14694_v38  ;;  %v5115_v38 = vrot.slane %v14809_v36, 2 }
 0x4c8   :  { %v14803_v18 = vadd.f32 %v5323_v19, %v16402_v51  ;;  %v10271_v25 = vpop.f32.mrb[245].mxu0  ;;  %v6235_v13 = vpop.f32.mrb[246].mxu1  ;;  %v5963_v51 = vsel %vm5703_vm7, %v5953_v53, %v5962_v7  ;;  %v5970_v39 = vrot.slane %v5968_v35, 3  ;;  %v5974_v53 = vshrl.u32 %v14728_v29, 16 }
 0x4c9   :  { %v5326_v1 = vpop.f32.mrb[246].mxu0  ;;  %16403 = vst [vmem:[#allocation38_spill] sm:$0xff] %v14812_v5  ;;  %v5967_v25 = vrot.slane %v5965_v63, 2  ;;  %v10422_v52 = vpop.f32.mrb[247].mxu1  ;;  %v14819_v48 = vadd.f32 %v6235_v13, %v14706_v23  ;;  %v16406_v23 = vld [vmem:[#allocation50_spill] sm:$0xff] }
 0x4ca   :  { %v14815_v44 = vadd.f32 %v5326_v1, %v16404_v17  ;;  %v10272_v19 = vpop.f32.mrb[247].mxu0  ;;  %v5977_v52 = vshll.u32 %v14728_v29, 16 }
 0x4cb   :  { %16405 = vst [vmem:[#allocation39_spill] sm:$0xff] %v14819_v48  ;;  %10528 = vmatmul.mubr.msk.bf16.gmra.mrb[96].mxu1 %vm642_vm3, %v5963_v51  ;;  %v5971_v56 = vor.u32 %v5970_v39, %v5967_v25  ;;  %v5116_v19 = vsel %vm4113_vm6, %v5113_v32, %v5115_v38  ;;  %v14837_v51 = vld [vmem:[%s16184_s0 + $0x120] sm:$0xff]   ;;  %v16407_v39 = vld [vmem:[#allocation45_spill] sm:$0xff] }
 0x4cc   :  { %10378 = vmatmul.mubr.msk.bf16.gmra.mrb[96].mxu0 %vm642_vm3, %v5114_v22  ;;  %10531 = vmatprep.mubr.msk.bf16.mxu1 %vm11310_vm1, %v16229_v15 }
 0x4cd   :  { %10381 = vmatprep.mubr.msk.bf16.mxu0 %vm11310_vm1, %v16229_v15 }
 0x4ce   :  { %v6240_v35 = vpop.f32.mrb[248].mxu1 }
 0x4cf   :  { %v5331_v63 = vpop.f32.mrb[248].mxu0  ;;  %v10425_v22 = vpop.f32.mrb[249].mxu1  ;;  %v14840_v25 = vadd.f32 %v6240_v35, %v14722_v45  ;;  %v5117_v45 = vrot.slane %v14837_v51, 2 }
 0x4d0   :  { %v14831_v13 = vadd.f32 %v5331_v63, %v16406_v23  ;;  %v10275_v1 = vpop.f32.mrb[249].mxu0  ;;  %v6243_v48 = vpop.f32.mrb[250].mxu1  ;;  %v5972_v23 = vsel %vm5703_vm7, %v5962_v7, %v5971_v56  ;;  %v5979_v22 = vrot.slane %v5977_v52, 3  ;;  %v5983_v7 = vshrl.u32 %v14756_v43, 16 }
 0x4d1   :  { %v5334_v17 = vpop.f32.mrb[250].mxu0  ;;  %v5976_v1 = vrot.slane %v5974_v53, 2  ;;  %v10426_v5 = vpop.f32.mrb[251].mxu1  ;;  %v14847_v32 = vadd.f32 %v6243_v48, %v14734_v34 }
 0x4d2   :  { %v14843_v29 = vadd.f32 %v5334_v17, %v16407_v39  ;;  %v10276_v63 = vpop.f32.mrb[251].mxu0  ;;  %v5986_v5 = vshll.u32 %v14756_v43, 16  ;;  %v5118_v39 = vsel %vm4113_vm6, %v5115_v38, %v5117_v45 }
 0x4d3   :  { %10532 = vmatmul.mubr.msk.bf16.gmra.mrb[100].mxu1 %vm642_vm3, %v5972_v23  ;;  %v5980_v35 = vor.u32 %v5979_v22, %v5976_v1  ;;  %v14865_v63 = vld [vmem:[%s16184_s0 + $0x128] sm:$0xff]  }
 0x4d4   :  { %10382 = vmatmul.mubr.msk.bf16.gmra.mrb[100].mxu0 %vm642_vm3, %v5116_v19  ;;  %10535 = vmatprep.mubr.msk.bf16.mxu1 %vm11310_vm1, %v16229_v15 }
 0x4d5   :  { %10385 = vmatprep.mubr.msk.bf16.mxu0 %vm11310_vm1, %v16229_v15  ;;  %v5981_v22 = vsel %vm5703_vm7, %v5971_v56, %v5980_v35  ;;  %v5992_v56 = vshrl.u32 %v14784_v11, 16 }
 0x4d6   :  { %v6248_v48 = vpop.f32.mrb[252].mxu1 }
 0x4d7   :  { %v5339_v53 = vpop.f32.mrb[252].mxu0  ;;  %v10429_v17 = vpop.f32.mrb[253].mxu1  ;;  %v14868_v23 = vadd.f32 %v6248_v48, %v14750_v28 }
 0x4d8   :  { %v14859_v34 = vadd.f32 %v5339_v53, %v13841_v62  ;;  %v10279_v52 = vpop.f32.mrb[253].mxu0  ;;  %v6251_v1 = vpop.f32.mrb[254].mxu1  ;;  %v5985_v53 = vrot.slane %v5983_v7, 2  ;;  %v5995_v7 = vshll.u32 %v14784_v11, 16 }
 0x4d9   :  { %v5342_v19 = vpop.f32.mrb[254].mxu0  ;;  %v5988_v52 = vrot.slane %v5986_v5, 3  ;;  %v10430_v17 = vpop.f32.mrb[255].mxu1  ;;  %v14875_v38 = vadd.f32 %v6251_v1, %v14762_v26 }
 0x4da   :  { %v14871_v43 = vadd.f32 %v5342_v19, %v13849_v8  ;;  %v10280_v62 = vpop.f32.mrb[255].mxu0  ;;  %v5119_v8 = vrot.slane %v14865_v63, 2 }
 0x4db   :  { %10536 = vmatmul.mubr.msk.bf16.gmra.mrb[104].mxu1 %vm642_vm3, %v5981_v22  ;;  %v5989_v28 = vor.u32 %v5988_v52, %v5985_v53  ;;  %v14893_v22 = vld [vmem:[%s16184_s0 + $0x130] sm:$0xff]  }
 0x4dc   :  { %10386 = vmatmul.mubr.msk.bf16.gmra.mrb[104].mxu0 %vm642_vm3, %v5118_v39  ;;  %10539 = vmatprep.mubr.msk.bf16.mxu1 %vm11310_vm1, %v16229_v15  ;;  %v5120_v62 = vsel %vm4113_vm6, %v5117_v45, %v5119_v8 }
 0x4dd   :  { %10389 = vmatprep.mubr.msk.bf16.mxu0 %vm11310_vm1, %v16229_v15  ;;  %v5990_v17 = vsel %vm5703_vm7, %v5980_v35, %v5989_v28  ;;  %v6001_v35 = vshrl.u32 %v14809_v36, 16 }
 0x4de   :  { %v6256_v48 = vpop.f32.mrb[0].mxu1 }
 0x4df   :  { %v5347_v5 = vpop.f32.mrb[0].mxu0  ;;  %v10433_v39 = vpop.f32.mrb[1].mxu1  ;;  %v14896_v53 = vadd.f32 %v6256_v48, %v14778_v33 }
 0x4e0   :  { %v14887_v26 = vadd.f32 %v5347_v5, %v13864_v0  ;;  %v10283_v19 = vpop.f32.mrb[1].mxu0  ;;  %v6259_v52 = vpop.f32.mrb[2].mxu1  ;;  %v5994_v5 = vrot.slane %v5992_v56, 2  ;;  %v6004_v56 = vshll.u32 %v14809_v36, 16 }
 0x4e1   :  { %v5350_v1 = vpop.f32.mrb[2].mxu0  ;;  %16408 = vst [vmem:[#allocation40_spill] sm:$0xff] %v14896_v53  ;;  %v5997_v19 = vrot.slane %v5995_v7, 3  ;;  %v10434_v39 = vpop.f32.mrb[3].mxu1  ;;  %v14903_v45 = vadd.f32 %v6259_v52, %v14790_v37 }
 0x4e2   :  { %v14899_v11 = vadd.f32 %v5350_v1, %v13872_v55  ;;  %v10284_v0 = vpop.f32.mrb[3].mxu0  ;;  %v5121_v55 = vrot.slane %v14893_v22, 2 }
 0x4e3   :  { %16409 = vst [vmem:[#allocation41_spill] sm:$0xff] %v14903_v45  ;;  %10540 = vmatmul.mubr.msk.bf16.gmra.mrb[108].mxu1 %vm642_vm3, %v5990_v17  ;;  %v5998_v33 = vor.u32 %v5997_v19, %v5994_v5  ;;  %v14921_v17 = vld [vmem:[%s16184_s0 + $0x138] sm:$0xff]  }
 0x4e4   :  { %10390 = vmatmul.mubr.msk.bf16.gmra.mrb[108].mxu0 %vm642_vm3, %v5120_v62  ;;  %10543 = vmatprep.mubr.msk.bf16.mxu1 %vm11310_vm1, %v16229_v15  ;;  %v5122_v0 = vsel %vm4113_vm6, %v5119_v8, %v5121_v55 }
 0x4e5   :  { %10393 = vmatprep.mubr.msk.bf16.mxu0 %vm11310_vm1, %v16229_v15  ;;  %v5999_v39 = vsel %vm5703_vm7, %v5989_v28, %v5998_v33  ;;  %v6010_v28 = vshrl.u32 %v14837_v51, 16 }
 0x4e6   :  { %v6264_v48 = vpop.f32.mrb[4].mxu1 }
 0x4e7   :  { %v5355_v7 = vpop.f32.mrb[4].mxu0  ;;  %v10437_v62 = vpop.f32.mrb[5].mxu1  ;;  %v14924_v5 = vadd.f32 %v6264_v48, %v14803_v18 }
 0x4e8   :  { %v14915_v37 = vadd.f32 %v5355_v7, %v13885_v16  ;;  %v10287_v1 = vpop.f32.mrb[5].mxu0  ;;  %v6267_v19 = vpop.f32.mrb[6].mxu1  ;;  %v6003_v7 = vrot.slane %v6001_v35, 2  ;;  %v6013_v35 = vshll.u32 %v14837_v51, 16 }
 0x4e9   :  { %v5358_v52 = vpop.f32.mrb[6].mxu0  ;;  %16410 = vst [vmem:[#allocation42_spill] sm:$0xff] %v14924_v5  ;;  %v6006_v1 = vrot.slane %v6004_v56, 3  ;;  %v10438_v62 = vpop.f32.mrb[7].mxu1  ;;  %v14931_v8 = vadd.f32 %v6267_v19, %v14815_v44 }
 0x4ea   :  { %v14927_v36 = vadd.f32 %v5358_v52, %v13893_v49  ;;  %v10288_v16 = vpop.f32.mrb[7].mxu0  ;;  %v5123_v49 = vrot.slane %v14921_v17, 2 }
 0x4eb   :  { %16411 = vst [vmem:[#allocation43_spill] sm:$0xff] %v14931_v8  ;;  %10544 = vmatmul.mubr.msk.bf16.gmra.mrb[112].mxu1 %vm642_vm3, %v5999_v39  ;;  %v6007_v18 = vor.u32 %v6006_v1, %v6003_v7  ;;  %v14949_v39 = vld [vmem:[%s16184_s0 + $0x140] sm:$0xff]  }
 0x4ec   :  { %10394 = vmatmul.mubr.msk.bf16.gmra.mrb[112].mxu0 %vm642_vm3, %v5122_v0  ;;  %10547 = vmatprep.mubr.msk.bf16.mxu1 %vm11310_vm1, %v16229_v15  ;;  %v5124_v16 = vsel %vm4113_vm6, %v5121_v55, %v5123_v49 }
 0x4ed   :  { %10397 = vmatprep.mubr.msk.bf16.mxu0 %vm11310_vm1, %v16229_v15  ;;  %v6008_v62 = vsel %vm5703_vm7, %v5998_v33, %v6007_v18  ;;  %v6019_v33 = vshrl.u32 %v14865_v63, 16 }
 0x4ee   :  { %v6272_v48 = vpop.f32.mrb[8].mxu1 }
 0x4ef   :  { %v5363_v56 = vpop.f32.mrb[8].mxu0  ;;  %v10441_v0 = vpop.f32.mrb[9].mxu1  ;;  %v14952_v7 = vadd.f32 %v6272_v48, %v14831_v13 }
 0x4f0   :  { %v14943_v44 = vadd.f32 %v5363_v56, %v13912_v24  ;;  %v10291_v52 = vpop.f32.mrb[9].mxu0  ;;  %v6275_v1 = vpop.f32.mrb[10].mxu1  ;;  %v6012_v56 = vrot.slane %v6010_v28, 2  ;;  %v6022_v28 = vshll.u32 %v14865_v63, 16 }
 0x4f1   :  { %v5366_v19 = vpop.f32.mrb[10].mxu0  ;;  %16412 = vst [vmem:[#allocation44_spill] sm:$0xff] %v14952_v7  ;;  %v6015_v52 = vrot.slane %v6013_v35, 3  ;;  %v10442_v0 = vpop.f32.mrb[11].mxu1  ;;  %v14959_v55 = vadd.f32 %v6275_v1, %v14843_v29  ;;  %v16414_v29 = vld [vmem:[#allocation46_spill] sm:$0xff] }
 0x4f2   :  { %v14955_v51 = vadd.f32 %v5366_v19, %v13926_v4  ;;  %v10292_v24 = vpop.f32.mrb[11].mxu0  ;;  %v5125_v4 = vrot.slane %v14949_v39, 2  ;;  %v14977_v0 = vld [vmem:[%s16184_s0 + $0x148] sm:$0xff]  }
 0x4f3   :  { %16413 = vst [vmem:[#allocation50_spill] sm:$0xff] %v14959_v55  ;;  %10548 = vmatmul.mubr.msk.bf16.gmra.mrb[116].mxu1 %vm642_vm3, %v6008_v62  ;;  %v6016_v13 = vor.u32 %v6015_v52, %v6012_v56  ;;  %v16416_v52 = vld [vmem:[#allocation47_spill] sm:$0xff] }
 0x4f4   :  { %10398 = vmatmul.mubr.msk.bf16.gmra.mrb[116].mxu0 %vm642_vm3, %v5124_v16  ;;  %10551 = vmatprep.mubr.msk.bf16.mxu1 %vm11310_vm1, %v16229_v15  ;;  %v5126_v62 = vsel %vm4113_vm6, %v5123_v49, %v5125_v4 }
 0x4f5   :  { %10401 = vmatprep.mubr.msk.bf16.mxu0 %vm11310_vm1, %v16229_v15 }
 0x4f6   :  { %v6280_v19 = vpop.f32.mrb[12].mxu1 }
 0x4f7   :  { %v5371_v35 = vpop.f32.mrb[12].mxu0  ;;  %v10445_v1 = vpop.f32.mrb[13].mxu1  ;;  %v14980_v56 = vadd.f32 %v6280_v19, %v14859_v34  ;;  %v5127_v34 = vrot.slane %v14977_v0, 2 }
 0x4f8   :  { %v14971_v48 = vadd.f32 %v5371_v35, %v16414_v29  ;;  %v10295_v16 = vpop.f32.mrb[13].mxu0  ;;  %v6283_v55 = vpop.f32.mrb[14].mxu1  ;;  %v6017_v29 = vsel %vm5703_vm7, %v6007_v18, %v6016_v13  ;;  %v6024_v1 = vrot.slane %v6022_v28, 3  ;;  %v14999_v18 = vld [vmem:[%s16184_s0 + $0x150] sm:$0xf]  ;;  %v16418_v28 = vld [vmem:[#allocation48_spill] sm:$0xff] }
 0x4f9   :  { %v5374_v24 = vpop.f32.mrb[14].mxu0  ;;  %16415 = vst [vmem:[#allocation45_spill] sm:$0xff] %v14980_v56  ;;  %v6021_v16 = vrot.slane %v6019_v33, 2  ;;  %v10446_v7 = vpop.f32.mrb[15].mxu1  ;;  %v14987_v49 = vadd.f32 %v6283_v55, %v14871_v43  ;;  %v4843_v43 = vld [vmem:[%s16184_s0 + $0x154] sm:$0x3] }
 0x4fa   :  { %v14983_v63 = vadd.f32 %v5374_v24, %v16416_v52  ;;  %v10296_v35 = vpop.f32.mrb[15].mxu0  ;;  %v6028_v7 = vshrl.u32 %v14893_v22, 16  ;;  %v6031_v55 = vshll.u32 %v14893_v22, 16  ;;  %v16419_v56 = vld [vmem:[#allocation49_spill] sm:$0xff] }
 0x4fb   :  { %16417 = vst [vmem:[#allocation46_spill] sm:$0xff] %v14987_v49  ;;  %10552 = vmatmul.mubr.msk.bf16.gmra.mrb[120].mxu1 %vm642_vm3, %v6017_v29  ;;  %v6025_v19 = vor.u32 %v6024_v1, %v6021_v16  ;;  %v5128_v16 = vsel %vm4113_vm6, %v5125_v4, %v5127_v34  ;;  %v8621_v1 = vcombine.low %v14999_v18, %v4843_v43 }
 0x4fc   :  { %10402 = vmatmul.mubr.msk.bf16.gmra.mrb[120].mxu0 %vm642_vm3, %v5126_v62  ;;  %10555 = vmatprep.mubr.msk.bf16.mxu1 %vm11310_vm1, %v16229_v15 }
 0x4fd   :  { %10405 = vmatprep.mubr.msk.bf16.mxu0 %vm11310_vm1, %v16229_v15  ;;  %v6026_v45 = vsel %vm5703_vm7, %v6016_v13, %v6025_v19 }
 0x4fe   :  { %v6288_v62 = vpop.f32.mrb[16].mxu1 }
 0x4ff   :  { %v5379_v33 = vpop.f32.mrb[16].mxu0  ;;  %v10449_v35 = vpop.f32.mrb[17].mxu1  ;;  %v15012_v49 = vadd.f32 %v6288_v62, %v14887_v26  ;;  %v5129_v26 = vrot.slane %v8621_v1, 2 }
 0x500   :  { %v15007_v24 = vadd.f32 %v5379_v33, %v16418_v28  ;;  %v10299_v52 = vpop.f32.mrb[17].mxu0  ;;  %v6291_v5 = vpop.f32.mrb[18].mxu1  ;;  %v6030_v33 = vrot.slane %v6028_v7, 2  ;;  %v6033_v28 = vrot.slane %v6031_v55, 3 }
 0x501   :  { %v5382_v29 = vpop.f32.mrb[18].mxu0  ;;  %v10450_v53 = vpop.f32.mrb[19].mxu1  ;;  %v11152_v52 = vld [vmem:[%s16187_s3] sm:$0xff]   ;;  %v15022_v4 = vadd.f32 %v6291_v5, %v14899_v11  ;;  %v16420_v11 = vld [vmem:[#allocation5_spill] sm:$0xff]  ;;  %v5130_v35 = vsel %vm4113_vm6, %v5127_v34, %v5129_v26  ;;  %v6046_v34 = vshrl.u32 %v14949_v39, 16 }
 0x502   :  { %v15015_v8 = vadd.f32 %v5382_v29, %v16419_v56  ;;  %v10300_v22 = vpop.f32.mrb[19].mxu0  ;;  %v6034_v13 = vor.u32 %v6033_v28, %v6030_v33  ;;  %v6037_v53 = vshrl.u32 %v14921_v17, 16  ;;  %v6040_v56 = vshll.u32 %v14921_v17, 16  ;;  %10750 = vmatpush3.bf16.msra.mxu1 %v11152_v52 }
 0x503   :  { %10556 = vmatmul.mubr.msk.bf16.gmra.mrb[124].mxu1 %vm642_vm3, %v6026_v45  ;;  %10751 = vmatprep.subr.bf16.mxu1 %v16229_v15 }
 0x504   :  { %10406 = vmatmul.mubr.msk.bf16.gmra.mrb[124].mxu0 %vm642_vm3, %v5128_v16  ;;  %10559 = vmatprep.mubr.msk.bf16.mxu1 %vm11310_vm1, %v16229_v15  ;;  %v16421_v16 = vld [vmem:[#allocation6_spill] sm:$0xff]  ;;  %v6035_v33 = vsel %vm5703_vm7, %v6025_v19, %v6034_v13  ;;  %v6039_v28 = vrot.slane %v6037_v53, 2  ;;  %v6042_v52 = vrot.slane %v6040_v56, 3  ;;  %v6049_v19 = vshll.u32 %v14949_v39, 16 }
 0x505   :  { %10409 = vmatprep.mubr.msk.bf16.mxu0 %vm11310_vm1, %v16229_v15 }
 0x506   :  { %v6296_v45 = vpop.f32.mrb[20].mxu1 }
 0x507   :  { %v5387_v43 = vpop.f32.mrb[20].mxu0  ;;  %v10453_v55 = vpop.f32.mrb[21].mxu1  ;;  %v15038_v29 = vadd.f32 %v6296_v45, %v14915_v37  ;;  %v6043_v37 = vor.u32 %v6042_v52, %v6039_v28  ;;  %v6048_v28 = vrot.slane %v6046_v34, 2  ;;  %v6051_v52 = vrot.slane %v6049_v19, 3 }
 0x508   :  { %v15034_v5 = vadd.f32 %v5387_v43, %v16420_v11  ;;  %v10303_v7 = vpop.f32.mrb[21].mxu0  ;;  %v6299_v17 = vpop.f32.mrb[22].mxu1  ;;  %v6058_v34 = vshll.u32 %v14977_v0, 16 }
 0x509   :  { %v5390_v62 = vpop.f32.mrb[22].mxu0  ;;  %v10454_v43 = vpop.f32.mrb[23].mxu1  ;;  %v15045_v11 = vadd.f32 %v6299_v17, %v14927_v36  ;;  %v6639_v36 = vld [vmem:[%s16184_s0 + $0x10] sm:$0x8] }
 0x50a   :  { %v15041_v1 = vadd.f32 %v5390_v62, %v16421_v16  ;;  %v10304_v22 = vpop.f32.mrb[23].mxu0 }
 0x50b   :  { %10560 = vmatmul.mubr.msk.bf16.gmra.mrb[128].mxu1 %vm642_vm3, %v6035_v33 }
 0x50c   :  { %10410 = vmatmul.mubr.msk.bf16.gmra.mrb[128].mxu0 %vm642_vm3, %v5130_v35  ;;  %10563 = vmatprep.mubr.msk.bf16.mxu1 %vm11310_vm1, %v16229_v15  ;;  %v11243_v35 = vld [vmem:[%s16184_s0 + $0x14] sm:$0xf] }
 0x50d   :  { %10413 = vmatprep.mubr.msk.bf16.mxu0 %vm11310_vm1, %v16229_v15  ;;  %v8705_v16 = vcombine.low %v6639_v36, %v11243_v35 }
 0x50e   :  { %v6304_v45 = vpop.f32.mrb[24].mxu1 }
 0x50f   :  { %v5395_v53 = vpop.f32.mrb[24].mxu0  ;;  %v10457_v55 = vpop.f32.mrb[25].mxu1  ;;  %v15065_v17 = vadd.f32 %v6304_v45, %v14943_v44  ;;  %v6645_v44 = vrot.slane %v8705_v16, 3  ;;  %v16422_v45 = vld [vmem:[#allocation7_spill] sm:$0xff] }
 0x510   :  { %v15059_v56 = vadd.f32 %v5395_v53, %v14025_v2  ;;  %v10307_v7 = vpop.f32.mrb[25].mxu0  ;;  %v6307_v22 = vpop.f32.mrb[26].mxu1  ;;  %v6044_v2 = vsel %vm5703_vm7, %v6034_v13, %v6043_v37  ;;  %v5698_v13 = vld [vmem:[%s16184_s0 + $0x154] sm:$0x7] }
 0x511   :  { %v5398_v62 = vpop.f32.mrb[26].mxu0  ;;  %v10458_v43 = vpop.f32.mrb[27].mxu1  ;;  %v15072_v53 = vadd.f32 %v6307_v22, %v14955_v51  ;;  %v6052_v51 = vor.u32 %v6051_v52, %v6048_v28  ;;  %v15092_v35 = vcombine.low %v14999_v18, %v5698_v13  ;;  %v16424_v28 = vld [vmem:[#allocation8_spill] sm:$0xff] }
 0x512   :  { %v15068_v39 = vadd.f32 %v5398_v62, %v14037_v61  ;;  %v10308_v33 = vpop.f32.mrb[27].mxu0  ;;  %v11244_v61 = vld [vmem:[%s16184_s0 + $0x18] sm:$0xff]  }
 0x513   :  { %10564 = vmatmul.mubr.msk.bf16.gmra.mrb[132].mxu1 %vm642_vm3, %v6044_v2  ;;  %v6646_v36 = vrot.slane %v11244_v61, 3  ;;  %16423 = vst [vmem:[#allocation47_spill] sm:$0xff] %v15092_v35  ;;  %v6053_v61 = vsel %vm5703_vm7, %v6043_v37, %v6052_v51  ;;  %v6064_v13 = vshrl.u32 %v15092_v35, 16 }
 0x514   :  { %10414 = vmatmul.mubr.msk.bf16.gmra.mrb[132].mxu0 %vm642_vm3, %v5129_v26  ;;  %10567 = vmatprep.mubr.msk.bf16.mxu1 %vm11310_vm1, %v16229_v15  ;;  %v6055_v26 = vshrl.u32 %v14977_v0, 16 }
 0x515   :  { %10585 = vmatprep.mubr.msk.bf16.mxu0 %vm11310_vm1, %v16229_v15  ;;  %v6647_v33 = vsel %vm6644_vm8, %v6645_v44, %v6646_v36 }
 0x516   :  { %v6312_v55 = vpop.f32.mrb[28].mxu1 }
 0x517   :  { %v5403_v19 = vpop.f32.mrb[28].mxu0  ;;  %v10461_v16 = vpop.f32.mrb[29].mxu1  ;;  %v15096_v2 = vadd.f32 %v6312_v55, %v14971_v48  ;;  %v11245_v48 = vld [vmem:[%s16184_s0 + $0x20] sm:$0xff]  }
 0x518   :  { %v15089_v7 = vadd.f32 %v5403_v19, %v16422_v45  ;;  %v10311_v62 = vpop.f32.mrb[29].mxu0  ;;  %v6315_v0 = vpop.f32.mrb[30].mxu1  ;;  %v6057_v19 = vrot.slane %v6055_v26, 2  ;;  %v6060_v45 = vrot.slane %v6058_v34, 3  ;;  %v6648_v44 = vrot.slane %v11245_v48, 3  ;;  %v16426_v34 = vld [vmem:[#allocation9_spill] sm:$0xff] }
 0x519   :  { %v5406_v22 = vpop.f32.mrb[30].mxu0  ;;  %v10462_v62 = vpop.f32.mrb[31].mxu1  ;;  %v15103_v18 = vadd.f32 %v6315_v0, %v14983_v63  ;;  %v6067_v63 = vshll.u32 %v15092_v35, 16  ;;  %v6066_v35 = vrot.slane %v6064_v13, 2 }
 0x51a   :  { %v15099_v52 = vadd.f32 %v5406_v22, %v16424_v28  ;;  %v10312_v43 = vpop.f32.mrb[31].mxu0  ;;  %v6061_v37 = vor.u32 %v6060_v45, %v6057_v19  ;;  %v6649_v0 = vsel %vm6644_vm8, %v6646_v36, %v6648_v44 }
 0x51b   :  { %16425 = vst [vmem:[#allocation48_spill] sm:$0xff] %v15103_v18  ;;  %10568 = vmatmul.mubr.msk.bf16.gmra.mrb[136].mxu1 %vm642_vm3, %v6053_v61  ;;  %v16427_v61 = vld [vmem:[#allocation10_spill] sm:$0xff]  ;;  %v6069_v18 = vrot.slane %v6067_v63, 3  ;;  %v16428_v63 = vld [vmem:[#allocation11_spill] sm:$0xff] }
 0x51c   :  { %10586 = vmatmul.mubr.msk.bf16.vlgmr.msra.gmra.mrb[136].mxu0 %vm642_vm3, %v6647_v33  ;;  %10571 = vmatprep.mubr.msk.bf16.mxu1 %vm11310_vm1, %v16229_v15  ;;  %v6062_v48 = vsel %vm5703_vm7, %v6052_v51, %v6061_v37 }
 0x51d   :  { %10589 = vmatprep.mubr.msk.bf16.mxu0 %vm11310_vm1, %v16229_v15  ;;  %v6070_v51 = vor.u32 %v6069_v18, %v6066_v35 }
 0x51e   :  { %v6320_v16 = vpop.f32.mrb[32].mxu1 }
 0x51f   :  { %v5411_v26 = vpop.f32.mrb[32].mxu0  ;;  %v10465_v33 = vpop.f32.mrb[33].mxu1  ;;  %v15121_v43 = vadd.f32 %v6320_v16, %v15007_v24  ;;  %v11246_v24 = vld [vmem:[%s16184_s0 + $0x28] sm:$0xff]   ;;  %v6071_v35 = vsel %vm5703_vm7, %v6061_v37, %v6070_v51 }
 0x520   :  { %v15117_v55 = vadd.f32 %v5411_v26, %v16426_v34  ;;  %v10315_v22 = vpop.f32.mrb[33].mxu0  ;;  %v6323_v19 = vpop.f32.mrb[34].mxu1  ;;  %v6650_v36 = vrot.slane %v11246_v24, 3 }
 0x521   :  { %v5414_v28 = vpop.f32.mrb[34].mxu0  ;;  %v10466_v26 = vpop.f32.mrb[35].mxu1  ;;  %v15128_v34 = vadd.f32 %v6323_v19, %v15015_v8  ;;  %v16429_v19 = vld [vmem:[#allocation12_spill] sm:$0xff] }
 0x522   :  { %v15124_v62 = vadd.f32 %v5414_v28, %v16427_v61  ;;  %v10316_v45 = vpop.f32.mrb[35].mxu0 }
 0x523   :  { %10572 = vmatmul.mubr.msk.bf16.gmra.mrb[140].mxu1 %vm642_vm3, %v6062_v48 }
 0x524   :  { %10590 = vmatmul.mubr.msk.bf16.gmra.mrb[140].mxu0 %vm642_vm3, %v6649_v0  ;;  %10575 = vmatprep.mubr.msk.bf16.mxu1 %vm11310_vm1, %v16229_v15  ;;  %v6651_v0 = vsel %vm6644_vm8, %v6648_v44, %v6650_v36  ;;  %v11153_v44 = vld [vmem:[%s16187_s3 + $0x8] sm:$0xff]  }
 0x525   :  { %10593 = vmatprep.mubr.msk.bf16.mxu0 %vm11310_vm1, %v16229_v15  ;;  %10752 = vmatpush3.bf16.msra.mxu1 %v11153_v44 }
 0x526   :  { %v6328_v16 = vpop.f32.mrb[36].mxu1  ;;  %10753 = vmatprep.subr.bf16.mxu1 %v16229_v15 }
 0x527   :  { %v5419_v13 = vpop.f32.mrb[36].mxu0  ;;  %v10469_v33 = vpop.f32.mrb[37].mxu1  ;;  %v15144_v61 = vadd.f32 %v6328_v16, %v15034_v5  ;;  %v11247_v5 = vld [vmem:[%s16184_s0 + $0x30] sm:$0xff]  }
 0x528   :  { %v15140_v8 = vadd.f32 %v5419_v13, %v16428_v63  ;;  %v10319_v22 = vpop.f32.mrb[37].mxu0  ;;  %v6331_v48 = vpop.f32.mrb[38].mxu1  ;;  %v6652_v37 = vrot.slane %v11247_v5, 3  ;;  %v16430_v13 = vld [vmem:[#allocation13_spill] sm:$0xff] }
 0x529   :  { %v5422_v28 = vpop.f32.mrb[38].mxu0  ;;  %v10470_v18 = vpop.f32.mrb[39].mxu1  ;;  %v15151_v24 = vadd.f32 %v6331_v48, %v15041_v1  ;;  %v16431_v48 = vld [vmem:[#allocation14_spill] sm:$0xff] }
 0x52a   :  { %v15147_v45 = vadd.f32 %v5422_v28, %v16429_v19  ;;  %v10320_v26 = vpop.f32.mrb[39].mxu0 }
 0x52b   :  { %10576 = vmatmul.mubr.msk.bf16.gmra.mrb[144].mxu1 %vm642_vm3, %v6071_v35 }
 0x52c   :  { %10594 = vmatmul.mubr.msk.bf16.gmra.mrb[144].mxu0 %vm642_vm3, %v6651_v0  ;;  %10579 = vmatprep.mubr.msk.bf16.mxu1 %vm11310_vm1, %v16229_v15  ;;  %v6653_v0 = vsel %vm6644_vm8, %v6650_v36, %v6652_v37 }
 0x52d   :  { %10597 = vmatprep.mubr.msk.bf16.mxu0 %vm11310_vm1, %v16229_v15 }
 0x52e   :  { %v6336_v16 = vpop.f32.mrb[40].mxu1 }
 0x52f   :  { %v5427_v1 = vpop.f32.mrb[40].mxu0  ;;  %v10473_v33 = vpop.f32.mrb[41].mxu1  ;;  %v15171_v19 = vadd.f32 %v6336_v16, %v15059_v56  ;;  %v11248_v56 = vld [vmem:[%s16184_s0 + $0x38] sm:$0xff]  }
 0x530   :  { %v15167_v63 = vadd.f32 %v5427_v1, %v16430_v13  ;;  %v10323_v22 = vpop.f32.mrb[41].mxu0  ;;  %v6339_v35 = vpop.f32.mrb[42].mxu1  ;;  %v6654_v36 = vrot.slane %v11248_v56, 3  ;;  %v16433_v13 = vld [vmem:[#allocation15_spill] sm:$0xff] }
 0x531   :  { %v5430_v28 = vpop.f32.mrb[42].mxu0  ;;  %v10474_v44 = vpop.f32.mrb[43].mxu1  ;;  %v15177_v5 = vadd.f32 %v6339_v35, %v15068_v39 }
 0x532   :  { %v15174_v26 = vadd.f32 %v5430_v28, %v16431_v48  ;;  %v10324_v18 = vpop.f32.mrb[43].mxu0 }
 0x533   :  { %16432 = vst [vmem:[#allocation49_spill] sm:$0xff] %v15177_v5  ;;  %10580 = vmatmul.mubr.msk.bf16.gmra.mrb[148].mxu1 %vm642_vm3, %v6070_v51  ;;  %v6655_v51 = vsel %vm6644_vm8, %v6652_v37, %v6654_v36  ;;  %v16435_v18 = vld [vmem:[#allocation16_spill] sm:$0xff] }
 0x534   :  { %10598 = vmatmul.mubr.msk.bf16.gmra.mrb[148].mxu0 %vm642_vm3, %v6653_v0  ;;  %10765 = vmatprep.mubr.msk.bf16.mxu1 %vm11310_vm1, %v16229_v15  ;;  %v11249_v37 = vld [vmem:[%s16184_s0 + $0x40] sm:$0xff]  }
 0x535   :  { %10601 = vmatprep.mubr.msk.bf16.mxu0 %vm11310_vm1, %v16229_v15 }
 0x536   :  { %v6344_v39 = vpop.f32.mrb[44].mxu1 }
 0x537   :  { %v5435_v1 = vpop.f32.mrb[44].mxu0  ;;  %v10477_v33 = vpop.f32.mrb[45].mxu1  ;;  %v15193_v0 = vadd.f32 %v6344_v39, %v15089_v7  ;;  %v6656_v7 = vrot.slane %v11249_v37, 3 }
 0x538   :  { %v15189_v16 = vadd.f32 %v5435_v1, %v16433_v13  ;;  %v10327_v22 = vpop.f32.mrb[45].mxu0  ;;  %v6347_v48 = vpop.f32.mrb[46].mxu1  ;;  %v16437_v13 = vld [vmem:[#allocation17_spill] sm:$0xff] }
 0x539   :  { %v5438_v28 = vpop.f32.mrb[46].mxu0  ;;  %16434 = vst [vmem:[#allocation5_spill] sm:$0xff] %v15193_v0  ;;  %v10478_v56 = vpop.f32.mrb[47].mxu1  ;;  %v15199_v5 = vadd.f32 %v6347_v48, %v15099_v52  ;;  %v6657_v52 = vsel %vm6644_vm8, %v6654_v36, %v6656_v7  ;;  %v16439_v48 = vld [vmem:[#allocation18_spill] sm:$0xff]  ;;  %v11250_v36 = vld [vmem:[%s16184_s0 + $0x48] sm:$0xff]  }
 0x53a   :  { %v10328_v35 = vpop.f32.mrb[47].mxu0  ;;  %v15196_v44 = vadd.f32 %v5438_v28, %v16435_v18 }
 0x53b   :  { %16436 = vst [vmem:[#allocation6_spill] sm:$0xff] %v15199_v5 }
 0x53c   :  { %10602 = vmatmul.mubr.msk.bf16.gmra.mrb[152].mxu0 %vm642_vm3, %v6655_v51 }
 0x53d   :  { %10605 = vmatprep.mubr.msk.bf16.mxu0 %vm11310_vm1, %v16229_v15 }
 0x53e   :  { %v6352_v22 = vpop.f32.mrb[48].mxu1 }
 0x53f   :  { %v5443_v1 = vpop.f32.mrb[48].mxu0  ;;  %v10481_v28 = vpop.f32.mrb[49].mxu1  ;;  %v15212_v51 = vadd.f32 %v6352_v22, %v15117_v55  ;;  %v6658_v55 = vrot.slane %v11250_v36, 3 }
 0x540   :  { %v15208_v39 = vadd.f32 %v5443_v1, %v16437_v13  ;;  %v10331_v33 = vpop.f32.mrb[49].mxu0  ;;  %v6355_v56 = vpop.f32.mrb[50].mxu1  ;;  %v16441_v13 = vld [vmem:[#allocation19_spill] sm:$0xff] }
 0x541   :  { %v5446_v35 = vpop.f32.mrb[50].mxu0  ;;  %16438 = vst [vmem:[#allocation7_spill] sm:$0xff] %v15212_v51  ;;  %v10482_v0 = vpop.f32.mrb[51].mxu1  ;;  %v15218_v37 = vadd.f32 %v6355_v56, %v15124_v62  ;;  %v6659_v62 = vsel %vm6644_vm8, %v6656_v7, %v6658_v55  ;;  %v11251_v7 = vld [vmem:[%s16184_s0 + $0x50] sm:$0xff]  }
 0x542   :  { %v15215_v18 = vadd.f32 %v5446_v35, %v16439_v48  ;;  %v10332_v5 = vpop.f32.mrb[51].mxu0 }
 0x543   :  { %16440 = vst [vmem:[#allocation8_spill] sm:$0xff] %v15218_v37 }
 0x544   :  { %10606 = vmatmul.mubr.msk.bf16.gmra.mrb[156].mxu0 %vm642_vm3, %v6657_v52  ;;  %v16443_v52 = vld [vmem:[#allocation20_spill] sm:$0xff] }
 0x545   :  { %10609 = vmatprep.mubr.msk.bf16.mxu0 %vm11310_vm1, %v16229_v15 }
 0x546   :  { %v6360_v33 = vpop.f32.mrb[52].mxu1 }
 0x547   :  { %v5451_v1 = vpop.f32.mrb[52].mxu0  ;;  %v10485_v0 = vpop.f32.mrb[53].mxu1  ;;  %v15231_v35 = vadd.f32 %v6360_v33, %v15140_v8  ;;  %v6660_v8 = vrot.slane %v11251_v7, 3 }
 0x548   :  { %v15227_v22 = vadd.f32 %v5451_v1, %v16441_v13  ;;  %v10335_v5 = vpop.f32.mrb[53].mxu0  ;;  %v6363_v56 = vpop.f32.mrb[54].mxu1  ;;  %v16445_v13 = vld [vmem:[#allocation21_spill] sm:$0xff] }
 0x549   :  { %v5454_v28 = vpop.f32.mrb[54].mxu0  ;;  %16442 = vst [vmem:[#allocation9_spill] sm:$0xff] %v15231_v35  ;;  %v10486_v51 = vpop.f32.mrb[55].mxu1  ;;  %v15237_v36 = vadd.f32 %v6363_v56, %v15147_v45  ;;  %v6661_v45 = vsel %vm6644_vm8, %v6658_v55, %v6660_v8 }
 0x54a   :  { %v15234_v48 = vadd.f32 %v5454_v28, %v16443_v52  ;;  %v10336_v37 = vpop.f32.mrb[55].mxu0 }
 0x54b   :  { %16444 = vst [vmem:[#allocation10_spill] sm:$0xff] %v15237_v36 }
 0x54c   :  { %10610 = vmatmul.mubr.msk.bf16.gmra.mrb[160].mxu0 %vm642_vm3, %v6659_v62  ;;  %v16447_v62 = vld [vmem:[#allocation22_spill] sm:$0xff] }
 0x54d   :  { %10613 = vmatprep.mubr.msk.bf16.mxu0 %vm11310_vm1, %v16229_v15 }
 0x54e   :  { %v6368_v5 = vpop.f32.mrb[56].mxu1 }
 0x54f   :  { %v5459_v1 = vpop.f32.mrb[56].mxu0  ;;  %v10489_v51 = vpop.f32.mrb[57].mxu1  ;;  %v15250_v28 = vadd.f32 %v6368_v5, %v15167_v63  ;;  %v11252_v63 = vld [vmem:[%s16184_s0 + $0x58] sm:$0xff]  }
 0x550   :  { %v15246_v33 = vadd.f32 %v5459_v1, %v16445_v13  ;;  %v10339_v37 = vpop.f32.mrb[57].mxu0  ;;  %v6371_v56 = vpop.f32.mrb[58].mxu1  ;;  %v11154_v1 = vld [vmem:[%s16187_s3 + $0x10] sm:$0xff]   ;;  %v6662_v55 = vrot.slane %v11252_v63, 3 }
 0x551   :  { %v5462_v0 = vpop.f32.mrb[58].mxu0  ;;  %16446 = vst [vmem:[#allocation11_spill] sm:$0xff] %v15250_v28  ;;  %v10490_v35 = vpop.f32.mrb[59].mxu1  ;;  %v15256_v7 = vadd.f32 %v6371_v56, %v15174_v26  ;;  %10754 = vmatpush3.bf16.msra.mxu1 %v11154_v1  ;;  %v16449_v26 = vld [vmem:[#allocation23_spill] sm:$0xff] }
 0x552   :  { %v15253_v52 = vadd.f32 %v5462_v0, %v16447_v62  ;;  %v10340_v36 = vpop.f32.mrb[59].mxu0  ;;  %10755 = vmatprep.subr.bf16.mxu1 %v16229_v15  ;;  %v6663_v0 = vsel %vm6644_vm8, %v6660_v8, %v6662_v55  ;;  %v16451_v62 = vld [vmem:[#allocation24_spill] sm:$0xff] }
 0x553   :  { %16448 = vst [vmem:[#allocation12_spill] sm:$0xff] %v15256_v7  ;;  %v11253_v8 = vld [vmem:[%s16184_s0 + $0x60] sm:$0xff]  }
 0x554   :  { %10614 = vmatmul.mubr.msk.bf16.gmra.mrb[164].mxu0 %vm642_vm3, %v6661_v45 }
 0x555   :  { %10617 = vmatprep.mubr.msk.bf16.mxu0 %vm11310_vm1, %v16229_v15 }
 0x556   :  { %v6376_v13 = vpop.f32.mrb[60].mxu1 }
 0x557   :  { %v5467_v36 = vpop.f32.mrb[60].mxu0  ;;  %v10493_v37 = vpop.f32.mrb[61].mxu1  ;;  %v15273_v45 = vadd.f32 %v6376_v13, %v15189_v16  ;;  %v6664_v16 = vrot.slane %v11253_v8, 3 }
 0x558   :  { %v15269_v35 = vadd.f32 %v5467_v36, %v16449_v26  ;;  %v10343_v5 = vpop.f32.mrb[61].mxu0  ;;  %v6379_v63 = vpop.f32.mrb[62].mxu1  ;;  %v16453_v26 = vld [vmem:[#allocation25_spill] sm:$0xff] }
 0x559   :  { %v5470_v51 = vpop.f32.mrb[62].mxu0  ;;  %16450 = vst [vmem:[#allocation13_spill] sm:$0xff] %v15273_v45  ;;  %v15279_v7 = vadd.f32 %v6379_v63, %v15196_v44  ;;  %v10494_v28 = vpop.f32.mrb[63].mxu1 }
 0x55a   :  { %v15276_v56 = vadd.f32 %v5470_v51, %v16451_v62  ;;  %v10344_v1 = vpop.f32.mrb[63].mxu0  ;;  %v16455_v62 = vld [vmem:[#allocation26_spill] sm:$0xff] }
 0x55b   :  { %16452 = vst [vmem:[#allocation14_spill] sm:$0xff] %v15279_v7 }
 0x55c   :  { %10618 = vmatmul.mubr.msk.bf16.gmra.mrb[168].mxu0 %vm642_vm3, %v6663_v0  ;;  %v6665_v0 = vsel %vm6644_vm8, %v6662_v55, %v6664_v16 }
 0x55d   :  { %10621 = vmatprep.mubr.msk.bf16.mxu0 %vm11310_vm1, %v16229_v15 }
 0x55e   :  { %v6384_v5 = vpop.f32.mrb[64].mxu1 }
 0x55f   :  { %v5475_v36 = vpop.f32.mrb[64].mxu0  ;;  %v15291_v44 = vadd.f32 %v6384_v5, %v15208_v39  ;;  %v10497_v28 = vpop.f32.mrb[65].mxu1  ;;  %v11254_v39 = vld [vmem:[%s16184_s0 + $0x68] sm:$0xff]  }
 0x560   :  { %v15288_v13 = vadd.f32 %v5475_v36, %v16453_v26  ;;  %v10347_v37 = vpop.f32.mrb[65].mxu0  ;;  %v6387_v1 = vpop.f32.mrb[66].mxu1  ;;  %v6666_v36 = vrot.slane %v11254_v39, 3  ;;  %v11155_v26 = vld [vmem:[%s16187_s3 + $0x18] sm:$0xff]  }
 0x561   :  { %16454 = vst [vmem:[#allocation15_spill] sm:$0xff] %v15291_v44  ;;  %v5478_v51 = vpop.f32.mrb[66].mxu0  ;;  %v15298_v8 = vadd.f32 %v6387_v1, %v15215_v18  ;;  %v10498_v45 = vpop.f32.mrb[67].mxu1  ;;  %10756 = vmatpush3.bf16.msra.mxu1 %v11155_v26  ;;  %v11157_v26 = vld [vmem:[%s16187_s3 + $0x28] sm:$0xff]  }
 0x562   :  { %v15295_v63 = vadd.f32 %v5478_v51, %v16455_v62  ;;  %v10348_v7 = vpop.f32.mrb[67].mxu0  ;;  %v16459_v62 = vld [vmem:[#allocation28_spill] sm:$0xff]  ;;  %10757 = vmatprep.subr.bf16.mxu1 %v16229_v15 }
 0x563   :  { %16456 = vst [vmem:[#allocation16_spill] sm:$0xff] %v15298_v8  ;;  %v16457_v7 = vld [vmem:[#allocation27_spill] sm:$0xff] }
 0x564   :  { %10622 = vmatmul.mubr.msk.bf16.gmra.mrb[172].mxu0 %vm642_vm3, %v6665_v0  ;;  %v6667_v0 = vsel %vm6644_vm8, %v6664_v16, %v6666_v36  ;;  %v11255_v16 = vld [vmem:[%s16184_s0 + $0x70] sm:$0xff]  }
 0x565   :  { %10625 = vmatprep.mubr.msk.bf16.mxu0 %vm11310_vm1, %v16229_v15 }
 0x566   :  { %v6392_v18 = vpop.f32.mrb[68].mxu1 }
 0x567   :  { %v5483_v55 = vpop.f32.mrb[68].mxu0  ;;  %v15313_v37 = vadd.f32 %v6392_v18, %v15227_v22  ;;  %v10501_v28 = vpop.f32.mrb[69].mxu1  ;;  %v11156_v22 = vld [vmem:[%s16187_s3 + $0x20] sm:$0xff]   ;;  %v16461_v18 = vld [vmem:[#allocation29_spill] sm:$0xff] }
 0x568   :  { %v15310_v5 = vadd.f32 %v5483_v55, %v16457_v7  ;;  %v10351_v45 = vpop.f32.mrb[69].mxu0  ;;  %v6395_v39 = vpop.f32.mrb[70].mxu1  ;;  %10758 = vmatpush3.bf16.msra.mxu1 %v11156_v22  ;;  %v16463_v22 = vld [vmem:[#allocation30_spill] sm:$0xff] }
 0x569   :  { %16458 = vst [vmem:[#allocation17_spill] sm:$0xff] %v15313_v37  ;;  %v5486_v51 = vpop.f32.mrb[70].mxu0  ;;  %v15321_v55 = vadd.f32 %v6395_v39, %v15234_v48  ;;  %v10502_v7 = vpop.f32.mrb[71].mxu1  ;;  %10759 = vmatprep.subr.bf16.mxu1 %v16229_v15 }
 0x56a   :  { %v15317_v1 = vadd.f32 %v5486_v51, %v16459_v62  ;;  %v10352_v8 = vpop.f32.mrb[71].mxu0 }
 0x56b   :  { %16460 = vst [vmem:[#allocation18_spill] sm:$0xff] %v15321_v55  ;;  %v6668_v8 = vrot.slane %v11255_v16, 3 }
 0x56c   :  { %10626 = vmatmul.mubr.msk.bf16.gmra.mrb[176].mxu0 %vm642_vm3, %v6667_v0  ;;  %10760 = vmatpush3.bf16.msra.mxu1 %v11157_v26  ;;  %v16465_v26 = vld [vmem:[#allocation31_spill] sm:$0xff] }
 0x56d   :  { %10629 = vmatprep.mubr.msk.bf16.mxu0 %vm11310_vm1, %v16229_v15  ;;  %v6669_v7 = vsel %vm6644_vm8, %v6666_v36, %v6668_v8  ;;  %10761 = vmatprep.subr.bf16.mxu1 %v16229_v15  ;;  %v11256_v36 = vld [vmem:[%s16184_s0 + $0x78] sm:$0xff]  }
 0x56e   :  { %v6400_v28 = vpop.f32.mrb[72].mxu1 }
 0x56f   :  { %v5491_v48 = vpop.f32.mrb[72].mxu0  ;;  %v15340_v0 = vadd.f32 %v6400_v28, %v15246_v33  ;;  %v10505_v62 = vpop.f32.mrb[73].mxu1  ;;  %v11158_v33 = vld [vmem:[%s16187_s3 + $0x30] sm:$0xff]  }
 0x570   :  { %v15337_v45 = vadd.f32 %v5491_v48, %v16461_v18  ;;  %v10355_v51 = vpop.f32.mrb[73].mxu0  ;;  %v6403_v55 = vpop.f32.mrb[74].mxu1  ;;  %10762 = vmatpush3.bf16.msra.mxu1 %v11158_v33  ;;  %v16466_v33 = vld [vmem:[#allocation32_spill] sm:$0xff] }
 0x571   :  { %16462 = vst [vmem:[#allocation19_spill] sm:$0xff] %v15340_v0  ;;  %v5494_v39 = vpop.f32.mrb[74].mxu0  ;;  %v15348_v48 = vadd.f32 %v6403_v55, %v15253_v52  ;;  %v10506_v18 = vpop.f32.mrb[75].mxu1  ;;  %10763 = vmatprep.subr.bf16.mxu1 %v16229_v15  ;;  %v11159_v55 = vld [vmem:[%s16187_s3 + $0x38] sm:$0xff]  }
 0x572   :  { %v15344_v16 = vadd.f32 %v5494_v39, %v16463_v22  ;;  %v10356_v37 = vpop.f32.mrb[75].mxu0 }
 0x573   :  { %16464 = vst [vmem:[#allocation20_spill] sm:$0xff] %v15348_v48  ;;  %v6670_v37 = vrot.slane %v11256_v36, 3 }
 0x574   :  { %10630 = vmatmul.mubr.msk.bf16.gmra.mrb[180].mxu0 %vm642_vm3, %v6669_v7  ;;  %10764 = vmatpush3.bf16.msra.mxu1 %v11159_v55 }
 0x575   :  { %10633 = vmatprep.mubr.msk.bf16.mxu0 %vm11310_vm1, %v16229_v15  ;;  %v6671_v18 = vsel %vm6644_vm8, %v6668_v8, %v6670_v37 }
 0x576   :  { %v6408_v51 = vpop.f32.mrb[76].mxu1 }
 0x577   :  { %v5499_v52 = vpop.f32.mrb[76].mxu0  ;;  %v15367_v39 = vadd.f32 %v6408_v51, %v15269_v35  ;;  %v10509_v7 = vpop.f32.mrb[77].mxu1  ;;  %v11257_v35 = vld [vmem:[%s16184_s0 + $0x80] sm:$0xff]  }
 0x578   :  { %v15364_v28 = vadd.f32 %v5499_v52, %v16465_v26  ;;  %v10359_v62 = vpop.f32.mrb[77].mxu0  ;;  %v6411_v48 = vpop.f32.mrb[78].mxu1  ;;  %v6672_v8 = vrot.slane %v11257_v35, 3 }
 0x579   :  { %v5502_v22 = vpop.f32.mrb[78].mxu0  ;;  %v15374_v44 = vadd.f32 %v6411_v48, %v15276_v56  ;;  %v10510_v52 = vpop.f32.mrb[79].mxu1 }
 0x57a   :  { %v15371_v36 = vadd.f32 %v5502_v22, %v16466_v33  ;;  %v10360_v0 = vpop.f32.mrb[79].mxu0  ;;  %v6673_v7 = vsel %vm6644_vm8, %v6670_v37, %v6672_v8 }
 0x57c   :  { %10634 = vmatmul.mubr.msk.bf16.gmra.mrb[184].mxu0 %vm642_vm3, %v6671_v18 }
 0x57d   :  { %10637 = vmatprep.mubr.msk.bf16.mxu0 %vm11310_vm1, %v16229_v15 }
 0x57e   :  { %v6416_v51 = vpop.f32.mrb[80].mxu1 }
 0x57f   :  { %v5507_v55 = vpop.f32.mrb[80].mxu0  ;;  %v15386_v56 = vadd.f32 %v6416_v51, %v15288_v13  ;;  %v10513_v48 = vpop.f32.mrb[81].mxu1 }
 0x580   :  { %v15383_v26 = vadd.f32 %v5507_v55, %v14426_v30  ;;  %v10363_v0 = vpop.f32.mrb[81].mxu0  ;;  %v6419_v18 = vpop.f32.mrb[82].mxu1  ;;  %v11258_v30 = vld [vmem:[%s16184_s0 + $0x88] sm:$0xff]  }
 0x581   :  { %v5510_v62 = vpop.f32.mrb[82].mxu0  ;;  %v15393_v52 = vadd.f32 %v6419_v18, %v15295_v63  ;;  %v10514_v35 = vpop.f32.mrb[83].mxu1  ;;  %v6674_v13 = vrot.slane %v11258_v30, 3 }
 0x582   :  { %v15390_v22 = vadd.f32 %v5510_v62, %v14433_v60  ;;  %v10364_v33 = vpop.f32.mrb[83].mxu0 }
 0x583   :  { %v6675_v62 = vsel %vm6644_vm8, %v6672_v8, %v6674_v13 }
 0x584   :  { %10638 = vmatmul.mubr.msk.bf16.gmra.mrb[188].mxu0 %vm642_vm3, %v6673_v7 }
 0x585   :  { %10641 = vmatprep.mubr.msk.bf16.mxu0 %vm11310_vm1, %v16229_v15 }
 0x586   :  { %v6424_v55 = vpop.f32.mrb[84].mxu1 }
 0x587   :  { %v5515_v37 = vpop.f32.mrb[84].mxu0  ;;  %v15405_v63 = vadd.f32 %v6424_v55, %v15310_v5  ;;  %v10517_v0 = vpop.f32.mrb[85].mxu1 }
 0x588   :  { %v15402_v60 = vadd.f32 %v5515_v37, %v14454_v31  ;;  %v10367_v51 = vpop.f32.mrb[85].mxu0  ;;  %v6427_v18 = vpop.f32.mrb[86].mxu1  ;;  %v11259_v31 = vld [vmem:[%s16184_s0 + $0x90] sm:$0xff]  }
 0x589   :  { %v5518_v48 = vpop.f32.mrb[86].mxu0  ;;  %v15412_v35 = vadd.f32 %v6427_v18, %v15317_v1  ;;  %v10518_v30 = vpop.f32.mrb[87].mxu1  ;;  %v6676_v5 = vrot.slane %v11259_v31, 3 }
 0x58a   :  { %v15409_v7 = vadd.f32 %v5518_v48, %v14461_v58  ;;  %v10368_v33 = vpop.f32.mrb[87].mxu0 }
 0x58b   :  { %v6677_v48 = vsel %vm6644_vm8, %v6674_v13, %v6676_v5 }
 0x58c   :  { %10642 = vmatmul.mubr.msk.bf16.gmra.mrb[192].mxu0 %vm642_vm3, %v6675_v62 }
 0x58d   :  { %10645 = vmatprep.mubr.msk.bf16.mxu0 %vm11310_vm1, %v16229_v15 }
 0x58e   :  { %v6432_v37 = vpop.f32.mrb[88].mxu1 }
 0x58f   :  { %v5523_v8 = vpop.f32.mrb[88].mxu0  ;;  %v15424_v1 = vadd.f32 %v6432_v37, %v15337_v45  ;;  %v10521_v51 = vpop.f32.mrb[89].mxu1 }
 0x590   :  { %v15421_v58 = vadd.f32 %v5523_v8, %v14482_v47  ;;  %v10371_v55 = vpop.f32.mrb[89].mxu0  ;;  %v6435_v18 = vpop.f32.mrb[90].mxu1  ;;  %v11260_v47 = vld [vmem:[%s16184_s0 + $0x98] sm:$0xff]  }
 0x591   :  { %v5526_v0 = vpop.f32.mrb[90].mxu0  ;;  %v15431_v30 = vadd.f32 %v6435_v18, %v15344_v16  ;;  %v10522_v31 = vpop.f32.mrb[91].mxu1  ;;  %v6678_v45 = vrot.slane %v11260_v47, 3 }
 0x592   :  { %v15428_v62 = vadd.f32 %v5526_v0, %v14489_v10  ;;  %v10372_v33 = vpop.f32.mrb[91].mxu0 }
 0x593   :  { %v6679_v0 = vsel %vm6644_vm8, %v6676_v5, %v6678_v45 }
 0x594   :  { %10646 = vmatmul.mubr.msk.bf16.gmra.mrb[196].mxu0 %vm642_vm3, %v6677_v48 }
 0x595   :  { %10649 = vmatprep.mubr.msk.bf16.mxu0 %vm11310_vm1, %v16229_v15 }
 0x596   :  { %v6440_v8 = vpop.f32.mrb[92].mxu1 }
 0x597   :  { %v5531_v13 = vpop.f32.mrb[92].mxu0  ;;  %v15443_v16 = vadd.f32 %v6440_v8, %v15364_v28  ;;  %v10525_v55 = vpop.f32.mrb[93].mxu1 }
 0x598   :  { %v15440_v10 = vadd.f32 %v5531_v13, %v14510_v42  ;;  %v10375_v37 = vpop.f32.mrb[93].mxu0  ;;  %v6443_v18 = vpop.f32.mrb[94].mxu1  ;;  %v11261_v42 = vld [vmem:[%s16184_s0 + $0xa0] sm:$0xff]  }
 0x599   :  { %v5534_v51 = vpop.f32.mrb[94].mxu0  ;;  %v15450_v31 = vadd.f32 %v6443_v18, %v15371_v36  ;;  %v10526_v47 = vpop.f32.mrb[95].mxu1  ;;  %v6680_v28 = vrot.slane %v11261_v42, 3 }
 0x59a   :  { %v15447_v48 = vadd.f32 %v5534_v51, %v14517_v41  ;;  %v10376_v33 = vpop.f32.mrb[95].mxu0 }
 0x59b   :  { %v6681_v51 = vsel %vm6644_vm8, %v6678_v45, %v6680_v28 }
 0x59c   :  { %10650 = vmatmul.mubr.msk.bf16.gmra.mrb[200].mxu0 %vm642_vm3, %v6679_v0 }
 0x59d   :  { %10653 = vmatprep.mubr.msk.bf16.mxu0 %vm11310_vm1, %v16229_v15 }
 0x59e   :  { %v6448_v13 = vpop.f32.mrb[96].mxu1 }
 0x59f   :  { %v5539_v5 = vpop.f32.mrb[96].mxu0  ;;  %v15462_v36 = vadd.f32 %v6448_v13, %v15383_v26  ;;  %v10529_v37 = vpop.f32.mrb[97].mxu1 }
 0x5a0   :  { %v15459_v41 = vadd.f32 %v5539_v5, %v14538_v46  ;;  %v10379_v8 = vpop.f32.mrb[97].mxu0  ;;  %v6451_v18 = vpop.f32.mrb[98].mxu1  ;;  %v11262_v46 = vld [vmem:[%s16184_s0 + $0xa8] sm:$0xff]  }
 0x5a1   :  { %v5542_v55 = vpop.f32.mrb[98].mxu0  ;;  %v15469_v47 = vadd.f32 %v6451_v18, %v15390_v22  ;;  %v10530_v42 = vpop.f32.mrb[99].mxu1  ;;  %v6682_v26 = vrot.slane %v11262_v46, 3 }
 0x5a2   :  { %v15466_v0 = vadd.f32 %v5542_v55, %v14545_v3  ;;  %v10380_v33 = vpop.f32.mrb[99].mxu0 }
 0x5a3   :  { %v6683_v55 = vsel %vm6644_vm8, %v6680_v28, %v6682_v26 }
 0x5a4   :  { %10654 = vmatmul.mubr.msk.bf16.gmra.mrb[204].mxu0 %vm642_vm3, %v6681_v51 }
 0x5a5   :  { %10657 = vmatprep.mubr.msk.bf16.mxu0 %vm11310_vm1, %v16229_v15 }
 0x5a6   :  { %v6456_v5 = vpop.f32.mrb[100].mxu1 }
 0x5a7   :  { %v5547_v45 = vpop.f32.mrb[100].mxu0  ;;  %v15481_v22 = vadd.f32 %v6456_v5, %v15402_v60  ;;  %v10533_v8 = vpop.f32.mrb[101].mxu1 }
 0x5a8   :  { %v15478_v3 = vadd.f32 %v5547_v45, %v14566_v59  ;;  %v10383_v13 = vpop.f32.mrb[101].mxu0  ;;  %v6459_v18 = vpop.f32.mrb[102].mxu1  ;;  %v11263_v59 = vld [vmem:[%s16184_s0 + $0xb0] sm:$0xff]  }
 0x5a9   :  { %v5550_v37 = vpop.f32.mrb[102].mxu0  ;;  %v15488_v42 = vadd.f32 %v6459_v18, %v15409_v7  ;;  %v10534_v46 = vpop.f32.mrb[103].mxu1  ;;  %v6684_v60 = vrot.slane %v11263_v59, 3 }
 0x5aa   :  { %v15485_v51 = vadd.f32 %v5550_v37, %v14573_v57  ;;  %v10384_v33 = vpop.f32.mrb[103].mxu0 }
 0x5ab   :  { %v6685_v37 = vsel %vm6644_vm8, %v6682_v26, %v6684_v60 }
 0x5ac   :  { %10658 = vmatmul.mubr.msk.bf16.gmra.mrb[208].mxu0 %vm642_vm3, %v6683_v55 }
 0x5ad   :  { %10661 = vmatprep.mubr.msk.bf16.mxu0 %vm11310_vm1, %v16229_v15 }
 0x5ae   :  { %v6464_v45 = vpop.f32.mrb[104].mxu1 }
 0x5af   :  { %v5555_v28 = vpop.f32.mrb[104].mxu0  ;;  %v15500_v7 = vadd.f32 %v6464_v45, %v15421_v58  ;;  %v10537_v13 = vpop.f32.mrb[105].mxu1 }
 0x5b0   :  { %v15497_v57 = vadd.f32 %v5555_v28, %v14594_v50  ;;  %v10387_v5 = vpop.f32.mrb[105].mxu0  ;;  %v6467_v18 = vpop.f32.mrb[106].mxu1  ;;  %v11264_v50 = vld [vmem:[%s16184_s0 + $0xb8] sm:$0xff]  }
 0x5b1   :  { %v5558_v8 = vpop.f32.mrb[106].mxu0  ;;  %v15507_v46 = vadd.f32 %v6467_v18, %v15428_v62  ;;  %v10538_v59 = vpop.f32.mrb[107].mxu1  ;;  %v6686_v58 = vrot.slane %v11264_v50, 3 }
 0x5b2   :  { %v15504_v55 = vadd.f32 %v5558_v8, %v14601_v9  ;;  %v10388_v33 = vpop.f32.mrb[107].mxu0 }
 0x5b3   :  { %16467 = vst [vmem:[#allocation21_spill] sm:$0xff] %v15507_v46  ;;  %v6687_v8 = vsel %vm6644_vm8, %v6684_v60, %v6686_v58 }
 0x5b4   :  { %10662 = vmatmul.mubr.msk.bf16.gmra.mrb[212].mxu0 %vm642_vm3, %v6685_v37  ;;  %v16468_v37 = vld [vmem:[#allocation33_spill] sm:$0xff] }
 0x5b5   :  { %10665 = vmatprep.mubr.msk.bf16.mxu0 %vm11310_vm1, %v16229_v15 }
 0x5b6   :  { %v6472_v28 = vpop.f32.mrb[108].mxu1 }
 0x5b7   :  { %v5563_v26 = vpop.f32.mrb[108].mxu0  ;;  %v15519_v62 = vadd.f32 %v6472_v28, %v15440_v10  ;;  %v10541_v5 = vpop.f32.mrb[109].mxu1 }
 0x5b8   :  { %v15516_v9 = vadd.f32 %v5563_v26, %v14622_v40  ;;  %v10391_v45 = vpop.f32.mrb[109].mxu0  ;;  %v6475_v33 = vpop.f32.mrb[110].mxu1  ;;  %v11265_v40 = vld [vmem:[%s16184_s0 + $0xc0] sm:$0xff]  }
 0x5b9   :  { %v5566_v13 = vpop.f32.mrb[110].mxu0  ;;  %v15526_v50 = vadd.f32 %v6475_v33, %v15447_v48  ;;  %v10542_v46 = vpop.f32.mrb[111].mxu1  ;;  %v6688_v10 = vrot.slane %v11265_v40, 3 }
 0x5ba   :  { %v15523_v18 = vadd.f32 %v5566_v13, %v16468_v37  ;;  %v10392_v59 = vpop.f32.mrb[111].mxu0 }
 0x5bb   :  { %16469 = vst [vmem:[#allocation22_spill] sm:$0xff] %v15526_v50  ;;  %v6689_v13 = vsel %vm6644_vm8, %v6686_v58, %v6688_v10 }
 0x5bc   :  { %10666 = vmatmul.mubr.msk.bf16.gmra.mrb[216].mxu0 %vm642_vm3, %v6687_v8  ;;  %v16470_v8 = vld [vmem:[#allocation34_spill] sm:$0xff] }
 0x5bd   :  { %10669 = vmatprep.mubr.msk.bf16.mxu0 %vm11310_vm1, %v16229_v15 }
 0x5be   :  { %v6480_v28 = vpop.f32.mrb[112].mxu1 }
 0x5bf   :  { %v5571_v60 = vpop.f32.mrb[112].mxu0  ;;  %v15538_v48 = vadd.f32 %v6480_v28, %v15459_v41  ;;  %v10545_v46 = vpop.f32.mrb[113].mxu1 }
 0x5c0   :  { %v15535_v26 = vadd.f32 %v5571_v60, %v14650_v14  ;;  %v10395_v45 = vpop.f32.mrb[113].mxu0  ;;  %v6483_v33 = vpop.f32.mrb[114].mxu1  ;;  %v11266_v14 = vld [vmem:[%s16184_s0 + $0xc8] sm:$0xff]  }
 0x5c1   :  { %v5574_v5 = vpop.f32.mrb[114].mxu0  ;;  %v15545_v40 = vadd.f32 %v6483_v33, %v15466_v0  ;;  %v10546_v50 = vpop.f32.mrb[115].mxu1  ;;  %v6690_v41 = vrot.slane %v11266_v14, 3 }
 0x5c2   :  { %v15542_v37 = vadd.f32 %v5574_v5, %v16470_v8  ;;  %v10396_v59 = vpop.f32.mrb[115].mxu0 }
 0x5c3   :  { %v6691_v5 = vsel %vm6644_vm8, %v6688_v10, %v6690_v41 }
 0x5c4   :  { %10670 = vmatmul.mubr.msk.bf16.gmra.mrb[220].mxu0 %vm642_vm3, %v6689_v13 }
 0x5c5   :  { %10673 = vmatprep.mubr.msk.bf16.mxu0 %vm11310_vm1, %v16229_v15 }
 0x5c6   :  { %v6488_v28 = vpop.f32.mrb[116].mxu1 }
 0x5c7   :  { %v5579_v58 = vpop.f32.mrb[116].mxu0  ;;  %v15557_v0 = vadd.f32 %v6488_v28, %v15478_v3  ;;  %v10549_v50 = vpop.f32.mrb[117].mxu1 }
 0x5c8   :  { %v15554_v60 = vadd.f32 %v5579_v58, %v14678_v12  ;;  %v10399_v45 = vpop.f32.mrb[117].mxu0  ;;  %v6491_v8 = vpop.f32.mrb[118].mxu1  ;;  %v11267_v12 = vld [vmem:[%s16184_s0 + $0xd0] sm:$0xff]  }
 0x5c9   :  { %v5582_v46 = vpop.f32.mrb[118].mxu0  ;;  %v15564_v59 = vadd.f32 %v6491_v8, %v15485_v51  ;;  %v10550_v14 = vpop.f32.mrb[119].mxu1  ;;  %v6692_v3 = vrot.slane %v11267_v12, 3 }
 0x5ca   :  { %v15561_v13 = vadd.f32 %v5582_v46, %v14682_v20  ;;  %v10400_v33 = vpop.f32.mrb[119].mxu0 }
 0x5cb   :  { %v6693_v46 = vsel %vm6644_vm8, %v6690_v41, %v6692_v3 }
 0x5cc   :  { %10674 = vmatmul.mubr.msk.bf16.gmra.mrb[224].mxu0 %vm642_vm3, %v6691_v5 }
 0x5cd   :  { %10677 = vmatprep.mubr.msk.bf16.mxu0 %vm11310_vm1, %v16229_v15 }
 0x5ce   :  { %v6496_v58 = vpop.f32.mrb[120].mxu1 }
 0x5cf   :  { %v5587_v10 = vpop.f32.mrb[120].mxu0  ;;  %v15576_v51 = vadd.f32 %v6496_v58, %v15497_v57  ;;  %v10553_v45 = vpop.f32.mrb[121].mxu1 }
 0x5d0   :  { %v15573_v20 = vadd.f32 %v5587_v10, %v14703_v6  ;;  %v10403_v28 = vpop.f32.mrb[121].mxu0  ;;  %v6499_v8 = vpop.f32.mrb[122].mxu1  ;;  %v11268_v6 = vld [vmem:[%s16184_s0 + $0xd8] sm:$0xff]  }
 0x5d1   :  { %v5590_v50 = vpop.f32.mrb[122].mxu0  ;;  %v15583_v14 = vadd.f32 %v6499_v8, %v15504_v55  ;;  %v10554_v12 = vpop.f32.mrb[123].mxu1  ;;  %v6694_v57 = vrot.slane %v11268_v6, 3 }
 0x5d2   :  { %v15580_v5 = vadd.f32 %v5590_v50, %v14710_v54  ;;  %v10404_v33 = vpop.f32.mrb[123].mxu0 }
 0x5d3   :  { %16471 = vst [vmem:[#allocation23_spill] sm:$0xff] %v15583_v14  ;;  %v6695_v50 = vsel %vm6644_vm8, %v6692_v3, %v6694_v57 }
 0x5d4   :  { %10678 = vmatmul.mubr.msk.bf16.gmra.mrb[228].mxu0 %vm642_vm3, %v6693_v46 }
 0x5d5   :  { %10681 = vmatprep.mubr.msk.bf16.mxu0 %vm11310_vm1, %v16229_v15 }
 0x5d6   :  { %v6504_v10 = vpop.f32.mrb[124].mxu1 }
 0x5d7   :  { %v5595_v41 = vpop.f32.mrb[124].mxu0  ;;  %v15595_v55 = vadd.f32 %v6504_v10, %v15516_v9  ;;  %v10557_v28 = vpop.f32.mrb[125].mxu1 }
 0x5d8   :  { %v15592_v54 = vadd.f32 %v5595_v41, %v14731_v27  ;;  %v10407_v58 = vpop.f32.mrb[125].mxu0  ;;  %v6507_v8 = vpop.f32.mrb[126].mxu1  ;;  %v11269_v27 = vld [vmem:[%s16184_s0 + $0xe0] sm:$0xff]   ;;  %v16474_v41 = vld [vmem:[#allocation35_spill] sm:$0xff] }
 0x5d9   :  { %16472 = vst [vmem:[#allocation24_spill] sm:$0xff] %v15595_v55  ;;  %v5598_v45 = vpop.f32.mrb[126].mxu0  ;;  %v15602_v12 = vadd.f32 %v6507_v8, %v15523_v18  ;;  %v10558_v6 = vpop.f32.mrb[127].mxu1  ;;  %v6696_v9 = vrot.slane %v11269_v27, 3  ;;  %v16476_v8 = vld [vmem:[#allocation36_spill] sm:$0xff] }
 0x5da   :  { %v15599_v46 = vadd.f32 %v5598_v45, %v14738_v21  ;;  %v10408_v33 = vpop.f32.mrb[127].mxu0 }
 0x5db   :  { %16473 = vst [vmem:[#allocation25_spill] sm:$0xff] %v15602_v12 }
 0x5dc   :  { %10682 = vmatmul.mubr.msk.bf16.gmra.mrb[232].mxu0 %vm642_vm3, %v6695_v50  ;;  %v6697_v50 = vsel %vm6644_vm8, %v6694_v57, %v6696_v9 }
 0x5dd   :  { %10685 = vmatprep.mubr.msk.bf16.mxu0 %vm11310_vm1, %v16229_v15 }
 0x5de   :  { %v6512_v10 = vpop.f32.mrb[128].mxu1 }
 0x5df   :  { %v5603_v3 = vpop.f32.mrb[128].mxu0  ;;  %v15614_v18 = vadd.f32 %v6512_v10, %v15535_v26  ;;  %v10561_v28 = vpop.f32.mrb[129].mxu1  ;;  %v11270_v26 = vld [vmem:[%s16184_s0 + $0xe8] sm:$0xff]  }
 0x5e0   :  { %v15611_v21 = vadd.f32 %v5603_v3, %v16474_v41  ;;  %v10411_v58 = vpop.f32.mrb[129].mxu0  ;;  %v6515_v6 = vpop.f32.mrb[130].mxu1  ;;  %v6698_v3 = vrot.slane %v11270_v26, 3  ;;  %v16478_v41 = vld [vmem:[#allocation37_spill] sm:$0xff] }
 0x5e1   :  { %16475 = vst [vmem:[#allocation26_spill] sm:$0xff] %v15614_v18  ;;  %v5606_v45 = vpop.f32.mrb[130].mxu0  ;;  %v15621_v27 = vadd.f32 %v6515_v6, %v15542_v37  ;;  %v10562_v55 = vpop.f32.mrb[131].mxu1 }
 0x5e2   :  { %v15618_v33 = vadd.f32 %v5606_v45, %v16476_v8  ;;  %v10412_v12 = vpop.f32.mrb[131].mxu0  ;;  %v6699_v45 = vsel %vm6644_vm8, %v6696_v9, %v6698_v3  ;;  %v15648_v9 = vld [vmem:[%s16186_s2] ss:$0 sm:$0xff] }
 0x5e3   :  { %16477 = vst [vmem:[#allocation27_spill] sm:$0xff] %v15621_v27 }
 0x5e4   :  { %10686 = vmatmul.mubr.msk.bf16.gmra.mrb[236].mxu0 %vm642_vm3, %v6697_v50 }
 0x5e5   :  { %10689 = vmatprep.mubr.msk.bf16.mxu0 %vm11310_vm1, %v16229_v15 }
 0x5e6   :  { %v6520_v58 = vpop.f32.mrb[132].mxu1 }
 0x5e7   :  { %v5611_v57 = vpop.f32.mrb[132].mxu0  ;;  %v15633_v37 = vadd.f32 %v6520_v58, %v15554_v60  ;;  %v10565_v55 = vpop.f32.mrb[133].mxu1  ;;  %v11271_v60 = vld [vmem:[%s16184_s0 + $0xf0] sm:$0xff]  }
 0x5e8   :  { %v15630_v10 = vadd.f32 %v5611_v57, %v16478_v41  ;;  %v10415_v12 = vpop.f32.mrb[133].mxu0  ;;  %v6523_v50 = vpop.f32.mrb[134].mxu1  ;;  %v6700_v26 = vrot.slane %v11271_v60, 3  ;;  %v16482_v60 = vld [vmem:[#allocation39_spill] sm:$0xff] }
 0x5e9   :  { %16479 = vst [vmem:[#allocation28_spill] sm:$0xff] %v15633_v37  ;;  %v5614_v28 = vpop.f32.mrb[134].mxu0  ;;  %v15637_v6 = vadd.f32 %v6523_v50, %v15561_v13  ;;  %v10566_v27 = vpop.f32.mrb[135].mxu1  ;;  %v16481_v13 = vld [vmem:[#allocation38_spill] sm:$0xff] }
 0x5ea   :  { %v10416_v8 = vpop.f32.mrb[135].mxu0 }
 0x5eb   :  { %16480 = vst [vmem:[#allocation29_spill] sm:$0xff] %v15637_v6 }
 0x5ec   :  { %10690 = vmatmul.mubr.msk.bf16.gmra.mrb[240].mxu0 %vm642_vm3, %v6699_v45  ;;  %v6701_v45 = vsel %vm6644_vm8, %v6698_v3, %v6700_v26 }
 0x5ed   :  { %10693 = vmatprep.mubr.msk.bf16.mxu0 %vm11310_vm1, %v16229_v15 }
 0x5ee   :  { %v6528_v41 = vpop.f32.mrb[136].mxu1 }
 0x5ef   :  { %v6886_v57 = vpop.f32.mrb[136].mxu0  ;;  %v15652_v12 = vadd.f32 %v6528_v41, %v15573_v20  ;;  %v10569_v55 = vpop.f32.mrb[137].mxu1  ;;  %v11272_v20 = vld [vmem:[%s16184_s0 + $0xf8] sm:$0xff]  }
 0x5f0   :  { %v7212_v58 = vadd.f32 %v6886_v57, %v16481_v13  ;;  %v10587_v27 = vpop.f32.mrb[137].mxu0  ;;  %v6531_v8 = vpop.f32.mrb[138].mxu1  ;;  %v6702_v3 = vrot.slane %v11272_v20, 3 }
 0x5f1   :  { %v6889_v28 = vpop.f32.mrb[138].mxu0  ;;  %v15658_v18 = vadd.f32 %v6531_v8, %v15580_v5  ;;  %v10570_v14 = vpop.f32.mrb[139].mxu1 }
 0x5f2   :  { %v7300_v50 = vadd.f32 %v15648_v9, %v7212_v58  ;;  %v7213_v6 = vadd.f32 %v6889_v28, %v16482_v60  ;;  %v10588_v37 = vpop.f32.mrb[139].mxu0 }
 0x5f4   :  { %v7301_v57 = vadd.f32 %v15648_v9, %v7213_v6  ;;  %10694 = vmatmul.mubr.msk.bf16.gmra.mrb[244].mxu0 %vm642_vm3, %v6701_v45  ;;  %v7381_v41 = vmax.f32 %v7300_v50, 0.0  ;;  %v6703_v45 = vsel %vm6644_vm8, %v6700_v26, %v6702_v3 }
 0x5f5   :  { %10697 = vmatprep.mubr.msk.bf16.mxu0 %vm11310_vm1, %v16229_v15 }
 0x5f6   :  { %v7382_v13 = vmax.f32 %v7301_v57, 0.0  ;;  %v6536_v27 = vpop.f32.mrb[140].mxu1 }
 0x5f7   :  { %v6894_v58 = vpop.f32.mrb[140].mxu0  ;;  %v15669_v6 = vadd.f32 %v6536_v27, %v15592_v54  ;;  %v10573_v55 = vpop.f32.mrb[141].mxu1 }
 0x5f8   :  { %v7462_v37 = vpack.c.bf16 %v7382_v13, %v7381_v41  ;;  %v7214_v5 = vadd.f32 %v6894_v58, %v14840_v25  ;;  %v10591_v14 = vpop.f32.mrb[141].mxu0  ;;  %v6539_v60 = vpop.f32.mrb[142].mxu1 }
 0x5f9   :  { %v6897_v28 = vpop.f32.mrb[142].mxu0  ;;  %v15675_v57 = vadd.f32 %v6539_v60, %v15599_v46  ;;  %v10574_v41 = vpop.f32.mrb[143].mxu1 }
 0x5fa   :  { %v7302_v8 = vadd.f32 %v15648_v9, %v7214_v5  ;;  %v7215_v20 = vadd.f32 %v6897_v28, %v14847_v32  ;;  %v10592_v50 = vpop.f32.mrb[143].mxu0  ;;  %10766 = vmatmul.mubr.bf16.vlgmr.msra.gmra.mrb[152].mxu1 %v7462_v37  ;;  %v11273_v32 = vld [vmem:[%s16184_s0 + $0x100] sm:$0xff]  }
 0x5fb   :  { %10769 = vmatprep.mubr.msk.bf16.mxu1 %vm11310_vm1, %v16229_v15  ;;  %v6704_v54 = vrot.slane %v11273_v32, 3 }
 0x5fc   :  { %v7303_v25 = vadd.f32 %v15648_v9, %v7215_v20  ;;  %10698 = vmatmul.mubr.msk.bf16.gmra.mrb[248].mxu0 %vm642_vm3, %v6703_v45  ;;  %v7383_v26 = vmax.f32 %v7302_v8, 0.0 }
 0x5fd   :  { %10701 = vmatprep.mubr.msk.bf16.mxu0 %vm11310_vm1, %v16229_v15  ;;  %v6705_v45 = vsel %vm6644_vm8, %v6702_v3, %v6704_v54 }
 0x5fe   :  { %v7384_v13 = vmax.f32 %v7303_v25, 0.0  ;;  %v6544_v37 = vpop.f32.mrb[144].mxu1 }
 0x5ff   :  { %v6902_v46 = vpop.f32.mrb[144].mxu0  ;;  %v15688_v14 = vadd.f32 %v6544_v37, %v15611_v21  ;;  %v10577_v55 = vpop.f32.mrb[145].mxu1 }
 0x600   :  { %v7463_v58 = vpack.c.bf16 %v7384_v13, %v7383_v26  ;;  %v7216_v27 = vadd.f32 %v6902_v46, %v14868_v23  ;;  %v10595_v5 = vpop.f32.mrb[145].mxu0  ;;  %v6547_v20 = vpop.f32.mrb[146].mxu1  ;;  %v16483_v46 = vld [vmem:[#allocation40_spill] sm:$0xff] }
 0x601   :  { %v6905_v28 = vpop.f32.mrb[146].mxu0  ;;  %v15694_v41 = vadd.f32 %v6547_v20, %v15618_v33  ;;  %v10578_v25 = vpop.f32.mrb[147].mxu1  ;;  %v16484_v20 = vld [vmem:[#allocation41_spill] sm:$0xff] }
 0x602   :  { %v7304_v60 = vadd.f32 %v15648_v9, %v7216_v27  ;;  %v7217_v50 = vadd.f32 %v6905_v28, %v14875_v38  ;;  %v10596_v8 = vpop.f32.mrb[147].mxu0  ;;  %10770 = vmatmul.mubr.bf16.gmra.mrb[156].mxu1 %v7463_v58  ;;  %v11274_v38 = vld [vmem:[%s16184_s0 + $0x108] sm:$0xff]  }
 0x603   :  { %10773 = vmatprep.mubr.msk.bf16.mxu1 %vm11310_vm1, %v16229_v15  ;;  %v6706_v21 = vrot.slane %v11274_v38, 3 }
 0x604   :  { %v7305_v23 = vadd.f32 %v15648_v9, %v7217_v50  ;;  %10702 = vmatmul.mubr.msk.bf16.gmra.mrb[252].mxu0 %vm642_vm3, %v6705_v45  ;;  %v7385_v3 = vmax.f32 %v7304_v60, 0.0 }
 0x605   :  { %10705 = vmatprep.mubr.msk.bf16.mxu0 %vm11310_vm1, %v16229_v15  ;;  %v6707_v55 = vsel %vm6644_vm8, %v6704_v54, %v6706_v21 }
 0x606   :  { %v7386_v32 = vmax.f32 %v7305_v23, 0.0  ;;  %v6552_v13 = vpop.f32.mrb[148].mxu1 }
 0x607   :  { %v6910_v33 = vpop.f32.mrb[148].mxu0  ;;  %v15707_v27 = vadd.f32 %v6552_v13, %v15630_v10  ;;  %v10581_v28 = vpop.f32.mrb[149].mxu1  ;;  %v11275_v10 = vld [vmem:[%s16184_s0 + $0x110] sm:$0xff]  }
 0x608   :  { %v7464_v26 = vpack.c.bf16 %v7386_v32, %v7385_v3  ;;  %v7218_v58 = vadd.f32 %v6910_v33, %v16483_v46  ;;  %v10599_v37 = vpop.f32.mrb[149].mxu0  ;;  %v6555_v60 = vpop.f32.mrb[150].mxu1  ;;  %v6708_v54 = vrot.slane %v11275_v10, 3  ;;  %v16487_v10 = vld [vmem:[#allocation44_spill] sm:$0xff] }
 0x609   :  { %v6913_v5 = vpop.f32.mrb[150].mxu0  ;;  %v10582_v25 = vpop.f32.mrb[151].mxu1 }
 0x60a   :  { %v7306_v45 = vadd.f32 %v15648_v9, %v7218_v58  ;;  %v7219_v50 = vadd.f32 %v6913_v5, %v16484_v20  ;;  %v10600_v8 = vpop.f32.mrb[151].mxu0  ;;  %10774 = vmatmul.mubr.bf16.gmra.mrb[160].mxu1 %v7464_v26  ;;  %v16485_v26 = vld [vmem:[#allocation42_spill] sm:$0xff]  ;;  %v6709_v37 = vsel %vm6644_vm8, %v6706_v21, %v6708_v54  ;;  %v11276_v21 = vld [vmem:[%s16184_s0 + $0x118] sm:$0xff]  }
 0x60b   :  { %10777 = vmatprep.mubr.msk.bf16.mxu1 %vm11310_vm1, %v16229_v15 }
 0x60c   :  { %v7307_v23 = vadd.f32 %v15648_v9, %v7219_v50  ;;  %10706 = vmatmul.mubr.msk.bf16.gmra.mrb[0].mxu0 %vm642_vm3, %v6707_v55  ;;  %v7387_v38 = vmax.f32 %v7306_v45, 0.0  ;;  %v16486_v55 = vld [vmem:[#allocation43_spill] sm:$0xff]  ;;  %v6710_v50 = vrot.slane %v11276_v21, 3  ;;  %v16489_v21 = vld [vmem:[#allocation45_spill] sm:$0xff] }
 0x60d   :  { %10709 = vmatprep.mubr.msk.bf16.mxu0 %vm11310_vm1, %v16229_v15 }
 0x60e   :  { %v7388_v3 = vmax.f32 %v7307_v23, 0.0 }
 0x60f   :  { %v6918_v32 = vpop.f32.mrb[152].mxu0 }
 0x610   :  { %v7465_v33 = vpack.c.bf16 %v7388_v3, %v7387_v38  ;;  %v7220_v13 = vadd.f32 %v6918_v32, %v16485_v26  ;;  %v10603_v46 = vpop.f32.mrb[153].mxu0 }
 0x611   :  { %v6921_v58 = vpop.f32.mrb[154].mxu0 }
 0x612   :  { %v7308_v5 = vadd.f32 %v15648_v9, %v7220_v13  ;;  %v7221_v28 = vadd.f32 %v6921_v58, %v16486_v55  ;;  %v10604_v20 = vpop.f32.mrb[155].mxu0  ;;  %10778 = vmatmul.mubr.bf16.gmra.mrb[164].mxu1 %v7465_v33  ;;  %v6711_v33 = vsel %vm6644_vm8, %v6708_v54, %v6710_v50  ;;  %v16488_v13 = vld [vmem:[#allocation50_spill] sm:$0xff]  ;;  %v11277_v54 = vld [vmem:[%s16184_s0 + $0x120] sm:$0xff]  }
 0x613   :  { %10781 = vmatprep.mubr.msk.bf16.mxu1 %vm11310_vm1, %v16229_v15 }
 0x614   :  { %v7309_v45 = vadd.f32 %v15648_v9, %v7221_v28  ;;  %10710 = vmatmul.mubr.msk.bf16.gmra.mrb[4].mxu0 %vm642_vm3, %v6709_v37  ;;  %v7389_v8 = vmax.f32 %v7308_v5, 0.0  ;;  %v6712_v5 = vrot.slane %v11277_v54, 3 }
 0x615   :  { %10713 = vmatprep.mubr.msk.bf16.mxu0 %vm11310_vm1, %v16229_v15 }
 0x616   :  { %v7390_v60 = vmax.f32 %v7309_v45, 0.0 }
 0x617   :  { %v6926_v25 = vpop.f32.mrb[156].mxu0 }
 0x618   :  { %v7466_v23 = vpack.c.bf16 %v7390_v60, %v7389_v8  ;;  %v7222_v38 = vadd.f32 %v6926_v25, %v16487_v10  ;;  %v10607_v3 = vpop.f32.mrb[157].mxu0 }
 0x619   :  { %v6929_v32 = vpop.f32.mrb[158].mxu0 }
 0x61a   :  { %v7310_v26 = vadd.f32 %v15648_v9, %v7222_v38  ;;  %v7223_v46 = vadd.f32 %v6929_v32, %v16488_v13  ;;  %v10608_v58 = vpop.f32.mrb[159].mxu0  ;;  %10782 = vmatmul.mubr.bf16.gmra.mrb[168].mxu1 %v7466_v23  ;;  %v6713_v23 = vsel %vm6644_vm8, %v6710_v50, %v6712_v5  ;;  %v16490_v38 = vld [vmem:[#allocation46_spill] sm:$0xff]  ;;  %v11278_v50 = vld [vmem:[%s16184_s0 + $0x128] sm:$0xff]  }
 0x61b   :  { %10785 = vmatprep.mubr.msk.bf16.mxu1 %vm11310_vm1, %v16229_v15 }
 0x61c   :  { %v7311_v37 = vadd.f32 %v15648_v9, %v7223_v46  ;;  %10714 = vmatmul.mubr.msk.bf16.gmra.mrb[8].mxu0 %vm642_vm3, %v6711_v33  ;;  %v7391_v55 = vmax.f32 %v7310_v26, 0.0  ;;  %v6714_v26 = vrot.slane %v11278_v50, 3 }
 0x61d   :  { %10717 = vmatprep.mubr.msk.bf16.mxu0 %vm11310_vm1, %v16229_v15 }
 0x61e   :  { %v7392_v28 = vmax.f32 %v7311_v37, 0.0 }
 0x61f   :  { %v6934_v20 = vpop.f32.mrb[160].mxu0 }
 0x620   :  { %v7467_v45 = vpack.c.bf16 %v7392_v28, %v7391_v55  ;;  %v7224_v8 = vadd.f32 %v6934_v20, %v16489_v21  ;;  %v10611_v60 = vpop.f32.mrb[161].mxu0  ;;  %v6715_v20 = vsel %vm6644_vm8, %v6712_v5, %v6714_v26 }
 0x621   :  { %v6937_v25 = vpop.f32.mrb[162].mxu0 }
 0x622   :  { %v7312_v10 = vadd.f32 %v15648_v9, %v7224_v8  ;;  %v7225_v3 = vadd.f32 %v6937_v25, %v16490_v38  ;;  %v10612_v32 = vpop.f32.mrb[163].mxu0  ;;  %10786 = vmatmul.mubr.bf16.gmra.mrb[172].mxu1 %v7467_v45 }
 0x623   :  { %10789 = vmatprep.mubr.msk.bf16.mxu1 %vm11310_vm1, %v16229_v15 }
 0x624   :  { %v7313_v33 = vadd.f32 %v15648_v9, %v7225_v3  ;;  %10718 = vmatmul.mubr.msk.bf16.gmra.mrb[12].mxu0 %vm642_vm3, %v6713_v23  ;;  %v7393_v13 = vmax.f32 %v7312_v10, 0.0 }
 0x625   :  { %10721 = vmatprep.mubr.msk.bf16.mxu0 %vm11310_vm1, %v16229_v15 }
 0x626   :  { %v7394_v46 = vmax.f32 %v7313_v33, 0.0 }
 0x627   :  { %v6942_v58 = vpop.f32.mrb[164].mxu0 }
 0x628   :  { %v7468_v37 = vpack.c.bf16 %v7394_v46, %v7393_v13  ;;  %v7226_v54 = vadd.f32 %v6942_v58, %v15012_v49  ;;  %v10615_v55 = vpop.f32.mrb[165].mxu0  ;;  %v11279_v49 = vld [vmem:[%s16184_s0 + $0x130] sm:$0xff]  }
 0x629   :  { %v6945_v28 = vpop.f32.mrb[166].mxu0  ;;  %v6716_v5 = vrot.slane %v11279_v49, 3 }
 0x62a   :  { %v7314_v45 = vadd.f32 %v15648_v9, %v7226_v54  ;;  %v7227_v21 = vadd.f32 %v6945_v28, %v15022_v4  ;;  %v10616_v8 = vpop.f32.mrb[167].mxu0  ;;  %10790 = vmatmul.mubr.bf16.gmra.mrb[176].mxu1 %v7468_v37 }
 0x62b   :  { %10793 = vmatprep.mubr.msk.bf16.mxu1 %vm11310_vm1, %v16229_v15  ;;  %v6717_v33 = vsel %vm6644_vm8, %v6714_v26, %v6716_v5 }
 0x62c   :  { %v7315_v60 = vadd.f32 %v15648_v9, %v7227_v21  ;;  %10722 = vmatmul.mubr.msk.bf16.gmra.mrb[16].mxu0 %vm642_vm3, %v6715_v20  ;;  %v7395_v25 = vmax.f32 %v7314_v45, 0.0 }
 0x62d   :  { %10725 = vmatprep.mubr.msk.bf16.mxu0 %vm11310_vm1, %v16229_v15 }
 0x62e   :  { %v7396_v23 = vmax.f32 %v7315_v60, 0.0 }
 0x62f   :  { %v6950_v4 = vpop.f32.mrb[168].mxu0 }
 0x630   :  { %v7469_v10 = vpack.c.bf16 %v7396_v23, %v7395_v25  ;;  %v7228_v38 = vadd.f32 %v6950_v4, %v15038_v29  ;;  %v10619_v3 = vpop.f32.mrb[169].mxu0  ;;  %v11280_v29 = vld [vmem:[%s16184_s0 + $0x138] sm:$0xff]  }
 0x631   :  { %v6953_v32 = vpop.f32.mrb[170].mxu0  ;;  %v6718_v26 = vrot.slane %v11280_v29, 3 }
 0x632   :  { %v7316_v50 = vadd.f32 %v15648_v9, %v7228_v38  ;;  %v7229_v13 = vadd.f32 %v6953_v32, %v15045_v11  ;;  %v10620_v46 = vpop.f32.mrb[171].mxu0  ;;  %10794 = vmatmul.mubr.bf16.gmra.mrb[180].mxu1 %v7469_v10 }
 0x633   :  { %10797 = vmatprep.mubr.msk.bf16.mxu1 %vm11310_vm1, %v16229_v15  ;;  %v6719_v21 = vsel %vm6644_vm8, %v6716_v5, %v6718_v26 }
 0x634   :  { %v7317_v58 = vadd.f32 %v15648_v9, %v7229_v13  ;;  %10726 = vmatmul.mubr.msk.bf16.gmra.mrb[20].mxu0 %vm642_vm3, %v6717_v33  ;;  %v7397_v37 = vmax.f32 %v7316_v50, 0.0  ;;  %v16491_v13 = vld [vmem:[#allocation48_spill] sm:$0xff] }
 0x635   :  { %10729 = vmatprep.mubr.msk.bf16.mxu0 %vm11310_vm1, %v16229_v15 }
 0x636   :  { %v7398_v54 = vmax.f32 %v7317_v58, 0.0 }
 0x637   :  { %v6958_v11 = vpop.f32.mrb[172].mxu0 }
 0x638   :  { %v7470_v55 = vpack.c.bf16 %v7398_v54, %v7397_v37  ;;  %v7230_v28 = vadd.f32 %v6958_v11, %v15065_v17  ;;  %v10623_v20 = vpop.f32.mrb[173].mxu0  ;;  %v11281_v17 = vld [vmem:[%s16184_s0 + $0x140] sm:$0xff]  }
 0x639   :  { %v6961_v45 = vpop.f32.mrb[174].mxu0  ;;  %v6720_v5 = vrot.slane %v11281_v17, 3 }
 0x63a   :  { %v7318_v8 = vadd.f32 %v15648_v9, %v7230_v28  ;;  %v7231_v60 = vadd.f32 %v6961_v45, %v15072_v53  ;;  %v10624_v49 = vpop.f32.mrb[175].mxu0  ;;  %10798 = vmatmul.mubr.bf16.gmra.mrb[184].mxu1 %v7470_v55 }
 0x63b   :  { %10801 = vmatprep.mubr.msk.bf16.mxu1 %vm11310_vm1, %v16229_v15  ;;  %v6721_v33 = vsel %vm6644_vm8, %v6718_v26, %v6720_v5 }
 0x63c   :  { %v7319_v25 = vadd.f32 %v15648_v9, %v7231_v60  ;;  %10730 = vmatmul.mubr.msk.bf16.gmra.mrb[24].mxu0 %vm642_vm3, %v6719_v21  ;;  %v7399_v23 = vmax.f32 %v7318_v8, 0.0 }
 0x63d   :  { %10733 = vmatprep.mubr.msk.bf16.mxu0 %vm11310_vm1, %v16229_v15 }
 0x63e   :  { %v7400_v4 = vmax.f32 %v7319_v25, 0.0 }
 0x63f   :  { %v6966_v53 = vpop.f32.mrb[176].mxu0 }
 0x640   :  { %v7471_v10 = vpack.c.bf16 %v7400_v4, %v7399_v23  ;;  %v7232_v38 = vadd.f32 %v6966_v53, %v15096_v2  ;;  %v10627_v3 = vpop.f32.mrb[177].mxu0  ;;  %v11282_v2 = vld [vmem:[%s16184_s0 + $0x148] sm:$0xff]  }
 0x641   :  { %v6969_v32 = vpop.f32.mrb[178].mxu0  ;;  %v6722_v26 = vrot.slane %v11282_v2, 3 }
 0x642   :  { %v7320_v50 = vadd.f32 %v15648_v9, %v7232_v38  ;;  %v7233_v46 = vadd.f32 %v6969_v32, %v16491_v13  ;;  %v10628_v58 = vpop.f32.mrb[179].mxu0  ;;  %10802 = vmatmul.mubr.bf16.gmra.mrb[188].mxu1 %v7471_v10 }
 0x643   :  { %10805 = vmatprep.mubr.msk.bf16.mxu1 %vm11310_vm1, %v16229_v15  ;;  %v6723_v21 = vsel %vm6644_vm8, %v6720_v5, %v6722_v26 }
 0x644   :  { %v7321_v29 = vadd.f32 %v15648_v9, %v7233_v46  ;;  %10734 = vmatmul.mubr.msk.bf16.gmra.mrb[28].mxu0 %vm642_vm3, %v6721_v33  ;;  %v7401_v37 = vmax.f32 %v7320_v50, 0.0 }
 0x645   :  { %10737 = vmatprep.mubr.msk.bf16.mxu0 %vm11310_vm1, %v16229_v15 }
 0x646   :  { %v7402_v54 = vmax.f32 %v7321_v29, 0.0 }
 0x647   :  { %v6974_v11 = vpop.f32.mrb[180].mxu0 }
 0x648   :  { %v7472_v55 = vpack.c.bf16 %v7402_v54, %v7401_v37  ;;  %v7234_v28 = vadd.f32 %v6974_v11, %v15121_v43  ;;  %v10631_v20 = vpop.f32.mrb[181].mxu0  ;;  %v16492_v43 = vld [vmem:[#allocation47_spill] sm:$0xff]  ;;  %v16493_v54 = vld [vmem:[#allocation49_spill] sm:$0xff] }
 0x649   :  { %v6977_v45 = vpop.f32.mrb[182].mxu0  ;;  %v6724_v17 = vrot.slane %v16492_v43, 3 }
 0x64a   :  { %v7322_v8 = vadd.f32 %v15648_v9, %v7234_v28  ;;  %v7235_v60 = vadd.f32 %v6977_v45, %v15128_v34  ;;  %v10632_v49 = vpop.f32.mrb[183].mxu0  ;;  %10806 = vmatmul.mubr.bf16.gmra.mrb[192].mxu1 %v7472_v55 }
 0x64b   :  { %10809 = vmatprep.mubr.msk.bf16.mxu1 %vm11310_vm1, %v16229_v15  ;;  %v6725_v3 = vsel %vm6644_vm8, %v6722_v26, %v6724_v17 }
 0x64c   :  { %v7323_v25 = vadd.f32 %v15648_v9, %v7235_v60  ;;  %10738 = vmatmul.mubr.msk.bf16.gmra.mrb[32].mxu0 %vm642_vm3, %v6723_v21  ;;  %v7403_v23 = vmax.f32 %v7322_v8, 0.0 }
 0x64d   :  { %10741 = vmatprep.mubr.msk.bf16.mxu0 %vm11310_vm1, %v16229_v15 }
 0x64e   :  { %v7404_v5 = vmax.f32 %v7323_v25, 0.0 }
 0x64f   :  { %v6982_v4 = vpop.f32.mrb[184].mxu0 }
 0x650   :  { %v7473_v53 = vpack.c.bf16 %v7404_v5, %v7403_v23  ;;  %v7236_v34 = vadd.f32 %v6982_v4, %v15144_v61  ;;  %v10635_v10 = vpop.f32.mrb[185].mxu0  ;;  %v16495_v23 = vld [vmem:[#allocation6_spill] sm:$0xff] }
 0x651   :  { %v6985_v38 = vpop.f32.mrb[186].mxu0 }
 0x652   :  { %v7324_v32 = vadd.f32 %v15648_v9, %v7236_v34  ;;  %v7237_v33 = vadd.f32 %v6985_v38, %v15151_v24  ;;  %v10636_v50 = vpop.f32.mrb[187].mxu0  ;;  %10810 = vmatmul.mubr.bf16.gmra.mrb[196].mxu1 %v7473_v53 }
 0x653   :  { %10813 = vmatprep.mubr.msk.bf16.mxu1 %vm11310_vm1, %v16229_v15 }
 0x654   :  { %v7325_v13 = vadd.f32 %v15648_v9, %v7237_v33  ;;  %10742 = vmatmul.mubr.msk.bf16.gmra.mrb[36].mxu0 %vm642_vm3, %v6725_v3  ;;  %v7405_v61 = vmax.f32 %v7324_v32, 0.0  ;;  %v16496_v3 = vld [vmem:[#allocation7_spill] sm:$0xff] }
 0x655   :  { %10745 = vmatprep.mubr.msk.bf16.mxu0 %vm11310_vm1, %v16229_v15 }
 0x656   :  { %v7406_v46 = vmax.f32 %v7325_v13, 0.0 }
 0x657   :  { %v6990_v58 = vpop.f32.mrb[188].mxu0 }
 0x658   :  { %v7474_v29 = vpack.c.bf16 %v7406_v46, %v7405_v61  ;;  %v7238_v2 = vadd.f32 %v6990_v58, %v15171_v19  ;;  %v10639_v26 = vpop.f32.mrb[189].mxu0  ;;  %v16494_v19 = vld [vmem:[#allocation5_spill] sm:$0xff]  ;;  %v16497_v61 = vld [vmem:[#allocation8_spill] sm:$0xff] }
 0x659   :  { %v6993_v24 = vpop.f32.mrb[190].mxu0 }
 0x65a   :  { %v7326_v37 = vadd.f32 %v15648_v9, %v7238_v2  ;;  %v7239_v11 = vadd.f32 %v6993_v24, %v16493_v54  ;;  %v10640_v55 = vpop.f32.mrb[191].mxu0  ;;  %10814 = vmatmul.mubr.bf16.gmra.mrb[200].mxu1 %v7474_v29  ;;  %v16498_v54 = vld [vmem:[#allocation9_spill] sm:$0xff] }
 0x65b   :  { %10817 = vmatprep.mubr.msk.bf16.mxu1 %vm11310_vm1, %v16229_v15 }
 0x65c   :  { %v7327_v28 = vadd.f32 %v15648_v9, %v7239_v11  ;;  %10746 = vmatmul.mubr.msk.bf16.gmra.mrb[40].mxu0 %vm642_vm3, %v6724_v17  ;;  %v7407_v20 = vmax.f32 %v7326_v37, 0.0 }
 0x65e   :  { %v7408_v45 = vmax.f32 %v7327_v28, 0.0 }
 0x65f   :  { %v6998_v21 = vpop.f32.mrb[192].mxu0 }
 0x660   :  { %v7475_v8 = vpack.c.bf16 %v7408_v45, %v7407_v20  ;;  %v7240_v60 = vadd.f32 %v6998_v21, %v16494_v19  ;;  %v10643_v49 = vpop.f32.mrb[193].mxu0  ;;  %v16499_v45 = vld [vmem:[#allocation10_spill] sm:$0xff] }
 0x661   :  { %v7001_v25 = vpop.f32.mrb[194].mxu0 }
 0x662   :  { %v7328_v43 = vadd.f32 %v15648_v9, %v7240_v60  ;;  %v7241_v5 = vadd.f32 %v7001_v25, %v16495_v23  ;;  %v10644_v4 = vpop.f32.mrb[195].mxu0  ;;  %10818 = vmatmul.mubr.bf16.gmra.mrb[204].mxu1 %v7475_v8  ;;  %v16500_v23 = vld [vmem:[#allocation11_spill] sm:$0xff] }
 0x663   :  { %10821 = vmatprep.mubr.msk.bf16.mxu1 %vm11310_vm1, %v16229_v15 }
 0x664   :  { %v7329_v53 = vadd.f32 %v15648_v9, %v7241_v5  ;;  %v7409_v17 = vmax.f32 %v7328_v43, 0.0 }
 0x666   :  { %v7410_v34 = vmax.f32 %v7329_v53, 0.0 }
 0x667   :  { %v7006_v10 = vpop.f32.mrb[196].mxu0 }
 0x668   :  { %v7476_v38 = vpack.c.bf16 %v7410_v34, %v7409_v17  ;;  %v7242_v32 = vadd.f32 %v7006_v10, %v16496_v3  ;;  %v10647_v33 = vpop.f32.mrb[197].mxu0  ;;  %v16501_v34 = vld [vmem:[#allocation12_spill] sm:$0xff] }
 0x669   :  { %v7009_v50 = vpop.f32.mrb[198].mxu0 }
 0x66a   :  { %v7330_v13 = vadd.f32 %v15648_v9, %v7242_v32  ;;  %v7243_v46 = vadd.f32 %v7009_v50, %v16497_v61  ;;  %v10648_v58 = vpop.f32.mrb[199].mxu0  ;;  %10822 = vmatmul.mubr.bf16.gmra.mrb[208].mxu1 %v7476_v38  ;;  %v16502_v61 = vld [vmem:[#allocation13_spill] sm:$0xff] }
 0x66b   :  { %10825 = vmatprep.mubr.msk.bf16.mxu1 %vm11310_vm1, %v16229_v15 }
 0x66c   :  { %v7331_v29 = vadd.f32 %v15648_v9, %v7243_v46  ;;  %v7411_v2 = vmax.f32 %v7330_v13, 0.0 }
 0x66e   :  { %v7412_v26 = vmax.f32 %v7331_v29, 0.0 }
 0x66f   :  { %v7014_v24 = vpop.f32.mrb[200].mxu0 }
 0x670   :  { %v7477_v37 = vpack.c.bf16 %v7412_v26, %v7411_v2  ;;  %v7244_v11 = vadd.f32 %v7014_v24, %v16498_v54  ;;  %v10651_v55 = vpop.f32.mrb[201].mxu0  ;;  %v16503_v26 = vld [vmem:[#allocation14_spill] sm:$0xff] }
 0x671   :  { %v7017_v28 = vpop.f32.mrb[202].mxu0 }
 0x672   :  { %v7332_v20 = vadd.f32 %v15648_v9, %v7244_v11  ;;  %v7245_v21 = vadd.f32 %v7017_v28, %v16499_v45  ;;  %v10652_v8 = vpop.f32.mrb[203].mxu0  ;;  %10826 = vmatmul.mubr.bf16.gmra.mrb[212].mxu1 %v7477_v37  ;;  %v16504_v45 = vld [vmem:[#allocation15_spill] sm:$0xff] }
 0x673   :  { %10829 = vmatprep.mubr.msk.bf16.mxu1 %vm11310_vm1, %v16229_v15 }
 0x674   :  { %v7333_v19 = vadd.f32 %v15648_v9, %v7245_v21  ;;  %v7413_v60 = vmax.f32 %v7332_v20, 0.0 }
 0x676   :  { %v7414_v49 = vmax.f32 %v7333_v19, 0.0 }
 0x677   :  { %v7022_v25 = vpop.f32.mrb[204].mxu0 }
 0x678   :  { %v7478_v43 = vpack.c.bf16 %v7414_v49, %v7413_v60  ;;  %v7246_v5 = vadd.f32 %v7022_v25, %v16500_v23  ;;  %v10655_v4 = vpop.f32.mrb[205].mxu0  ;;  %v16505_v49 = vld [vmem:[#allocation16_spill] sm:$0xff] }
 0x679   :  { %v7025_v53 = vpop.f32.mrb[206].mxu0 }
 0x67a   :  { %v7334_v17 = vadd.f32 %v15648_v9, %v7246_v5  ;;  %v7247_v10 = vadd.f32 %v7025_v53, %v16501_v34  ;;  %v10656_v38 = vpop.f32.mrb[207].mxu0  ;;  %10830 = vmatmul.mubr.bf16.gmra.mrb[216].mxu1 %v7478_v43  ;;  %v16506_v34 = vld [vmem:[#allocation17_spill] sm:$0xff] }
 0x67b   :  { %10833 = vmatprep.mubr.msk.bf16.mxu1 %vm11310_vm1, %v16229_v15 }
 0x67c   :  { %v7335_v3 = vadd.f32 %v15648_v9, %v7247_v10  ;;  %v7415_v32 = vmax.f32 %v7334_v17, 0.0 }
 0x67e   :  { %v7416_v33 = vmax.f32 %v7335_v3, 0.0 }
 0x67f   :  { %v7030_v50 = vpop.f32.mrb[208].mxu0 }
 0x680   :  { %v7479_v13 = vpack.c.bf16 %v7416_v33, %v7415_v32  ;;  %v7248_v46 = vadd.f32 %v7030_v50, %v16502_v61  ;;  %v10659_v58 = vpop.f32.mrb[209].mxu0  ;;  %v16507_v33 = vld [vmem:[#allocation18_spill] sm:$0xff] }
 0x681   :  { %v7033_v29 = vpop.f32.mrb[210].mxu0 }
 0x682   :  { %v7336_v2 = vadd.f32 %v15648_v9, %v7248_v46  ;;  %v7249_v24 = vadd.f32 %v7033_v29, %v16503_v26  ;;  %v10660_v37 = vpop.f32.mrb[211].mxu0  ;;  %10834 = vmatmul.mubr.bf16.gmra.mrb[220].mxu1 %v7479_v13  ;;  %v16508_v26 = vld [vmem:[#allocation19_spill] sm:$0xff] }
 0x683   :  { %10837 = vmatprep.mubr.msk.bf16.mxu1 %vm11310_vm1, %v16229_v15 }
 0x684   :  { %v7337_v54 = vadd.f32 %v15648_v9, %v7249_v24  ;;  %v7417_v11 = vmax.f32 %v7336_v2, 0.0 }
 0x686   :  { %v7418_v55 = vmax.f32 %v7337_v54, 0.0 }
 0x687   :  { %v7038_v28 = vpop.f32.mrb[212].mxu0 }
 0x688   :  { %v7480_v20 = vpack.c.bf16 %v7418_v55, %v7417_v11  ;;  %v7250_v21 = vadd.f32 %v7038_v28, %v16504_v45  ;;  %v10663_v8 = vpop.f32.mrb[213].mxu0  ;;  %v16509_v55 = vld [vmem:[#allocation20_spill] sm:$0xff] }
 0x689   :  { %v7041_v19 = vpop.f32.mrb[214].mxu0 }
 0x68a   :  { %v7338_v60 = vadd.f32 %v15648_v9, %v7250_v21  ;;  %v7251_v25 = vadd.f32 %v7041_v19, %v16505_v49  ;;  %v10664_v43 = vpop.f32.mrb[215].mxu0  ;;  %10838 = vmatmul.mubr.bf16.gmra.mrb[224].mxu1 %v7480_v20 }
 0x68b   :  { %10841 = vmatprep.mubr.msk.bf16.mxu1 %vm11310_vm1, %v16229_v15 }
 0x68c   :  { %v7339_v23 = vadd.f32 %v15648_v9, %v7251_v25  ;;  %v7419_v5 = vmax.f32 %v7338_v60, 0.0 }
 0x68e   :  { %v7420_v4 = vmax.f32 %v7339_v23, 0.0 }
 0x68f   :  { %v7046_v53 = vpop.f32.mrb[216].mxu0 }
 0x690   :  { %v7481_v17 = vpack.c.bf16 %v7420_v4, %v7419_v5  ;;  %v7252_v10 = vadd.f32 %v7046_v53, %v16506_v34  ;;  %v10667_v38 = vpop.f32.mrb[217].mxu0 }
 0x691   :  { %v7049_v3 = vpop.f32.mrb[218].mxu0 }
 0x692   :  { %v7340_v32 = vadd.f32 %v15648_v9, %v7252_v10  ;;  %v7253_v50 = vadd.f32 %v7049_v3, %v16507_v33  ;;  %v10668_v13 = vpop.f32.mrb[219].mxu0  ;;  %10842 = vmatmul.mubr.bf16.gmra.mrb[228].mxu1 %v7481_v17 }
 0x693   :  { %10845 = vmatprep.mubr.msk.bf16.mxu1 %vm11310_vm1, %v16229_v15 }
 0x694   :  { %v7341_v61 = vadd.f32 %v15648_v9, %v7253_v50  ;;  %v7421_v46 = vmax.f32 %v7340_v32, 0.0 }
 0x696   :  { %v7422_v58 = vmax.f32 %v7341_v61, 0.0 }
 0x697   :  { %v7054_v29 = vpop.f32.mrb[220].mxu0 }
 0x698   :  { %v7482_v2 = vpack.c.bf16 %v7422_v58, %v7421_v46  ;;  %v7254_v24 = vadd.f32 %v7054_v29, %v16508_v26  ;;  %v10671_v37 = vpop.f32.mrb[221].mxu0 }
 0x699   :  { %v7057_v54 = vpop.f32.mrb[222].mxu0 }
 0x69a   :  { %v7342_v11 = vadd.f32 %v15648_v9, %v7254_v24  ;;  %v7255_v28 = vadd.f32 %v7057_v54, %v16509_v55  ;;  %v10672_v20 = vpop.f32.mrb[223].mxu0  ;;  %10846 = vmatmul.mubr.bf16.gmra.mrb[232].mxu1 %v7482_v2 }
 0x69b   :  { %10849 = vmatprep.mubr.msk.bf16.mxu1 %vm11310_vm1, %v16229_v15 }
 0x69c   :  { %v7343_v45 = vadd.f32 %v15648_v9, %v7255_v28  ;;  %v7423_v21 = vmax.f32 %v7342_v11, 0.0 }
 0x69e   :  { %v7424_v8 = vmax.f32 %v7343_v45, 0.0 }
 0x69f   :  { %v7062_v19 = vpop.f32.mrb[224].mxu0 }
 0x6a0   :  { %v7483_v60 = vpack.c.bf16 %v7424_v8, %v7423_v21  ;;  %v7256_v49 = vadd.f32 %v7062_v19, %v15367_v39  ;;  %v10675_v25 = vpop.f32.mrb[225].mxu0 }
 0x6a1   :  { %v7065_v43 = vpop.f32.mrb[226].mxu0 }
 0x6a2   :  { %v7344_v23 = vadd.f32 %v15648_v9, %v7256_v49  ;;  %v7257_v5 = vadd.f32 %v7065_v43, %v15374_v44  ;;  %v10676_v4 = vpop.f32.mrb[227].mxu0  ;;  %10850 = vmatmul.mubr.bf16.gmra.mrb[236].mxu1 %v7483_v60 }
 0x6a3   :  { %10853 = vmatprep.mubr.msk.bf16.mxu1 %vm11310_vm1, %v16229_v15 }
 0x6a4   :  { %v7345_v53 = vadd.f32 %v15648_v9, %v7257_v5  ;;  %v7425_v17 = vmax.f32 %v7344_v23, 0.0 }
 0x6a6   :  { %v7426_v34 = vmax.f32 %v7345_v53, 0.0 }
 0x6a7   :  { %v7070_v10 = vpop.f32.mrb[228].mxu0 }
 0x6a8   :  { %v7484_v38 = vpack.c.bf16 %v7426_v34, %v7425_v17  ;;  %v7258_v3 = vadd.f32 %v7070_v10, %v15386_v56  ;;  %v10679_v39 = vpop.f32.mrb[229].mxu0 }
 0x6a9   :  { %v7073_v32 = vpop.f32.mrb[230].mxu0 }
 0x6aa   :  { %v7346_v33 = vadd.f32 %v15648_v9, %v7258_v3  ;;  %v7259_v50 = vadd.f32 %v7073_v32, %v15393_v52  ;;  %v10680_v44 = vpop.f32.mrb[231].mxu0  ;;  %10854 = vmatmul.mubr.bf16.gmra.mrb[240].mxu1 %v7484_v38 }
 0x6ab   :  { %10857 = vmatprep.mubr.msk.bf16.mxu1 %vm11310_vm1, %v16229_v15 }
 0x6ac   :  { %v7347_v13 = vadd.f32 %v15648_v9, %v7259_v50  ;;  %v7427_v61 = vmax.f32 %v7346_v33, 0.0 }
 0x6ae   :  { %v7428_v46 = vmax.f32 %v7347_v13, 0.0  ;;  %v15924_v13 = vld [vmem:[%s16188_s4] ss:$0 sm:$0xff] }
 0x6af   :  { %v7078_v58 = vpop.f32.mrb[232].mxu0 }
 0x6b0   :  { %v7485_v29 = vpack.c.bf16 %v7428_v46, %v7427_v61  ;;  %v7260_v2 = vadd.f32 %v7078_v58, %v15405_v63  ;;  %v10683_v56 = vpop.f32.mrb[233].mxu0 }
 0x6b1   :  { %v7081_v26 = vpop.f32.mrb[234].mxu0 }
 0x6b2   :  { %v7348_v24 = vadd.f32 %v15648_v9, %v7260_v2  ;;  %v7261_v37 = vadd.f32 %v7081_v26, %v15412_v35  ;;  %v10684_v52 = vpop.f32.mrb[235].mxu0  ;;  %10858 = vmatmul.mubr.bf16.gmra.mrb[244].mxu1 %v7485_v29 }
 0x6b3   :  { %10861 = vmatprep.mubr.msk.bf16.mxu1 %vm11310_vm1, %v16229_v15 }
 0x6b4   :  { %v7349_v54 = vadd.f32 %v15648_v9, %v7261_v37  ;;  %v7429_v11 = vmax.f32 %v7348_v24, 0.0 }
 0x6b6   :  { %v7430_v55 = vmax.f32 %v7349_v54, 0.0 }
 0x6b7   :  { %v7086_v28 = vpop.f32.mrb[236].mxu0 }
 0x6b8   :  { %v7486_v20 = vpack.c.bf16 %v7430_v55, %v7429_v11  ;;  %v7262_v45 = vadd.f32 %v7086_v28, %v15424_v1  ;;  %v10687_v63 = vpop.f32.mrb[237].mxu0 }
 0x6b9   :  { %v7089_v21 = vpop.f32.mrb[238].mxu0 }
 0x6ba   :  { %v7350_v8 = vadd.f32 %v15648_v9, %v7262_v45  ;;  %v7263_v19 = vadd.f32 %v7089_v21, %v15431_v30  ;;  %10862 = vmatmul.mubr.bf16.gmra.mrb[248].mxu1 %v7486_v20  ;;  %v10688_v35 = vpop.f32.mrb[239].mxu0 }
 0x6bb   :  { %10865 = vmatprep.mubr.msk.bf16.mxu1 %vm11310_vm1, %v16229_v15 }
 0x6bc   :  { %v7351_v60 = vadd.f32 %v15648_v9, %v7263_v19  ;;  %v7431_v49 = vmax.f32 %v7350_v8, 0.0 }
 0x6be   :  { %v7432_v25 = vmax.f32 %v7351_v60, 0.0 }
 0x6bf   :  { %v7094_v43 = vpop.f32.mrb[240].mxu0 }
 0x6c0   :  { %v7487_v23 = vpack.c.bf16 %v7432_v25, %v7431_v49  ;;  %v7264_v5 = vadd.f32 %v7094_v43, %v15443_v16  ;;  %v10691_v1 = vpop.f32.mrb[241].mxu0 }
 0x6c1   :  { %v7097_v4 = vpop.f32.mrb[242].mxu0 }
 0x6c2   :  { %v7352_v53 = vadd.f32 %v15648_v9, %v7264_v5  ;;  %v7265_v17 = vadd.f32 %v7097_v4, %v15450_v31  ;;  %10866 = vmatmul.mubr.bf16.gmra.mrb[252].mxu1 %v7487_v23  ;;  %v10692_v30 = vpop.f32.mrb[243].mxu0 }
 0x6c3   :  { %10869 = vmatprep.mubr.msk.bf16.mxu1 %vm11310_vm1, %v16229_v15 }
 0x6c4   :  { %v7353_v34 = vadd.f32 %v15648_v9, %v7265_v17  ;;  %v7433_v10 = vmax.f32 %v7352_v53, 0.0 }
 0x6c6   :  { %v7434_v38 = vmax.f32 %v7353_v34, 0.0 }
 0x6c7   :  { %v7102_v3 = vpop.f32.mrb[244].mxu0 }
 0x6c8   :  { %v7488_v39 = vpack.c.bf16 %v7434_v38, %v7433_v10  ;;  %v7266_v32 = vadd.f32 %v7102_v3, %v15462_v36  ;;  %v10695_v16 = vpop.f32.mrb[245].mxu0  ;;  %v16510_v10 = vld [vmem:[#allocation21_spill] sm:$0xff] }
 0x6c9   :  { %v7105_v33 = vpop.f32.mrb[246].mxu0 }
 0x6ca   :  { %v7354_v50 = vadd.f32 %v15648_v9, %v7266_v32  ;;  %v7267_v44 = vadd.f32 %v7105_v33, %v15469_v47  ;;  %10870 = vmatmul.mubr.bf16.gmra.mrb[0].mxu1 %v7488_v39  ;;  %v10696_v31 = vpop.f32.mrb[247].mxu0 }
 0x6cb   :  { %10873 = vmatprep.mubr.msk.bf16.mxu1 %vm11310_vm1, %v16229_v15 }
 0x6cc   :  { %v7355_v61 = vadd.f32 %v15648_v9, %v7267_v44  ;;  %v7435_v36 = vmax.f32 %v7354_v50, 0.0 }
 0x6cd   :  { %v7608_v46 = vpop.f32.mrb[152].mxu1 }
 0x6ce   :  { %v7436_v58 = vmax.f32 %v7355_v61, 0.0  ;;  %v7609_v29 = vadd.f32 %v15924_v13, %v7608_v46  ;;  %v10767_v2 = vpop.f32.mrb[153].mxu1 }
 0x6cf   :  { %v7110_v56 = vpop.f32.mrb[248].mxu0  ;;  %v7611_v47 = vpop.f32.mrb[154].mxu1 }
 0x6d0   :  { %v7489_v26 = vpack.c.bf16 %v7436_v58, %v7435_v36  ;;  %v7268_v24 = vadd.f32 %v7110_v56, %v15481_v22  ;;  %v7612_v37 = vadd.f32 %v15924_v13, %v7611_v47  ;;  %v10699_v52 = vpop.f32.mrb[249].mxu0  ;;  %v10768_v54 = vpop.f32.mrb[155].mxu1  ;;  %v7934_v55 = vmax.f32 %v7609_v29, 0.0 }
 0x6d1   :  { %v7113_v11 = vpop.f32.mrb[250].mxu0 }
 0x6d2   :  { %v7356_v28 = vadd.f32 %v15648_v9, %v7268_v24  ;;  %v7935_v20 = vmax.f32 %v7612_v37, 0.0  ;;  %v7269_v45 = vadd.f32 %v7113_v11, %v15488_v42  ;;  %10874 = vmatmul.mubr.bf16.gmra.mrb[4].mxu1 %v7489_v26  ;;  %v10700_v63 = vpop.f32.mrb[251].mxu0  ;;  %v16511_v37 = vld [vmem:[#allocation22_spill] sm:$0xff] }
 0x6d3   :  { %10877 = vmatprep.mubr.msk.bf16.mxu1 %vm11310_vm1, %v16229_v15 }
 0x6d4   :  { %v15936_v21 = vpack.c.bf16 %v7935_v20, %v7934_v55  ;;  %v7357_v22 = vadd.f32 %v15648_v9, %v7269_v45  ;;  %v7437_v19 = vmax.f32 %v7356_v28, 0.0 }
 0x6d5   :  { %v7616_v8 = vpop.f32.mrb[156].mxu1 }
 0x6d6   :  { %v7438_v35 = vmax.f32 %v7357_v22, 0.0  ;;  %v7617_v60 = vadd.f32 %v15924_v13, %v7616_v8  ;;  %v10771_v49 = vpop.f32.mrb[157].mxu1 }
 0x6d7   :  { %v7118_v25 = vpop.f32.mrb[252].mxu0  ;;  %v7619_v43 = vpop.f32.mrb[158].mxu1 }
 0x6d8   :  { %v7490_v23 = vpack.c.bf16 %v7438_v35, %v7437_v19  ;;  %v7270_v42 = vadd.f32 %v7118_v25, %v15500_v7  ;;  %v7620_v5 = vadd.f32 %v15924_v13, %v7619_v43  ;;  %v10703_v1 = vpop.f32.mrb[253].mxu0  ;;  %v10772_v4 = vpop.f32.mrb[159].mxu1  ;;  %v7936_v17 = vmax.f32 %v7617_v60, 0.0 }
 0x6d9   :  { %v7121_v53 = vpop.f32.mrb[254].mxu0 }
 0x6da   :  { %v7358_v30 = vadd.f32 %v15648_v9, %v7270_v42  ;;  %v7937_v34 = vmax.f32 %v7620_v5, 0.0  ;;  %v7271_v38 = vadd.f32 %v7121_v53, %v16510_v10  ;;  %10878 = vmatmul.mubr.bf16.gmra.mrb[8].mxu1 %v7490_v23  ;;  %v10704_v3 = vpop.f32.mrb[255].mxu0 }
 0x6db   :  { %10881 = vmatprep.mubr.msk.bf16.mxu1 %vm11310_vm1, %v16229_v15 }
 0x6dc   :  { %v15946_v39 = vpack.c.bf16 %v7937_v34, %v7936_v17  ;;  %v7359_v7 = vadd.f32 %v15648_v9, %v7271_v38  ;;  %v7439_v16 = vmax.f32 %v7358_v30, 0.0 }
 0x6dd   :  { %v7624_v32 = vpop.f32.mrb[160].mxu1 }
 0x6de   :  { %v7440_v33 = vmax.f32 %v7359_v7, 0.0  ;;  %v7625_v50 = vadd.f32 %v15924_v13, %v7624_v32  ;;  %v10775_v44 = vpop.f32.mrb[161].mxu1 }
 0x6df   :  { %v7126_v31 = vpop.f32.mrb[0].mxu0  ;;  %v7627_v61 = vpop.f32.mrb[162].mxu1 }
 0x6e0   :  { %v7491_v46 = vpack.c.bf16 %v7440_v33, %v7439_v16  ;;  %v7272_v36 = vadd.f32 %v7126_v31, %v15519_v62  ;;  %v7628_v58 = vadd.f32 %v15924_v13, %v7627_v61  ;;  %v10707_v29 = vpop.f32.mrb[1].mxu0  ;;  %v10776_v2 = vpop.f32.mrb[163].mxu1  ;;  %v7938_v47 = vmax.f32 %v7625_v50, 0.0 }
 0x6e1   :  { %v7129_v56 = vpop.f32.mrb[2].mxu0 }
 0x6e2   :  { %v7360_v26 = vadd.f32 %v15648_v9, %v7272_v36  ;;  %v7939_v24 = vmax.f32 %v7628_v58, 0.0  ;;  %v7273_v52 = vadd.f32 %v7129_v56, %v16511_v37  ;;  %10882 = vmatmul.mubr.bf16.gmra.mrb[12].mxu1 %v7491_v46  ;;  %v10708_v54 = vpop.f32.mrb[3].mxu0 }
 0x6e3   :  { %10885 = vmatprep.mubr.msk.bf16.mxu1 %vm11310_vm1, %v16229_v15 }
 0x6e4   :  { %v15956_v11 = vpack.c.bf16 %v7939_v24, %v7938_v47  ;;  %v7361_v62 = vadd.f32 %v15648_v9, %v7273_v52  ;;  %v7441_v28 = vmax.f32 %v7360_v26, 0.0  ;;  %v15965_v9 = vld [vmem:[%s16186_s2] ss:$0 sm:$0xff] }
 0x6e5   :  { %v7632_v55 = vpop.f32.mrb[164].mxu1 }
 0x6e6   :  { %v7442_v20 = vmax.f32 %v7361_v62, 0.0  ;;  %v7633_v45 = vadd.f32 %v15924_v13, %v7632_v55  ;;  %v10779_v63 = vpop.f32.mrb[165].mxu1 }
 0x6e7   :  { %v7134_v22 = vpop.f32.mrb[4].mxu0  ;;  %v7635_v8 = vpop.f32.mrb[166].mxu1 }
 0x6e8   :  { %v7492_v19 = vpack.c.bf16 %v7442_v20, %v7441_v28  ;;  %v7274_v35 = vadd.f32 %v7134_v22, %v15538_v48  ;;  %v7636_v60 = vadd.f32 %v15924_v13, %v7635_v8  ;;  %v10711_v49 = vpop.f32.mrb[5].mxu0  ;;  %v10780_v25 = vpop.f32.mrb[167].mxu1  ;;  %v7940_v23 = vmax.f32 %v7633_v45, 0.0  ;;  %v16512_v8 = vld [vmem:[#allocation23_spill] sm:$0xff] }
 0x6e9   :  { %v7137_v43 = vpop.f32.mrb[6].mxu0 }
 0x6ea   :  { %v7362_v42 = vadd.f32 %v15965_v9, %v7274_v35  ;;  %v7941_v5 = vmax.f32 %v7636_v60, 0.0  ;;  %v7275_v1 = vadd.f32 %v7137_v43, %v15545_v40  ;;  %10886 = vmatmul.mubr.bf16.gmra.mrb[16].mxu1 %v7492_v19  ;;  %v10712_v4 = vpop.f32.mrb[7].mxu0 }
 0x6eb   :  { %10889 = vmatprep.mubr.msk.bf16.mxu1 %vm11310_vm1, %v16229_v15 }
 0x6ec   :  { %v15971_v48 = vpack.c.bf16 %v7941_v5, %v7940_v23  ;;  %v7363_v53 = vadd.f32 %v15965_v9, %v7275_v1  ;;  %v7443_v30 = vmax.f32 %v7362_v42, 0.0 }
 0x6ed   :  { %v7640_v17 = vpop.f32.mrb[168].mxu1 }
 0x6ee   :  { %v7444_v34 = vmax.f32 %v7363_v53, 0.0  ;;  %v7641_v10 = vadd.f32 %v15924_v13, %v7640_v17  ;;  %v10783_v38 = vpop.f32.mrb[169].mxu1  ;;  %v16513_v53 = vld [vmem:[#allocation24_spill] sm:$0xff] }
 0x6ef   :  { %v7142_v3 = vpop.f32.mrb[8].mxu0  ;;  %v7643_v7 = vpop.f32.mrb[170].mxu1 }
 0x6f0   :  { %v7493_v32 = vpack.c.bf16 %v7444_v34, %v7443_v30  ;;  %v7276_v40 = vadd.f32 %v7142_v3, %v15557_v0  ;;  %v7644_v16 = vadd.f32 %v15924_v13, %v7643_v7  ;;  %v10715_v33 = vpop.f32.mrb[9].mxu0  ;;  %v10784_v50 = vpop.f32.mrb[171].mxu1  ;;  %v7942_v31 = vmax.f32 %v7641_v10, 0.0 }
 0x6f1   :  { %v7145_v44 = vpop.f32.mrb[10].mxu0 }
 0x6f2   :  { %v7364_v61 = vadd.f32 %v15965_v9, %v7276_v40  ;;  %v7943_v46 = vmax.f32 %v7644_v16, 0.0  ;;  %v7277_v36 = vadd.f32 %v7145_v44, %v15564_v59  ;;  %10890 = vmatmul.mubr.bf16.gmra.mrb[20].mxu1 %v7493_v32  ;;  %v10716_v58 = vpop.f32.mrb[11].mxu0  ;;  %v16514_v40 = vld [vmem:[#allocation25_spill] sm:$0xff] }
 0x6f3   :  { %10893 = vmatprep.mubr.msk.bf16.mxu1 %vm11310_vm1, %v16229_v15 }
 0x6f4   :  { %v15981_v29 = vpack.c.bf16 %v7943_v46, %v7942_v31  ;;  %v7365_v0 = vadd.f32 %v15965_v9, %v7277_v36  ;;  %v7445_v56 = vmax.f32 %v7364_v61, 0.0 }
 0x6f5   :  { %v7648_v2 = vpop.f32.mrb[172].mxu1 }
 0x6f6   :  { %v7446_v47 = vmax.f32 %v7365_v0, 0.0  ;;  %v7649_v26 = vadd.f32 %v15924_v13, %v7648_v2  ;;  %v10787_v24 = vpop.f32.mrb[173].mxu1 }
 0x6f7   :  { %v7150_v37 = vpop.f32.mrb[12].mxu0  ;;  %v7651_v52 = vpop.f32.mrb[174].mxu1 }
 0x6f8   :  { %v7494_v54 = vpack.c.bf16 %v7446_v47, %v7445_v56  ;;  %v7278_v59 = vadd.f32 %v7150_v37, %v15576_v51  ;;  %v7652_v62 = vadd.f32 %v15924_v13, %v7651_v52  ;;  %v10719_v55 = vpop.f32.mrb[13].mxu0  ;;  %v10788_v28 = vpop.f32.mrb[175].mxu1  ;;  %v7944_v45 = vmax.f32 %v7649_v26, 0.0  ;;  %v16515_v47 = vld [vmem:[#allocation26_spill] sm:$0xff] }
 0x6f9   :  { %v7153_v20 = vpop.f32.mrb[14].mxu0  ;;  %v16516_v28 = vld [vmem:[#allocation27_spill] sm:$0xff] }
 0x6fa   :  { %v7366_v63 = vadd.f32 %v15965_v9, %v7278_v59  ;;  %v7945_v22 = vmax.f32 %v7652_v62, 0.0  ;;  %v7279_v19 = vadd.f32 %v7153_v20, %v16512_v8  ;;  %10894 = vmatmul.mubr.bf16.gmra.mrb[24].mxu1 %v7494_v54  ;;  %v10720_v35 = vpop.f32.mrb[15].mxu0 }
 0x6fb   :  { %10897 = vmatprep.mubr.msk.bf16.mxu1 %vm11310_vm1, %v16229_v15 }
 0x6fc   :  { %v15991_v60 = vpack.c.bf16 %v7945_v22, %v7944_v45  ;;  %v7367_v51 = vadd.f32 %v15965_v9, %v7279_v19  ;;  %v7447_v25 = vmax.f32 %v7366_v63, 0.0 }
 0x6fd   :  { %v7656_v49 = vpop.f32.mrb[176].mxu1 }
 0x6fe   :  { %v7448_v43 = vmax.f32 %v7367_v51, 0.0  ;;  %v7657_v23 = vadd.f32 %v15924_v13, %v7656_v49  ;;  %v10791_v42 = vpop.f32.mrb[177].mxu1 }
 0x6ff   :  { %v7158_v5 = vpop.f32.mrb[16].mxu0  ;;  %v7659_v1 = vpop.f32.mrb[178].mxu1  ;;  %v16517_v42 = vld [vmem:[#allocation28_spill] sm:$0xff] }
 0x700   :  { %v7495_v4 = vpack.c.bf16 %v7448_v43, %v7447_v25  ;;  %v7280_v17 = vadd.f32 %v7158_v5, %v16513_v53  ;;  %v7660_v30 = vadd.f32 %v15924_v13, %v7659_v1  ;;  %v10723_v34 = vpop.f32.mrb[17].mxu0  ;;  %v10792_v10 = vpop.f32.mrb[179].mxu1  ;;  %v7946_v3 = vmax.f32 %v7657_v23, 0.0 }
 0x701   :  { %v7161_v38 = vpop.f32.mrb[18].mxu0 }
 0x702   :  { %v7368_v7 = vadd.f32 %v15965_v9, %v7280_v17  ;;  %v7947_v32 = vmax.f32 %v7660_v30, 0.0  ;;  %v7281_v16 = vadd.f32 %v7161_v38, %v16514_v40  ;;  %10898 = vmatmul.mubr.bf16.gmra.mrb[28].mxu1 %v7495_v4  ;;  %v10724_v33 = vpop.f32.mrb[19].mxu0  ;;  %v16518_v38 = vld [vmem:[#allocation29_spill] sm:$0xff] }
 0x703   :  { %10901 = vmatprep.mubr.msk.bf16.mxu1 %vm11310_vm1, %v16229_v15 }
 0x704   :  { %v16001_v50 = vpack.c.bf16 %v7947_v32, %v7946_v3  ;;  %v7369_v44 = vadd.f32 %v15965_v9, %v7281_v16  ;;  %v7449_v61 = vmax.f32 %v7368_v7, 0.0 }
 0x705   :  { %v7664_v31 = vpop.f32.mrb[180].mxu1 }
 0x706   :  { %v7450_v46 = vmax.f32 %v7369_v44, 0.0  ;;  %v7665_v36 = vadd.f32 %v15924_v13, %v7664_v31  ;;  %v10795_v58 = vpop.f32.mrb[181].mxu1 }
 0x707   :  { %v7166_v0 = vpop.f32.mrb[20].mxu0  ;;  %v7667_v2 = vpop.f32.mrb[182].mxu1 }
 0x708   :  { %v7496_v56 = vpack.c.bf16 %v7450_v46, %v7449_v61  ;;  %v7282_v26 = vadd.f32 %v7166_v0, %v16515_v47  ;;  %v7668_v24 = vadd.f32 %v15924_v13, %v7667_v2  ;;  %v10727_v37 = vpop.f32.mrb[21].mxu0  ;;  %v10796_v52 = vpop.f32.mrb[183].mxu1  ;;  %v7948_v59 = vmax.f32 %v7665_v36, 0.0 }
 0x709   :  { %v7169_v54 = vpop.f32.mrb[22].mxu0 }
 0x70a   :  { %v7370_v62 = vadd.f32 %v15965_v9, %v7282_v26  ;;  %v7949_v55 = vmax.f32 %v7668_v24, 0.0  ;;  %v7283_v20 = vadd.f32 %v7169_v54, %v16516_v28  ;;  %10902 = vmatmul.mubr.bf16.gmra.mrb[32].mxu1 %v7496_v56  ;;  %v10728_v45 = vpop.f32.mrb[23].mxu0 }
 0x70b   :  { %10905 = vmatprep.mubr.msk.bf16.mxu1 %vm11310_vm1, %v16229_v15 }
 0x70c   :  { %v16011_v63 = vpack.c.bf16 %v7949_v55, %v7948_v59  ;;  %v7371_v22 = vadd.f32 %v15965_v9, %v7283_v20  ;;  %v7451_v19 = vmax.f32 %v7370_v62, 0.0 }
 0x70d   :  { %v7672_v8 = vpop.f32.mrb[184].mxu1 }
 0x70e   :  { %v7452_v35 = vmax.f32 %v7371_v22, 0.0  ;;  %v7673_v51 = vadd.f32 %v15924_v13, %v7672_v8  ;;  %v10799_v49 = vpop.f32.mrb[185].mxu1 }
 0x70f   :  { %v7174_v25 = vpop.f32.mrb[24].mxu0  ;;  %v7675_v43 = vpop.f32.mrb[186].mxu1 }
 0x710   :  { %v7497_v23 = vpack.c.bf16 %v7452_v35, %v7451_v19  ;;  %v7284_v5 = vadd.f32 %v7174_v25, %v16517_v42  ;;  %v7676_v1 = vadd.f32 %v15924_v13, %v7675_v43  ;;  %v10731_v4 = vpop.f32.mrb[25].mxu0  ;;  %v10800_v53 = vpop.f32.mrb[187].mxu1  ;;  %v7950_v30 = vmax.f32 %v7673_v51, 0.0 }
 0x711   :  { %v7177_v17 = vpop.f32.mrb[26].mxu0 }
 0x712   :  { %v7372_v34 = vadd.f32 %v15965_v9, %v7284_v5  ;;  %v7951_v10 = vmax.f32 %v7676_v1, 0.0  ;;  %v7285_v3 = vadd.f32 %v7177_v17, %v16518_v38  ;;  %10906 = vmatmul.mubr.bf16.gmra.mrb[36].mxu1 %v7497_v23  ;;  %v10732_v7 = vpop.f32.mrb[27].mxu0 }
 0x713   :  { %10909 = vmatprep.mubr.msk.bf16.mxu1 %vm11310_vm1, %v16229_v15 }
 0x714   :  { %v10929_v32 = vpack.c.bf16 %v7951_v10, %v7950_v30  ;;  %v7373_v40 = vadd.f32 %v15965_v9, %v7285_v3  ;;  %v7453_v33 = vmax.f32 %v7372_v34, 0.0 }
 0x715   :  { %v7680_v16 = vpop.f32.mrb[188].mxu1 }
 0x716   :  { %v7454_v44 = vmax.f32 %v7373_v40, 0.0  ;;  %v7681_v31 = vadd.f32 %v15924_v13, %v7680_v16  ;;  %v10803_v61 = vpop.f32.mrb[189].mxu1  ;;  %10930 = vmatprep.subr.bf16.mxu0 %v10929_v32 }
 0x717   :  { %v7182_v46 = vpop.f32.mrb[28].mxu0  ;;  %v7683_v36 = vpop.f32.mrb[190].mxu1  ;;  %10932 = vmatpush3.bf16.msra.mxu0 %v15936_v21 }
 0x718   :  { %v7498_v58 = vpack.c.bf16 %v7454_v44, %v7453_v33  ;;  %v7286_v0 = vadd.f32 %v7182_v46, %v15652_v12  ;;  %v7684_v2 = vadd.f32 %v15924_v13, %v7683_v36  ;;  %v10735_v56 = vpop.f32.mrb[29].mxu0  ;;  %v10804_v47 = vpop.f32.mrb[191].mxu1  ;;  %v7952_v24 = vmax.f32 %v7681_v31, 0.0 }
 0x719   :  { %v7185_v26 = vpop.f32.mrb[30].mxu0 }
 0x71a   :  { %v7374_v37 = vadd.f32 %v15965_v9, %v7286_v0  ;;  %v7953_v52 = vmax.f32 %v7684_v2, 0.0  ;;  %v7287_v54 = vadd.f32 %v7185_v26, %v15658_v18  ;;  %10910 = vmatmul.mubr.bf16.gmra.mrb[40].mxu1 %v7498_v58  ;;  %v10736_v59 = vpop.f32.mrb[31].mxu0 }
 0x71b   :  { %10913 = vmatprep.mubr.msk.bf16.mxu1 %vm11310_vm1, %v16229_v15 }
 0x71c   :  { %v10933_v21 = vpack.c.bf16 %v7953_v52, %v7952_v24  ;;  %v7375_v62 = vadd.f32 %v15965_v9, %v7287_v54  ;;  %v7455_v55 = vmax.f32 %v7374_v37, 0.0 }
 0x71d   :  { %v7688_v12 = vpop.f32.mrb[192].mxu1 }
 0x71e   :  { %v7456_v28 = vmax.f32 %v7375_v62, 0.0  ;;  %v7689_v20 = vadd.f32 %v15924_v13, %v7688_v12  ;;  %v10807_v45 = vpop.f32.mrb[193].mxu1  ;;  %10934 = vmatprep.subr.bf16.mxu0 %v10933_v21 }
 0x71f   :  { %v7190_v22 = vpop.f32.mrb[32].mxu0  ;;  %v7691_v8 = vpop.f32.mrb[194].mxu1  ;;  %10936 = vmatpush3.bf16.msra.mxu0 %v15946_v39 }
 0x720   :  { %v7499_v18 = vpack.c.bf16 %v7456_v28, %v7455_v55  ;;  %v7288_v19 = vadd.f32 %v7190_v22, %v15669_v6  ;;  %v7692_v35 = vadd.f32 %v15924_v13, %v7691_v8  ;;  %v10739_v51 = vpop.f32.mrb[33].mxu0  ;;  %v10808_v49 = vpop.f32.mrb[195].mxu1  ;;  %v7954_v43 = vmax.f32 %v7689_v20, 0.0 }
 0x721   :  { %v7193_v25 = vpop.f32.mrb[34].mxu0 }
 0x722   :  { %v7376_v23 = vadd.f32 %v15965_v9, %v7288_v19  ;;  %v7955_v42 = vmax.f32 %v7692_v35, 0.0  ;;  %v7289_v5 = vadd.f32 %v7193_v25, %v15675_v57  ;;  %10914 = vmatmul.mubr.bf16.gmra.mrb[44].mxu1 %v7499_v18  ;;  %v10740_v1 = vpop.f32.mrb[35].mxu0 }
 0x723   :  { %10917 = vmatprep.mubr.msk.bf16.mxu1 %vm11310_vm1, %v16229_v15 }
 0x724   :  { %v10937_v39 = vpack.c.bf16 %v7955_v42, %v7954_v43  ;;  %v7377_v4 = vadd.f32 %v15965_v9, %v7289_v5  ;;  %v7457_v53 = vmax.f32 %v7376_v23, 0.0 }
 0x725   :  { %v7696_v6 = vpop.f32.mrb[196].mxu1 }
 0x726   :  { %v7458_v17 = vmax.f32 %v7377_v4, 0.0  ;;  %v7697_v30 = vadd.f32 %v15924_v13, %v7696_v6  ;;  %v10811_v34 = vpop.f32.mrb[197].mxu1  ;;  %10938 = vmatprep.subr.bf16.mxu0 %v10937_v39 }
 0x727   :  { %v7198_v10 = vpop.f32.mrb[36].mxu0  ;;  %v7699_v38 = vpop.f32.mrb[198].mxu1  ;;  %10940 = vmatpush3.bf16.msra.mxu0 %v15956_v11 }
 0x728   :  { %v7500_v57 = vpack.c.bf16 %v7458_v17, %v7457_v53  ;;  %v7290_v3 = vadd.f32 %v7198_v10, %v15688_v14  ;;  %v7700_v7 = vadd.f32 %v15924_v13, %v7699_v38  ;;  %v10743_v32 = vpop.f32.mrb[37].mxu0  ;;  %v10812_v40 = vpop.f32.mrb[199].mxu1  ;;  %v7956_v33 = vmax.f32 %v7697_v30, 0.0 }
 0x729   :  { %v7201_v16 = vpop.f32.mrb[38].mxu0 }
 0x72a   :  { %v7378_v44 = vadd.f32 %v15965_v9, %v7290_v3  ;;  %v7957_v31 = vmax.f32 %v7700_v7, 0.0  ;;  %v7291_v61 = vadd.f32 %v7201_v16, %v15694_v41  ;;  %10918 = vmatmul.mubr.bf16.gmra.mrb[48].mxu1 %v7500_v57  ;;  %v10744_v46 = vpop.f32.mrb[39].mxu0 }
 0x72b   :  { %10921 = vmatprep.mubr.msk.bf16.mxu1 %vm11310_vm1, %v16229_v15 }
 0x72c   :  { %v10941_v11 = vpack.c.bf16 %v7957_v31, %v7956_v33  ;;  %v7379_v36 = vadd.f32 %v15965_v9, %v7291_v61  ;;  %v7459_v58 = vmax.f32 %v7378_v44, 0.0 }
 0x72d   :  { %v7704_v14 = vpop.f32.mrb[200].mxu1 }
 0x72e   :  { %v7460_v0 = vmax.f32 %v7379_v36, 0.0  ;;  %v7705_v2 = vadd.f32 %v15924_v13, %v7704_v14  ;;  %v10815_v56 = vpop.f32.mrb[201].mxu1  ;;  %10942 = vmatprep.subr.bf16.mxu0 %v10941_v11  ;;  %v8016_v11 = vld [vmem:[%s16189_s5 + $0x8] sm:$0xff]  ;;  %v11311_v14 = vmov 0.0|0.0  }
 0x72f   :  { %v7206_v47 = vpop.f32.mrb[40].mxu0  ;;  %v7707_v26 = vpop.f32.mrb[202].mxu1  ;;  %10944 = vmatpush3.bf16.msra.mxu0 %v15971_v48  ;;  %8088 = vmatprep.mubr.f32.mxu0 %v8016_v11 }
 0x730   :  { %v7501_v41 = vpack.c.bf16 %v7460_v0, %v7459_v58  ;;  %v7292_v24 = vadd.f32 %v7206_v47, %v15707_v27  ;;  %v7708_v37 = vadd.f32 %v15924_v13, %v7707_v26  ;;  %v10816_v52 = vpop.f32.mrb[203].mxu1  ;;  %v10747_v54 = vpop.f32.mrb[41].mxu0  ;;  %v7958_v21 = vmax.f32 %v7705_v2, 0.0 }
 0x731   :  { %v7209_v59 = vpop.f32.mrb[42].mxu0 }
 0x732   :  { %v7380_v62 = vadd.f32 %v15965_v9, %v7292_v24  ;;  %v7959_v12 = vmax.f32 %v7708_v37, 0.0  ;;  %10922 = vmatmul.mubr.bf16.gmra.mrb[52].mxu1 %v7501_v41  ;;  %v10748_v55 = vpop.f32.mrb[43].mxu0 }
 0x733   :  { %10925 = vmatprep.mubr.msk.bf16.mxu1 %vm11310_vm1, %v16229_v15 }
 0x734   :  { %v7461_v28 = vmax.f32 %v7380_v62, 0.0  ;;  %v10945_v20 = vpack.c.bf16 %v7959_v12, %v7958_v21 }
 0x735   :  { %v7712_v48 = vpop.f32.mrb[204].mxu1 }
 0x736   :  { %v7713_v45 = vadd.f32 %v15924_v13, %v7712_v48  ;;  %v10819_v27 = vpop.f32.mrb[205].mxu1  ;;  %10946 = vmatprep.subr.bf16.mxu0 %v10945_v20  ;;  %v7502_v8 = vpack.c.bf16 %v7461_v28, %v7461_v28 }
 0x737   :  { %v7715_v22 = vpop.f32.mrb[206].mxu1  ;;  %10948 = vmatpush3.bf16.msra.mxu0 %v15981_v29 }
 0x738   :  { %v7716_v18 = vadd.f32 %v15924_v13, %v7715_v22  ;;  %v10820_v9 = vpop.f32.mrb[207].mxu1  ;;  %v7960_v19 = vmax.f32 %v7713_v45, 0.0 }
 0x73a   :  { %v7961_v35 = vmax.f32 %v7716_v18, 0.0  ;;  %10926 = vmatmul.mubr.bf16.gmra.mrb[56].mxu1 %v7502_v8 }
 0x73c   :  { %v10949_v51 = vpack.c.bf16 %v7961_v35, %v7960_v19 }
 0x73d   :  { %v7720_v49 = vpop.f32.mrb[208].mxu1 }
 0x73e   :  { %v7721_v25 = vadd.f32 %v15924_v13, %v7720_v49  ;;  %v10823_v43 = vpop.f32.mrb[209].mxu1  ;;  %10950 = vmatprep.subr.bf16.mxu0 %v10949_v51 }
 0x73f   :  { %v7723_v23 = vpop.f32.mrb[210].mxu1  ;;  %10952 = vmatpush3.bf16.msra.mxu0 %v15991_v60 }
 0x740   :  { %v7724_v42 = vadd.f32 %v15924_v13, %v7723_v23  ;;  %v10824_v5 = vpop.f32.mrb[211].mxu1  ;;  %v7962_v29 = vmax.f32 %v7721_v25, 0.0  ;;  %v8018_v25 = vld [vmem:[%s16189_s5 + $0x18] sm:$0xff] }
 0x741   :  { %8158 = vmatprep.mubr.f32.mxu1 %v8018_v25 }
 0x742   :  { %v7963_v1 = vmax.f32 %v7724_v42, 0.0 }
 0x744   :  { %v10953_v39 = vpack.c.bf16 %v7963_v1, %v7962_v29 }
 0x745   :  { %v7728_v4 = vpop.f32.mrb[212].mxu1 }
 0x746   :  { %v7729_v6 = vadd.f32 %v15924_v13, %v7728_v4  ;;  %v10827_v53 = vpop.f32.mrb[213].mxu1  ;;  %10954 = vmatprep.subr.bf16.mxu0 %v10953_v39 }
 0x747   :  { %v7731_v17 = vpop.f32.mrb[214].mxu1  ;;  %10956 = vmatpush3.bf16.msra.mxu0 %v16001_v50 }
 0x748   :  { %v7732_v30 = vadd.f32 %v15924_v13, %v7731_v17  ;;  %v10828_v34 = vpop.f32.mrb[215].mxu1  ;;  %v7964_v10 = vmax.f32 %v7729_v6, 0.0 }
 0x74a   :  { %v7965_v38 = vmax.f32 %v7732_v30, 0.0 }
 0x74c   :  { %v10957_v60 = vpack.c.bf16 %v7965_v38, %v7964_v10 }
 0x74d   :  { %v7736_v57 = vpop.f32.mrb[216].mxu1 }
 0x74e   :  { %v7737_v3 = vadd.f32 %v15924_v13, %v7736_v57  ;;  %v10831_v7 = vpop.f32.mrb[217].mxu1  ;;  %10958 = vmatprep.subr.bf16.mxu0 %v10957_v60 }
 0x74f   :  { %v7739_v32 = vpop.f32.mrb[218].mxu1  ;;  %10960 = vmatpush3.bf16.msra.mxu0 %v16011_v63  ;;  %v8015_v63 = vld [vmem:[%s16189_s5] sm:$0xff] }
 0x750   :  { %v7740_v40 = vadd.f32 %v15924_v13, %v7739_v32  ;;  %v10832_v16 = vpop.f32.mrb[219].mxu1  ;;  %v7966_v33 = vmax.f32 %v7737_v3, 0.0  ;;  %10993 = vmatprep.subr.bf16.mxu0 %v11311_v14 }
 0x752   :  { %v7967_v44 = vmax.f32 %v7740_v40, 0.0  ;;  %8089 = vmatmul.mubr.f32.vlgmr.msra.gmra.mrb[44].mxu0 %v8015_v63 }
 0x754   :  { %v16068_v50 = vpack.c.bf16 %v7967_v44, %v7966_v33 }
 0x755   :  { %v7744_v31 = vpop.f32.mrb[220].mxu1 }
 0x756   :  { %v7745_v61 = vadd.f32 %v15924_v13, %v7744_v31  ;;  %v10835_v46 = vpop.f32.mrb[221].mxu1 }
 0x757   :  { %v7747_v36 = vpop.f32.mrb[222].mxu1 }
 0x758   :  { %v7748_v58 = vadd.f32 %v15924_v13, %v7747_v36  ;;  %v10836_v0 = vpop.f32.mrb[223].mxu1  ;;  %v7968_v2 = vmax.f32 %v7745_v61, 0.0 }
 0x75a   :  { %v7969_v56 = vmax.f32 %v7748_v58, 0.0 }
 0x75c   :  { %v16079_v47 = vpack.c.bf16 %v7969_v56, %v7968_v2 }
 0x75d   :  { %v7752_v26 = vpop.f32.mrb[224].mxu1 }
 0x75e   :  { %v7753_v41 = vadd.f32 %v15924_v13, %v7752_v26  ;;  %v10839_v24 = vpop.f32.mrb[225].mxu1 }
 0x75f   :  { %v7755_v37 = vpop.f32.mrb[226].mxu1 }
 0x760   :  { %v7756_v52 = vadd.f32 %v15924_v13, %v7755_v37  ;;  %v10840_v54 = vpop.f32.mrb[227].mxu1  ;;  %v7970_v59 = vmax.f32 %v7753_v41, 0.0 }
 0x762   :  { %v7971_v21 = vmax.f32 %v7756_v52, 0.0  ;;  %v8020_v52 = vld [vmem:[%s16189_s5 + $0x28] sm:$0xff] }
 0x763   :  { %8757 = vmatprep.mubr.msk.f32.mxu0 %vm642_vm3, %v8020_v52 }
 0x764   :  { %v16083_v62 = vpack.c.bf16 %v7971_v21, %v7970_v59 }
 0x765   :  { %v7760_v12 = vpop.f32.mrb[228].mxu1 }
 0x766   :  { %v7761_v55 = vadd.f32 %v15924_v13, %v7760_v12  ;;  %v10843_v28 = vpop.f32.mrb[229].mxu1 }
 0x767   :  { %v7763_v20 = vpop.f32.mrb[230].mxu1 }
 0x768   :  { %v7764_v48 = vadd.f32 %v15924_v13, %v7763_v20  ;;  %v10844_v45 = vpop.f32.mrb[231].mxu1  ;;  %v7972_v27 = vmax.f32 %v7761_v55, 0.0 }
 0x76a   :  { %v7973_v22 = vmax.f32 %v7764_v48, 0.0 }
 0x76c   :  { %v16087_v8 = vpack.c.bf16 %v7973_v22, %v7972_v27 }
 0x76d   :  { %v7768_v18 = vpop.f32.mrb[232].mxu1 }
 0x76e   :  { %v7769_v9 = vadd.f32 %v15924_v13, %v7768_v18  ;;  %v10847_v19 = vpop.f32.mrb[233].mxu1 }
 0x76f   :  { %v7771_v35 = vpop.f32.mrb[234].mxu1 }
 0x770   :  { %v7772_v51 = vadd.f32 %v15924_v13, %v7771_v35  ;;  %v10848_v49 = vpop.f32.mrb[235].mxu1  ;;  %v7974_v43 = vmax.f32 %v7769_v9, 0.0 }
 0x772   :  { %v7975_v23 = vmax.f32 %v7772_v51, 0.0 }
 0x774   :  { %v16094_v42 = vpack.c.bf16 %v7975_v23, %v7974_v43 }
 0x775   :  { %v7776_v5 = vpop.f32.mrb[236].mxu1 }
 0x776   :  { %v7777_v29 = vadd.f32 %v15924_v13, %v7776_v5  ;;  %v10851_v1 = vpop.f32.mrb[237].mxu1 }
 0x777   :  { %v7779_v39 = vpop.f32.mrb[238].mxu1 }
 0x778   :  { %v7780_v4 = vadd.f32 %v15924_v13, %v7779_v39  ;;  %v10852_v6 = vpop.f32.mrb[239].mxu1  ;;  %v7976_v53 = vmax.f32 %v7777_v29, 0.0 }
 0x77a   :  { %v7977_v17 = vmax.f32 %v7780_v4, 0.0 }
 0x77c   :  { %v16098_v30 = vpack.c.bf16 %v7977_v17, %v7976_v53 }
 0x77d   :  { %v7784_v34 = vpop.f32.mrb[240].mxu1 }
 0x77e   :  { %v7785_v10 = vadd.f32 %v15924_v13, %v7784_v34  ;;  %v10855_v38 = vpop.f32.mrb[241].mxu1 }
 0x77f   :  { %v7787_v60 = vpop.f32.mrb[242].mxu1 }
 0x780   :  { %v7788_v57 = vadd.f32 %v15924_v13, %v7787_v60  ;;  %v10856_v3 = vpop.f32.mrb[243].mxu1  ;;  %v7978_v7 = vmax.f32 %v7785_v10, 0.0 }
 0x782   :  { %v7979_v32 = vmax.f32 %v7788_v57, 0.0 }
 0x784   :  { %v16102_v40 = vpack.c.bf16 %v7979_v32, %v7978_v7 }
 0x785   :  { %v7792_v16 = vpop.f32.mrb[244].mxu1 }
 0x786   :  { %v7793_v33 = vadd.f32 %v15924_v13, %v7792_v16  ;;  %v10859_v44 = vpop.f32.mrb[245].mxu1 }
 0x787   :  { %v7795_v31 = vpop.f32.mrb[246].mxu1 }
 0x788   :  { %v7796_v61 = vadd.f32 %v15924_v13, %v7795_v31  ;;  %v10860_v46 = vpop.f32.mrb[247].mxu1  ;;  %v7980_v11 = vmax.f32 %v7793_v33, 0.0 }
 0x78a   :  { %v7981_v36 = vmax.f32 %v7796_v61, 0.0 }
 0x78c   :  { %v16106_v63 = vpack.c.bf16 %v7981_v36, %v7980_v11 }
 0x78d   :  { %v7800_v58 = vpop.f32.mrb[248].mxu1 }
 0x78e   :  { %v7801_v0 = vadd.f32 %v15924_v13, %v7800_v58  ;;  %v10863_v2 = vpop.f32.mrb[249].mxu1 }
 0x78f   :  { %v7803_v56 = vpop.f32.mrb[250].mxu1 }
 0x790   :  { %v7804_v26 = vadd.f32 %v15924_v13, %v7803_v56  ;;  %v10864_v41 = vpop.f32.mrb[251].mxu1  ;;  %v7982_v24 = vmax.f32 %v7801_v0, 0.0 }
 0x792   :  { %v7983_v37 = vmax.f32 %v7804_v26, 0.0 }
 0x794   :  { %v10961_v54 = vpack.c.bf16 %v7983_v37, %v7982_v24 }
 0x795   :  { %v7808_v59 = vpop.f32.mrb[252].mxu1 }
 0x796   :  { %v7809_v21 = vadd.f32 %v15924_v13, %v7808_v59  ;;  %v10867_v12 = vpop.f32.mrb[253].mxu1  ;;  %10962 = vmatprep.subr.bf16.mxu1 %v10961_v54 }
 0x797   :  { %v7811_v55 = vpop.f32.mrb[254].mxu1  ;;  %10964 = vmatpush3.bf16.msra.mxu1 %v16068_v50 }
 0x798   :  { %v7812_v28 = vadd.f32 %v15924_v13, %v7811_v55  ;;  %v10868_v20 = vpop.f32.mrb[255].mxu1  ;;  %v7984_v48 = vmax.f32 %v7809_v21, 0.0 }
 0x79a   :  { %v7985_v45 = vmax.f32 %v7812_v28, 0.0 }
 0x79c   :  { %v10965_v27 = vpack.c.bf16 %v7985_v45, %v7984_v48 }
 0x79d   :  { %v7816_v22 = vpop.f32.mrb[0].mxu1 }
 0x79e   :  { %v7817_v18 = vadd.f32 %v15924_v13, %v7816_v22  ;;  %v10871_v9 = vpop.f32.mrb[1].mxu1  ;;  %10966 = vmatprep.subr.bf16.mxu1 %v10965_v27  ;;  %v8017_v27 = vld [vmem:[%s16189_s5 + $0x10] sm:$0xff] }
 0x79f   :  { %v7819_v19 = vpop.f32.mrb[2].mxu1  ;;  %10968 = vmatpush3.bf16.msra.mxu1 %v16079_v47 }
 0x7a0   :  { %v7820_v35 = vadd.f32 %v15924_v13, %v7819_v19  ;;  %v10872_v51 = vpop.f32.mrb[3].mxu1  ;;  %v7986_v49 = vmax.f32 %v7817_v18, 0.0 }
 0x7a1   :  { %v16144_v51 = vld [vmem:[%s16188_s4] ss:$0 sm:$0xff] }
 0x7a2   :  { %v7987_v25 = vmax.f32 %v7820_v35, 0.0 }
 0x7a4   :  { %v10969_v50 = vpack.c.bf16 %v7987_v25, %v7986_v49 }
 0x7a5   :  { %v7824_v43 = vpop.f32.mrb[4].mxu1 }
 0x7a6   :  { %v7825_v23 = vadd.f32 %v15924_v13, %v7824_v43  ;;  %v10875_v5 = vpop.f32.mrb[5].mxu1  ;;  %10970 = vmatprep.subr.bf16.mxu1 %v10969_v50 }
 0x7a7   :  { %v7827_v29 = vpop.f32.mrb[6].mxu1  ;;  %10972 = vmatpush3.bf16.msra.mxu1 %v16083_v62 }
 0x7a8   :  { %v7828_v1 = vadd.f32 %v15924_v13, %v7827_v29  ;;  %v10876_v39 = vpop.f32.mrb[7].mxu1  ;;  %v7988_v4 = vmax.f32 %v7825_v23, 0.0 }
 0x7aa   :  { %v7989_v6 = vmax.f32 %v7828_v1, 0.0 }
 0x7ac   :  { %v10973_v47 = vpack.c.bf16 %v7989_v6, %v7988_v4 }
 0x7ad   :  { %v7832_v53 = vpop.f32.mrb[8].mxu1 }
 0x7ae   :  { %v7833_v17 = vadd.f32 %v15924_v13, %v7832_v53  ;;  %v10879_v34 = vpop.f32.mrb[9].mxu1  ;;  %10974 = vmatprep.subr.bf16.mxu1 %v10973_v47 }
 0x7af   :  { %v7835_v10 = vpop.f32.mrb[10].mxu1  ;;  %10976 = vmatpush3.bf16.msra.mxu1 %v16087_v8 }
 0x7b0   :  { %v7836_v38 = vadd.f32 %v15924_v13, %v7835_v10  ;;  %v10880_v60 = vpop.f32.mrb[11].mxu1  ;;  %v7990_v57 = vmax.f32 %v7833_v17, 0.0 }
 0x7b2   :  { %v7991_v3 = vmax.f32 %v7836_v38, 0.0 }
 0x7b4   :  { %v10977_v62 = vpack.c.bf16 %v7991_v3, %v7990_v57 }
 0x7b5   :  { %v7840_v7 = vpop.f32.mrb[12].mxu1 }
 0x7b6   :  { %v7841_v32 = vadd.f32 %v15924_v13, %v7840_v7  ;;  %v10883_v16 = vpop.f32.mrb[13].mxu1  ;;  %10978 = vmatprep.subr.bf16.mxu1 %v10977_v62 }
 0x7b7   :  { %v7843_v33 = vpop.f32.mrb[14].mxu1  ;;  %10980 = vmatpush3.bf16.msra.mxu1 %v16094_v42 }
 0x7b8   :  { %v7844_v44 = vadd.f32 %v15924_v13, %v7843_v33  ;;  %v10884_v31 = vpop.f32.mrb[15].mxu1  ;;  %v7992_v61 = vmax.f32 %v7841_v32, 0.0 }
 0x7ba   :  { %v7993_v46 = vmax.f32 %v7844_v44, 0.0 }
 0x7bc   :  { %v10981_v8 = vpack.c.bf16 %v7993_v46, %v7992_v61 }
 0x7bd   :  { %v7848_v11 = vpop.f32.mrb[16].mxu1 }
 0x7be   :  { %v7849_v36 = vadd.f32 %v15924_v13, %v7848_v11  ;;  %v10887_v58 = vpop.f32.mrb[17].mxu1  ;;  %10982 = vmatprep.subr.bf16.mxu1 %v10981_v8 }
 0x7bf   :  { %v7851_v0 = vpop.f32.mrb[18].mxu1  ;;  %10984 = vmatpush3.bf16.msra.mxu1 %v16098_v30 }
 0x7c0   :  { %v7852_v2 = vadd.f32 %v15924_v13, %v7851_v0  ;;  %v10888_v56 = vpop.f32.mrb[19].mxu1  ;;  %v7994_v26 = vmax.f32 %v7849_v36, 0.0 }
 0x7c2   :  { %v7995_v41 = vmax.f32 %v7852_v2, 0.0 }
 0x7c4   :  { %v10985_v42 = vpack.c.bf16 %v7995_v41, %v7994_v26 }
 0x7c5   :  { %v7856_v24 = vpop.f32.mrb[20].mxu1 }
 0x7c6   :  { %v7857_v37 = vadd.f32 %v15924_v13, %v7856_v24  ;;  %v10891_v52 = vpop.f32.mrb[21].mxu1  ;;  %10986 = vmatprep.subr.bf16.mxu1 %v10985_v42 }
 0x7c7   :  { %v7859_v54 = vpop.f32.mrb[22].mxu1  ;;  %10988 = vmatpush3.bf16.msra.mxu1 %v16102_v40 }
 0x7c8   :  { %v7860_v59 = vadd.f32 %v15924_v13, %v7859_v54  ;;  %v10892_v21 = vpop.f32.mrb[23].mxu1  ;;  %v7996_v12 = vmax.f32 %v7857_v37, 0.0 }
 0x7ca   :  { %v7997_v55 = vmax.f32 %v7860_v59, 0.0 }
 0x7cc   :  { %v10989_v30 = vpack.c.bf16 %v7997_v55, %v7996_v12 }
 0x7cd   :  { %v7864_v28 = vpop.f32.mrb[24].mxu1 }
 0x7ce   :  { %v7865_v20 = vadd.f32 %v15924_v13, %v7864_v28  ;;  %v10895_v48 = vpop.f32.mrb[25].mxu1  ;;  %10990 = vmatprep.subr.bf16.mxu1 %v10989_v30 }
 0x7cf   :  { %v7867_v45 = vpop.f32.mrb[26].mxu1  ;;  %10992 = vmatpush3.bf16.msra.mxu1 %v16106_v63 }
 0x7d0   :  { %v7868_v40 = vadd.f32 %v15924_v13, %v7867_v45  ;;  %v10896_v22 = vpop.f32.mrb[27].mxu1  ;;  %v7998_v18 = vmax.f32 %v7865_v20, 0.0 }
 0x7d2   :  { %v7999_v9 = vmax.f32 %v7868_v40, 0.0  ;;  %8159 = vmatmul.mubr.f32.vlgmr.msra.gmra.mrb[60].mxu1 %v8017_v27 }
 0x7d4   :  { %v10994_v19 = vpack.c.bf16 %v7999_v9, %v7998_v18 }
 0x7d5   :  { %v7872_v35 = vpop.f32.mrb[28].mxu1 }
 0x7d6   :  { %v7873_v49 = vadd.f32 %v16144_v51, %v7872_v35  ;;  %v10899_v63 = vpop.f32.mrb[29].mxu1  ;;  %10995 = vmatpush1.bf16.msra.mxu0 %v10994_v19 }
 0x7d7   :  { %v7875_v25 = vpop.f32.mrb[30].mxu1  ;;  %10996 = vmatprep.subr.bf16.mxu0 %v11311_v14 }
 0x7d8   :  { %v7876_v13 = vadd.f32 %v16144_v51, %v7875_v25  ;;  %v10900_v50 = vpop.f32.mrb[31].mxu1  ;;  %v8000_v43 = vmax.f32 %v7873_v49, 0.0 }
 0x7da   :  { %v8001_v23 = vmax.f32 %v7876_v13, 0.0 }
 0x7dc   :  { %v10997_v5 = vpack.c.bf16 %v8001_v23, %v8000_v43 }
 0x7dd   :  { %v7880_v29 = vpop.f32.mrb[32].mxu1 }
 0x7de   :  { %v7881_v1 = vadd.f32 %v16144_v51, %v7880_v29  ;;  %v10903_v39 = vpop.f32.mrb[33].mxu1  ;;  %10998 = vmatpush1.bf16.msra.mxu0 %v10997_v5 }
 0x7df   :  { %v7883_v4 = vpop.f32.mrb[34].mxu1  ;;  %10999 = vmatprep.subr.bf16.mxu0 %v11311_v14 }
 0x7e0   :  { %v7884_v6 = vadd.f32 %v16144_v51, %v7883_v4  ;;  %v10904_v47 = vpop.f32.mrb[35].mxu1  ;;  %v8002_v53 = vmax.f32 %v7881_v1, 0.0 }
 0x7e2   :  { %v8003_v17 = vmax.f32 %v7884_v6, 0.0 }
 0x7e4   :  { %v11000_v34 = vpack.c.bf16 %v8003_v17, %v8002_v53 }
 0x7e5   :  { %v7888_v10 = vpop.f32.mrb[36].mxu1 }
 0x7e6   :  { %v7889_v38 = vadd.f32 %v16144_v51, %v7888_v10  ;;  %v10907_v60 = vpop.f32.mrb[37].mxu1  ;;  %11001 = vmatpush1.bf16.msra.mxu0 %v11000_v34 }
 0x7e7   :  { %v7891_v57 = vpop.f32.mrb[38].mxu1  ;;  %11002 = vmatprep.subr.bf16.mxu0 %v11311_v14 }
 0x7e8   :  { %v7892_v3 = vadd.f32 %v16144_v51, %v7891_v57  ;;  %v10908_v62 = vpop.f32.mrb[39].mxu1  ;;  %v8004_v7 = vmax.f32 %v7889_v38, 0.0 }
 0x7ea   :  { %v8005_v32 = vmax.f32 %v7892_v3, 0.0 }
 0x7ec   :  { %v11003_v16 = vpack.c.bf16 %v8005_v32, %v8004_v7 }
 0x7ed   :  { %v7896_v33 = vpop.f32.mrb[40].mxu1 }
 0x7ee   :  { %v7897_v44 = vadd.f32 %v16144_v51, %v7896_v33  ;;  %v10911_v31 = vpop.f32.mrb[41].mxu1  ;;  %11004 = vmatpush1.bf16.msra.mxu0 %v11003_v16 }
 0x7ef   :  { %v7899_v61 = vpop.f32.mrb[42].mxu1  ;;  %11005 = vmatprep.subr.bf16.mxu0 %v11311_v14 }
 0x7f0   :  { %v7900_v46 = vadd.f32 %v16144_v51, %v7899_v61  ;;  %v10912_v8 = vpop.f32.mrb[43].mxu1  ;;  %v8006_v11 = vmax.f32 %v7897_v44, 0.0 }
 0x7f2   :  { %v8007_v36 = vmax.f32 %v7900_v46, 0.0 }
 0x7f4   :  { %v11006_v58 = vpack.c.bf16 %v8007_v36, %v8006_v11 }
 0x7f5   :  { %v7904_v0 = vpop.f32.mrb[44].mxu1 }
 0x7f6   :  { %v7905_v2 = vadd.f32 %v16144_v51, %v7904_v0  ;;  %v10915_v56 = vpop.f32.mrb[45].mxu1  ;;  %11007 = vmatpush1.bf16.msra.mxu0 %v11006_v58 }
 0x7f7   :  { %v7907_v26 = vpop.f32.mrb[46].mxu1  ;;  %11008 = vmatprep.subr.bf16.mxu0 %v11311_v14 }
 0x7f8   :  { %v7908_v41 = vadd.f32 %v16144_v51, %v7907_v26  ;;  %v10916_v42 = vpop.f32.mrb[47].mxu1  ;;  %v8008_v24 = vmax.f32 %v7905_v2, 0.0 }
 0x7fa   :  { %v8009_v37 = vmax.f32 %v7908_v41, 0.0 }
 0x7fc   :  { %v11009_v52 = vpack.c.bf16 %v8009_v37, %v8008_v24 }
 0x7fd   :  { %v7912_v54 = vpop.f32.mrb[48].mxu1 }
 0x7fe   :  { %v7913_v59 = vadd.f32 %v16144_v51, %v7912_v54  ;;  %v10919_v21 = vpop.f32.mrb[49].mxu1  ;;  %11010 = vmatpush1.bf16.msra.mxu0 %v11009_v52 }
 0x7ff   :  { %v7915_v12 = vpop.f32.mrb[50].mxu1  ;;  %11011 = vmatprep.subr.bf16.mxu0 %v11311_v14 }
 0x800   :  { %v7916_v55 = vadd.f32 %v16144_v51, %v7915_v12  ;;  %v10920_v30 = vpop.f32.mrb[51].mxu1  ;;  %v8010_v28 = vmax.f32 %v7913_v59, 0.0 }
 0x802   :  { %v8011_v20 = vmax.f32 %v7916_v55, 0.0 }
 0x804   :  { %v11012_v48 = vpack.c.bf16 %v8011_v20, %v8010_v28 }
 0x805   :  { %v7920_v45 = vpop.f32.mrb[52].mxu1 }
 0x806   :  { %v7921_v27 = vadd.f32 %v16144_v51, %v7920_v45  ;;  %v10923_v40 = vpop.f32.mrb[53].mxu1  ;;  %11013 = vmatpush1.bf16.msra.mxu0 %v11012_v48 }
 0x807   :  { %v7923_v22 = vpop.f32.mrb[54].mxu1  ;;  %11014 = vmatprep.subr.bf16.mxu0 %v11311_v14  ;;  %v8019_v14 = vld [vmem:[%s16189_s5 + $0x20] sm:$0xff] }
 0x808   :  { %v7924_v18 = vadd.f32 %v16144_v51, %v7923_v22  ;;  %v10924_v9 = vpop.f32.mrb[55].mxu1  ;;  %v8012_v19 = vmax.f32 %v7921_v27, 0.0 }
 0x80a   :  { %v8013_v35 = vmax.f32 %v7924_v18, 0.0 }
 0x80c   :  { %v11015_v49 = vpack.c.bf16 %v8013_v35, %v8012_v19 }
 0x80d   :  { %v7928_v63 = vpop.f32.mrb[56].mxu1 }
 0x80e   :  { %v7929_v25 = vadd.f32 %v16144_v51, %v7928_v63  ;;  %v10927_v13 = vpop.f32.mrb[57].mxu1  ;;  %11016 = vmatpush1.bf16.msra.mxu0 %v11015_v49 }
 0x80f   :  { %v7931_v50 = vpop.f32.mrb[58].mxu1  ;;  %8196 = vmatprep.subr.mxu0 %v16229_v15 }
 0x810   :  { %v8014_v43 = vmax.f32 %v7929_v25, 0.0  ;;  %v10928_v23 = vpop.f32.mrb[59].mxu1 }
 0x812   :  { %8197 = vmatpush1.msra.mxu0 %v8014_v43 }
 0x813   :  { %8229 = vmatmul.mubr.f32.vlgmr.msra.gmra.mrb[46].mxu0 %v8019_v14 }
 0x825   :  { %v9217_v5 = vpop.f32.mrb[44].mxu0 }
 0x826   :  { %v9218_v29 = vpop.f32.mrb[45].mxu0 }
 0x827   :  { %v9219_v1 = vadd.f32 %v9218_v29, %v9217_v5 }
 0x8a5   :  { %v9252_v39 = vpop.f32.mrb[60].mxu1 }
 0x8a6   :  { %v9253_v4 = vpop.f32.mrb[61].mxu1 }
 0x8a7   :  { %v9254_v6 = vadd.f32 %v9253_v4, %v9252_v39 }
 0x8a9   :  { %v8161_v51 = vadd.f32 %v9254_v6, %v9219_v1 }
 0x8e6   :  { %v8230_v47 = vpop.f32.mrb[46].mxu0 }
 0x8e7   :  { %v8231_v53 = vadd.f32 %v8230_v47, %v8161_v51  ;;  %v8232_v15 = vpop.f32.mrb[47].mxu0 }
 0x8e9   :  { %8234 = vst [vmem:[#allocation2] sm:$0xff] %v8231_v53 }
 0x8ea   :  { %11296 = shalt.err (!%p11293_p4)
}
 0x8eb   :  { %s11297_s27 = scalar_lea.hbm %s16190_s6, 128 }
 0x8ec   :  { %p11298_p5 = scmp.ne.s32.totalorder %s16190_s6, %s11297_s27  ;;  %p11301_p6 = scmp.lt.u32.totalorder %s11297_s27, %s16190_s6 }
 0x8ee   :  { %p11303_p7 = pnand %p11301_p6, %p11298_p5 }
 0x8f0   :  { %11306 = shalt.err (!%p11303_p7)
}
 0x8f1   :  { %8244 = dma.vmem_to_hbm [thread:$0]  %s8242_s25, 128, %s16190_s6, [#allocation3]  }
 0x8f2   :  { %11307 = dma.done.wait [#allocation3], 128  }
 0x8f3   :  { %11308 = vsyncadd [#allocation3], 4294967168 }
 0x8f4   :  { %8248 = vsyncpa [#allocation3], 1 }

</bundles_post_ra>
